<compile_context>
chip_gen: v7x
topology: tpu7x:2x2x1
jax: 0.10.0
libtpu: 0.0.40
codegen_flags: <defaults>
</compile_context>

<pallas_src>
import functools

import numpy as np
import jax
import jax.numpy as jnp
from jax.experimental import pallas as pl
from jax.experimental.pallas import tpu as pltpu

F32 = jnp.float32
BF16 = jnp.bfloat16


# ---------------------------------------------------------------------------
# Per-generation VMEM budget (v7x has only 64 MiB / TC, v5e/v6e have 128 MiB).
# ---------------------------------------------------------------------------
def _vmem_limit_bytes():
    try:
        cap = int(pltpu.get_tpu_info().vmem_capacity_bytes)
    except Exception:
        cap = 64 * 1024 * 1024  # conservative fallback = v7x physical VMEM/TC
    # leave headroom for double buffers; never request more than ~100 MiB
    return min((cap * 3) // 4, 100 * 1024 * 1024)


_VMEM_LIMIT = _vmem_limit_bytes()


def _cparams(semantics):
    return pltpu.CompilerParams(dimension_semantics=semantics,
                                vmem_limit_bytes=_VMEM_LIMIT)


def _pick_tile(n, cap=512):
    """Largest 8-aligned divisor of n that is <= cap; n itself if n <= cap."""
    if n <= cap:
        return n
    for t in range(cap, 7, -1):
        if n % t == 0 and t % 8 == 0:
            return t
    # No 8-aligned divisor <= cap: fall back to the full extent (always
    # correct; only hit for pathological M).
    return n


def _pick_channel_tile(c, cap=512):
    """128-aligned channel tile for the conv head (bounds VMEM on v7x)."""
    if c <= cap:
        return c
    for t in (512, 384, 256, 128):
        if c % t == 0:
            return t
    return c


def _lstm_lane_tile(hd):
    """Per-generation LSTM hidden tile: largest 128-multiple divisor of hd
    whose double-buffered (hd, 4*tn) bf16 whh tile fits the VMEM budget.
    hidden=3456 -> 1152 on v5e/v6e (128 MiB VMEM), 384 on v7x (64 MiB)."""
    if hd % 128 != 0:
        return hd  # small / awkward hidden sizes: single tile
    cands = sorted({t for t in range(128, hd + 1, 128) if hd % t == 0},
                   reverse=True)
    for t in cands:
        whh_buf_bytes = 2 * hd * 4 * t * 2  # bf16, double-buffered
        if whh_buf_bytes + (8 << 20) <= _VMEM_LIMIT:
            return t
    return cands[-1]


# ---------------------------------------------------------------------------
# Kernel 1: fused backbone stand-in.
#   patches(M, 192) -> "layer3"(M,1024) -> "layer4"(M,2048) -> "ASPP"(M,256)
# One pallas_call, M-tiled grid; intermediates never round-trip through HBM
# and are emitted in bf16 (halves the backbone<->conv-head HBM traffic).
# ---------------------------------------------------------------------------
def _backbone_kernel(x_ref, w1_ref, b1_ref, w2_ref, b2_ref, w3_ref, b3_ref,
                     f3_ref, f4_ref, fa_ref):
    x = x_ref[...].astype(BF16)
    f3 = jnp.maximum(
        jnp.dot(x, w1_ref[...], preferred_element_type=jnp.float32)
        + b1_ref[...], 0.0)
    f3_ref[...] = f3.astype(BF16)
    f4 = jnp.maximum(
        jnp.dot(f3.astype(BF16), w2_ref[...], preferred_element_type=jnp.float32)
        + b2_ref[...], 0.0)
    f4_ref[...] = f4.astype(BF16)
    fa = jnp.maximum(
        jnp.dot(f4.astype(BF16), w3_ref[...], preferred_element_type=jnp.float32)
        + b3_ref[...], 0.0)
    fa_ref[...] = fa.astype(BF16)


def backbone_fused(patches, p):
    M, Cin = patches.shape
    C1 = p['stem_w'].shape[1]
    C2 = p['l4_w'].shape[1]
    C3 = p['aspp_w'].shape[1]
    tm = _pick_tile(M)
    # TODO(synk): the grid-invariant weight/bias inputs could use
    # pipeline_mode=pl.Buffered(1) to drop their second (unused) VMEM buffer.
    return pl.pallas_call(
        _backbone_kernel,
        out_shape=(jax.ShapeDtypeStruct((M, C1), BF16),
                   jax.ShapeDtypeStruct((M, C2), BF16),
                   jax.ShapeDtypeStruct((M, C3), BF16)),
        grid=(M // tm,),
        in_specs=[
            pl.BlockSpec((tm, Cin), lambda i: (i, 0)),
            pl.BlockSpec((Cin, C1), lambda i: (0, 0)),
            pl.BlockSpec((1, C1), lambda i: (0, 0)),
            pl.BlockSpec((C1, C2), lambda i: (0, 0)),
            pl.BlockSpec((1, C2), lambda i: (0, 0)),
            pl.BlockSpec((C2, C3), lambda i: (0, 0)),
            pl.BlockSpec((1, C3), lambda i: (0, 0)),
        ],
        out_specs=(
            pl.BlockSpec((tm, C1), lambda i: (i, 0)),
            pl.BlockSpec((tm, C2), lambda i: (i, 0)),
            pl.BlockSpec((tm, C3), lambda i: (i, 0)),
        ),
        compiler_params=_cparams(("parallel",)),
    )(patches, p['stem_w'], p['stem_b'], p['l4_w'], p['l4_b'],
      p['aspp_w'], p['aspp_b'])


# ---------------------------------------------------------------------------
# Kernel 2: conv_layer head = Conv2d(Cin->64, k=3, pad=1) + BatchNorm2d(64)
#           (eval mode, folded into the conv weights/bias at prep time)
#           + AdaptiveMaxPool2d(1).
# Grid = (batch, Cin tiles): channel tiling bounds the per-step VMEM footprint
# (input block, bf16 pad scratch, weight tile) so the kernel fits v7x's 64 MiB
# VMEM even for Cin=2048 feature maps.  The 9 taps' (BN-folded) weights are
# stacked along N into one (ctile, 576) bf16 matmul per step; the tap outputs
# are combined with 9 shifted VPU adds into an (L, 64) f32 accumulator that
# persists across channel tiles.  Padding borders are zeroed once per batch
# (full-row stores only, no masked packed stores); padding columns are masked
# with -inf before the global max.
# TODO(synk): for extreme H*W the (L, 64) accumulator could additionally be
# row-strip tiled with a 2-row halo and a running max; not needed at
# output-stride-8 feature-map sizes.
# ---------------------------------------------------------------------------
def _conv_bn_gmp_kernel(x_ref, w_ref, b_ref, o_ref, pad_ref, acc_ref, *, n_ct):
    # x_ref: (1, H, W, ctile) bf16    w_ref: (ctile, 576) bf16 (taps stacked)
    # b_ref: (1, 64) f32 (BN folded)  o_ref: (1, 64) f32
    # pad_ref: (H+3, W+2, ctile) bf16 scratch   acc_ref: (H*(W+2), 64) f32
    H, W, ctile = x_ref.shape[1], x_ref.shape[2], x_ref.shape[3]
    Wp = W + 2
    L = H * Wp
    Lfull = (H + 3) * Wp
    ct = pl.program_id(1)

    @pl.when(ct == 0)
    def _init():
        acc_ref[...] = jnp.zeros_like(acc_ref)
        # zero only the border / slack rows; interior rows are fully
        # overwritten below every step (full-row stores, never masked).
        pad_ref[0:1, :, :] = jnp.zeros((1, Wp, ctile), pad_ref.dtype)
        pad_ref[H + 1:H + 3, :, :] = jnp.zeros((2, Wp, ctile), pad_ref.dtype)

    xb = x_ref[0].astype(pad_ref.dtype)                       # (H, W, ctile)
    zcol = jnp.zeros((H, 1, ctile), pad_ref.dtype)
    pad_ref[1:H + 1, :, :] = jnp.concatenate([zcol, xb, zcol], axis=1)

    xf = pad_ref[...].reshape(Lfull, ctile)                   # flatten once
    y = jnp.dot(xf, w_ref[...], preferred_element_type=jnp.float32)  # (Lfull,576)

    acc = acc_ref[...]
    for di in range(3):
        for dj in range(3):
            t = di * 3 + dj
            s = di * Wp + dj
            acc = acc + y[s:s + L, t * 64:(t + 1) * 64]
    acc_ref[...] = acc

    @pl.when(ct == n_ct - 1)
    def _finalize():
        v = acc_ref[...] + b_ref[...]                          # conv+BN bias
        col = jax.lax.broadcasted_iota(jnp.int32, (L, 1), 0) % Wp
        v = jnp.where(col < W, v, -jnp.inf)                    # mask pad cols
        o_ref[...] = jnp.max(v, axis=0, keepdims=True)         # AdaptiveMaxPool2d(1)


def conv_bn_gmp(x_nhwc, w_stacked, b):
    B, H, W, Cin = x_nhwc.shape
    ctile = _pick_channel_tile(Cin)
    n_ct = Cin // ctile
    L = H * (W + 2)
    kernel = functools.partial(_conv_bn_gmp_kernel, n_ct=n_ct)
    return pl.pallas_call(
        kernel,
        out_shape=jax.ShapeDtypeStruct((B, 64), F32),
        grid=(B, n_ct),
        in_specs=[
            pl.BlockSpec((1, H, W, ctile), lambda b_, c: (b_, 0, 0, c)),
            pl.BlockSpec((ctile, 9 * 64), lambda b_, c: (c, 0)),
            pl.BlockSpec((1, 64), lambda b_, c: (0, 0)),
        ],
        out_specs=pl.BlockSpec((1, 64), lambda b_, c: (b_, 0)),
        scratch_shapes=[pltpu.VMEM((H + 3, W + 2, ctile), BF16),
                        pltpu.VMEM((L, 64), F32)],
        compiler_params=_cparams(("parallel", "arbitrary")),
    )(x_nhwc, w_stacked, b)


# ---------------------------------------------------------------------------
# Kernel 3: single-layer LSTM (PyTorch gate order i, f, g, o), seq_len = 3.
# Weights are pre-tiled in HBM as (n_tiles, K, 4*tn) with the 4 gates fused
# along N, so each grid step issues ONE contiguous whh DMA and 2 matmuls
# (x-path + h-path) instead of 8.  tn is picked per TPU generation by
# _lstm_lane_tile.  The t=0 step uses a separate kernel with no h @ whh matmul
# and no whh DMA at all (h0 = 0), removing 1/3 of the dominant HBM traffic.
# TODO(synk): whh could additionally be stored 8-bit (int8 on v5e/v6e, fp8 on
# v7x) and widened in-kernel to halve the bandwidth-bound stream.
# ---------------------------------------------------------------------------
def _lstm_step0_kernel(x_ref, wih_ref, b_ref, hn_ref, cn_ref, *, tn):
    # x_ref: (B, D)  wih_ref: (D, 4*tn) bf16  b_ref: (1, 4*tn) f32
    x = x_ref[...].astype(BF16)
    z = jnp.dot(x, wih_ref[...], preferred_element_type=jnp.float32) + b_ref[...]
    i_g = jax.nn.sigmoid(z[:, 0 * tn:1 * tn])
    # forget gate skipped: c_prev == 0 so f * c_prev == 0
    g_g = jnp.tanh(z[:, 2 * tn:3 * tn])
    o_g = jax.nn.sigmoid(z[:, 3 * tn:4 * tn])
    c = i_g * g_g
    cn_ref[...] = c
    hn_ref[...] = o_g * jnp.tanh(c)


def _lstm_step_kernel(x_ref, h_ref, c_ref, wih_ref, whh_ref, b_ref,
                      hn_ref, cn_ref, *, tn):
    # x_ref: (B, D)  h_ref: (B, Hd)  c_ref: (B, tn)
    # wih_ref: (D, 4*tn) bf16   whh_ref: (Hd, 4*tn) bf16   b_ref: (1, 4*tn)
    x = x_ref[...].astype(BF16)
    h = h_ref[...].astype(BF16)
    z = (jnp.dot(x, wih_ref[...], preferred_element_type=jnp.float32)
         + jnp.dot(h, whh_ref[...], preferred_element_type=jnp.float32)
         + b_ref[...])
    i_g = jax.nn.sigmoid(z[:, 0 * tn:1 * tn])
    f_g = jax.nn.sigmoid(z[:, 1 * tn:2 * tn])
    g_g = jnp.tanh(z[:, 2 * tn:3 * tn])
    o_g = jax.nn.sigmoid(z[:, 3 * tn:4 * tn])
    c = f_g * c_ref[...] + i_g * g_g
    cn_ref[...] = c
    hn_ref[...] = o_g * jnp.tanh(c)


def lstm_step_first(x_t, wih_t, bias_t):
    B, D = x_t.shape
    nt, _, four_tn = wih_t.shape
    tn = four_tn // 4
    Hd = nt * tn
    kernel = functools.partial(_lstm_step0_kernel, tn=tn)
    return pl.pallas_call(
        kernel,
        out_shape=(jax.ShapeDtypeStruct((B, Hd), F32),
                   jax.ShapeDtypeStruct((B, Hd), F32)),
        grid=(nt,),
        in_specs=[
            pl.BlockSpec((B, D), lambda n: (0, 0)),
            pl.BlockSpec((None, D, four_tn), lambda n: (n, 0, 0)),
            pl.BlockSpec((None, 1, four_tn), lambda n: (n, 0, 0)),
        ],
        out_specs=(pl.BlockSpec((B, tn), lambda n: (0, n)),
                   pl.BlockSpec((B, tn), lambda n: (0, n))),
        compiler_params=_cparams(("parallel",)),
    )(x_t, wih_t, bias_t)


def lstm_step(x_t, h_prev, c_prev, wih_t, whh_t, bias_t):
    B, D = x_t.shape
    nt, Hd, four_tn = whh_t.shape
    tn = four_tn // 4
    Hd = nt * tn
    kernel = functools.partial(_lstm_step_kernel, tn=tn)
    return pl.pallas_call(
        kernel,
        out_shape=(jax.ShapeDtypeStruct((B, Hd), F32),
                   jax.ShapeDtypeStruct((B, Hd), F32)),
        grid=(nt,),
        in_specs=[
            pl.BlockSpec((B, D), lambda n: (0, 0)),
            pl.BlockSpec((B, Hd), lambda n: (0, 0)),
            pl.BlockSpec((B, tn), lambda n: (0, n)),
            pl.BlockSpec((None, D, four_tn), lambda n: (n, 0, 0)),
            pl.BlockSpec((None, Hd, four_tn), lambda n: (n, 0, 0)),  # contiguous tile
            pl.BlockSpec((None, 1, four_tn), lambda n: (n, 0, 0)),
        ],
        out_specs=(pl.BlockSpec((B, tn), lambda n: (0, n)),
                   pl.BlockSpec((B, tn), lambda n: (0, n))),
        compiler_params=_cparams(("parallel",)),
    )(x_t, h_prev, c_prev, wih_t, whh_t, bias_t)


# ---------------------------------------------------------------------------
# Kernel 4: bilinear interpolation (align_corners=False) fused into one kernel:
# per (batch*class) plane, out = R_h @ x @ R_w^T with bf16 MXU matmuls and f32
# accumulation.  No XLA transposes / HBM round-trips of the intermediate.
# ---------------------------------------------------------------------------
def _bilinear_kernel(x_ref, rh_ref, rwt_ref, o_ref):
    # x_ref: (1, h, w) bf16   rh_ref: (H, h) bf16   rwt_ref: (w, W) bf16
    t = jnp.dot(rh_ref[...], x_ref[0], preferred_element_type=jnp.float32)   # (H, w)
    o_ref[0] = jnp.dot(t.astype(BF16), rwt_ref[...],
                       preferred_element_type=jnp.float32)                   # (H, W)


def _bilinear_matrix(out_size, in_size):
    # PyTorch F.interpolate(mode="bilinear", align_corners=False) weights.
    scale = in_size / out_size
    o = np.arange(out_size, dtype=np.float64)
    src = np.maximum((o + 0.5) * scale - 0.5, 0.0)
    i0 = np.minimum(np.floor(src).astype(np.int64), in_size - 1)
    i1 = np.minimum(i0 + 1, in_size - 1)
    w1 = src - i0
    w0 = 1.0 - w1
    R = np.zeros((out_size, in_size), dtype=np.float32)
    R[np.arange(out_size), i0] += w0.astype(np.float32)
    R[np.arange(out_size), i1] += w1.astype(np.float32)
    return R


def bilinear_resize_nchw(x, out_h, out_w):
    B, C, h, w = x.shape
    rh = jnp.asarray(_bilinear_matrix(out_h, h)).astype(BF16)       # (H, h)
    rwt = jnp.asarray(_bilinear_matrix(out_w, w).T).astype(BF16)    # (w, W)
    planes = x.reshape(B * C, h, w).astype(BF16)
    y = pl.pallas_call(
        _bilinear_kernel,
        out_shape=jax.ShapeDtypeStruct((B * C, out_h, out_w), F32),
        grid=(B * C,),
        in_specs=[
            pl.BlockSpec((1, h, w), lambda i: (i, 0, 0)),
            pl.BlockSpec((out_h, h), lambda i: (0, 0)),
            pl.BlockSpec((w, out_w), lambda i: (0, 0)),
        ],
        out_specs=pl.BlockSpec((1, out_h, out_w), lambda i: (i, 0, 0)),
        compiler_params=_cparams(("parallel",)),
    )(planes, rh, rwt)
    return y.reshape(B, C, out_h, out_w)


# ---------------------------------------------------------------------------
# Parameters + full forward (glue in plain JAX, hot paths in Pallas).
# ---------------------------------------------------------------------------
def init_params(key, num_classes, inter_h, inter_w):
    hidden = num_classes * inter_h * inter_w  # == nn.LSTM hidden_size (3456 in original)
    ks = jax.random.split(key, 16)

    def nrm(k, shape, scale):
        return (jax.random.normal(k, shape, F32) * scale).astype(BF16)

    p = {}
    # ----- frozen backbone stand-in (see TODO in forward); weights kept in bf16
    p['stem_w'] = nrm(ks[0], (8 * 8 * 3, 1024), 0.05)
    p['stem_b'] = jnp.zeros((1, 1024), F32)
    p['l4_w'] = nrm(ks[1], (1024, 2048), 0.02)
    p['l4_b'] = jnp.zeros((1, 2048), F32)
    p['aspp_w'] = nrm(ks[2], (2048, 256), 0.02)
    p['aspp_b'] = jnp.zeros((1, 256), F32)

    # ----- convSeq heads: Conv2d(Cin,64,3,pad=1) + BatchNorm2d(64) + AdaptiveMaxPool2d(1)
    def conv_head(kk, cin):
        k1, k2, k3 = jax.random.split(kk, 3)
        w = jax.random.normal(k1, (9, cin, 64), F32) / np.sqrt(9 * cin)
        b = 0.01 * jax.random.normal(k2, (1, 64), F32)
        gamma = 1.0 + 0.1 * jax.random.normal(k3, (1, 64), F32)
        beta = jnp.zeros((1, 64), F32)
        running_mean = jnp.zeros((1, 64), F32)   # TODO(synk): BatchNorm runs in eval
        running_var = jnp.ones((1, 64), F32)     # mode (running stats), not train-mode batch stats.
        eps = 1e-5
        scale = gamma / jnp.sqrt(running_var + eps)
        shift = beta - running_mean * scale
        # fold BN into conv weights/bias (eval mode): y = (x*w + b)*scale + shift
        w_folded = w * scale                                  # (9, cin, 64)
        # stack the 9 taps along N -> (cin, 9*64) for one full-width MXU matmul
        w_stacked = jnp.transpose(w_folded, (1, 0, 2)).reshape(cin, 9 * 64).astype(BF16)
        b_folded = b * scale + shift
        return {'w': w_stacked, 'b': b_folded}

    p['seq1'] = conv_head(ks[3], 1024)
    p['seq2'] = conv_head(ks[4], 2048)
    p['seq3'] = conv_head(ks[5], 256)

    # ----- LSTM(input_size=64, hidden_size=hidden), PyTorch-style uniform init,
    # gate order (i, f, g, o).  Weights are pre-tiled along the hidden axis into
    # (n_tiles, K, 4*tn) gate-fused blocks so each grid step's DMA is one
    # contiguous slab; bias = b_ih + b_hh kept in f32.
    bound = 1.0 / np.sqrt(hidden)
    tn = _lstm_lane_tile(hidden)
    nt = hidden // tn

    wih = jax.random.uniform(ks[6], (4, 64, hidden), F32, -bound, bound)
    whh = jax.random.uniform(ks[7], (4, hidden, hidden), F32, -bound, bound)
    b_ih = jax.random.uniform(ks[8], (4, 1, hidden), F32, -bound, bound)
    b_hh = jax.random.uniform(ks[9], (4, 1, hidden), F32, -bound, bound)
    bias = b_ih + b_hh

    def tile_gates(w, lead):  # (4, lead, hidden) -> (nt, lead, 4*tn)
        return (w.reshape(4, lead, nt, tn)
                 .transpose(2, 1, 0, 3)
                 .reshape(nt, lead, 4 * tn))

    p['wih'] = tile_gates(wih, 64).astype(BF16)
    p['whh'] = tile_gates(whh, hidden).astype(BF16)
    p['lstm_b'] = tile_gates(bias, 1)  # f32
    return p


def deeplabv3_lstm_forward(params, x_nchw, num_classes):
    B, Cin, H, W = x_nchw.shape
    ih, iw = H // 8, W // 8  # deeplabv3-resnet50 runs at output-stride 8

    x = jnp.transpose(x_nchw, (0, 2, 3, 1))  # NCHW -> NHWC

    # TODO(synk): the frozen pretrained deeplabv3_resnet50 backbone (resnet
    # children 0..7) and the ASPP module are not reproduced weight-for-weight;
    # they are replaced by one fused Pallas projection kernel that emits
    # feature maps with the exact shapes the head consumes:
    #   layer3 -> (B, 1024, H/8, W/8), layer4 -> (B, 2048, H/8, W/8),
    #   ASPP   -> (B,  256, H/8, W/8).
    patches = (x.reshape(B, ih, 8, iw, 8, Cin)
                .transpose(0, 1, 3, 2, 4, 5)
                .reshape(B * ih * iw, 8 * 8 * Cin))
    feat3, feat4, aspp = backbone_fused(patches, params)      # bf16 maps

    f3_map = feat3.reshape(B, ih, iw, 1024)
    f4_map = feat4.reshape(B, ih, iw, 2048)
    fa_map = aspp.reshape(B, ih, iw, 256)

    s1 = conv_bn_gmp(f3_map, params['seq1']['w'], params['seq1']['b'])   # (B, 64)
    s2 = conv_bn_gmp(f4_map, params['seq2']['w'], params['seq2']['b'])   # (B, 64)
    s3 = conv_bn_gmp(fa_map, params['seq3']['w'], params['seq3']['b'])   # (B, 64)

    # LSTM over the 3 stacked features; only the final hidden state is used.
    h, c = lstm_step_first(s1, params['wih'], params['lstm_b'])          # t=0: h0=c0=0
    h, c = lstm_step(s2, h, c, params['wih'], params['whh'], params['lstm_b'])
    h, c = lstm_step(s3, h, c, params['wih'], params['whh'], params['lstm_b'])

    seg = h.reshape(B, num_classes, ih, iw)                              # .view(...)
    out = bilinear_resize_nchw(seg, H, W)                                # F.interpolate bilinear
    return out


if __name__ == "__main__":
    key = jax.random.PRNGKey(0)
    kx, kp = jax.random.split(key)

    B, C, H, W = 2, 3, 32, 32
    num_classes = 4  # hidden_size = num_classes * (H/8) * (W/8) = 64

    x = jax.random.normal(kx, (B, C, H, W), F32)
    params = init_params(kp, num_classes, H // 8, W // 8)

    out = deeplabv3_lstm_forward(params, x, num_classes)
    out = jax.block_until_ready(out)
    assert out.shape == (B, num_classes, H, W), out.shape
    assert bool(jnp.all(jnp.isfinite(out)))
    print("KERNEL_OK")
</pallas_src>

<mosaic_0001>
module attributes {stable_mosaic.version = 11 : i64} {
  func.func @_backbone_kernel(%arg0: i32, %arg1: memref<32x192xf32, #tpu.memory_space<vmem>>, %arg2: memref<192x1024xbf16, #tpu.memory_space<vmem>>, %arg3: memref<1x1024xf32, #tpu.memory_space<vmem>>, %arg4: memref<1024x2048xbf16, #tpu.memory_space<vmem>>, %arg5: memref<1x2048xf32, #tpu.memory_space<vmem>>, %arg6: memref<2048x256xbf16, #tpu.memory_space<vmem>>, %arg7: memref<1x256xf32, #tpu.memory_space<vmem>>, %arg8: memref<32x1024xbf16, #tpu.memory_space<vmem>>, %arg9: memref<32x2048xbf16, #tpu.memory_space<vmem>>, %arg10: memref<32x256xbf16, #tpu.memory_space<vmem>>) attributes {dimension_semantics = [#tpu.dimension_semantics<parallel>], iteration_bounds = array<i64: 1>, scalar_prefetch = 0 : i64, scratch_operands = 0 : i64, tpu.core_type = #tpu.core_type<tc>, window_params = [{transform_indices = @transform_0, window_bounds = array<i64: 32, 192>}, {pipeline_mode = #tpu.pipeline_mode<synchronous>, transform_indices = @transform_1, window_bounds = array<i64: 192, 1024>}, {pipeline_mode = #tpu.pipeline_mode<synchronous>, transform_indices = @transform_2, window_bounds = array<i64: 1, 1024>}, {pipeline_mode = #tpu.pipeline_mode<synchronous>, transform_indices = @transform_3, window_bounds = array<i64: 1024, 2048>}, {pipeline_mode = #tpu.pipeline_mode<synchronous>, transform_indices = @transform_4, window_bounds = array<i64: 1, 2048>}, {pipeline_mode = #tpu.pipeline_mode<synchronous>, transform_indices = @transform_5, window_bounds = array<i64: 2048, 256>}, {pipeline_mode = #tpu.pipeline_mode<synchronous>, transform_indices = @transform_6, window_bounds = array<i64: 1, 256>}, {transform_indices = @transform_7, window_bounds = array<i64: 32, 1024>}, {transform_indices = @transform_8, window_bounds = array<i64: 32, 2048>}, {transform_indices = @transform_9, window_bounds = array<i64: 32, 256>}]} {
    %c0 = arith.constant 0 : index
    %c0_0 = arith.constant 0 : index
    %0 = vector.load %arg1[%c0, %c0_0] : memref<32x192xf32, #tpu.memory_space<vmem>>, vector<32x192xf32>
    %1 = arith.truncf %0 : vector<32x192xf32> to vector<32x192xbf16>
    %c0_1 = arith.constant 0 : index
    %c0_2 = arith.constant 0 : index
    %2 = vector.load %arg2[%c0_1, %c0_2] : memref<192x1024xbf16, #tpu.memory_space<vmem>>, vector<192x1024xbf16>
    %cst = arith.constant dense<0.000000e+00> : vector<32x1024xf32>
    %3 = tpu.matmul %1, %2, %cst {dimension_numbers = #tpu.dot_dimension_numbers<[1], [0], [0], [1], [0, 0, 1, 1], [], []>} : vector<32x192xbf16>, vector<192x1024xbf16>, vector<32x1024xf32> -> vector<32x1024xf32>
    %c0_3 = arith.constant 0 : index
    %c0_4 = arith.constant 0 : index
    %4 = vector.load %arg3[%c0_3, %c0_4] : memref<1x1024xf32, #tpu.memory_space<vmem>>, vector<1x1024xf32>
    %5 = vector.broadcast %4 : vector<1x1024xf32> to vector<32x1024xf32>
    %6 = arith.addf %3, %5 : vector<32x1024xf32>
    %cst_5 = arith.constant 0.000000e+00 : f32
    %7 = vector.broadcast %cst_5 : f32 to vector<32x1024xf32>
    %8 = arith.maximumf %6, %7 : vector<32x1024xf32>
    %9 = arith.truncf %8 : vector<32x1024xf32> to vector<32x1024xbf16>
    %c0_6 = arith.constant 0 : index
    %c0_7 = arith.constant 0 : index
    %10 = vector.load %arg8[%c0_6, %c0_7] : memref<32x1024xbf16, #tpu.memory_space<vmem>>, vector<32x1024xbf16>
    tpu.vector_store %arg8[%c0_6, %c0_7], %9 {strides = array<i32>} : memref<32x1024xbf16, #tpu.memory_space<vmem>>, vector<32x1024xbf16>,
    %11 = arith.truncf %8 : vector<32x1024xf32> to vector<32x1024xbf16>
    %c0_8 = arith.constant 0 : index
    %c0_9 = arith.constant 0 : index
    %12 = vector.load %arg4[%c0_8, %c0_9] : memref<1024x2048xbf16, #tpu.memory_space<vmem>>, vector<1024x2048xbf16>
    %cst_10 = arith.constant dense<0.000000e+00> : vector<32x2048xf32>
    %13 = tpu.matmul %11, %12, %cst_10 {dimension_numbers = #tpu.dot_dimension_numbers<[1], [0], [0], [1], [0, 0, 1, 1], [], []>} : vector<32x1024xbf16>, vector<1024x2048xbf16>, vector<32x2048xf32> -> vector<32x2048xf32>
    %c0_11 = arith.constant 0 : index
    %c0_12 = arith.constant 0 : index
    %14 = vector.load %arg5[%c0_11, %c0_12] : memref<1x2048xf32, #tpu.memory_space<vmem>>, vector<1x2048xf32>
    %15 = vector.broadcast %14 : vector<1x2048xf32> to vector<32x2048xf32>
    %16 = arith.addf %13, %15 : vector<32x2048xf32>
    %cst_13 = arith.constant 0.000000e+00 : f32
    %17 = vector.broadcast %cst_13 : f32 to vector<32x2048xf32>
    %18 = arith.maximumf %16, %17 : vector<32x2048xf32>
    %19 = arith.truncf %18 : vector<32x2048xf32> to vector<32x2048xbf16>
    %c0_14 = arith.constant 0 : index
    %c0_15 = arith.constant 0 : index
    %20 = vector.load %arg9[%c0_14, %c0_15] : memref<32x2048xbf16, #tpu.memory_space<vmem>>, vector<32x2048xbf16>
    tpu.vector_store %arg9[%c0_14, %c0_15], %19 {strides = array<i32>} : memref<32x2048xbf16, #tpu.memory_space<vmem>>, vector<32x2048xbf16>,
    %21 = arith.truncf %18 : vector<32x2048xf32> to vector<32x2048xbf16>
    %c0_16 = arith.constant 0 : index
    %c0_17 = arith.constant 0 : index
    %22 = vector.load %arg6[%c0_16, %c0_17] : memref<2048x256xbf16, #tpu.memory_space<vmem>>, vector<2048x256xbf16>
    %cst_18 = arith.constant dense<0.000000e+00> : vector<32x256xf32>
    %23 = tpu.matmul %21, %22, %cst_18 {dimension_numbers = #tpu.dot_dimension_numbers<[1], [0], [0], [1], [0, 0, 1, 1], [], []>} : vector<32x2048xbf16>, vector<2048x256xbf16>, vector<32x256xf32> -> vector<32x256xf32>
    %c0_19 = arith.constant 0 : index
    %c0_20 = arith.constant 0 : index
    %24 = vector.load %arg7[%c0_19, %c0_20] : memref<1x256xf32, #tpu.memory_space<vmem>>, vector<1x256xf32>
    %25 = vector.broadcast %24 : vector<1x256xf32> to vector<32x256xf32>
    %26 = arith.addf %23, %25 : vector<32x256xf32>
    %cst_21 = arith.constant 0.000000e+00 : f32
    %27 = vector.broadcast %cst_21 : f32 to vector<32x256xf32>
    %28 = arith.maximumf %26, %27 : vector<32x256xf32>
    %29 = arith.truncf %28 : vector<32x256xf32> to vector<32x256xbf16>
    %c0_22 = arith.constant 0 : index
    %c0_23 = arith.constant 0 : index
    %30 = vector.load %arg10[%c0_22, %c0_23] : memref<32x256xbf16, #tpu.memory_space<vmem>>, vector<32x256xbf16>
    tpu.vector_store %arg10[%c0_22, %c0_23], %29 {strides = array<i32>} : memref<32x256xbf16, #tpu.memory_space<vmem>>, vector<32x256xbf16>,
    return
  }
  func.func @transform_0(%arg0: i32) -> (i32, i32) {
    %c0_i32 = arith.constant 0 : i32
    %c0_i32_0 = arith.constant 0 : i32
    return %arg0, %c0_i32 : i32, i32
  }
  func.func @transform_1(%arg0: i32) -> (i32, i32) {
    %c0_i32 = arith.constant 0 : i32
    %c0_i32_0 = arith.constant 0 : i32
    %c0_i32_1 = arith.constant 0 : i32
    return %c0_i32, %c0_i32_0 : i32, i32
  }
  func.func @transform_2(%arg0: i32) -> (i32, i32) {
    %c0_i32 = arith.constant 0 : i32
    %c0_i32_0 = arith.constant 0 : i32
    %c0_i32_1 = arith.constant 0 : i32
    return %c0_i32, %c0_i32_0 : i32, i32
  }
  func.func @transform_3(%arg0: i32) -> (i32, i32) {
    %c0_i32 = arith.constant 0 : i32
    %c0_i32_0 = arith.constant 0 : i32
    %c0_i32_1 = arith.constant 0 : i32
    return %c0_i32, %c0_i32_0 : i32, i32
  }
  func.func @transform_4(%arg0: i32) -> (i32, i32) {
    %c0_i32 = arith.constant 0 : i32
    %c0_i32_0 = arith.constant 0 : i32
    %c0_i32_1 = arith.constant 0 : i32
    return %c0_i32, %c0_i32_0 : i32, i32
  }
  func.func @transform_5(%arg0: i32) -> (i32, i32) {
    %c0_i32 = arith.constant 0 : i32
    %c0_i32_0 = arith.constant 0 : i32
    %c0_i32_1 = arith.constant 0 : i32
    return %c0_i32, %c0_i32_0 : i32, i32
  }
  func.func @transform_6(%arg0: i32) -> (i32, i32) {
    %c0_i32 = arith.constant 0 : i32
    %c0_i32_0 = arith.constant 0 : i32
    %c0_i32_1 = arith.constant 0 : i32
    return %c0_i32, %c0_i32_0 : i32, i32
  }
  func.func @transform_7(%arg0: i32) -> (i32, i32) {
    %c0_i32 = arith.constant 0 : i32
    %c0_i32_0 = arith.constant 0 : i32
    return %arg0, %c0_i32 : i32, i32
  }
  func.func @transform_8(%arg0: i32) -> (i32, i32) {
    %c0_i32 = arith.constant 0 : i32
    %c0_i32_0 = arith.constant 0 : i32
    return %arg0, %c0_i32 : i32, i32
  }
  func.func @transform_9(%arg0: i32) -> (i32, i32) {
    %c0_i32 = arith.constant 0 : i32
    %c0_i32_0 = arith.constant 0 : i32
    return %arg0, %c0_i32 : i32, i32
  }
}

</mosaic_0001>

<bundles_post_ra>
// kernel: tpu_custom_call.1
= control target key start
LH: loop header
LB: loop body
LE: loop exit
PB: predicated region body
PF: predicated region fallthrough
CT: control target
= control target key end

     0   :  { %15 = vsyncpa [#allocation3], 0  ;;  %s14667_s0 = inlined_call_operand.hbm [shape: f32[32,192], index: 0, kind: input, shape index: {}]   ;;  %s14668_s1 = inlined_call_operand.hbm [shape: bf16[192,1024], index: 1, kind: input, shape index: {}]   ;;  %s14669_s2 = inlined_call_operand.hbm [shape: f32[1,1024], index: 2, kind: input, shape index: {}]   ;;  %s14670_s3 = inlined_call_operand.hbm [shape: bf16[1024,2048], index: 3, kind: input, shape index: {}]   ;;  %s14671_s4 = inlined_call_operand.hbm [shape: f32[1,2048], index: 4, kind: input, shape index: {}]   ;;  %s14672_s5 = inlined_call_operand.hbm [shape: bf16[2048,256], index: 5, kind: input, shape index: {}]   ;;  %s14673_s6 = inlined_call_operand.hbm [shape: f32[1,256], index: 6, kind: input, shape index: {}]   ;;  %s14674_s7 = inlined_call_operand.hbm [shape: bf16[32,1024], index: 7, kind: output, shape index: {0}]   ;;  %s14675_s8 = inlined_call_operand.hbm [shape: bf16[32,2048], index: 8, kind: output, shape index: {1}]   ;;  %s14676_s9 = inlined_call_operand.hbm [shape: bf16[32,256], index: 9, kind: output, shape index: {2}]  }
   0x1   :  { %16 = vsyncpa [#allocation6], 0 }
   0x2   :  { %17 = vsyncpa [#allocation9], 0 }
   0x3   :  { %18 = vsyncpa [#allocation12], 0 }
   0x4   :  { %19 = vsyncpa [#allocation4], 0 }
   0x5   :  { %20 = vsyncpa [#allocation16], 0  ;;  %s13831_s30 = smov [#allocation5]   ;;  %s13599_s13 = scalar_lea.hbm %s14668_s1, 12288 }
   0x6   :  { %s38_s10 = sshll.u32 %s13831_s30, 4  ;;  %p13600_p0 = scmp.ne.s32.totalorder %s14668_s1, %s13599_s13  ;;  %s39_s10 = int_to_ptr.vmem [resolvable:$true] %s38_s10 }
   0x7   :  { %p13603_p1 = scmp.lt.u32.totalorder %s13599_s13, %s14668_s1 }
   0x9   :  { %p13605_p2 = pnand %p13603_p1, %p13600_p0 }
   0xb   :  { %13608 = shalt.err (!%p13605_p2)
}
   0xc   :  { %s13609_s18 = scalar_lea.vmem %s39_s10, 12288  ;;  %p13614_p4 = scmp.lt.s32.totalorder %s39_s10, %s39_s10 }
   0xd   :  { %p13610_p3 = scmp.ne.s32.totalorder %s39_s10, %s13609_s18  ;;  %p13615_p5 = scmp.lt.s32.totalorder %s13609_s18, %s13609_s18 }
   0xf   :  { %p13616_p6 = por %p13615_p5, %p13614_p4 }
  0x11   :  { %p13617_p7 = pnand %p13616_p6, %p13610_p3 }
  0x13   :  { %13620 = shalt.err (!%p13617_p7)
}
  0x14   :  { %s13832_s19 = smov 512   ;;  %s13833_s20 = smov 32  }
  0x15   :  { %44 = dma.hbm_to_vmem [thread:$0]  %s14668_s1, 12288, %s39_s10, [#allocation6], %s13832_s19, %s13832_s19, %s13833_s20  }
  0x16   :  { %s13834_s23 = smov [#allocation8]   ;;  %s13621_s27 = scalar_lea.hbm %s14670_s3, 131072 }
  0x17   :  { %s60_s24 = sshll.u32 %s13834_s23, 4  ;;  %p13622_p8 = scmp.ne.s32.totalorder %s14670_s3, %s13621_s27  ;;  %s61_s24 = int_to_ptr.vmem [resolvable:$true] %s60_s24 }
  0x18   :  { %p13625_p9 = scmp.lt.u32.totalorder %s13621_s27, %s14670_s3 }
  0x1a   :  { %p13627_p10 = pnand %p13625_p9, %p13622_p8 }
  0x1c   :  { %13630 = shalt.err (!%p13627_p10)
}
  0x1d   :  { %s13631_s12 = scalar_lea.vmem %s61_s24, 131072  ;;  %p13636_p12 = scmp.lt.s32.totalorder %s61_s24, %s61_s24 }
  0x1e   :  { %p13632_p11 = scmp.ne.s32.totalorder %s61_s24, %s13631_s12  ;;  %p13637_p13 = scmp.lt.s32.totalorder %s13631_s12, %s13631_s12 }
  0x20   :  { %p13638_p0 = por %p13637_p13, %p13636_p12 }
  0x22   :  { %p13639_p1 = pnand %p13638_p0, %p13632_p11 }
  0x24   :  { %13642 = shalt.err (!%p13639_p1)
}
  0x25   :  { %s13835_s1 = smov 1024   ;;  %s13836_s10 = smov 64  }
  0x26   :  { %66 = dma.hbm_to_vmem [thread:$0]  %s14670_s3, 131072, %s61_s24, [#allocation9], %s13835_s1, %s13835_s1, %s13836_s10  }
  0x27   :  { %s13837_s15 = smov [#allocation11]   ;;  %s13643_s21 = scalar_lea.hbm %s14672_s5, 32768 }
  0x28   :  { %s82_s16 = sshll.u32 %s13837_s15, 4  ;;  %p13644_p2 = scmp.ne.s32.totalorder %s14672_s5, %s13643_s21  ;;  %s83_s16 = int_to_ptr.vmem [resolvable:$true] %s82_s16 }
  0x29   :  { %p13647_p3 = scmp.lt.u32.totalorder %s13643_s21, %s14672_s5 }
  0x2b   :  { %p13649_p4 = pnand %p13647_p3, %p13644_p2 }
  0x2d   :  { %13652 = shalt.err (!%p13649_p4)
}
  0x2e   :  { %s13653_s27 = scalar_lea.vmem %s83_s16, 32768  ;;  %p13658_p6 = scmp.lt.s32.totalorder %s83_s16, %s83_s16 }
  0x2f   :  { %p13654_p5 = scmp.ne.s32.totalorder %s83_s16, %s13653_s27  ;;  %p13659_p7 = scmp.lt.s32.totalorder %s13653_s27, %s13653_s27 }
  0x31   :  { %p13660_p8 = por %p13659_p7, %p13658_p6 }
  0x33   :  { %p13661_p9 = pnand %p13660_p8, %p13654_p5 }
  0x35   :  { %13664 = shalt.err (!%p13661_p9)
}
  0x36   :  { %s13838_s3 = smov 128   ;;  %s13839_s24 = smov 8  }
  0x37   :  { %88 = dma.hbm_to_vmem [thread:$0]  %s14672_s5, 32768, %s83_s16, [#allocation12], %s13838_s3, %s13838_s3, %s13839_s24  }
  0x38   :  { %s13840_s30 = smov [#allocation2]   ;;  %s13665_s14 = scalar_lea.hbm %s14667_s0, 1024 }
  0x39   :  { %s26_s11 = sshll.u32 %s13840_s30, 4  ;;  %p13666_p10 = scmp.ne.s32.totalorder %s14667_s0, %s13665_s14  ;;  %s27_s11 = int_to_ptr.vmem [resolvable:$true] %s26_s11 }
  0x3a   :  { %p13669_p11 = scmp.lt.u32.totalorder %s13665_s14, %s14667_s0 }
  0x3c   :  { %p13671_p12 = pnand %p13669_p11, %p13666_p10 }
  0x3e   :  { %13674 = shalt.err (!%p13671_p12)
}
  0x3f   :  { %s13675_s22 = scalar_lea.vmem %s27_s11, 1024  ;;  %p13680_p0 = scmp.lt.s32.totalorder %s27_s11, %s27_s11 }
  0x40   :  { %p13676_p13 = scmp.ne.s32.totalorder %s27_s11, %s13675_s22  ;;  %p13681_p1 = scmp.lt.s32.totalorder %s13675_s22, %s13675_s22 }
  0x42   :  { %p13682_p2 = por %p13681_p1, %p13680_p0 }
  0x44   :  { %p13683_p3 = pnand %p13682_p2, %p13676_p13 }
  0x46   :  { %13686 = shalt.err (!%p13683_p3)
}
  0x47   :  { %s13841_s5 = smov 256   ;;  %s13842_s16 = smov 16  }
  0x48   :  { %32 = dma.hbm_to_vmem [thread:$0]  %s14667_s0, 1024, %s27_s11, [#allocation3], %s13841_s5, %s13841_s5, %s13842_s16  }
  0x49   :  { %s13843_s26 = smov [#allocation7]   ;;  %s13844_s28 = smov [#allocation10]  }
  0x4a   :  { %s51_s27 = sshll.u32 %s13843_s26, 4  ;;  %s73_s29 = sshll.u32 %s13844_s28, 4  ;;  %s52_s27 = int_to_ptr.vmem [resolvable:$true] %s51_s27  ;;  %s74_s29 = int_to_ptr.vmem [resolvable:$true] %s73_s29 }
  0x4b   :  { %s13687_s13 = scalar_lea.hbm %s14669_s2, 128 }
  0x4c   :  { %p13688_p4 = scmp.ne.s32.totalorder %s14669_s2, %s13687_s13  ;;  %p13691_p5 = scmp.lt.u32.totalorder %s13687_s13, %s14669_s2 }
  0x4e   :  { %p13693_p6 = pnand %p13691_p5, %p13688_p4 }
  0x50   :  { %13696 = shalt.err (!%p13693_p6)
}
  0x51   :  { %s13697_s0 = scalar_lea.vmem %s52_s27, 128  ;;  %p13702_p8 = scmp.lt.s32.totalorder %s52_s27, %s52_s27 }
  0x52   :  { %p13698_p7 = scmp.ne.s32.totalorder %s52_s27, %s13697_s0  ;;  %p13703_p9 = scmp.lt.s32.totalorder %s13697_s0, %s13697_s0 }
  0x54   :  { %p13704_p10 = por %p13703_p9, %p13702_p8 }
  0x56   :  { %p13705_p11 = pnand %p13704_p10, %p13698_p7 }
  0x58   :  { %13708 = shalt.err (!%p13705_p11)
}
  0x59   :  { %54 = dma.hbm_to_vmem [thread:$0]  %s14669_s2, 128, %s52_s27, [#allocation6]  }
  0x5a   :  { %s13709_s16 = scalar_lea.hbm %s14671_s4, 256 }
  0x5b   :  { %p13710_p12 = scmp.ne.s32.totalorder %s14671_s4, %s13709_s16  ;;  %p13713_p13 = scmp.lt.u32.totalorder %s13709_s16, %s14671_s4 }
  0x5d   :  { %p13715_p0 = pnand %p13713_p13, %p13710_p12 }
  0x5f   :  { %13718 = shalt.err (!%p13715_p0)
}
  0x60   :  { %s13719_s30 = scalar_lea.vmem %s74_s29, 256  ;;  %p13724_p2 = scmp.lt.s32.totalorder %s74_s29, %s74_s29 }
  0x61   :  { %p13720_p1 = scmp.ne.s32.totalorder %s74_s29, %s13719_s30  ;;  %p13725_p3 = scmp.lt.s32.totalorder %s13719_s30, %s13719_s30 }
  0x63   :  { %p13726_p4 = por %p13725_p3, %p13724_p2 }
  0x65   :  { %p13727_p5 = pnand %p13726_p4, %p13720_p1 }
  0x67   :  { %13730 = shalt.err (!%p13727_p5)
}
  0x68   :  { %76 = dma.hbm_to_vmem [thread:$0]  %s14671_s4, 256, %s74_s29, [#allocation9]  }
  0x69   :  { %s13845_s12 = smov [#allocation13]   ;;  %s13731_s17 = scalar_lea.hbm %s14673_s6, 32 }
  0x6a   :  { %s95_s13 = sshll.u32 %s13845_s12, 4  ;;  %p13732_p6 = scmp.ne.s32.totalorder %s14673_s6, %s13731_s17  ;;  %s96_s13 = int_to_ptr.vmem [resolvable:$true] %s95_s13 }
  0x6b   :  { %p13735_p7 = scmp.lt.u32.totalorder %s13731_s17, %s14673_s6 }
  0x6d   :  { %p13737_p8 = pnand %p13735_p7, %p13732_p6 }
  0x6f   :  { %13740 = shalt.err (!%p13737_p8)
}
  0x70   :  { %s13741_s22 = scalar_lea.vmem %s96_s13, 32  ;;  %p13746_p10 = scmp.lt.s32.totalorder %s96_s13, %s96_s13 }
  0x71   :  { %p13742_p9 = scmp.ne.s32.totalorder %s96_s13, %s13741_s22  ;;  %p13747_p11 = scmp.lt.s32.totalorder %s13741_s22, %s13741_s22 }
  0x73   :  { %p13748_p12 = por %p13747_p11, %p13746_p10 }
  0x75   :  { %p13749_p13 = pnand %p13748_p12, %p13742_p9 }
  0x77   :  { %13752 = shalt.err (!%p13749_p13)
}
  0x78   :  { %98 = dma.hbm_to_vmem [thread:$0]  %s14673_s6, 32, %s96_s13, [#allocation12]  }
  0x79   :  { %13819 = dma.done.wait [#allocation3], 1024  }
  0x7a   :  { %13820 = vsyncadd [#allocation3], 4294966272 }
  0x7b   :  { %13821 = dma.done.wait [#allocation6], 12416  }
  0x7c   :  { %13822 = vsyncadd [#allocation6], 4294954880 }
  0x7d   :  { %13823 = dma.done.wait [#allocation9], 131328  }
  0x7e   :  { %13824 = vsyncadd [#allocation9], 4294835968 }
  0x7f   :  { %13825 = dma.done.wait [#allocation12], 32800  }
  0x80   :  { %13826 = vsyncadd [#allocation12], 4294934496  ;;  %v133_v0 = vld [vmem:[#allocation5] sm:$0xff]  ;;  %v122_v14 = vld [vmem:[#allocation2 + $0x8] sm:$0xff]  ;;  %vm751_vm0 = vcmask 523264   ;;  %s13846_s6 = smov [#allocation15]  }
  0x81   :  { %v137_v1 = vld [vmem:[#allocation5 + $0x20] sm:$0xff]  ;;  %v124_v15 = vld [vmem:[#allocation2 + $0x18] sm:$0xff]  ;;  %v134_v19 = vld [vmem:[#allocation5 + $0x8] sm:$0xff]  ;;  %s11351_s5 = sshll.u32 %s13846_s6, 4  ;;  %s13847_s16 = smov [#allocation14]   ;;  %s11352_s5 = int_to_ptr.vmem [resolvable:$true] %s11351_s5 }
  0x82   :  { %v141_v2 = vld [vmem:[#allocation5 + $0x40] sm:$0xff]  ;;  %v11386_v3 = vcombine.high %v133_v0, %v137_v1  ;;  %v11385_v4 = vcombine.low %v133_v0, %v137_v1  ;;  %v13992_v18 = vpack.c.bf16 %v124_v15, %v122_v14  ;;  %v138_v20 = vld [vmem:[#allocation5 + $0x28] sm:$0xff]  ;;  %s11339_s23 = sshll.u32 %s13847_s16, 4  ;;  %s13753_s25 = scalar_lea.vmem %s11352_s5, 4096  ;;  %s11340_s23 = int_to_ptr.vmem [resolvable:$true] %s11339_s23 }
  0x83   :  { %v145_v5 = vld [vmem:[#allocation5 + $0x60] sm:$0xff]  ;;  %v11388_v22 = vcombine.high %v134_v19, %v138_v20  ;;  %v11387_v23 = vcombine.low %v134_v19, %v138_v20  ;;  %v142_v24 = vld [vmem:[#allocation5 + $0x48] sm:$0xff]  ;;  %p13754_p0 = scmp.ne.s32.totalorder %s11352_s5, %s13753_s25  ;;  %p13758_p1 = scmp.lt.s32.totalorder %s11352_s5, %s11352_s5 }
  0x84   :  { %v11394_v6 = vcombine.high %v141_v2, %v145_v5  ;;  %v149_v7 = vld [vmem:[#allocation5 + $0x80] sm:$0xff]  ;;  %758 = vmatprep.subr.bf16.mxu0 %v11386_v3  ;;  %v11393_v9 = vcombine.low %v141_v2, %v145_v5  ;;  %v146_v25 = vld [vmem:[#allocation5 + $0x68] sm:$0xff]  ;;  %11481 = vmatprep.mubr.msk.bf16.mxu0 %vm751_vm0, %v13992_v18  ;;  %p13759_p2 = scmp.lt.s32.totalorder %s13753_s25, %s13753_s25 }
  0x85   :  { %v153_v8 = vld [vmem:[#allocation5 + $0xa0] sm:$0xff]  ;;  %759 = vmatpush1.bf16.msra.mxu0 %v11385_v4  ;;  %v11396_v26 = vcombine.high %v142_v24, %v146_v25  ;;  %v150_v27 = vld [vmem:[#allocation5 + $0x88] sm:$0xff]  ;;  %11483 = vmatprep.mubr.msk.bf16.mxu1 %vm751_vm0, %v13992_v18  ;;  %v11395_v31 = vcombine.low %v142_v24, %v146_v25 }
  0x86   :  { %760 = vmatprep.subr.bf16.mxu0 %v11394_v6  ;;  %v11402_v10 = vcombine.high %v149_v7, %v153_v8  ;;  %v157_v11 = vld [vmem:[#allocation5 + $0xc0] sm:$0xff]  ;;  %v11401_v13 = vcombine.low %v149_v7, %v153_v8  ;;  %v154_v28 = vld [vmem:[#allocation5 + $0xa8] sm:$0xff]  ;;  %811 = vmatprep.subr.bf16.mxu1 %v11388_v22  ;;  %p13760_p3 = por %p13759_p2, %p13758_p1 }
  0x87   :  { %v161_v12 = vld [vmem:[#allocation5 + $0xe0] sm:$0xff]  ;;  %812 = vmatpush1.bf16.msra.mxu1 %v11387_v23  ;;  %v11404_v34 = vcombine.high %v150_v27, %v154_v28  ;;  %v158_v35 = vld [vmem:[#allocation5 + $0xc8] sm:$0xff]  ;;  %v11403_v39 = vcombine.low %v150_v27, %v154_v28  ;;  %v139_v27 = vld [vmem:[#allocation5 + $0x30] sm:$0xff] }
  0x88   :  { %v11410_v16 = vcombine.high %v157_v11, %v161_v12  ;;  %v165_v17 = vld [vmem:[#allocation5 + $0x100] sm:$0xff]  ;;  %v11409_v29 = vcombine.low %v157_v11, %v161_v12  ;;  %813 = vmatprep.subr.bf16.mxu1 %v11396_v26  ;;  %v162_v36 = vld [vmem:[#allocation5 + $0xe8] sm:$0xff]  ;;  %v135_v26 = vld [vmem:[#allocation5 + $0x10] sm:$0xff]  ;;  %p13761_p4 = pnand %p13760_p3, %p13754_p0 }
  0x89   :  { %761 = vmatpush1.bf16.msra.mxu0 %v11393_v9  ;;  %v169_v21 = vld [vmem:[#allocation5 + $0x120] sm:$0xff]  ;;  %v11412_v42 = vcombine.high %v158_v35, %v162_v36  ;;  %v166_v43 = vld [vmem:[#allocation5 + $0x108] sm:$0xff]  ;;  %v11411_v47 = vcombine.low %v158_v35, %v162_v36  ;;  %v128_v35 = vld [vmem:[#allocation2 + $0x38] sm:$0xff]  ;;  %v11390_v36 = vcombine.high %v135_v26, %v139_v27 }
  0x8a   :  { %762 = vmatprep.subr.bf16.mxu0 %v11402_v10  ;;  %v11418_v30 = vcombine.high %v165_v17, %v169_v21  ;;  %v173_v32 = vld [vmem:[#allocation5 + $0x140] sm:$0xff]  ;;  %v11417_v37 = vcombine.low %v165_v17, %v169_v21  ;;  %v170_v44 = vld [vmem:[#allocation5 + $0x128] sm:$0xff] }
  0x8b   :  { %v177_v33 = vld [vmem:[#allocation5 + $0x160] sm:$0xff]  ;;  %814 = vmatpush1.bf16.msra.mxu1 %v11395_v31  ;;  %v11420_v50 = vcombine.high %v166_v43, %v170_v44  ;;  %v174_v51 = vld [vmem:[#allocation5 + $0x148] sm:$0xff]  ;;  %v11419_v55 = vcombine.low %v166_v43, %v170_v44  ;;  %v11389_v44 = vcombine.low %v135_v26, %v139_v27  ;;  %v195_v26 = vld [vmem:[#allocation5 + $0x1f0] sm:$0xff] }
  0x8c   :  { %v11426_v38 = vcombine.high %v173_v32, %v177_v33  ;;  %v181_v40 = vld [vmem:[#allocation5 + $0x180] sm:$0xff]  ;;  %815 = vmatprep.subr.bf16.mxu1 %v11404_v34  ;;  %v11425_v45 = vcombine.low %v173_v32, %v177_v33  ;;  %v178_v52 = vld [vmem:[#allocation5 + $0x168] sm:$0xff]  ;;  %v123_v32 = vld [vmem:[#allocation2 + $0x10] sm:$0xff] }
  0x8d   :  { %763 = vmatpush1.bf16.msra.mxu0 %v11401_v13  ;;  %v185_v41 = vld [vmem:[#allocation5 + $0x1a0] sm:$0xff]  ;;  %v11428_v58 = vcombine.high %v174_v51, %v178_v52  ;;  %v182_v59 = vld [vmem:[#allocation5 + $0x188] sm:$0xff]  ;;  %v11427_v63 = vcombine.low %v174_v51, %v178_v52  ;;  %v136_v51 = vld [vmem:[#allocation5 + $0x18] sm:$0xff] }
  0x8e   :  { %764 = vmatprep.subr.bf16.mxu0 %v11410_v16  ;;  %v11434_v46 = vcombine.high %v181_v40, %v185_v41  ;;  %v189_v48 = vld [vmem:[#allocation5 + $0x1c0] sm:$0xff]  ;;  %v11433_v53 = vcombine.low %v181_v40, %v185_v41  ;;  %v186_v60 = vld [vmem:[#allocation5 + $0x1a8] sm:$0xff]  ;;  %v140_v52 = vld [vmem:[#allocation5 + $0x38] sm:$0xff] }
  0x8f   :  { %816 = vmatpush1.bf16.msra.mxu1 %v11403_v39  ;;  %v193_v49 = vld [vmem:[#allocation5 + $0x1e0] sm:$0xff]  ;;  %v11436_v2 = vcombine.high %v182_v59, %v186_v60  ;;  %v190_v3 = vld [vmem:[#allocation5 + $0x1c8] sm:$0xff]  ;;  %v11435_v7 = vcombine.low %v182_v59, %v186_v60  ;;  %v147_v39 = vld [vmem:[#allocation5 + $0x70] sm:$0xff] }
  0x90   :  { %817 = vmatprep.subr.bf16.mxu1 %v11412_v42  ;;  %v11442_v54 = vcombine.high %v189_v48, %v193_v49  ;;  %v197_v56 = vld [vmem:[#allocation5 + $0x200] sm:$0xff]  ;;  %v11441_v61 = vcombine.low %v189_v48, %v193_v49  ;;  %v194_v4 = vld [vmem:[#allocation5 + $0x1e8] sm:$0xff]  ;;  %v151_v48 = vld [vmem:[#allocation5 + $0x90] sm:$0xff] }
  0x91   :  { %765 = vmatpush1.bf16.msra.mxu0 %v11409_v29  ;;  %v201_v57 = vld [vmem:[#allocation5 + $0x220] sm:$0xff]  ;;  %v11444_v10 = vcombine.high %v190_v3, %v194_v4  ;;  %v198_v11 = vld [vmem:[#allocation5 + $0x208] sm:$0xff]  ;;  %v11443_v15 = vcombine.low %v190_v3, %v194_v4  ;;  %v155_v49 = vld [vmem:[#allocation5 + $0xb0] sm:$0xff]  ;;  %v11391_v3 = vcombine.low %v136_v51, %v140_v52 }
  0x92   :  { %766 = vmatprep.subr.bf16.mxu0 %v11418_v30  ;;  %v11450_v62 = vcombine.high %v197_v56, %v201_v57  ;;  %v205_v0 = vld [vmem:[#allocation5 + $0x240] sm:$0xff]  ;;  %v11449_v5 = vcombine.low %v197_v56, %v201_v57  ;;  %v202_v12 = vld [vmem:[#allocation5 + $0x228] sm:$0xff]  ;;  %v163_v56 = vld [vmem:[#allocation5 + $0xf0] sm:$0xff] }
  0x93   :  { %818 = vmatpush1.bf16.msra.mxu1 %v11411_v47  ;;  %v209_v1 = vld [vmem:[#allocation5 + $0x260] sm:$0xff]  ;;  %v11452_v19 = vcombine.high %v198_v11, %v202_v12  ;;  %v206_v20 = vld [vmem:[#allocation5 + $0x248] sm:$0xff]  ;;  %v11451_v24 = vcombine.low %v198_v11, %v202_v12  ;;  %v144_v59 = vld [vmem:[#allocation5 + $0x58] sm:$0xff] }
  0x94   :  { %819 = vmatprep.subr.bf16.mxu1 %v11420_v50  ;;  %v11458_v6 = vcombine.high %v205_v0, %v209_v1  ;;  %v213_v8 = vld [vmem:[#allocation5 + $0x280] sm:$0xff]  ;;  %v11457_v13 = vcombine.low %v205_v0, %v209_v1  ;;  %v210_v21 = vld [vmem:[#allocation5 + $0x268] sm:$0xff]  ;;  %v148_v60 = vld [vmem:[#allocation5 + $0x78] sm:$0xff] }
  0x95   :  { %767 = vmatpush1.bf16.msra.mxu0 %v11417_v37  ;;  %v217_v9 = vld [vmem:[#allocation5 + $0x2a0] sm:$0xff]  ;;  %v11460_v25 = vcombine.high %v206_v20, %v210_v21  ;;  %v214_v28 = vld [vmem:[#allocation5 + $0x288] sm:$0xff]  ;;  %v11459_v33 = vcombine.low %v206_v20, %v210_v21  ;;  %v167_v0 = vld [vmem:[#allocation5 + $0x110] sm:$0xff]  ;;  %v11399_v11 = vcombine.low %v144_v59, %v148_v60 }
  0x96   :  { %768 = vmatprep.subr.bf16.mxu0 %v11426_v38  ;;  %v11466_v14 = vcombine.high %v213_v8, %v217_v9  ;;  %v221_v16 = vld [vmem:[#allocation5 + $0x2c0] sm:$0xff]  ;;  %v11465_v22 = vcombine.low %v213_v8, %v217_v9  ;;  %v218_v29 = vld [vmem:[#allocation5 + $0x2a8] sm:$0xff]  ;;  %v143_v38 = vld [vmem:[#allocation5 + $0x50] sm:$0xff] }
  0x97   :  { %820 = vmatpush1.bf16.msra.mxu1 %v11419_v55  ;;  %v225_v17 = vld [vmem:[#allocation5 + $0x2e0] sm:$0xff]  ;;  %v126_v34 = vld [vmem:[#allocation2 + $0x28] sm:$0xff]  ;;  %v11468_v37 = vcombine.high %v214_v28, %v218_v29  ;;  %v159_v55 = vld [vmem:[#allocation5 + $0xd0] sm:$0xff] }
  0x98   :  { %821 = vmatprep.subr.bf16.mxu1 %v11428_v58  ;;  %v11474_v23 = vcombine.high %v221_v16, %v225_v17  ;;  %v11473_v30 = vcombine.low %v221_v16, %v225_v17  ;;  %v121_v31 = vld [vmem:[#allocation2] sm:$0xff]  ;;  %v222_v41 = vld [vmem:[#allocation5 + $0x2c8] sm:$0xff]  ;;  %v14000_v43 = vpack.c.bf16 %v128_v35, %v126_v34  ;;  %v11406_v58 = vcombine.high %v151_v48, %v155_v49  ;;  %v171_v1 = vld [vmem:[#allocation5 + $0x130] sm:$0xff] }
  0x99   :  { %769 = vmatpush1.bf16.msra.mxu0 %v11425_v45  ;;  %v13998_v40 = vpack.c.bf16 %v123_v32, %v121_v31  ;;  %v226_v42 = vld [vmem:[#allocation5 + $0x2e8] sm:$0xff]  ;;  %v11467_v45 = vcombine.low %v214_v28, %v218_v29  ;;  %v125_v50 = vld [vmem:[#allocation2 + $0x20] sm:$0xff]  ;;  %v152_v4 = vld [vmem:[#allocation5 + $0x98] sm:$0xff] }
  0x9a   :  { %770 = vmatprep.subr.bf16.mxu0 %v11434_v46  ;;  %v11398_v46 = vcombine.high %v143_v38, %v147_v39  ;;  %v11476_v47 = vcombine.high %v222_v41, %v226_v42  ;;  %v11475_v57 = vcombine.low %v222_v41, %v226_v42  ;;  %v175_v8 = vld [vmem:[#allocation5 + $0x150] sm:$0xff]  ;;  %v160_v12 = vld [vmem:[#allocation5 + $0xd8] sm:$0xff] }
  0x9b   :  { %822 = vmatpush1.bf16.msra.mxu1 %v11427_v63  ;;  %v11405_v63 = vcombine.low %v151_v48, %v155_v49  ;;  %v179_v9 = vld [vmem:[#allocation5 + $0x170] sm:$0xff]  ;;  %v168_v21 = vld [vmem:[#allocation5 + $0x118] sm:$0xff] }
  0x9c   :  { %823 = vmatprep.subr.bf16.mxu1 %v11436_v2  ;;  %v11414_v2 = vcombine.high %v159_v55, %v163_v56  ;;  %v183_v16 = vld [vmem:[#allocation5 + $0x190] sm:$0xff]  ;;  %v176_v29 = vld [vmem:[#allocation5 + $0x158] sm:$0xff] }
  0x9d   :  { %771 = vmatpush1.bf16.msra.mxu0 %v11433_v53  ;;  %v127_v53 = vld [vmem:[#allocation2 + $0x30] sm:$0xff] }
  0x9e   :  { %772 = vmatprep.subr.bf16.mxu0 %v11442_v54  ;;  %v11397_v54 = vcombine.low %v143_v38, %v147_v39  ;;  %v187_v17 = vld [vmem:[#allocation5 + $0x1b0] sm:$0xff]  ;;  %v188_v38 = vld [vmem:[#allocation5 + $0x1b8] sm:$0xff] }
  0x9f   :  { %824 = vmatpush1.bf16.msra.mxu1 %v11435_v7  ;;  %v11413_v7 = vcombine.low %v159_v55, %v163_v56  ;;  %v11438_v27 = vcombine.high %v183_v16, %v187_v17  ;;  %v11437_v32 = vcombine.low %v183_v16, %v187_v17  ;;  %v203_v34 = vld [vmem:[#allocation5 + $0x230] sm:$0xff]  ;;  %v204_v55 = vld [vmem:[#allocation5 + $0x238] sm:$0xff] }
  0xa0   :  { %825 = vmatprep.subr.bf16.mxu1 %v11444_v10  ;;  %v11422_v10 = vcombine.high %v167_v0, %v171_v1  ;;  %v207_v42 = vld [vmem:[#allocation5 + $0x250] sm:$0xff] }
  0xa1   :  { %773 = vmatpush1.bf16.msra.mxu0 %v11441_v61  ;;  %v11392_v61 = vcombine.high %v136_v51, %v140_v52  ;;  %v219_v51 = vld [vmem:[#allocation5 + $0x2b0] sm:$0xff] }
  0xa2   :  { %774 = vmatprep.subr.bf16.mxu0 %v11450_v62  ;;  %v14005_v62 = vpack.c.bf16 %v127_v53, %v125_v50  ;;  %v215_v50 = vld [vmem:[#allocation5 + $0x290] sm:$0xff] }
  0xa3   :  { %826 = vmatpush1.bf16.msra.mxu1 %v11443_v15  ;;  %v11421_v15 = vcombine.low %v167_v0, %v171_v1  ;;  %v212_v0 = vld [vmem:[#allocation5 + $0x278] sm:$0xff] }
  0xa4   :  { %827 = vmatprep.subr.bf16.mxu1 %v11452_v19  ;;  %v11430_v19 = vcombine.high %v175_v8, %v179_v9 }
  0xa5   :  { %775 = vmatpush1.bf16.msra.mxu0 %v11449_v5  ;;  %v156_v5 = vld [vmem:[#allocation5 + $0xb8] sm:$0xff] }
  0xa6   :  { %776 = vmatprep.subr.bf16.mxu0 %v11458_v6  ;;  %v11400_v6 = vcombine.high %v144_v59, %v148_v60  ;;  %v11407_v20 = vcombine.low %v152_v4, %v156_v5  ;;  %v227_v59 = vld [vmem:[#allocation5 + $0x2f0] sm:$0xff]  ;;  %v11470_v60 = vcombine.high %v215_v50, %v219_v51 }
  0xa7   :  { %828 = vmatpush1.bf16.msra.mxu1 %v11451_v24  ;;  %v11429_v24 = vcombine.low %v175_v8, %v179_v9  ;;  %v220_v8 = vld [vmem:[#allocation5 + $0x2b8] sm:$0xff] }
  0xa8   :  { %829 = vmatprep.subr.bf16.mxu1 %v11460_v25  ;;  %v191_v25 = vld [vmem:[#allocation5 + $0x1d0] sm:$0xff] }
  0xa9   :  { %777 = vmatpush1.bf16.msra.mxu0 %v11457_v13  ;;  %v164_v13 = vld [vmem:[#allocation5 + $0xf8] sm:$0xff]  ;;  %v11446_v35 = vcombine.high %v191_v25, %v195_v26  ;;  %v11445_v41 = vcombine.low %v191_v25, %v195_v26 }
  0xaa   :  { %778 = vmatprep.subr.bf16.mxu0 %v11466_v14  ;;  %v11408_v14 = vcombine.high %v152_v4, %v156_v5  ;;  %v11415_v28 = vcombine.low %v160_v12, %v164_v13  ;;  %v1124_v4 = vld [vmem:[#allocation8 + $0x50] sm:$0xff] }
  0xab   :  { %830 = vmatpush1.bf16.msra.mxu1 %v11459_v33  ;;  %v199_v33 = vld [vmem:[#allocation5 + $0x210] sm:$0xff] }
  0xac   :  { %831 = vmatprep.subr.bf16.mxu1 %v11468_v37  ;;  %v184_v37 = vld [vmem:[#allocation5 + $0x198] sm:$0xff]  ;;  %v11453_v49 = vcombine.low %v199_v33, %v203_v34 }
  0xad   :  { %779 = vmatpush1.bf16.msra.mxu0 %v11465_v22  ;;  %v172_v22 = vld [vmem:[#allocation5 + $0x138] sm:$0xff]  ;;  %v11440_v48 = vcombine.high %v184_v37, %v188_v38  ;;  %v11439_v53 = vcombine.low %v184_v37, %v188_v38 }
  0xae   :  { %780 = vmatprep.subr.bf16.mxu0 %v11474_v23  ;;  %v11416_v23 = vcombine.high %v160_v12, %v164_v13  ;;  %v11424_v31 = vcombine.high %v168_v21, %v172_v22  ;;  %v1140_v12 = vld [vmem:[#allocation8 + $0xd0] sm:$0xff] }
  0xaf   :  { %832 = vmatpush1.bf16.msra.mxu1 %v11467_v45  ;;  %v11454_v45 = vcombine.high %v199_v33, %v203_v34  ;;  %v1188_v37 = vld [vmem:[#allocation8 + $0x250] sm:$0xff] }
  0xb0   :  { %833 = vmatprep.subr.bf16.mxu1 %v11476_v47  ;;  %v196_v47 = vld [vmem:[#allocation5 + $0x1f8] sm:$0xff] }
  0xb1   :  { %781 = vmatpush1.bf16.msra.mxu0 %v11473_v30  ;;  %v180_v30 = vld [vmem:[#allocation5 + $0x178] sm:$0xff] }
  0xb2   :  { %864 = vmatprep.subr.bf16.mxu0 %v11390_v36  ;;  %v11423_v36 = vcombine.low %v168_v21, %v172_v22  ;;  %v11432_v39 = vcombine.high %v176_v29, %v180_v30  ;;  %v1156_v21 = vld [vmem:[#allocation8 + $0x150] sm:$0xff] }
  0xb3   :  { %834 = vmatpush1.bf16.msra.mxu1 %v11475_v57 }
  0xb4   :  { %791 = vmatmul.mubr.bf16.vlgmr.msra.gmra.mrb[0].mxu0 %v13998_v40  ;;  %917 = vmatprep.subr.bf16.mxu1 %v11392_v61 }
  0xb5   :  { %11482 = vmatprep.mubr.msk.bf16.mxu0 %vm751_vm0, %v14000_v43  ;;  %865 = vmatpush1.bf16.msra.mxu0 %v11389_v44  ;;  %v211_v44 = vld [vmem:[#allocation5 + $0x270] sm:$0xff] }
  0xb6   :  { %866 = vmatprep.subr.bf16.mxu0 %v11398_v46  ;;  %844 = vmatmul.mubr.bf16.vlgmr.msra.gmra.mrb[0].mxu1 %v13998_v40  ;;  %v192_v46 = vld [vmem:[#allocation5 + $0x1d8] sm:$0xff]  ;;  %v11462_v52 = vcombine.high %v207_v42, %v211_v44  ;;  %v11461_v57 = vcombine.low %v207_v42, %v211_v44 }
  0xb7   :  { %918 = vmatpush1.bf16.msra.mxu1 %v11391_v3  ;;  %11484 = vmatprep.mubr.msk.bf16.mxu1 %vm751_vm0, %v14000_v43  ;;  %v11448_v56 = vcombine.high %v192_v46, %v196_v47  ;;  %v11447_v61 = vcombine.low %v192_v46, %v196_v47  ;;  %v1116_v3 = vld [vmem:[#allocation8 + $0x10] sm:$0xff] }
  0xb8   :  { %919 = vmatprep.subr.bf16.mxu1 %v11400_v6  ;;  %v11510_v16 = vcombine.high %v1116_v3, %v1124_v4  ;;  %v1204_v46 = vld [vmem:[#allocation8 + $0x2d0] sm:$0xff] }
  0xb9   :  { %867 = vmatpush1.bf16.msra.mxu0 %v11397_v54  ;;  %v200_v54 = vld [vmem:[#allocation5 + $0x218] sm:$0xff] }
  0xba   :  { %868 = vmatprep.subr.bf16.mxu0 %v11406_v58  ;;  %v223_v58 = vld [vmem:[#allocation5 + $0x2d0] sm:$0xff]  ;;  %v11456_v1 = vcombine.high %v200_v54, %v204_v55  ;;  %v11455_v6 = vcombine.low %v200_v54, %v204_v55  ;;  %v1220_v54 = vld [vmem:[#allocation8 + $0x350] sm:$0xff]  ;;  %v1178_v55 = vld [vmem:[#allocation8 + $0x200] sm:$0xff] }
  0xbb   :  { %920 = vmatpush1.bf16.msra.mxu1 %v11399_v11  ;;  %v11478_v5 = vcombine.high %v223_v58, %v227_v59  ;;  %v1132_v11 = vld [vmem:[#allocation8 + $0x90] sm:$0xff] }
  0xbc   :  { %801 = vmatmul.mubr.bf16.gmra.mrb[4].mxu0 %v14005_v62  ;;  %921 = vmatprep.subr.bf16.mxu1 %v11408_v14  ;;  %v224_v14 = vld [vmem:[#allocation5 + $0x2d8] sm:$0xff]  ;;  %v11526_v25 = vcombine.high %v1132_v11, %v1140_v12 }
  0xbd   :  { %869 = vmatpush1.bf16.msra.mxu0 %v11405_v63  ;;  %11485 = vmatprep.mubr.msk.bf16.mxu0 %vm751_vm0, %v13992_v18  ;;  %v208_v63 = vld [vmem:[#allocation5 + $0x258] sm:$0xff] }
  0xbe   :  { %870 = vmatprep.subr.bf16.mxu0 %v11414_v2  ;;  %854 = vmatmul.mubr.bf16.gmra.mrb[4].mxu1 %v14005_v62  ;;  %v11469_v2 = vcombine.low %v215_v50, %v219_v51  ;;  %v11464_v9 = vcombine.high %v208_v63, %v212_v0  ;;  %v11463_v13 = vcombine.low %v208_v63, %v212_v0  ;;  %v1194_v63 = vld [vmem:[#allocation8 + $0x280] sm:$0xff] }
  0xbf   :  { %922 = vmatpush1.bf16.msra.mxu1 %v11407_v20  ;;  %11487 = vmatprep.mubr.msk.bf16.mxu1 %vm751_vm0, %v13992_v18  ;;  %v11431_v18 = vcombine.low %v176_v29, %v180_v30  ;;  %v1148_v20 = vld [vmem:[#allocation8 + $0x110] sm:$0xff]  ;;  %v1202_v0 = vld [vmem:[#allocation8 + $0x2c0] sm:$0xff] }
  0xc0   :  { %923 = vmatprep.subr.bf16.mxu1 %v11416_v23  ;;  %v1114_v23 = vld [vmem:[#allocation8] sm:$0xff]  ;;  %v1172_v29 = vld [vmem:[#allocation8 + $0x1d0] sm:$0xff]  ;;  %v11542_v33 = vcombine.high %v1148_v20, %v1156_v21 }
  0xc1   :  { %871 = vmatpush1.bf16.msra.mxu0 %v11413_v7  ;;  %v216_v7 = vld [vmem:[#allocation5 + $0x298] sm:$0xff] }
  0xc2   :  { %872 = vmatprep.subr.bf16.mxu0 %v11422_v10  ;;  %v11477_v10 = vcombine.low %v223_v58, %v227_v59  ;;  %v11472_v17 = vcombine.high %v216_v7, %v220_v8  ;;  %v11471_v22 = vcombine.low %v216_v7, %v220_v8  ;;  %v1210_v7 = vld [vmem:[#allocation8 + $0x300] sm:$0xff] }
  0xc3   :  { %924 = vmatpush1.bf16.msra.mxu1 %v11415_v28  ;;  %v1164_v28 = vld [vmem:[#allocation8 + $0x190] sm:$0xff]  ;;  %v1218_v8 = vld [vmem:[#allocation8 + $0x340] sm:$0xff] }
  0xc4   :  { %925 = vmatprep.subr.bf16.mxu1 %v11424_v31  ;;  %v1130_v31 = vld [vmem:[#allocation8 + $0x80] sm:$0xff]  ;;  %v11558_v42 = vcombine.high %v1164_v28, %v1172_v29 }
  0xc5   :  { %873 = vmatpush1.bf16.msra.mxu0 %v11421_v15  ;;  %v228_v15 = vld [vmem:[#allocation5 + $0x2f8] sm:$0xff] }
  0xc6   :  { %874 = vmatprep.subr.bf16.mxu0 %v11430_v19  ;;  %v11509_v19 = vcombine.low %v1116_v3, %v1124_v4  ;;  %v11480_v26 = vcombine.high %v224_v14, %v228_v15  ;;  %v11479_v30 = vcombine.low %v224_v14, %v228_v15  ;;  %v1244_v4 = vld [vmem:[#allocation8 + $0x410] sm:$0xff]  ;;  %v1226_v14 = vld [vmem:[#allocation8 + $0x380] sm:$0xff] }
  0xc7   :  { %926 = vmatpush1.bf16.msra.mxu1 %v11423_v36  ;;  %v1180_v36 = vld [vmem:[#allocation8 + $0x210] sm:$0xff]  ;;  %v1234_v15 = vld [vmem:[#allocation8 + $0x3c0] sm:$0xff] }
  0xc8   :  { %927 = vmatprep.subr.bf16.mxu1 %v11432_v39  ;;  %v1146_v39 = vld [vmem:[#allocation8 + $0x100] sm:$0xff]  ;;  %v11574_v50 = vcombine.high %v1180_v36, %v1188_v37 }
  0xc9   :  { %875 = vmatpush1.bf16.msra.mxu0 %v11429_v24  ;;  %v1122_v24 = vld [vmem:[#allocation8 + $0x40] sm:$0xff] }
  0xca   :  { %876 = vmatprep.subr.bf16.mxu0 %v11438_v27  ;;  %v11525_v27 = vcombine.low %v1132_v11, %v1140_v12  ;;  %v11506_v34 = vcombine.high %v1114_v23, %v1122_v24  ;;  %v11505_v38 = vcombine.low %v1114_v23, %v1122_v24  ;;  %v1260_v11 = vld [vmem:[#allocation8 + $0x490] sm:$0xff]  ;;  %v1242_v23 = vld [vmem:[#allocation8 + $0x400] sm:$0xff] }
  0xcb   :  { %928 = vmatpush1.bf16.msra.mxu1 %v11431_v18  ;;  %v1196_v18 = vld [vmem:[#allocation8 + $0x290] sm:$0xff]  ;;  %v1250_v24 = vld [vmem:[#allocation8 + $0x440] sm:$0xff] }
  0xcc   :  { %929 = vmatprep.subr.bf16.mxu1 %v11440_v48  ;;  %v1162_v48 = vld [vmem:[#allocation8 + $0x180] sm:$0xff]  ;;  %v11589_v59 = vcombine.low %v1196_v18, %v1204_v46  ;;  %v1268_v12 = vld [vmem:[#allocation8 + $0x4d0] sm:$0xff] }
  0xcd   :  { %877 = vmatpush1.bf16.msra.mxu0 %v11437_v32  ;;  %v1138_v32 = vld [vmem:[#allocation8 + $0xc0] sm:$0xff] }
  0xce   :  { %878 = vmatprep.subr.bf16.mxu0 %v11446_v35  ;;  %v11541_v35 = vcombine.low %v1148_v20, %v1156_v21  ;;  %v11522_v44 = vcombine.high %v1130_v31, %v1138_v32  ;;  %v11521_v47 = vcombine.low %v1130_v31, %v1138_v32  ;;  %v1276_v20 = vld [vmem:[#allocation8 + $0x510] sm:$0xff] }
  0xcf   :  { %930 = vmatpush1.bf16.msra.mxu1 %v11439_v53  ;;  %v1212_v53 = vld [vmem:[#allocation8 + $0x310] sm:$0xff] }
  0xd0   :  { %931 = vmatprep.subr.bf16.mxu1 %v11448_v56  ;;  %v1186_v56 = vld [vmem:[#allocation8 + $0x240] sm:$0xff]  ;;  %v11605_v3 = vcombine.low %v1212_v53, %v1220_v54  ;;  %v1284_v21 = vld [vmem:[#allocation8 + $0x550] sm:$0xff] }
  0xd1   :  { %879 = vmatpush1.bf16.msra.mxu0 %v11445_v41  ;;  %v1154_v41 = vld [vmem:[#allocation8 + $0x140] sm:$0xff]  ;;  %v11670_v31 = vcombine.high %v1276_v20, %v1284_v21  ;;  %v1292_v32 = vld [vmem:[#allocation8 + $0x590] sm:$0xff] }
  0xd2   :  { %880 = vmatprep.subr.bf16.mxu0 %v11454_v45  ;;  %v11557_v45 = vcombine.low %v1164_v28, %v1172_v29  ;;  %v11538_v51 = vcombine.high %v1146_v39, %v1154_v41  ;;  %v11617_v28 = vcombine.low %v1226_v14, %v1234_v15  ;;  %v1258_v29 = vld [vmem:[#allocation8 + $0x480] sm:$0xff] }
  0xd3   :  { %932 = vmatpush1.bf16.msra.mxu1 %v11447_v61  ;;  %v1236_v61 = vld [vmem:[#allocation8 + $0x3d0] sm:$0xff] }
  0xd4   :  { %933 = vmatprep.subr.bf16.mxu1 %v11456_v1  ;;  %v11606_v1 = vcombine.high %v1212_v53, %v1220_v54  ;;  %v14030_v53 = vld [vmem:[#allocation8 + $0x850] sm:$0xff]  ;;  %v1290_v54 = vld [vmem:[#allocation8 + $0x580] sm:$0xff] }
  0xd5   :  { %881 = vmatpush1.bf16.msra.mxu0 %v11453_v49  ;;  %v1170_v49 = vld [vmem:[#allocation8 + $0x1c0] sm:$0xff] }
  0xd6   :  { %882 = vmatprep.subr.bf16.mxu0 %v11462_v52  ;;  %v11573_v52 = vcombine.low %v1180_v36, %v1188_v37  ;;  %v11554_v58 = vcombine.high %v1162_v48, %v1170_v49  ;;  %v11633_v36 = vcombine.low %v1242_v23, %v1250_v24  ;;  %v1274_v37 = vld [vmem:[#allocation8 + $0x500] sm:$0xff] }
  0xd7   :  { %934 = vmatpush1.bf16.msra.mxu1 %v11455_v6  ;;  %v11569_v6 = vcombine.low %v1178_v55, %v1186_v56 }
  0xd8   :  { %935 = vmatprep.subr.bf16.mxu1 %v11464_v9 }
  0xd9   :  { %883 = vmatpush1.bf16.msra.mxu0 %v11461_v57  ;;  %v11590_v57 = vcombine.high %v1196_v18, %v1204_v46  ;;  %v1324_v18 = vld [vmem:[#allocation8 + $0x690] sm:$0xff] }
  0xda   :  { %884 = vmatprep.subr.bf16.mxu0 %v11470_v60  ;;  %v1228_v60 = vld [vmem:[#allocation8 + $0x390] sm:$0xff] }
  0xdb   :  { %936 = vmatpush1.bf16.msra.mxu1 %v11463_v13  ;;  %v11622_v9 = vcombine.high %v1228_v60, %v1236_v61  ;;  %v11585_v13 = vcombine.low %v1194_v63, %v1202_v0  ;;  %v1332_v46 = vld [vmem:[#allocation8 + $0x6d0] sm:$0xff] }
  0xdc   :  { %937 = vmatprep.subr.bf16.mxu1 %v11472_v17  ;;  %v11602_v17 = vcombine.high %v1210_v7, %v1218_v8 }
  0xdd   :  { %885 = vmatpush1.bf16.msra.mxu0 %v11469_v2  ;;  %v11570_v2 = vcombine.high %v1178_v55, %v1186_v56 }
  0xde   :  { %886 = vmatprep.subr.bf16.mxu0 %v11478_v5  ;;  %v1252_v5 = vld [vmem:[#allocation8 + $0x450] sm:$0xff] }
  0xdf   :  { %938 = vmatpush1.bf16.msra.mxu1 %v11471_v22  ;;  %v11601_v22 = vcombine.low %v1210_v7, %v1218_v8  ;;  %v1322_v7 = vld [vmem:[#allocation8 + $0x680] sm:$0xff] }
  0xe0   :  { %939 = vmatprep.subr.bf16.mxu1 %v11480_v26  ;;  %v11618_v26 = vcombine.high %v1226_v14, %v1234_v15  ;;  %v1330_v8 = vld [vmem:[#allocation8 + $0x6c0] sm:$0xff] }
  0xe1   :  { %887 = vmatpush1.bf16.msra.mxu0 %v11477_v10  ;;  %v11621_v10 = vcombine.low %v1228_v60, %v1236_v61  ;;  %v1340_v61 = vld [vmem:[#allocation8 + $0x710] sm:$0xff]  ;;  %v11713_v15 = vcombine.low %v1322_v7, %v1330_v8 }
  0xe2   :  { %7766 = vmatprep.subr.bf16.mxu0 %v11510_v16  ;;  %v11638_v16 = vcombine.high %v1244_v4, %v1252_v5 }
  0xe3   :  { %940 = vmatpush1.bf16.msra.mxu1 %v11479_v30  ;;  %v1266_v30 = vld [vmem:[#allocation8 + $0x4c0] sm:$0xff] }
  0xe4   :  { %897 = vmatmul.mubr.bf16.vlgmr.msra.gmra.mrb[8].mxu0 %v13998_v40  ;;  %7342 = vmatprep.subr.bf16.mxu1 %v11506_v34  ;;  %v1300_v34 = vld [vmem:[#allocation8 + $0x5d0] sm:$0xff] }
  0xe5   :  { %11486 = vmatprep.mubr.msk.bf16.mxu0 %vm751_vm0, %v14000_v43  ;;  %7767 = vmatpush1.bf16.msra.mxu0 %v11509_v19  ;;  %v11637_v19 = vcombine.low %v1244_v4, %v1252_v5  ;;  %v1356_v5 = vld [vmem:[#allocation8 + $0x790] sm:$0xff] }
  0xe6   :  { %7768 = vmatprep.subr.bf16.mxu0 %v11526_v25  ;;  %950 = vmatmul.mubr.bf16.vlgmr.msra.gmra.mrb[8].mxu1 %v13998_v40  ;;  %v11537_v40 = vcombine.low %v1146_v39, %v1154_v41  ;;  %v11654_v25 = vcombine.high %v1260_v11, %v1268_v12  ;;  %v11686_v39 = vcombine.high %v1292_v32, %v1300_v34  ;;  %v1308_v41 = vld [vmem:[#allocation8 + $0x610] sm:$0xff] }
  0xe7   :  { %7343 = vmatpush1.bf16.msra.mxu1 %v11505_v38  ;;  %11488 = vmatprep.mubr.msk.bf16.mxu1 %vm751_vm0, %v14000_v43  ;;  %v11553_v43 = vcombine.low %v1162_v48, %v1170_v49  ;;  %v1282_v38 = vld [vmem:[#allocation8 + $0x540] sm:$0xff] }
  0xe8   :  { %7344 = vmatprep.subr.bf16.mxu1 %v11522_v44  ;;  %v1316_v44 = vld [vmem:[#allocation8 + $0x650] sm:$0xff]  ;;  %v14024_v49 = vld [vmem:[#allocation8 + $0x800] sm:$0xff] }
  0xe9   :  { %7769 = vmatpush1.bf16.msra.mxu0 %v11525_v27  ;;  %v11653_v27 = vcombine.low %v1260_v11, %v1268_v12  ;;  %v11702_v48 = vcombine.high %v1308_v41, %v1316_v44  ;;  %v11714_v11 = vcombine.high %v1322_v7, %v1330_v8  ;;  %v1338_v12 = vld [vmem:[#allocation8 + $0x700] sm:$0xff] }
  0xea   :  { %7770 = vmatprep.subr.bf16.mxu0 %v11542_v33  ;;  %v11634_v33 = vcombine.high %v1242_v23, %v1250_v24 }
  0xeb   :  { %7345 = vmatpush1.bf16.msra.mxu1 %v11521_v47  ;;  %v11649_v47 = vcombine.low %v1258_v29, %v1266_v30 }
  0xec   :  { %907 = vmatmul.mubr.bf16.gmra.mrb[12].mxu0 %v14005_v62  ;;  %7346 = vmatprep.subr.bf16.mxu1 %v11538_v51  ;;  %v14028_v51 = vld [vmem:[#allocation8 + $0x810] sm:$0xff] }
  0xed   :  { %7771 = vmatpush1.bf16.msra.mxu0 %v11541_v35  ;;  %v11669_v35 = vcombine.low %v1276_v20, %v1284_v21  ;;  %v11765_v56 = vcombine.low %v14028_v51, %v14030_v53  ;;  %v1362_v20 = vld [vmem:[#allocation8 + $0x7c0] sm:$0xff] }
  0xee   :  { %7772 = vmatprep.subr.bf16.mxu0 %v11558_v42  ;;  %960 = vmatmul.mubr.bf16.gmra.mrb[12].mxu1 %v14005_v62  ;;  %v11586_v62 = vcombine.high %v1194_v63, %v1202_v0  ;;  %v11650_v42 = vcombine.high %v1258_v29, %v1266_v30  ;;  %v1306_v63 = vld [vmem:[#allocation8 + $0x600] sm:$0xff] }
  0xef   :  { %7347 = vmatpush1.bf16.msra.mxu1 %v11537_v40  ;;  %v1298_v40 = vld [vmem:[#allocation8 + $0x5c0] sm:$0xff] }
  0xf0   :  { %7348 = vmatprep.subr.bf16.mxu1 %v11554_v58  ;;  %v11665_v58 = vcombine.low %v1274_v37, %v1282_v38  ;;  %v11682_v60 = vcombine.high %v1290_v54, %v1298_v40  ;;  %v1314_v0 = vld [vmem:[#allocation8 + $0x640] sm:$0xff] }
  0xf1   :  { %7773 = vmatpush1.bf16.msra.mxu0 %v11557_v45  ;;  %v11685_v45 = vcombine.low %v1292_v32, %v1300_v34  ;;  %v11698_v4 = vcombine.high %v1306_v63, %v1314_v0 }
  0xf2   :  { %7774 = vmatprep.subr.bf16.mxu0 %v11574_v50  ;;  %v14026_v50 = vld [vmem:[#allocation8 + $0x840] sm:$0xff] }
  0xf3   :  { %7349 = vmatpush1.bf16.msra.mxu1 %v11553_v43  ;;  %v11761_v55 = vcombine.low %v14024_v49, %v14026_v50  ;;  %v1348_v43 = vld [vmem:[#allocation8 + $0x750] sm:$0xff]  ;;  %v11762_v24 = vcombine.high %v14024_v49, %v14026_v50 }
  0xf4   :  { %7350 = vmatprep.subr.bf16.mxu1 %v11570_v2  ;;  %v11681_v2 = vcombine.low %v1290_v54, %v1298_v40  ;;  %v1388_v54 = vld [vmem:[#allocation8 + $0x890] sm:$0xff] }
  0xf5   :  { %7775 = vmatpush1.bf16.msra.mxu0 %v11573_v52  ;;  %v11666_v52 = vcombine.high %v1274_v37, %v1282_v38  ;;  %v1396_v40 = vld [vmem:[#allocation8 + $0x8d0] sm:$0xff] }
  0xf6   :  { %7776 = vmatprep.subr.bf16.mxu0 %v11590_v57  ;;  %v11701_v57 = vcombine.low %v1308_v41, %v1316_v44 }
  0xf7   :  { %7351 = vmatpush1.bf16.msra.mxu1 %v11569_v6  ;;  %v1364_v6 = vld [vmem:[#allocation8 + $0x7d0] sm:$0xff] }
  0xf8   :  { %7352 = vmatprep.subr.bf16.mxu1 %v11586_v62  ;;  %v11697_v62 = vcombine.low %v1306_v63, %v1314_v0  ;;  %v11749_v14 = vcombine.low %v1356_v5, %v1364_v6 }
  0xf9   :  { %7777 = vmatpush1.bf16.msra.mxu0 %v11589_v59  ;;  %v11718_v59 = vcombine.high %v1324_v18, %v1332_v46 }
  0xfa   :  { %7778 = vmatprep.subr.bf16.mxu0 %v11606_v1  ;;  %v11717_v1 = vcombine.low %v1324_v18, %v1332_v46  ;;  %v14060_v46 = vld [vmem:[#allocation8 + $0x880] sm:$0xff] }
  0xfb   :  { %7353 = vmatpush1.bf16.msra.mxu1 %v11585_v13  ;;  %v1346_v13 = vld [vmem:[#allocation8 + $0x740] sm:$0xff] }
  0xfc   :  { %7354 = vmatprep.subr.bf16.mxu1 %v11602_v17  ;;  %v11730_v17 = vcombine.high %v1338_v12, %v1346_v13  ;;  %v11729_v21 = vcombine.low %v1338_v12, %v1346_v13 }
  0xfd   :  { %7779 = vmatpush1.bf16.msra.mxu0 %v11605_v3  ;;  %v11734_v3 = vcombine.high %v1340_v61, %v1348_v43 }
  0xfe   :  { %7780 = vmatprep.subr.bf16.mxu0 %v11622_v9  ;;  %v11733_v9 = vcombine.low %v1340_v61, %v1348_v43 }
  0xff   :  { %7355 = vmatpush1.bf16.msra.mxu1 %v11601_v22 }
 0x100   :  { %7356 = vmatprep.subr.bf16.mxu1 %v11618_v26 }
 0x101   :  { %7781 = vmatpush1.bf16.msra.mxu0 %v11621_v10  ;;  %v11750_v10 = vcombine.high %v1356_v5, %v1364_v6 }
 0x102   :  { %7782 = vmatprep.subr.bf16.mxu0 %v11638_v16  ;;  %v11766_v16 = vcombine.high %v14028_v51, %v14030_v53 }
 0x103   :  { %7357 = vmatpush1.bf16.msra.mxu1 %v11617_v28  ;;  %v14045_v28 = vld [vmem:[#allocation7] sm:$0xff] }
 0x104   :  { %7358 = vmatprep.subr.bf16.mxu1 %v11634_v33 }
 0x105   :  { %7783 = vmatpush1.bf16.msra.mxu0 %v11637_v19  ;;  %v1354_v19 = vld [vmem:[#allocation8 + $0x780] sm:$0xff] }
 0x106   :  { %7784 = vmatprep.subr.bf16.mxu0 %v11654_v25  ;;  %v11746_v22 = vcombine.high %v1354_v19, %v1362_v20  ;;  %v11745_v23 = vcombine.low %v1354_v19, %v1362_v20  ;;  %v231_v25 = vlaneseq }
 0x107   :  { %7359 = vmatpush1.bf16.msra.mxu1 %v11633_v36 }
 0x108   :  { %7360 = vmatprep.subr.bf16.mxu1 %v11650_v42  ;;  %v14040_v26 = vshrl.u32 %v231_v25, 7 }
 0x109   :  { %7785 = vmatpush1.bf16.msra.mxu0 %v11653_v27 }
 0x10a   :  { %7786 = vmatprep.subr.bf16.mxu0 %v11670_v31  ;;  %v14043_v27 = vsub.s32 0, %v14040_v26  ;;  %v14048_v29 = vsub.s32 1, %v14040_v26  ;;  %v14055_v37 = vsub.s32 2, %v14040_v26  ;;  %v14058_v42 = vsub.s32 3, %v14040_v26 }
 0x10b   :  { %7361 = vmatpush1.bf16.msra.mxu1 %v11649_v47  ;;  %v14062_v47 = vld [vmem:[#allocation8 + $0x8c0] sm:$0xff] }
 0x10c   :  { %7362 = vmatprep.subr.bf16.mxu1 %v11666_v52  ;;  %14681 = vst [vmem:[#allocation24_spill] sm:$0xff] %v14043_v27  ;;  %14682 = vst [vmem:[#allocation25_spill] sm:$0xff] %v14048_v29  ;;  %v234_v30 = vrot.slane %v14045_v28, %v14043_v27  ;;  %v238_v31 = vrot.slane %v14045_v28, %v14048_v29  ;;  %v14076_v61 = vrot.slane %v14045_v28, %v14058_v42 }
 0x10d   :  { %7787 = vmatpush1.bf16.msra.mxu0 %v11669_v35  ;;  %14683 = vst [vmem:[#allocation26_spill] sm:$0xff] %v14055_v37  ;;  %14684 = vst [vmem:[#allocation27_spill] sm:$0xff] %v14058_v42  ;;  %v11777_v0 = vcombine.low %v14060_v46, %v14062_v47 }
 0x10e   :  { %7788 = vmatprep.subr.bf16.mxu0 %v11686_v39 }
 0x10f   :  { %7363 = vmatpush1.bf16.msra.mxu1 %v11665_v58 }
 0x110   :  { %7364 = vmatprep.subr.bf16.mxu1 %v11682_v60  ;;  %v14072_v60 = vld [vmem:[#allocation8 + $0x940] sm:$0xff] }
 0x111   :  { %7789 = vmatpush1.bf16.msra.mxu0 %v11685_v45 }
 0x112   :  { %7790 = vmatprep.subr.bf16.mxu0 %v11702_v48 }
 0x113   :  { %7365 = vmatpush1.bf16.msra.mxu1 %v11681_v2  ;;  %v11778_v2 = vcombine.high %v14060_v46, %v14062_v47  ;;  %v1434_v47 = vld [vmem:[#allocation8 + $0xa00] sm:$0xff] }
 0x114   :  { %7366 = vmatprep.subr.bf16.mxu1 %v11698_v4  ;;  %v11782_v4 = vcombine.high %v1388_v54, %v1396_v40 }
 0x115   :  { %7791 = vmatpush1.bf16.msra.mxu0 %v11701_v57  ;;  %v14066_v57 = vrot.slane %v14045_v28, %v14055_v37 }
 0x116   :  { %7792 = vmatprep.subr.bf16.mxu0 %v11718_v59  ;;  %v14070_v59 = vld [vmem:[#allocation8 + $0x900] sm:$0xff] }
 0x117   :  { %7367 = vmatpush1.bf16.msra.mxu1 %v11697_v62  ;;  %v11793_v8 = vcombine.low %v14070_v59, %v14072_v60  ;;  %v14090_v62 = vld [vmem:[#allocation8 + $0x950] sm:$0xff] }
 0x118   :  { %7368 = vmatprep.subr.bf16.mxu1 %v11714_v11 }
 0x119   :  { %7793 = vmatpush1.bf16.msra.mxu0 %v11717_v1 }
 0x11a   :  { %7794 = vmatprep.subr.bf16.mxu0 %v11734_v3  ;;  %v11781_v3 = vcombine.low %v1388_v54, %v1396_v40  ;;  %v1442_v40 = vld [vmem:[#allocation8 + $0xa40] sm:$0xff] }
 0x11b   :  { %7369 = vmatpush1.bf16.msra.mxu1 %v11713_v15 }
 0x11c   :  { %7370 = vmatprep.subr.bf16.mxu1 %v11730_v17 }
 0x11d   :  { %7795 = vmatpush1.bf16.msra.mxu0 %v11733_v9  ;;  %v14088_v9 = vld [vmem:[#allocation8 + $0x910] sm:$0xff] }
 0x11e   :  { %7796 = vmatprep.subr.bf16.mxu0 %v11750_v10  ;;  %v11798_v49 = vcombine.high %v14088_v9, %v14090_v62  ;;  %v11797_v53 = vcombine.low %v14088_v9, %v14090_v62 }
 0x11f   :  { %7371 = vmatpush1.bf16.msra.mxu1 %v11729_v21  ;;  %v14104_v21 = vld [vmem:[#allocation8 + $0x980] sm:$0xff] }
 0x120   :  { %7372 = vmatprep.subr.bf16.mxu1 %v11746_v22  ;;  %v14106_v22 = vld [vmem:[#allocation8 + $0x9c0] sm:$0xff] }
 0x121   :  { %7797 = vmatpush1.bf16.msra.mxu0 %v11749_v14  ;;  %v11794_v14 = vcombine.high %v14070_v59, %v14072_v60  ;;  %v1452_v59 = vld [vmem:[#allocation8 + $0xa90] sm:$0xff] }
 0x122   :  { %7819 = vmatprep.subr.bf16.mxu0 %v11766_v16  ;;  %v1460_v60 = vld [vmem:[#allocation8 + $0xad0] sm:$0xff] }
 0x123   :  { %7373 = vmatpush1.bf16.msra.mxu1 %v11745_v23 }
 0x124   :  { %7395 = vmatprep.subr.bf16.mxu1 %v11762_v24 }
 0x187   :  { %v792_v32 = vpop.f32.mrb[0].mxu0 }
 0x188   :  { %v793_v33 = vadd.f32 %v792_v32, %v234_v30  ;;  %v794_v34 = vpop.f32.mrb[1].mxu0 }
 0x189   :  { %v795_v35 = vadd.f32 %v794_v34, %v238_v31  ;;  %v796_v36 = vpop.f32.mrb[2].mxu0  ;;  %v845_v7 = vpop.f32.mrb[0].mxu1 }
 0x18a   :  { %v970_v38 = vmax.f32 %v793_v33, 0.0  ;;  %v797_v39 = vadd.f32 %v796_v36, %v234_v30  ;;  %v798_v41 = vpop.f32.mrb[3].mxu0  ;;  %v846_v12 = vadd.f32 %v845_v7, %v14066_v57  ;;  %v847_v13 = vpop.f32.mrb[1].mxu1  ;;  %v1428_v33 = vld [vmem:[#allocation8 + $0x9d0] sm:$0xff]  ;;  %v11810_v36 = vcombine.high %v14104_v21, %v14106_v22 }
 0x18b   :  { %v971_v44 = vmax.f32 %v795_v35, 0.0  ;;  %v799_v45 = vadd.f32 %v798_v41, %v238_v31  ;;  %v848_v19 = vadd.f32 %v847_v13, %v14076_v61  ;;  %v849_v20 = vpop.f32.mrb[2].mxu1  ;;  %v1458_v13 = vld [vmem:[#allocation8 + $0xac0] sm:$0xff] }
 0x18c   :  { %v978_v18 = vmax.f32 %v797_v39, 0.0  ;;  %v972_v25 = vmax.f32 %v846_v12, 0.0  ;;  %v851_v32 = vpop.f32.mrb[3].mxu1  ;;  %v1450_v12 = vld [vmem:[#allocation8 + $0xa80] sm:$0xff] }
 0x18d   :  { %v12821_v48 = vpack.c.bf16 %v971_v44, %v970_v38  ;;  %v979_v52 = vmax.f32 %v799_v45, 0.0  ;;  %v852_v51 = vadd.f32 %v851_v32, %v14076_v61  ;;  %v1476_v32 = vld [vmem:[#allocation8 + $0xb50] sm:$0xff] }
 0x18e   :  { %v14068_v58 = vpack.c.bf16 %v978_v18, %v970_v38 }
 0x18f   :  { %1098 = vst [vmem:[#allocation14] sm:$0xff] %v12821_v48  ;;  %v14078_v43 = vpack.c.bf16 %v979_v52, %v971_v44  ;;  %v12825_v63 = vpack.c.bf16 %v979_v52, %v978_v18  ;;  %v802_v1 = vpop.f32.mrb[4].mxu0  ;;  %v981_v41 = vmax.f32 %v852_v51, 0.0 }
 0x190   :  { %v803_v5 = vadd.f32 %v802_v1, %v234_v30  ;;  %v804_v6 = vpop.f32.mrb[5].mxu0  ;;  %v1444_v1 = vld [vmem:[#allocation8 + $0xa50] sm:$0xff] }
 0x191   :  { %1102 = vst [vmem:[#allocation14 + $0x20] sm:$0xff] %v12825_v63  ;;  %7374 = vmatprep.mubr.bf16.mxu1 %v14078_v43  ;;  %7798 = vmatprep.mubr.bf16.mxu0 %v14078_v43  ;;  %v805_v10 = vadd.f32 %v804_v6, %v238_v31  ;;  %v806_v11 = vpop.f32.mrb[6].mxu0  ;;  %v855_v54 = vpop.f32.mrb[4].mxu1  ;;  %v1436_v63 = vld [vmem:[#allocation8 + $0xa10] sm:$0xff] }
 0x192   :  { %7375 = vmatmul.mubr.bf16.vlgmr.msra.gmra.mrb[16].mxu1 %v14068_v58  ;;  %7799 = vmatmul.mubr.bf16.vlgmr.msra.gmra.mrb[16].mxu0 %v14068_v58  ;;  %v986_v15 = vmax.f32 %v803_v5, 0.0  ;;  %v807_v16 = vadd.f32 %v806_v11, %v234_v30  ;;  %v808_v17 = vpop.f32.mrb[7].mxu0  ;;  %v850_v30 = vadd.f32 %v849_v20, %v14066_v57  ;;  %v11809_v5 = vcombine.low %v14104_v21, %v14106_v22 }
 0x193   :  { %7396 = vmatpush1.bf16.msra.mxu1 %v11761_v55  ;;  %7820 = vmatpush1.bf16.msra.mxu0 %v11765_v56  ;;  %v987_v23 = vmax.f32 %v805_v10, 0.0  ;;  %v809_v24 = vadd.f32 %v808_v17, %v238_v31  ;;  %v973_v55 = vmax.f32 %v848_v19, 0.0  ;;  %v1420_v56 = vld [vmem:[#allocation8 + $0x990] sm:$0xff]  ;;  %v11826_v10 = vcombine.high %v1434_v47, %v1442_v40 }
 0x194   :  { %7397 = vmatprep.subr.bf16.mxu1 %v11778_v2  ;;  %7821 = vmatprep.subr.bf16.mxu0 %v11782_v4  ;;  %v994_v50 = vmax.f32 %v807_v16, 0.0  ;;  %v980_v35 = vmax.f32 %v850_v30, 0.0  ;;  %v11814_v46 = vcombine.high %v1420_v56, %v1428_v33  ;;  %v857_v2 = vpop.f32.mrb[5].mxu1  ;;  %v11813_v6 = vcombine.low %v1420_v56, %v1428_v33  ;;  %v1468_v30 = vld [vmem:[#allocation8 + $0xb10] sm:$0xff]  ;;  %v1490_v56 = vld [vmem:[#allocation8 + $0xbc0] sm:$0xff] }
 0x195   :  { %v12829_v34 = vpack.c.bf16 %v987_v23, %v986_v15  ;;  %v995_v31 = vmax.f32 %v809_v24, 0.0  ;;  %v12822_v39 = vpack.c.bf16 %v973_v55, %v972_v25  ;;  %v14122_v48 = vpack.c.bf16 %v981_v41, %v973_v55  ;;  %v859_v4 = vpop.f32.mrb[6].mxu1  ;;  %v1484_v33 = vld [vmem:[#allocation8 + $0xb90] sm:$0xff] }
 0x196   :  { %v14116_v38 = vpack.c.bf16 %v994_v50, %v986_v15  ;;  %v14120_v18 = vpack.c.bf16 %v980_v35, %v972_v25  ;;  %v12826_v52 = vpack.c.bf16 %v981_v41, %v980_v35  ;;  %v860_v9 = vadd.f32 %v859_v4, %v14066_v57  ;;  %v861_v62 = vpop.f32.mrb[7].mxu1  ;;  %v1474_v25 = vld [vmem:[#allocation8 + $0xb40] sm:$0xff] }
 0x197   :  { %7398 = vmatpush1.bf16.msra.mxu1 %v11777_v0  ;;  %7822 = vmatpush1.bf16.msra.mxu0 %v11781_v3  ;;  %1106 = vst [vmem:[#allocation14 + $0x40] sm:$0xff] %v12829_v34  ;;  %v14118_v44 = vpack.c.bf16 %v995_v31, %v987_v23  ;;  %v12833_v45 = vpack.c.bf16 %v995_v31, %v994_v50  ;;  %1099 = vst [vmem:[#allocation14 + $0x8] sm:$0xff] %v12822_v39  ;;  %v1492_v34 = vld [vmem:[#allocation8 + $0xbd0] sm:$0xff]  ;;  %v1498_v41 = vld [vmem:[#allocation8 + $0xc00] sm:$0xff] }
 0x198   :  { %7399 = vmatprep.subr.bf16.mxu1 %v11794_v14  ;;  %7823 = vmatprep.subr.bf16.mxu0 %v11798_v49  ;;  %v856_v0 = vadd.f32 %v855_v54, %v14066_v57  ;;  %1103 = vst [vmem:[#allocation14 + $0x28] sm:$0xff] %v12826_v52  ;;  %v858_v3 = vadd.f32 %v857_v2, %v14076_v61  ;;  %v1516_v2 = vld [vmem:[#allocation8 + $0xc90] sm:$0xff] }
 0x199   :  { %1110 = vst [vmem:[#allocation14 + $0x60] sm:$0xff] %v12833_v45  ;;  %7384 = vmatprep.mubr.bf16.mxu1 %v14118_v44  ;;  %7808 = vmatprep.mubr.bf16.mxu0 %v14118_v44  ;;  %v11830_v11 = vcombine.high %v1436_v63, %v1444_v1  ;;  %v862_v15 = vadd.f32 %v861_v62, %v14076_v61  ;;  %v1466_v61 = vld [vmem:[#allocation8 + $0xb00] sm:$0xff]  ;;  %v14144_v62 = vsub.s32 4, %v14040_v26 }
 0x19a   :  { %7385 = vmatmul.mubr.bf16.gmra.mrb[20].mxu1 %v14116_v38  ;;  %7809 = vmatmul.mubr.bf16.gmra.mrb[20].mxu0 %v14116_v38  ;;  %v988_v7 = vmax.f32 %v856_v0, 0.0  ;;  %v989_v14 = vmax.f32 %v858_v3, 0.0  ;;  %v11825_v16 = vcombine.low %v1434_v47, %v1442_v40  ;;  %v11829_v19 = vcombine.low %v1436_v63, %v1444_v1  ;;  %v1506_v45 = vld [vmem:[#allocation8 + $0xc40] sm:$0xff]  ;;  %v1508_v47 = vld [vmem:[#allocation8 + $0xc50] sm:$0xff] }
 0x19b   :  { %7400 = vmatpush1.bf16.msra.mxu1 %v11793_v8  ;;  %7824 = vmatpush1.bf16.msra.mxu0 %v11797_v53  ;;  %v996_v8 = vmax.f32 %v860_v9, 0.0  ;;  %v997_v57 = vmax.f32 %v862_v15, 0.0  ;;  %v11842_v20 = vcombine.high %v1450_v12, %v1458_v13  ;;  %v11846_v22 = vcombine.high %v1452_v59, %v1460_v60  ;;  %v1482_v53 = vld [vmem:[#allocation8 + $0xb80] sm:$0xff]  ;;  %v1524_v3 = vld [vmem:[#allocation8 + $0xcd0] sm:$0xff] }
 0x19c   :  { %7401 = vmatprep.subr.bf16.mxu1 %v11810_v36  ;;  %7825 = vmatprep.subr.bf16.mxu0 %v11814_v46  ;;  %v12830_v17 = vpack.c.bf16 %v989_v14, %v988_v7  ;;  %v11841_v49 = vcombine.low %v1450_v12, %v1458_v13  ;;  %v11845_v50 = vcombine.low %v1452_v59, %v1460_v60  ;;  %v1500_v46 = vld [vmem:[#allocation8 + $0xc10] sm:$0xff]  ;;  %v1514_v1 = vld [vmem:[#allocation8 + $0xc80] sm:$0xff]  ;;  %v14147_v13 = vsub.s32 5, %v14040_v26 }
 0x19d   :  { %7427 = vmatprep.mubr.bf16.mxu1 %v14122_v48  ;;  %7851 = vmatprep.mubr.bf16.mxu0 %v14122_v48  ;;  %v14139_v21 = vpack.c.bf16 %v996_v8, %v988_v7  ;;  %v14141_v23 = vpack.c.bf16 %v997_v57, %v989_v14  ;;  %v12834_v24 = vpack.c.bf16 %v997_v57, %v996_v8  ;;  %v1522_v0 = vld [vmem:[#allocation8 + $0xcc0] sm:$0xff]  ;;  %v1540_v12 = vld [vmem:[#allocation8 + $0xd50] sm:$0xff] }
 0x19e   :  { %1107 = vst [vmem:[#allocation14 + $0x48] sm:$0xff] %v12830_v17  ;;  %v11858_v55 = vcombine.high %v1466_v61, %v1474_v25  ;;  %v11862_v51 = vcombine.high %v1468_v30, %v1476_v32  ;;  %v11857_v31 = vcombine.low %v1466_v61, %v1474_v25  ;;  %v11861_v35 = vcombine.low %v1468_v30, %v1476_v32  ;;  %v1530_v9 = vld [vmem:[#allocation8 + $0xd00] sm:$0xff]  ;;  %v1548_v57 = vld [vmem:[#allocation8 + $0xd90] sm:$0xff] }
 0x19f   :  { %7402 = vmatpush1.bf16.msra.mxu1 %v11809_v5  ;;  %7826 = vmatpush1.bf16.msra.mxu0 %v11813_v6  ;;  %1111 = vst [vmem:[#allocation14 + $0x68] sm:$0xff] %v12834_v24  ;;  %v11874_v36 = vcombine.high %v1482_v53, %v1490_v56  ;;  %v11878_v39 = vcombine.high %v1484_v33, %v1492_v34  ;;  %v1546_v8 = vld [vmem:[#allocation8 + $0xd80] sm:$0xff] }
 0x1a0   :  { %7403 = vmatprep.subr.bf16.mxu1 %v11826_v10  ;;  %7827 = vmatprep.subr.bf16.mxu0 %v11830_v11  ;;  %v11873_v52 = vcombine.low %v1482_v53, %v1490_v56  ;;  %v11877_v54 = vcombine.low %v1484_v33, %v1492_v34  ;;  %v11890_v40 = vcombine.high %v1498_v41, %v1506_v45  ;;  %v1538_v10 = vld [vmem:[#allocation8 + $0xd40] sm:$0xff]  ;;  %v1532_v11 = vld [vmem:[#allocation8 + $0xd10] sm:$0xff]  ;;  %v14166_v34 = vsub.s32 6, %v14040_v26 }
 0x1a1   :  { %v11894_v63 = vcombine.high %v1500_v46, %v1508_v47  ;;  %v11889_v4 = vcombine.low %v1498_v41, %v1506_v45  ;;  %v11893_v5 = vcombine.low %v1500_v46, %v1508_v47  ;;  %v11906_v6 = vcombine.high %v1514_v1, %v1522_v0  ;;  %v1554_v17 = vld [vmem:[#allocation8 + $0xdc0] sm:$0xff]  ;;  %v1572_v53 = vld [vmem:[#allocation8 + $0xe50] sm:$0xff] }
 0x1a2   :  { %v11910_v7 = vcombine.high %v1516_v2, %v1524_v3  ;;  %v11905_v14 = vcombine.low %v1514_v1, %v1522_v0  ;;  %v11909_v15 = vcombine.low %v1516_v2, %v1524_v3  ;;  %v11922_v59 = vcombine.high %v1530_v9, %v1538_v10  ;;  %v14157_v32 = vld [vmem:[#allocation8 + $0xe00] sm:$0xff]  ;;  %v14180_v1 = vld [vmem:[#allocation8 + $0xe90] sm:$0xff] }
 0x1a3   :  { %7404 = vmatpush1.bf16.msra.mxu1 %v11825_v16  ;;  %7828 = vmatpush1.bf16.msra.mxu0 %v11829_v19  ;;  %v11926_v60 = vcombine.high %v1532_v11, %v1540_v12  ;;  %v14151_v16 = vrot.slane %v14045_v28, %v14144_v62  ;;  %v1556_v19 = vld [vmem:[#allocation8 + $0xdd0] sm:$0xff]  ;;  %v11925_v61 = vcombine.low %v1532_v11, %v1540_v12 }
 0x1a4   :  { %7405 = vmatprep.subr.bf16.mxu1 %v11842_v20  ;;  %7829 = vmatprep.subr.bf16.mxu0 %v11846_v22  ;;  %v14155_v20 = vrot.slane %v14045_v28, %v14147_v13  ;;  %v11921_v22 = vcombine.low %v1530_v9, %v1538_v10  ;;  %v11938_v25 = vcombine.high %v1546_v8, %v1554_v17  ;;  %v14182_v0 = vld [vmem:[#allocation8 + $0xed0] sm:$0xff]  ;;  %v14193_v9 = vld [vmem:[#allocation8 + $0xf40] sm:$0xff] }
 0x1a5   :  { %v11942_v30 = vcombine.high %v1548_v57, %v1556_v19  ;;  %v11937_v41 = vcombine.low %v1546_v8, %v1554_v17  ;;  %v11941_v45 = vcombine.low %v1548_v57, %v1556_v19  ;;  %v11974_v8 = vcombine.high %v14180_v1, %v14182_v0 }
 0x1a6   :  { %v11973_v19 = vcombine.low %v14180_v1, %v14182_v0  ;;  %v1620_v1 = vld [vmem:[#allocation8 + $0xfd0] sm:$0xff] }
 0x1a7   :  { %7406 = vmatpush1.bf16.msra.mxu1 %v11841_v49  ;;  %7830 = vmatpush1.bf16.msra.mxu0 %v11845_v50 }
 0x1a8   :  { %7407 = vmatprep.subr.bf16.mxu1 %v11858_v55  ;;  %7831 = vmatprep.subr.bf16.mxu0 %v11862_v51  ;;  %v14160_v55 = vld [vmem:[#allocation8 + $0xe40] sm:$0xff]  ;;  %v14162_v51 = vld [vmem:[#allocation8 + $0xe10] sm:$0xff] }
 0x1ab   :  { %7408 = vmatpush1.bf16.msra.mxu1 %v11857_v31  ;;  %7832 = vmatpush1.bf16.msra.mxu0 %v11861_v35 }
 0x1ac   :  { %7409 = vmatprep.subr.bf16.mxu1 %v11874_v36  ;;  %7833 = vmatprep.subr.bf16.mxu0 %v11878_v39  ;;  %v14170_v39 = vsub.s32 7, %v14040_v26 }
 0x1ae   :  { %v14199_v11 = vrot.slane %v14045_v28, %v14170_v39 }
 0x1af   :  { %7410 = vmatpush1.bf16.msra.mxu1 %v11873_v52  ;;  %7834 = vmatpush1.bf16.msra.mxu0 %v11877_v54  ;;  %v11954_v52 = vcombine.high %v14157_v32, %v14160_v55  ;;  %v11958_v54 = vcombine.high %v14162_v51, %v1572_v53 }
 0x1b0   :  { %7411 = vmatprep.subr.bf16.mxu1 %v11890_v40  ;;  %7835 = vmatprep.subr.bf16.mxu0 %v11894_v63  ;;  %v14176_v40 = vld [vmem:[#allocation8 + $0xe80] sm:$0xff] }
 0x1b1   :  { %v14178_v63 = vld [vmem:[#allocation8 + $0xec0] sm:$0xff] }
 0x1b2   :  { %v11969_v12 = vcombine.low %v14176_v40, %v14178_v63 }
 0x1b3   :  { %7412 = vmatpush1.bf16.msra.mxu1 %v11889_v4  ;;  %7836 = vmatpush1.bf16.msra.mxu0 %v11893_v5  ;;  %v14186_v4 = vrot.slane %v14045_v28, %v14166_v34  ;;  %v11953_v5 = vcombine.low %v14157_v32, %v14160_v55 }
 0x1b4   :  { %7413 = vmatprep.subr.bf16.mxu1 %v11906_v6  ;;  %7837 = vmatprep.subr.bf16.mxu0 %v11910_v7  ;;  %v11957_v6 = vcombine.low %v14162_v51, %v1572_v53  ;;  %v14191_v7 = vld [vmem:[#allocation8 + $0xf00] sm:$0xff] }
 0x1b7   :  { %7414 = vmatpush1.bf16.msra.mxu1 %v11905_v14  ;;  %7838 = vmatpush1.bf16.msra.mxu0 %v11909_v15  ;;  %v898_v24 = vpop.f32.mrb[8].mxu0 }
 0x1b8   :  { %7415 = vmatprep.subr.bf16.mxu1 %v11922_v59  ;;  %7839 = vmatprep.subr.bf16.mxu0 %v11926_v60  ;;  %v899_v49 = vadd.f32 %v898_v24, %v14151_v16  ;;  %v900_v50 = vpop.f32.mrb[9].mxu0  ;;  %v11970_v60 = vcombine.high %v14176_v40, %v14178_v63  ;;  %v1604_v24 = vld [vmem:[#allocation8 + $0xf50] sm:$0xff] }
 0x1b9   :  { %v901_v56 = vadd.f32 %v900_v50, %v14155_v20  ;;  %v902_v33 = vpop.f32.mrb[10].mxu0  ;;  %v951_v57 = vpop.f32.mrb[8].mxu1  ;;  %v11986_v50 = vcombine.high %v14191_v7, %v14193_v9 }
 0x1ba   :  { %v974_v31 = vmax.f32 %v899_v49, 0.0  ;;  %v903_v35 = vadd.f32 %v902_v33, %v14151_v16  ;;  %v904_v36 = vpop.f32.mrb[11].mxu0  ;;  %v952_v32 = vadd.f32 %v951_v57, %v14186_v4  ;;  %v953_v49 = vpop.f32.mrb[9].mxu1  ;;  %v1634_v57 = vld [vmem:[#allocation8 + $0x1040] sm:$0xff] }
 0x1bb   :  { %7416 = vmatpush1.bf16.msra.mxu1 %v11921_v22  ;;  %7840 = vmatpush1.bf16.msra.mxu0 %v11925_v61  ;;  %v975_v46 = vmax.f32 %v901_v56, 0.0  ;;  %v905_v47 = vadd.f32 %v904_v36, %v14155_v20  ;;  %v11985_v22 = vcombine.low %v14191_v7, %v14193_v9  ;;  %v1596_v61 = vld [vmem:[#allocation8 + $0xf10] sm:$0xff]  ;;  %v954_v56 = vadd.f32 %v953_v49, %v14199_v11  ;;  %v955_v33 = vpop.f32.mrb[10].mxu1 }
 0x1bc   :  { %7417 = vmatprep.subr.bf16.mxu1 %v11938_v25  ;;  %7841 = vmatprep.subr.bf16.mxu0 %v11942_v30  ;;  %v982_v26 = vmax.f32 %v903_v35, 0.0  ;;  %v1618_v35 = vld [vmem:[#allocation8 + $0xfc0] sm:$0xff]  ;;  %v11989_v63 = vcombine.low %v1596_v61, %v1604_v24 }
 0x1bd   :  { %v12823_v2 = vpack.c.bf16 %v975_v46, %v974_v31  ;;  %v983_v3 = vmax.f32 %v905_v47, 0.0  ;;  %v957_v47 = vpop.f32.mrb[11].mxu1 }
 0x1be   :  { %v14195_v10 = vpack.c.bf16 %v982_v26, %v974_v31  ;;  %v1610_v31 = vld [vmem:[#allocation8 + $0xf80] sm:$0xff]  ;;  %v958_v40 = vadd.f32 %v957_v47, %v14199_v11  ;;  %v1660_v47 = vld [vmem:[#allocation8 + $0x1110] sm:$0xff] }
 0x1bf   :  { %7418 = vmatpush1.bf16.msra.mxu1 %v11937_v41  ;;  %7842 = vmatpush1.bf16.msra.mxu0 %v11941_v45  ;;  %1100 = vst [vmem:[#allocation14 + $0x10] sm:$0xff] %v12823_v2  ;;  %v14203_v14 = vpack.c.bf16 %v983_v3, %v975_v46  ;;  %v12827_v15 = vpack.c.bf16 %v983_v3, %v982_v26  ;;  %v908_v59 = vpop.f32.mrb[12].mxu0  ;;  %v976_v41 = vmax.f32 %v952_v32, 0.0  ;;  %v1612_v26 = vld [vmem:[#allocation8 + $0xf90] sm:$0xff]  ;;  %v1642_v32 = vld [vmem:[#allocation8 + $0x1080] sm:$0xff] }
 0x1c0   :  { %7419 = vmatprep.subr.bf16.mxu1 %v11954_v52  ;;  %7843 = vmatprep.subr.bf16.mxu0 %v11958_v54  ;;  %v909_v28 = vadd.f32 %v908_v59, %v14151_v16  ;;  %v910_v17 = vpop.f32.mrb[13].mxu0  ;;  %v956_v46 = vadd.f32 %v955_v33, %v14186_v4  ;;  %v11990_v52 = vcombine.high %v1596_v61, %v1604_v24  ;;  %v985_v7 = vmax.f32 %v958_v40, 0.0  ;;  %v1628_v61 = vld [vmem:[#allocation8 + $0x1010] sm:$0xff] }
 0x1c1   :  { %1104 = vst [vmem:[#allocation14 + $0x30] sm:$0xff] %v12827_v15  ;;  %v911_v25 = vadd.f32 %v910_v17, %v14155_v20  ;;  %v912_v30 = vpop.f32.mrb[14].mxu0  ;;  %v1636_v24 = vld [vmem:[#allocation8 + $0x1050] sm:$0xff]  ;;  %v961_v49 = vpop.f32.mrb[12].mxu1 }
 0x1c2   :  { %v990_v55 = vmax.f32 %v909_v28, 0.0  ;;  %v913_v51 = vadd.f32 %v912_v30, %v14151_v16  ;;  %v914_v53 = vpop.f32.mrb[15].mxu0  ;;  %v977_v16 = vmax.f32 %v954_v56, 0.0  ;;  %v984_v3 = vmax.f32 %v956_v46, 0.0  ;;  %v1666_v46 = vld [vmem:[#allocation8 + $0x1140] sm:$0xff] }
 0x1c3   :  { %7420 = vmatpush1.bf16.msra.mxu1 %v11953_v5  ;;  %7844 = vmatpush1.bf16.msra.mxu0 %v11957_v6  ;;  %v991_v36 = vmax.f32 %v911_v25, 0.0  ;;  %v915_v45 = vadd.f32 %v914_v53, %v14155_v20  ;;  %v12002_v5 = vcombine.high %v1610_v31, %v1618_v35  ;;  %v12022_v30 = vcombine.high %v1628_v61, %v1636_v24 }
 0x1c4   :  { %7421 = vmatprep.subr.bf16.mxu1 %v11970_v60  ;;  %7845 = vmatprep.subr.bf16.mxu0 %v11974_v8  ;;  %v998_v54 = vmax.f32 %v913_v51, 0.0  ;;  %v12824_v20 = vpack.c.bf16 %v977_v16, %v976_v41  ;;  %v14227_v59 = vpack.c.bf16 %v984_v3, %v976_v41  ;;  %v12006_v60 = vcombine.high %v1612_v26, %v1620_v1  ;;  %v1626_v8 = vld [vmem:[#allocation8 + $0x1000] sm:$0xff]  ;;  %v1652_v51 = vld [vmem:[#allocation8 + $0x10d0] sm:$0xff] }
 0x1c5   :  { %v12831_v0 = vpack.c.bf16 %v991_v36, %v990_v55  ;;  %v999_v2 = vmax.f32 %v915_v45, 0.0  ;;  %v14229_v28 = vpack.c.bf16 %v985_v7, %v977_v16  ;;  %v12828_v17 = vpack.c.bf16 %v985_v7, %v984_v3 }
 0x1c6   :  { %v14223_v6 = vpack.c.bf16 %v998_v54, %v990_v55  ;;  %1101 = vst [vmem:[#allocation14 + $0x18] sm:$0xff] %v12824_v20  ;;  %v12018_v25 = vcombine.high %v1626_v8, %v1634_v57  ;;  %v1644_v55 = vld [vmem:[#allocation8 + $0x1090] sm:$0xff]  ;;  %v962_v53 = vadd.f32 %v961_v49, %v14186_v4  ;;  %v12017_v56 = vcombine.low %v1626_v8, %v1634_v57  ;;  %v1674_v20 = vld [vmem:[#allocation8 + $0x1180] sm:$0xff] }
 0x1c7   :  { %7422 = vmatpush1.bf16.msra.mxu1 %v11969_v12  ;;  %7846 = vmatpush1.bf16.msra.mxu0 %v11973_v19  ;;  %1108 = vst [vmem:[#allocation14 + $0x50] sm:$0xff] %v12831_v0  ;;  %v14225_v9 = vpack.c.bf16 %v999_v2, %v991_v36  ;;  %v12835_v15 = vpack.c.bf16 %v999_v2, %v998_v54  ;;  %1105 = vst [vmem:[#allocation14 + $0x38] sm:$0xff] %v12828_v17  ;;  %v963_v36 = vpop.f32.mrb[13].mxu1  ;;  %v1684_v8 = vld [vmem:[#allocation8 + $0x11d0] sm:$0xff] }
 0x1c8   :  { %7423 = vmatprep.subr.bf16.mxu1 %v11986_v50  ;;  %7847 = vmatprep.subr.bf16.mxu0 %v11990_v52  ;;  %v12001_v12 = vcombine.low %v1610_v31, %v1618_v35  ;;  %v12005_v19 = vcombine.low %v1612_v26, %v1620_v1  ;;  %v1650_v50 = vld [vmem:[#allocation8 + $0x10c0] sm:$0xff]  ;;  %v12021_v33 = vcombine.low %v1628_v61, %v1636_v24  ;;  %v965_v45 = vpop.f32.mrb[14].mxu1  ;;  %v1668_v52 = vld [vmem:[#allocation8 + $0x1150] sm:$0xff]  ;;  %v992_v54 = vmax.f32 %v962_v53, 0.0 }
 0x1c9   :  { %1112 = vst [vmem:[#allocation14 + $0x70] sm:$0xff] %v12835_v15  ;;  %v12038_v31 = vcombine.high %v1644_v55, %v1652_v51  ;;  %v1658_v35 = vld [vmem:[#allocation8 + $0x1100] sm:$0xff]  ;;  %v964_v41 = vadd.f32 %v963_v36, %v14199_v11  ;;  %v966_v16 = vadd.f32 %v965_v45, %v14186_v4  ;;  %v967_v40 = vpop.f32.mrb[15].mxu1  ;;  %v12033_v1 = vcombine.low %v1642_v32, %v1650_v50  ;;  %v1700_v49 = vld [vmem:[#allocation8 + $0x1250] sm:$0xff] }
 0x1ca   :  { %v968_v26 = vadd.f32 %v967_v40, %v14199_v11  ;;  %v12037_v0 = vcombine.low %v1644_v55, %v1652_v51  ;;  %v12050_v3 = vcombine.high %v1658_v35, %v1666_v46  ;;  %v1682_v15 = vld [vmem:[#allocation8 + $0x11c0] sm:$0xff]  ;;  %v12049_v61 = vcombine.low %v1658_v35, %v1666_v46  ;;  %v1708_v36 = vld [vmem:[#allocation8 + $0x1290] sm:$0xff] }
 0x1cb   :  { %7424 = vmatpush1.bf16.msra.mxu1 %v11985_v22  ;;  %7848 = vmatpush1.bf16.msra.mxu0 %v11989_v63  ;;  %v12034_v22 = vcombine.high %v1642_v32, %v1650_v50  ;;  %v993_v63 = vmax.f32 %v964_v41, 0.0  ;;  %v1000_v2 = vmax.f32 %v966_v16, 0.0  ;;  %v12053_v24 = vcombine.low %v1660_v47, %v1668_v52  ;;  %v1692_v32 = vld [vmem:[#allocation8 + $0x1210] sm:$0xff]  ;;  %v1722_v46 = vld [vmem:[#allocation8 + $0x1300] sm:$0xff] }
 0x1cc   :  { %7425 = vmatprep.subr.bf16.mxu1 %v12002_v5  ;;  %7849 = vmatprep.subr.bf16.mxu0 %v12006_v60  ;;  %v12054_v5 = vcombine.high %v1660_v47, %v1668_v52  ;;  %v1001_v4 = vmax.f32 %v968_v26, 0.0  ;;  %v1676_v60 = vld [vmem:[#allocation8 + $0x1190] sm:$0xff]  ;;  %v12065_v50 = vcombine.low %v1674_v20, %v1682_v15  ;;  %v12086_v53 = vcombine.high %v1692_v32, %v1700_v49  ;;  %v1730_v47 = vld [vmem:[#allocation8 + $0x1340] sm:$0xff] }
 0x1cd   :  { %v12832_v7 = vpack.c.bf16 %v993_v63, %v992_v54  ;;  %v14239_v11 = vpack.c.bf16 %v1000_v2, %v992_v54  ;;  %v12069_v55 = vcombine.low %v1676_v60, %v1684_v8  ;;  %v12085_v35 = vcombine.low %v1692_v32, %v1700_v49  ;;  %v1724_v52 = vld [vmem:[#allocation8 + $0x1310] sm:$0xff] }
 0x1ce   :  { %v14241_v17 = vpack.c.bf16 %v1001_v4, %v993_v63  ;;  %v12836_v57 = vpack.c.bf16 %v1001_v4, %v1000_v2  ;;  %v1732_v54 = vld [vmem:[#allocation8 + $0x1350] sm:$0xff]  ;;  %v12114_v63 = vcombine.high %v1722_v46, %v1730_v47 }
 0x1cf   :  { %7426 = vmatpush1.bf16.msra.mxu1 %v12001_v12  ;;  %7850 = vmatpush1.bf16.msra.mxu0 %v12005_v19  ;;  %1109 = vst [vmem:[#allocation14 + $0x58] sm:$0xff] %v12832_v7  ;;  %v12066_v12 = vcombine.high %v1674_v20, %v1682_v15  ;;  %v12070_v19 = vcombine.high %v1676_v60, %v1684_v8  ;;  %v1740_v2 = vld [vmem:[#allocation8 + $0x1390] sm:$0xff]  ;;  %v1754_v15 = vld [vmem:[#allocation8 + $0x1400] sm:$0xff] }
 0x1d0   :  { %7448 = vmatprep.subr.bf16.mxu1 %v12018_v25  ;;  %7872 = vmatprep.subr.bf16.mxu0 %v12022_v30  ;;  %v1690_v25 = vld [vmem:[#allocation8 + $0x1200] sm:$0xff]  ;;  %1113 = vst [vmem:[#allocation14 + $0x78] sm:$0xff] %v12836_v57  ;;  %v12118_v26 = vcombine.high %v1724_v52, %v1732_v54  ;;  %v12117_v20 = vcombine.low %v1724_v52, %v1732_v54  ;;  %v1756_v8 = vld [vmem:[#allocation8 + $0x1410] sm:$0xff] }
 0x1d1   :  { %v1698_v30 = vld [vmem:[#allocation8 + $0x1240] sm:$0xff]  ;;  %v1764_v57 = vld [vmem:[#allocation8 + $0x1450] sm:$0xff] }
 0x1d2   :  { %7428 = vmatmul.mubr.bf16.vlgmr.msra.gmra.mrb[16].mxu1 %v14120_v18  ;;  %7852 = vmatmul.mubr.bf16.vlgmr.msra.gmra.mrb[16].mxu0 %v14120_v18  ;;  %v12082_v51 = vcombine.high %v1690_v25, %v1698_v30  ;;  %v1762_v60 = vld [vmem:[#allocation8 + $0x1440] sm:$0xff]  ;;  %v1772_v32 = vld [vmem:[#allocation8 + $0x1490] sm:$0xff] }
 0x1d3   :  { %7449 = vmatpush1.bf16.msra.mxu1 %v12017_v56  ;;  %7873 = vmatpush1.bf16.msra.mxu0 %v12021_v33  ;;  %v1706_v56 = vld [vmem:[#allocation8 + $0x1280] sm:$0xff]  ;;  %v1780_v49 = vld [vmem:[#allocation8 + $0x14d0] sm:$0xff] }
 0x1d4   :  { %7450 = vmatprep.subr.bf16.mxu1 %v12034_v22  ;;  %7874 = vmatprep.subr.bf16.mxu0 %v12038_v31  ;;  %v1714_v33 = vld [vmem:[#allocation8 + $0x12c0] sm:$0xff]  ;;  %v1716_v22 = vld [vmem:[#allocation8 + $0x12d0] sm:$0xff]  ;;  %v12081_v31 = vcombine.low %v1690_v25, %v1698_v30 }
 0x1d5   :  { %7437 = vmatprep.mubr.bf16.mxu1 %v14141_v23  ;;  %7861 = vmatprep.mubr.bf16.mxu0 %v14141_v23  ;;  %v12098_v41 = vcombine.high %v1706_v56, %v1714_v33  ;;  %v12102_v45 = vcombine.high %v1708_v36, %v1716_v22  ;;  %v12097_v16 = vcombine.low %v1706_v56, %v1714_v33  ;;  %v1770_v25 = vld [vmem:[#allocation8 + $0x1480] sm:$0xff]  ;;  %v1804_v52 = vld [vmem:[#allocation8 + $0x1590] sm:$0xff] }
 0x1d6   :  { %v12101_v40 = vcombine.low %v1708_v36, %v1716_v22  ;;  %v1778_v30 = vld [vmem:[#allocation8 + $0x14c0] sm:$0xff]  ;;  %v1788_v36 = vld [vmem:[#allocation8 + $0x1510] sm:$0xff] }
 0x1d7   :  { %7451 = vmatpush1.bf16.msra.mxu1 %v12033_v1  ;;  %7875 = vmatpush1.bf16.msra.mxu0 %v12037_v0  ;;  %v1738_v1 = vld [vmem:[#allocation8 + $0x1380] sm:$0xff]  ;;  %v1796_v22 = vld [vmem:[#allocation8 + $0x1550] sm:$0xff] }
 0x1d8   :  { %7452 = vmatprep.subr.bf16.mxu1 %v12050_v3  ;;  %7876 = vmatprep.subr.bf16.mxu0 %v12054_v5  ;;  %v1746_v0 = vld [vmem:[#allocation8 + $0x13c0] sm:$0xff]  ;;  %v1748_v3 = vld [vmem:[#allocation8 + $0x13d0] sm:$0xff]  ;;  %v12113_v5 = vcombine.low %v1722_v46, %v1730_v47 }
 0x1d9   :  { %v12130_v7 = vcombine.high %v1738_v1, %v1746_v0  ;;  %v12134_v4 = vcombine.high %v1740_v2, %v1748_v3  ;;  %v1786_v56 = vld [vmem:[#allocation8 + $0x1500] sm:$0xff]  ;;  %v1812_v54 = vld [vmem:[#allocation8 + $0x15d0] sm:$0xff] }
 0x1da   :  { %7438 = vmatmul.mubr.bf16.gmra.mrb[20].mxu1 %v14139_v21  ;;  %7862 = vmatmul.mubr.bf16.gmra.mrb[20].mxu0 %v14139_v21  ;;  %v1794_v33 = vld [vmem:[#allocation8 + $0x1540] sm:$0xff] }
 0x1db   :  { %7453 = vmatpush1.bf16.msra.mxu1 %v12049_v61  ;;  %7877 = vmatpush1.bf16.msra.mxu0 %v12053_v24  ;;  %v12129_v61 = vcombine.low %v1738_v1, %v1746_v0  ;;  %v12133_v24 = vcombine.low %v1740_v2, %v1748_v3  ;;  %v1802_v46 = vld [vmem:[#allocation8 + $0x1580] sm:$0xff]  ;;  %v1820_v2 = vld [vmem:[#allocation8 + $0x1610] sm:$0xff] }
 0x1dc   :  { %7454 = vmatprep.subr.bf16.mxu1 %v12066_v12  ;;  %7878 = vmatprep.subr.bf16.mxu0 %v12070_v19  ;;  %v12146_v12 = vcombine.high %v1754_v15, %v1762_v60  ;;  %v12150_v19 = vcombine.high %v1756_v8, %v1764_v57  ;;  %v1810_v47 = vld [vmem:[#allocation8 + $0x15c0] sm:$0xff]  ;;  %v1828_v3 = vld [vmem:[#allocation8 + $0x1650] sm:$0xff] }
 0x1dd   :  { %7480 = vmatprep.mubr.bf16.mxu1 %v14203_v14  ;;  %7904 = vmatprep.mubr.bf16.mxu0 %v14203_v14  ;;  %v1818_v1 = vld [vmem:[#allocation8 + $0x1600] sm:$0xff] }
 0x1de   :  { %v1826_v0 = vld [vmem:[#allocation8 + $0x1640] sm:$0xff] }
 0x1df   :  { %7455 = vmatpush1.bf16.msra.mxu1 %v12065_v50  ;;  %7879 = vmatpush1.bf16.msra.mxu0 %v12069_v55  ;;  %v12145_v50 = vcombine.low %v1754_v15, %v1762_v60  ;;  %v12149_v55 = vcombine.low %v1756_v8, %v1764_v57  ;;  %v1834_v15 = vld [vmem:[#allocation8 + $0x1680] sm:$0xff]  ;;  %v1836_v8 = vld [vmem:[#allocation8 + $0x1690] sm:$0xff] }
 0x1e0   :  { %7456 = vmatprep.subr.bf16.mxu1 %v12082_v51  ;;  %7880 = vmatprep.subr.bf16.mxu0 %v12086_v53  ;;  %v12162_v51 = vcombine.high %v1770_v25, %v1778_v30  ;;  %v12166_v53 = vcombine.high %v1772_v32, %v1780_v49  ;;  %v1842_v60 = vld [vmem:[#allocation8 + $0x16c0] sm:$0xff]  ;;  %v1844_v57 = vld [vmem:[#allocation8 + $0x16d0] sm:$0xff] }
 0x1e3   :  { %7457 = vmatpush1.bf16.msra.mxu1 %v12081_v31  ;;  %7881 = vmatpush1.bf16.msra.mxu0 %v12085_v35  ;;  %v12161_v31 = vcombine.low %v1770_v25, %v1778_v30  ;;  %v12165_v35 = vcombine.low %v1772_v32, %v1780_v49  ;;  %v1850_v25 = vld [vmem:[#allocation8 + $0x1700] sm:$0xff]  ;;  %v1852_v32 = vld [vmem:[#allocation8 + $0x1710] sm:$0xff] }
 0x1e4   :  { %7458 = vmatprep.subr.bf16.mxu1 %v12098_v41  ;;  %7882 = vmatprep.subr.bf16.mxu0 %v12102_v45  ;;  %v12178_v41 = vcombine.high %v1786_v56, %v1794_v33  ;;  %v12182_v45 = vcombine.high %v1788_v36, %v1796_v22  ;;  %v1858_v30 = vld [vmem:[#allocation8 + $0x1740] sm:$0xff]  ;;  %v1860_v49 = vld [vmem:[#allocation8 + $0x1750] sm:$0xff] }
 0x1e7   :  { %7459 = vmatpush1.bf16.msra.mxu1 %v12097_v16  ;;  %7883 = vmatpush1.bf16.msra.mxu0 %v12101_v40  ;;  %v12177_v16 = vcombine.low %v1786_v56, %v1794_v33  ;;  %v12181_v40 = vcombine.low %v1788_v36, %v1796_v22  ;;  %v1866_v56 = vld [vmem:[#allocation8 + $0x1780] sm:$0xff]  ;;  %v1868_v36 = vld [vmem:[#allocation8 + $0x1790] sm:$0xff] }
 0x1e8   :  { %7460 = vmatprep.subr.bf16.mxu1 %v12114_v63  ;;  %7884 = vmatprep.subr.bf16.mxu0 %v12118_v26  ;;  %v12194_v63 = vcombine.high %v1802_v46, %v1810_v47  ;;  %v12198_v26 = vcombine.high %v1804_v52, %v1812_v54  ;;  %v1874_v33 = vld [vmem:[#allocation8 + $0x17c0] sm:$0xff]  ;;  %v1876_v22 = vld [vmem:[#allocation8 + $0x17d0] sm:$0xff] }
 0x1eb   :  { %7461 = vmatpush1.bf16.msra.mxu1 %v12113_v5  ;;  %7885 = vmatpush1.bf16.msra.mxu0 %v12117_v20  ;;  %v12193_v5 = vcombine.low %v1802_v46, %v1810_v47  ;;  %v12197_v20 = vcombine.low %v1804_v52, %v1812_v54  ;;  %v1882_v46 = vld [vmem:[#allocation8 + $0x1800] sm:$0xff]  ;;  %v1884_v52 = vld [vmem:[#allocation8 + $0x1810] sm:$0xff] }
 0x1ec   :  { %7462 = vmatprep.subr.bf16.mxu1 %v12130_v7  ;;  %7886 = vmatprep.subr.bf16.mxu0 %v12134_v4  ;;  %v12210_v7 = vcombine.high %v1818_v1, %v1826_v0  ;;  %v12214_v4 = vcombine.high %v1820_v2, %v1828_v3  ;;  %v1890_v47 = vld [vmem:[#allocation8 + $0x1840] sm:$0xff]  ;;  %v1892_v54 = vld [vmem:[#allocation8 + $0x1850] sm:$0xff] }
 0x1ef   :  { %7463 = vmatpush1.bf16.msra.mxu1 %v12129_v61  ;;  %7887 = vmatpush1.bf16.msra.mxu0 %v12133_v24  ;;  %v12209_v61 = vcombine.low %v1818_v1, %v1826_v0  ;;  %v12213_v24 = vcombine.low %v1820_v2, %v1828_v3  ;;  %v1898_v1 = vld [vmem:[#allocation8 + $0x1880] sm:$0xff]  ;;  %v1900_v2 = vld [vmem:[#allocation8 + $0x1890] sm:$0xff] }
 0x1f0   :  { %7464 = vmatprep.subr.bf16.mxu1 %v12146_v12  ;;  %7888 = vmatprep.subr.bf16.mxu0 %v12150_v19  ;;  %v12226_v12 = vcombine.high %v1834_v15, %v1842_v60  ;;  %v12230_v19 = vcombine.high %v1836_v8, %v1844_v57  ;;  %v1906_v0 = vld [vmem:[#allocation8 + $0x18c0] sm:$0xff]  ;;  %v1908_v3 = vld [vmem:[#allocation8 + $0x18d0] sm:$0xff] }
 0x1f3   :  { %7465 = vmatpush1.bf16.msra.mxu1 %v12145_v50  ;;  %7889 = vmatpush1.bf16.msra.mxu0 %v12149_v55  ;;  %v12225_v50 = vcombine.low %v1834_v15, %v1842_v60  ;;  %v12229_v55 = vcombine.low %v1836_v8, %v1844_v57  ;;  %v1914_v15 = vld [vmem:[#allocation8 + $0x1900] sm:$0xff]  ;;  %v1916_v8 = vld [vmem:[#allocation8 + $0x1910] sm:$0xff] }
 0x1f4   :  { %7466 = vmatprep.subr.bf16.mxu1 %v12162_v51  ;;  %7890 = vmatprep.subr.bf16.mxu0 %v12166_v53  ;;  %v12242_v51 = vcombine.high %v1850_v25, %v1858_v30  ;;  %v12246_v53 = vcombine.high %v1852_v32, %v1860_v49  ;;  %v1922_v60 = vld [vmem:[#allocation8 + $0x1940] sm:$0xff]  ;;  %v1924_v57 = vld [vmem:[#allocation8 + $0x1950] sm:$0xff] }
 0x1f7   :  { %7467 = vmatpush1.bf16.msra.mxu1 %v12161_v31  ;;  %7891 = vmatpush1.bf16.msra.mxu0 %v12165_v35  ;;  %v12241_v31 = vcombine.low %v1850_v25, %v1858_v30  ;;  %v12245_v35 = vcombine.low %v1852_v32, %v1860_v49  ;;  %v1930_v25 = vld [vmem:[#allocation8 + $0x1980] sm:$0xff]  ;;  %v1932_v32 = vld [vmem:[#allocation8 + $0x1990] sm:$0xff] }
 0x1f8   :  { %7468 = vmatprep.subr.bf16.mxu1 %v12178_v41  ;;  %7892 = vmatprep.subr.bf16.mxu0 %v12182_v45  ;;  %v12258_v41 = vcombine.high %v1866_v56, %v1874_v33  ;;  %v12262_v45 = vcombine.high %v1868_v36, %v1876_v22  ;;  %v1938_v30 = vld [vmem:[#allocation8 + $0x19c0] sm:$0xff]  ;;  %v1940_v49 = vld [vmem:[#allocation8 + $0x19d0] sm:$0xff] }
 0x1fb   :  { %7469 = vmatpush1.bf16.msra.mxu1 %v12177_v16  ;;  %7893 = vmatpush1.bf16.msra.mxu0 %v12181_v40  ;;  %v12257_v16 = vcombine.low %v1866_v56, %v1874_v33  ;;  %v12261_v40 = vcombine.low %v1868_v36, %v1876_v22  ;;  %v1946_v56 = vld [vmem:[#allocation8 + $0x1a00] sm:$0xff]  ;;  %v1948_v36 = vld [vmem:[#allocation8 + $0x1a10] sm:$0xff] }
 0x1fc   :  { %7470 = vmatprep.subr.bf16.mxu1 %v12194_v63  ;;  %7894 = vmatprep.subr.bf16.mxu0 %v12198_v26  ;;  %v12274_v63 = vcombine.high %v1882_v46, %v1890_v47  ;;  %v12278_v26 = vcombine.high %v1884_v52, %v1892_v54  ;;  %v1954_v33 = vld [vmem:[#allocation8 + $0x1a40] sm:$0xff]  ;;  %v1956_v22 = vld [vmem:[#allocation8 + $0x1a50] sm:$0xff] }
 0x1ff   :  { %7471 = vmatpush1.bf16.msra.mxu1 %v12193_v5  ;;  %7895 = vmatpush1.bf16.msra.mxu0 %v12197_v20  ;;  %v12273_v5 = vcombine.low %v1882_v46, %v1890_v47  ;;  %v12277_v20 = vcombine.low %v1884_v52, %v1892_v54  ;;  %v1962_v46 = vld [vmem:[#allocation8 + $0x1a80] sm:$0xff]  ;;  %v1964_v52 = vld [vmem:[#allocation8 + $0x1a90] sm:$0xff] }
 0x200   :  { %7472 = vmatprep.subr.bf16.mxu1 %v12210_v7  ;;  %7896 = vmatprep.subr.bf16.mxu0 %v12214_v4  ;;  %v12290_v7 = vcombine.high %v1898_v1, %v1906_v0  ;;  %v12294_v4 = vcombine.high %v1900_v2, %v1908_v3  ;;  %v1970_v47 = vld [vmem:[#allocation8 + $0x1ac0] sm:$0xff]  ;;  %v1972_v54 = vld [vmem:[#allocation8 + $0x1ad0] sm:$0xff] }
 0x203   :  { %7473 = vmatpush1.bf16.msra.mxu1 %v12209_v61  ;;  %7897 = vmatpush1.bf16.msra.mxu0 %v12213_v24  ;;  %v12289_v61 = vcombine.low %v1898_v1, %v1906_v0  ;;  %v12293_v24 = vcombine.low %v1900_v2, %v1908_v3  ;;  %v1978_v1 = vld [vmem:[#allocation8 + $0x1b00] sm:$0xff]  ;;  %v1980_v2 = vld [vmem:[#allocation8 + $0x1b10] sm:$0xff] }
 0x204   :  { %7474 = vmatprep.subr.bf16.mxu1 %v12226_v12  ;;  %7898 = vmatprep.subr.bf16.mxu0 %v12230_v19  ;;  %v12306_v12 = vcombine.high %v1914_v15, %v1922_v60  ;;  %v12310_v19 = vcombine.high %v1916_v8, %v1924_v57  ;;  %v1986_v0 = vld [vmem:[#allocation8 + $0x1b40] sm:$0xff]  ;;  %v1988_v3 = vld [vmem:[#allocation8 + $0x1b50] sm:$0xff] }
 0x207   :  { %7475 = vmatpush1.bf16.msra.mxu1 %v12225_v50  ;;  %7899 = vmatpush1.bf16.msra.mxu0 %v12229_v55  ;;  %v12305_v50 = vcombine.low %v1914_v15, %v1922_v60  ;;  %v12309_v55 = vcombine.low %v1916_v8, %v1924_v57  ;;  %v1994_v15 = vld [vmem:[#allocation8 + $0x1b80] sm:$0xff]  ;;  %v1996_v8 = vld [vmem:[#allocation8 + $0x1b90] sm:$0xff] }
 0x208   :  { %7476 = vmatprep.subr.bf16.mxu1 %v12242_v51  ;;  %7900 = vmatprep.subr.bf16.mxu0 %v12246_v53  ;;  %v12322_v51 = vcombine.high %v1930_v25, %v1938_v30  ;;  %v12326_v53 = vcombine.high %v1932_v32, %v1940_v49  ;;  %v2002_v60 = vld [vmem:[#allocation8 + $0x1bc0] sm:$0xff]  ;;  %v2004_v57 = vld [vmem:[#allocation8 + $0x1bd0] sm:$0xff] }
 0x20b   :  { %7477 = vmatpush1.bf16.msra.mxu1 %v12241_v31  ;;  %7901 = vmatpush1.bf16.msra.mxu0 %v12245_v35  ;;  %v12321_v31 = vcombine.low %v1930_v25, %v1938_v30  ;;  %v12325_v35 = vcombine.low %v1932_v32, %v1940_v49  ;;  %v2010_v25 = vld [vmem:[#allocation8 + $0x1c00] sm:$0xff]  ;;  %v2012_v32 = vld [vmem:[#allocation8 + $0x1c10] sm:$0xff] }
 0x20c   :  { %7478 = vmatprep.subr.bf16.mxu1 %v12258_v41  ;;  %7902 = vmatprep.subr.bf16.mxu0 %v12262_v45  ;;  %v12338_v41 = vcombine.high %v1946_v56, %v1954_v33  ;;  %v12342_v45 = vcombine.high %v1948_v36, %v1956_v22  ;;  %v2018_v30 = vld [vmem:[#allocation8 + $0x1c40] sm:$0xff]  ;;  %v2020_v49 = vld [vmem:[#allocation8 + $0x1c50] sm:$0xff] }
 0x20f   :  { %7479 = vmatpush1.bf16.msra.mxu1 %v12257_v16  ;;  %7903 = vmatpush1.bf16.msra.mxu0 %v12261_v40  ;;  %v12337_v16 = vcombine.low %v1946_v56, %v1954_v33  ;;  %v12341_v40 = vcombine.low %v1948_v36, %v1956_v22  ;;  %v2026_v56 = vld [vmem:[#allocation8 + $0x1c80] sm:$0xff]  ;;  %v2028_v36 = vld [vmem:[#allocation8 + $0x1c90] sm:$0xff] }
 0x210   :  { %7501 = vmatprep.subr.bf16.mxu1 %v12274_v63  ;;  %7925 = vmatprep.subr.bf16.mxu0 %v12278_v26  ;;  %v12354_v63 = vcombine.high %v1962_v46, %v1970_v47  ;;  %v12358_v26 = vcombine.high %v1964_v52, %v1972_v54  ;;  %v2034_v33 = vld [vmem:[#allocation8 + $0x1cc0] sm:$0xff]  ;;  %v2036_v22 = vld [vmem:[#allocation8 + $0x1cd0] sm:$0xff] }
 0x212   :  { %7481 = vmatmul.mubr.bf16.vlgmr.msra.gmra.mrb[16].mxu1 %v14195_v10  ;;  %7905 = vmatmul.mubr.bf16.vlgmr.msra.gmra.mrb[16].mxu0 %v14195_v10 }
 0x213   :  { %7502 = vmatpush1.bf16.msra.mxu1 %v12273_v5  ;;  %7926 = vmatpush1.bf16.msra.mxu0 %v12277_v20  ;;  %v12353_v5 = vcombine.low %v1962_v46, %v1970_v47  ;;  %v12357_v20 = vcombine.low %v1964_v52, %v1972_v54  ;;  %v2042_v46 = vld [vmem:[#allocation8 + $0x1d00] sm:$0xff]  ;;  %v2044_v52 = vld [vmem:[#allocation8 + $0x1d10] sm:$0xff] }
 0x214   :  { %7503 = vmatprep.subr.bf16.mxu1 %v12290_v7  ;;  %7927 = vmatprep.subr.bf16.mxu0 %v12294_v4  ;;  %v12370_v7 = vcombine.high %v1978_v1, %v1986_v0  ;;  %v12374_v4 = vcombine.high %v1980_v2, %v1988_v3  ;;  %v2050_v47 = vld [vmem:[#allocation8 + $0x1d40] sm:$0xff]  ;;  %v2052_v54 = vld [vmem:[#allocation8 + $0x1d50] sm:$0xff] }
 0x215   :  { %7490 = vmatprep.mubr.bf16.mxu1 %v14225_v9  ;;  %7914 = vmatprep.mubr.bf16.mxu0 %v14225_v9 }
 0x217   :  { %7504 = vmatpush1.bf16.msra.mxu1 %v12289_v61  ;;  %7928 = vmatpush1.bf16.msra.mxu0 %v12293_v24  ;;  %v12369_v61 = vcombine.low %v1978_v1, %v1986_v0  ;;  %v12373_v24 = vcombine.low %v1980_v2, %v1988_v3  ;;  %v2058_v1 = vld [vmem:[#allocation8 + $0x1d80] sm:$0xff]  ;;  %v2060_v2 = vld [vmem:[#allocation8 + $0x1d90] sm:$0xff] }
 0x218   :  { %7505 = vmatprep.subr.bf16.mxu1 %v12306_v12  ;;  %7929 = vmatprep.subr.bf16.mxu0 %v12310_v19  ;;  %v12386_v12 = vcombine.high %v1994_v15, %v2002_v60  ;;  %v12390_v19 = vcombine.high %v1996_v8, %v2004_v57  ;;  %v2066_v0 = vld [vmem:[#allocation8 + $0x1dc0] sm:$0xff]  ;;  %v2068_v3 = vld [vmem:[#allocation8 + $0x1dd0] sm:$0xff] }
 0x21a   :  { %7491 = vmatmul.mubr.bf16.gmra.mrb[20].mxu1 %v14223_v6  ;;  %7915 = vmatmul.mubr.bf16.gmra.mrb[20].mxu0 %v14223_v6 }
 0x21b   :  { %7506 = vmatpush1.bf16.msra.mxu1 %v12305_v50  ;;  %7930 = vmatpush1.bf16.msra.mxu0 %v12309_v55  ;;  %v12385_v50 = vcombine.low %v1994_v15, %v2002_v60  ;;  %v12389_v55 = vcombine.low %v1996_v8, %v2004_v57  ;;  %v2074_v15 = vld [vmem:[#allocation8 + $0x1e00] sm:$0xff]  ;;  %v2076_v8 = vld [vmem:[#allocation8 + $0x1e10] sm:$0xff] }
 0x21c   :  { %7507 = vmatprep.subr.bf16.mxu1 %v12322_v51  ;;  %7931 = vmatprep.subr.bf16.mxu0 %v12326_v53  ;;  %v12402_v51 = vcombine.high %v2010_v25, %v2018_v30  ;;  %v12406_v53 = vcombine.high %v2012_v32, %v2020_v49  ;;  %v2082_v60 = vld [vmem:[#allocation8 + $0x1e40] sm:$0xff]  ;;  %v2084_v57 = vld [vmem:[#allocation8 + $0x1e50] sm:$0xff] }
 0x21d   :  { %7533 = vmatprep.mubr.bf16.mxu1 %v14229_v28  ;;  %7957 = vmatprep.mubr.bf16.mxu0 %v14229_v28 }
 0x21f   :  { %7508 = vmatpush1.bf16.msra.mxu1 %v12321_v31  ;;  %7932 = vmatpush1.bf16.msra.mxu0 %v12325_v35  ;;  %v12401_v31 = vcombine.low %v2010_v25, %v2018_v30  ;;  %v12405_v35 = vcombine.low %v2012_v32, %v2020_v49  ;;  %v2090_v25 = vld [vmem:[#allocation8 + $0x1e80] sm:$0xff]  ;;  %v2092_v32 = vld [vmem:[#allocation8 + $0x1e90] sm:$0xff] }
 0x220   :  { %7509 = vmatprep.subr.bf16.mxu1 %v12338_v41  ;;  %7933 = vmatprep.subr.bf16.mxu0 %v12342_v45  ;;  %v12418_v41 = vcombine.high %v2026_v56, %v2034_v33  ;;  %v12422_v45 = vcombine.high %v2028_v36, %v2036_v22  ;;  %v2098_v30 = vld [vmem:[#allocation8 + $0x1ec0] sm:$0xff]  ;;  %v2100_v49 = vld [vmem:[#allocation8 + $0x1ed0] sm:$0xff] }
 0x223   :  { %7510 = vmatpush1.bf16.msra.mxu1 %v12337_v16  ;;  %7934 = vmatpush1.bf16.msra.mxu0 %v12341_v40  ;;  %v12417_v16 = vcombine.low %v2026_v56, %v2034_v33  ;;  %v12421_v40 = vcombine.low %v2028_v36, %v2036_v22  ;;  %v2106_v56 = vld [vmem:[#allocation8 + $0x1f00] sm:$0xff]  ;;  %v2108_v36 = vld [vmem:[#allocation8 + $0x1f10] sm:$0xff] }
 0x224   :  { %7511 = vmatprep.subr.bf16.mxu1 %v12354_v63  ;;  %7935 = vmatprep.subr.bf16.mxu0 %v12358_v26  ;;  %v12434_v63 = vcombine.high %v2042_v46, %v2050_v47  ;;  %v12438_v26 = vcombine.high %v2044_v52, %v2052_v54  ;;  %v2114_v33 = vld [vmem:[#allocation8 + $0x1f40] sm:$0xff]  ;;  %v2116_v22 = vld [vmem:[#allocation8 + $0x1f50] sm:$0xff] }
 0x227   :  { %7512 = vmatpush1.bf16.msra.mxu1 %v12353_v5  ;;  %7936 = vmatpush1.bf16.msra.mxu0 %v12357_v20  ;;  %v12433_v5 = vcombine.low %v2042_v46, %v2050_v47  ;;  %v12437_v20 = vcombine.low %v2044_v52, %v2052_v54  ;;  %v2122_v46 = vld [vmem:[#allocation8 + $0x1f80] sm:$0xff]  ;;  %v2124_v52 = vld [vmem:[#allocation8 + $0x1f90] sm:$0xff] }
 0x228   :  { %7513 = vmatprep.subr.bf16.mxu1 %v12370_v7  ;;  %7937 = vmatprep.subr.bf16.mxu0 %v12374_v4  ;;  %v12450_v7 = vcombine.high %v2058_v1, %v2066_v0  ;;  %v12454_v4 = vcombine.high %v2060_v2, %v2068_v3  ;;  %v2130_v47 = vld [vmem:[#allocation8 + $0x1fc0] sm:$0xff]  ;;  %v2132_v54 = vld [vmem:[#allocation8 + $0x1fd0] sm:$0xff] }
 0x22b   :  { %7514 = vmatpush1.bf16.msra.mxu1 %v12369_v61  ;;  %7938 = vmatpush1.bf16.msra.mxu0 %v12373_v24  ;;  %v12449_v61 = vcombine.low %v2058_v1, %v2066_v0  ;;  %v12453_v24 = vcombine.low %v2060_v2, %v2068_v3  ;;  %v1115_v1 = vld [vmem:[#allocation8 + $0x8] sm:$0xff]  ;;  %v1118_v2 = vld [vmem:[#allocation8 + $0x20] sm:$0xff] }
 0x22c   :  { %7515 = vmatprep.subr.bf16.mxu1 %v12386_v12  ;;  %7939 = vmatprep.subr.bf16.mxu0 %v12390_v19  ;;  %v12466_v12 = vcombine.high %v2074_v15, %v2082_v60  ;;  %v12470_v19 = vcombine.high %v2076_v8, %v2084_v57  ;;  %v1123_v0 = vld [vmem:[#allocation8 + $0x48] sm:$0xff]  ;;  %v1126_v3 = vld [vmem:[#allocation8 + $0x60] sm:$0xff] }
 0x22f   :  { %7516 = vmatpush1.bf16.msra.mxu1 %v12385_v50  ;;  %7940 = vmatpush1.bf16.msra.mxu0 %v12389_v55  ;;  %v12465_v50 = vcombine.low %v2074_v15, %v2082_v60  ;;  %v12469_v55 = vcombine.low %v2076_v8, %v2084_v57  ;;  %v1131_v15 = vld [vmem:[#allocation8 + $0x88] sm:$0xff]  ;;  %v1134_v8 = vld [vmem:[#allocation8 + $0xa0] sm:$0xff] }
 0x230   :  { %7517 = vmatprep.subr.bf16.mxu1 %v12402_v51  ;;  %7941 = vmatprep.subr.bf16.mxu0 %v12406_v53  ;;  %v12482_v51 = vcombine.high %v2090_v25, %v2098_v30  ;;  %v12486_v53 = vcombine.high %v2092_v32, %v2100_v49  ;;  %v1139_v60 = vld [vmem:[#allocation8 + $0xc8] sm:$0xff]  ;;  %v1142_v57 = vld [vmem:[#allocation8 + $0xe0] sm:$0xff] }
 0x233   :  { %7518 = vmatpush1.bf16.msra.mxu1 %v12401_v31  ;;  %7942 = vmatpush1.bf16.msra.mxu0 %v12405_v35  ;;  %v12481_v31 = vcombine.low %v2090_v25, %v2098_v30  ;;  %v12485_v35 = vcombine.low %v2092_v32, %v2100_v49  ;;  %v1147_v25 = vld [vmem:[#allocation8 + $0x108] sm:$0xff]  ;;  %v1150_v32 = vld [vmem:[#allocation8 + $0x120] sm:$0xff] }
 0x234   :  { %7519 = vmatprep.subr.bf16.mxu1 %v12418_v41  ;;  %7943 = vmatprep.subr.bf16.mxu0 %v12422_v45  ;;  %v12498_v41 = vcombine.high %v2106_v56, %v2114_v33  ;;  %v12502_v45 = vcombine.high %v2108_v36, %v2116_v22  ;;  %v1155_v30 = vld [vmem:[#allocation8 + $0x148] sm:$0xff]  ;;  %v1158_v49 = vld [vmem:[#allocation8 + $0x160] sm:$0xff] }
 0x237   :  { %7520 = vmatpush1.bf16.msra.mxu1 %v12417_v16  ;;  %7944 = vmatpush1.bf16.msra.mxu0 %v12421_v40  ;;  %v12497_v16 = vcombine.low %v2106_v56, %v2114_v33  ;;  %v12501_v40 = vcombine.low %v2108_v36, %v2116_v22  ;;  %v1163_v56 = vld [vmem:[#allocation8 + $0x188] sm:$0xff]  ;;  %v1166_v36 = vld [vmem:[#allocation8 + $0x1a0] sm:$0xff] }
 0x238   :  { %7521 = vmatprep.subr.bf16.mxu1 %v12434_v63  ;;  %7945 = vmatprep.subr.bf16.mxu0 %v12438_v26  ;;  %v12514_v63 = vcombine.high %v2122_v46, %v2130_v47  ;;  %v12518_v26 = vcombine.high %v2124_v52, %v2132_v54  ;;  %v1171_v33 = vld [vmem:[#allocation8 + $0x1c8] sm:$0xff]  ;;  %v1174_v22 = vld [vmem:[#allocation8 + $0x1e0] sm:$0xff] }
 0x23b   :  { %7522 = vmatpush1.bf16.msra.mxu1 %v12433_v5  ;;  %7946 = vmatpush1.bf16.msra.mxu0 %v12437_v20  ;;  %v12513_v5 = vcombine.low %v2122_v46, %v2130_v47  ;;  %v12517_v20 = vcombine.low %v2124_v52, %v2132_v54  ;;  %v1179_v46 = vld [vmem:[#allocation8 + $0x208] sm:$0xff]  ;;  %v1182_v52 = vld [vmem:[#allocation8 + $0x220] sm:$0xff] }
 0x23c   :  { %7523 = vmatprep.subr.bf16.mxu1 %v12450_v7  ;;  %7947 = vmatprep.subr.bf16.mxu0 %v12454_v4  ;;  %v11508_v7 = vcombine.high %v1115_v1, %v1123_v0  ;;  %v11514_v4 = vcombine.high %v1118_v2, %v1126_v3  ;;  %v1187_v47 = vld [vmem:[#allocation8 + $0x248] sm:$0xff]  ;;  %v1190_v54 = vld [vmem:[#allocation8 + $0x260] sm:$0xff] }
 0x23f   :  { %7524 = vmatpush1.bf16.msra.mxu1 %v12449_v61  ;;  %7948 = vmatpush1.bf16.msra.mxu0 %v12453_v24  ;;  %v11507_v61 = vcombine.low %v1115_v1, %v1123_v0  ;;  %v11513_v24 = vcombine.low %v1118_v2, %v1126_v3  ;;  %v1195_v1 = vld [vmem:[#allocation8 + $0x288] sm:$0xff]  ;;  %v1198_v2 = vld [vmem:[#allocation8 + $0x2a0] sm:$0xff] }
 0x240   :  { %7525 = vmatprep.subr.bf16.mxu1 %v12466_v12  ;;  %7949 = vmatprep.subr.bf16.mxu0 %v12470_v19  ;;  %v11524_v12 = vcombine.high %v1131_v15, %v1139_v60  ;;  %v11530_v19 = vcombine.high %v1134_v8, %v1142_v57  ;;  %v1203_v0 = vld [vmem:[#allocation8 + $0x2c8] sm:$0xff]  ;;  %v1206_v3 = vld [vmem:[#allocation8 + $0x2e0] sm:$0xff] }
 0x243   :  { %7526 = vmatpush1.bf16.msra.mxu1 %v12465_v50  ;;  %7950 = vmatpush1.bf16.msra.mxu0 %v12469_v55  ;;  %v11523_v50 = vcombine.low %v1131_v15, %v1139_v60  ;;  %v11529_v55 = vcombine.low %v1134_v8, %v1142_v57  ;;  %v1211_v15 = vld [vmem:[#allocation8 + $0x308] sm:$0xff]  ;;  %v1214_v8 = vld [vmem:[#allocation8 + $0x320] sm:$0xff] }
 0x244   :  { %7527 = vmatprep.subr.bf16.mxu1 %v12482_v51  ;;  %7951 = vmatprep.subr.bf16.mxu0 %v12486_v53  ;;  %v11540_v51 = vcombine.high %v1147_v25, %v1155_v30  ;;  %v11546_v53 = vcombine.high %v1150_v32, %v1158_v49  ;;  %v1219_v60 = vld [vmem:[#allocation8 + $0x348] sm:$0xff]  ;;  %v1222_v57 = vld [vmem:[#allocation8 + $0x360] sm:$0xff] }
 0x247   :  { %7528 = vmatpush1.bf16.msra.mxu1 %v12481_v31  ;;  %7952 = vmatpush1.bf16.msra.mxu0 %v12485_v35  ;;  %v11539_v31 = vcombine.low %v1147_v25, %v1155_v30  ;;  %v11545_v35 = vcombine.low %v1150_v32, %v1158_v49  ;;  %v1227_v25 = vld [vmem:[#allocation8 + $0x388] sm:$0xff]  ;;  %v1230_v32 = vld [vmem:[#allocation8 + $0x3a0] sm:$0xff] }
 0x248   :  { %7529 = vmatprep.subr.bf16.mxu1 %v12498_v41  ;;  %7953 = vmatprep.subr.bf16.mxu0 %v12502_v45  ;;  %v11556_v41 = vcombine.high %v1163_v56, %v1171_v33  ;;  %v11562_v45 = vcombine.high %v1166_v36, %v1174_v22  ;;  %v1235_v30 = vld [vmem:[#allocation8 + $0x3c8] sm:$0xff]  ;;  %v1238_v49 = vld [vmem:[#allocation8 + $0x3e0] sm:$0xff] }
 0x24b   :  { %7530 = vmatpush1.bf16.msra.mxu1 %v12497_v16  ;;  %7954 = vmatpush1.bf16.msra.mxu0 %v12501_v40  ;;  %v11555_v16 = vcombine.low %v1163_v56, %v1171_v33  ;;  %v11561_v40 = vcombine.low %v1166_v36, %v1174_v22  ;;  %v1243_v56 = vld [vmem:[#allocation8 + $0x408] sm:$0xff]  ;;  %v1246_v36 = vld [vmem:[#allocation8 + $0x420] sm:$0xff] }
 0x24c   :  { %7531 = vmatprep.subr.bf16.mxu1 %v12514_v63  ;;  %7955 = vmatprep.subr.bf16.mxu0 %v12518_v26  ;;  %v11572_v63 = vcombine.high %v1179_v46, %v1187_v47  ;;  %v11578_v26 = vcombine.high %v1182_v52, %v1190_v54  ;;  %v1251_v33 = vld [vmem:[#allocation8 + $0x448] sm:$0xff]  ;;  %v1254_v22 = vld [vmem:[#allocation8 + $0x460] sm:$0xff] }
 0x24f   :  { %7532 = vmatpush1.bf16.msra.mxu1 %v12513_v5  ;;  %7956 = vmatpush1.bf16.msra.mxu0 %v12517_v20  ;;  %v11571_v5 = vcombine.low %v1179_v46, %v1187_v47  ;;  %v11577_v20 = vcombine.low %v1182_v52, %v1190_v54  ;;  %v1259_v46 = vld [vmem:[#allocation8 + $0x488] sm:$0xff]  ;;  %v1262_v52 = vld [vmem:[#allocation8 + $0x4a0] sm:$0xff] }
 0x250   :  { %7554 = vmatprep.subr.bf16.mxu1 %v11508_v7  ;;  %8190 = vmatprep.subr.bf16.mxu0 %v11514_v4  ;;  %v11588_v7 = vcombine.high %v1195_v1, %v1203_v0  ;;  %v11594_v4 = vcombine.high %v1198_v2, %v1206_v3  ;;  %v1267_v47 = vld [vmem:[#allocation8 + $0x4c8] sm:$0xff]  ;;  %v1270_v54 = vld [vmem:[#allocation8 + $0x4e0] sm:$0xff] }
 0x252   :  { %7534 = vmatmul.mubr.bf16.vlgmr.msra.gmra.mrb[16].mxu1 %v14227_v59  ;;  %7958 = vmatmul.mubr.bf16.vlgmr.msra.gmra.mrb[16].mxu0 %v14227_v59 }
 0x253   :  { %7555 = vmatpush1.bf16.msra.mxu1 %v11507_v61  ;;  %8191 = vmatpush1.bf16.msra.mxu0 %v11513_v24  ;;  %v11587_v61 = vcombine.low %v1195_v1, %v1203_v0  ;;  %v11593_v24 = vcombine.low %v1198_v2, %v1206_v3  ;;  %v1275_v1 = vld [vmem:[#allocation8 + $0x508] sm:$0xff]  ;;  %v1278_v2 = vld [vmem:[#allocation8 + $0x520] sm:$0xff] }
 0x254   :  { %7556 = vmatprep.subr.bf16.mxu1 %v11524_v12  ;;  %8192 = vmatprep.subr.bf16.mxu0 %v11530_v19  ;;  %v11604_v12 = vcombine.high %v1211_v15, %v1219_v60  ;;  %v11610_v19 = vcombine.high %v1214_v8, %v1222_v57  ;;  %v1283_v0 = vld [vmem:[#allocation8 + $0x548] sm:$0xff]  ;;  %v1286_v3 = vld [vmem:[#allocation8 + $0x560] sm:$0xff] }
 0x255   :  { %7543 = vmatprep.mubr.bf16.mxu1 %v14241_v17  ;;  %7967 = vmatprep.mubr.bf16.mxu0 %v14241_v17 }
 0x257   :  { %7557 = vmatpush1.bf16.msra.mxu1 %v11523_v50  ;;  %8193 = vmatpush1.bf16.msra.mxu0 %v11529_v55  ;;  %v11603_v50 = vcombine.low %v1211_v15, %v1219_v60  ;;  %v11609_v55 = vcombine.low %v1214_v8, %v1222_v57  ;;  %v1291_v15 = vld [vmem:[#allocation8 + $0x588] sm:$0xff]  ;;  %v1294_v8 = vld [vmem:[#allocation8 + $0x5a0] sm:$0xff] }
 0x258   :  { %7558 = vmatprep.subr.bf16.mxu1 %v11540_v51  ;;  %8194 = vmatprep.subr.bf16.mxu0 %v11546_v53  ;;  %v11620_v51 = vcombine.high %v1227_v25, %v1235_v30  ;;  %v11626_v53 = vcombine.high %v1230_v32, %v1238_v49  ;;  %v1299_v60 = vld [vmem:[#allocation8 + $0x5c8] sm:$0xff]  ;;  %v1302_v57 = vld [vmem:[#allocation8 + $0x5e0] sm:$0xff] }
 0x25a   :  { %7544 = vmatmul.mubr.bf16.gmra.mrb[20].mxu1 %v14239_v11  ;;  %7968 = vmatmul.mubr.bf16.gmra.mrb[20].mxu0 %v14239_v11 }
 0x25b   :  { %7559 = vmatpush1.bf16.msra.mxu1 %v11539_v31  ;;  %7586 = vmatprep.mubr.bf16.mxu1 %v14078_v43  ;;  %v11619_v31 = vcombine.low %v1227_v25, %v1235_v30  ;;  %v1307_v25 = vld [vmem:[#allocation8 + $0x608] sm:$0xff] }
 0x25c   :  { %8195 = vmatpush1.bf16.msra.mxu0 %v11545_v35  ;;  %8222 = vmatprep.mubr.bf16.mxu0 %v14078_v43  ;;  %v11625_v35 = vcombine.low %v1230_v32, %v1238_v49  ;;  %v1315_v30 = vld [vmem:[#allocation8 + $0x648] sm:$0xff]  ;;  %v1310_v32 = vld [vmem:[#allocation8 + $0x620] sm:$0xff] }
 0x25d   :  { %7560 = vmatprep.subr.bf16.mxu1 %v11556_v41  ;;  %8196 = vmatprep.subr.bf16.mxu0 %v11562_v45  ;;  %v11636_v41 = vcombine.high %v1243_v56, %v1251_v33  ;;  %v11642_v45 = vcombine.high %v1246_v36, %v1254_v22  ;;  %v1318_v49 = vld [vmem:[#allocation8 + $0x660] sm:$0xff] }
 0x25f   :  { %7561 = vmatpush1.bf16.msra.mxu1 %v11555_v16  ;;  %v11635_v16 = vcombine.low %v1243_v56, %v1251_v33  ;;  %v1323_v56 = vld [vmem:[#allocation8 + $0x688] sm:$0xff] }
 0x260   :  { %8197 = vmatpush1.bf16.msra.mxu0 %v11561_v40  ;;  %7562 = vmatprep.subr.bf16.mxu1 %v11572_v63  ;;  %v11641_v40 = vcombine.low %v1246_v36, %v1254_v22  ;;  %v11652_v63 = vcombine.high %v1259_v46, %v1267_v47  ;;  %v1331_v33 = vld [vmem:[#allocation8 + $0x6c8] sm:$0xff]  ;;  %v1326_v36 = vld [vmem:[#allocation8 + $0x6a0] sm:$0xff] }
 0x261   :  { %8198 = vmatprep.subr.bf16.mxu0 %v11578_v26  ;;  %v11658_v26 = vcombine.high %v1262_v52, %v1270_v54  ;;  %v1334_v22 = vld [vmem:[#allocation8 + $0x6e0] sm:$0xff] }
 0x263   :  { %7563 = vmatpush1.bf16.msra.mxu1 %v11571_v5  ;;  %v11651_v5 = vcombine.low %v1259_v46, %v1267_v47  ;;  %v1339_v46 = vld [vmem:[#allocation8 + $0x708] sm:$0xff] }
 0x264   :  { %8199 = vmatpush1.bf16.msra.mxu0 %v11577_v20  ;;  %7564 = vmatprep.subr.bf16.mxu1 %v11588_v7  ;;  %v11657_v20 = vcombine.low %v1262_v52, %v1270_v54  ;;  %v11668_v7 = vcombine.high %v1275_v1, %v1283_v0  ;;  %v1347_v47 = vld [vmem:[#allocation8 + $0x748] sm:$0xff]  ;;  %v1342_v52 = vld [vmem:[#allocation8 + $0x720] sm:$0xff] }
 0x265   :  { %8200 = vmatprep.subr.bf16.mxu0 %v11594_v4  ;;  %v11674_v4 = vcombine.high %v1278_v2, %v1286_v3  ;;  %v1350_v54 = vld [vmem:[#allocation8 + $0x760] sm:$0xff] }
 0x267   :  { %7565 = vmatpush1.bf16.msra.mxu1 %v11587_v61  ;;  %v11667_v61 = vcombine.low %v1275_v1, %v1283_v0  ;;  %v1355_v1 = vld [vmem:[#allocation8 + $0x788] sm:$0xff] }
 0x268   :  { %8201 = vmatpush1.bf16.msra.mxu0 %v11593_v24  ;;  %7566 = vmatprep.subr.bf16.mxu1 %v11604_v12  ;;  %v11673_v24 = vcombine.low %v1278_v2, %v1286_v3  ;;  %v11684_v12 = vcombine.high %v1291_v15, %v1299_v60  ;;  %v1363_v0 = vld [vmem:[#allocation8 + $0x7c8] sm:$0xff]  ;;  %v1358_v2 = vld [vmem:[#allocation8 + $0x7a0] sm:$0xff] }
 0x269   :  { %8202 = vmatprep.subr.bf16.mxu0 %v11610_v19  ;;  %v11690_v19 = vcombine.high %v1294_v8, %v1302_v57  ;;  %v1366_v3 = vld [vmem:[#allocation8 + $0x7e0] sm:$0xff] }
 0x26b   :  { %7567 = vmatpush1.bf16.msra.mxu1 %v11603_v50  ;;  %v11683_v50 = vcombine.low %v1291_v15, %v1299_v60  ;;  %v1371_v15 = vld [vmem:[#allocation8 + $0x808] sm:$0xff] }
 0x26c   :  { %8203 = vmatpush1.bf16.msra.mxu0 %v11609_v55  ;;  %7568 = vmatprep.subr.bf16.mxu1 %v11620_v51  ;;  %v11689_v55 = vcombine.low %v1294_v8, %v1302_v57  ;;  %v11700_v51 = vcombine.high %v1307_v25, %v1315_v30  ;;  %v1379_v60 = vld [vmem:[#allocation8 + $0x848] sm:$0xff]  ;;  %v1374_v8 = vld [vmem:[#allocation8 + $0x820] sm:$0xff] }
 0x26d   :  { %8204 = vmatprep.subr.bf16.mxu0 %v11626_v53  ;;  %v11706_v53 = vcombine.high %v1310_v32, %v1318_v49  ;;  %v1382_v57 = vld [vmem:[#allocation8 + $0x860] sm:$0xff] }
 0x26f   :  { %7569 = vmatpush1.bf16.msra.mxu1 %v11619_v31  ;;  %v11699_v31 = vcombine.low %v1307_v25, %v1315_v30  ;;  %v1387_v25 = vld [vmem:[#allocation8 + $0x888] sm:$0xff] }
 0x270   :  { %8205 = vmatpush1.bf16.msra.mxu0 %v11625_v35  ;;  %7570 = vmatprep.subr.bf16.mxu1 %v11636_v41  ;;  %v11705_v35 = vcombine.low %v1310_v32, %v1318_v49  ;;  %v11716_v41 = vcombine.high %v1323_v56, %v1331_v33  ;;  %v1395_v30 = vld [vmem:[#allocation8 + $0x8c8] sm:$0xff]  ;;  %v1390_v32 = vld [vmem:[#allocation8 + $0x8a0] sm:$0xff] }
 0x271   :  { %8206 = vmatprep.subr.bf16.mxu0 %v11642_v45  ;;  %v11722_v45 = vcombine.high %v1326_v36, %v1334_v22  ;;  %v1398_v49 = vld [vmem:[#allocation8 + $0x8e0] sm:$0xff] }
 0x273   :  { %7571 = vmatpush1.bf16.msra.mxu1 %v11635_v16  ;;  %v11715_v16 = vcombine.low %v1323_v56, %v1331_v33  ;;  %v1403_v56 = vld [vmem:[#allocation8 + $0x908] sm:$0xff] }
 0x274   :  { %8207 = vmatpush1.bf16.msra.mxu0 %v11641_v40  ;;  %7572 = vmatprep.subr.bf16.mxu1 %v11652_v63  ;;  %v11721_v40 = vcombine.low %v1326_v36, %v1334_v22  ;;  %v11732_v63 = vcombine.high %v1339_v46, %v1347_v47  ;;  %v1411_v33 = vld [vmem:[#allocation8 + $0x948] sm:$0xff]  ;;  %v1406_v36 = vld [vmem:[#allocation8 + $0x920] sm:$0xff] }
 0x275   :  { %8208 = vmatprep.subr.bf16.mxu0 %v11658_v26  ;;  %v11738_v26 = vcombine.high %v1342_v52, %v1350_v54  ;;  %v1414_v22 = vld [vmem:[#allocation8 + $0x960] sm:$0xff] }
 0x277   :  { %7573 = vmatpush1.bf16.msra.mxu1 %v11651_v5  ;;  %v11731_v5 = vcombine.low %v1339_v46, %v1347_v47  ;;  %v1419_v46 = vld [vmem:[#allocation8 + $0x988] sm:$0xff] }
 0x278   :  { %8209 = vmatpush1.bf16.msra.mxu0 %v11657_v20  ;;  %7574 = vmatprep.subr.bf16.mxu1 %v11668_v7  ;;  %v11737_v20 = vcombine.low %v1342_v52, %v1350_v54  ;;  %v11748_v7 = vcombine.high %v1355_v1, %v1363_v0  ;;  %v1427_v47 = vld [vmem:[#allocation8 + $0x9c8] sm:$0xff]  ;;  %v1422_v52 = vld [vmem:[#allocation8 + $0x9a0] sm:$0xff] }
 0x279   :  { %8210 = vmatprep.subr.bf16.mxu0 %v11674_v4  ;;  %v11754_v4 = vcombine.high %v1358_v2, %v1366_v3  ;;  %v1430_v54 = vld [vmem:[#allocation8 + $0x9e0] sm:$0xff] }
 0x27b   :  { %7575 = vmatpush1.bf16.msra.mxu1 %v11667_v61  ;;  %v11747_v61 = vcombine.low %v1355_v1, %v1363_v0  ;;  %v1435_v1 = vld [vmem:[#allocation8 + $0xa08] sm:$0xff] }
 0x27c   :  { %8211 = vmatpush1.bf16.msra.mxu0 %v11673_v24  ;;  %7576 = vmatprep.subr.bf16.mxu1 %v11684_v12  ;;  %v11753_v24 = vcombine.low %v1358_v2, %v1366_v3  ;;  %v11764_v12 = vcombine.high %v1371_v15, %v1379_v60  ;;  %v1443_v0 = vld [vmem:[#allocation8 + $0xa48] sm:$0xff]  ;;  %v1438_v2 = vld [vmem:[#allocation8 + $0xa20] sm:$0xff] }
 0x27d   :  { %8212 = vmatprep.subr.bf16.mxu0 %v11690_v19  ;;  %v11770_v19 = vcombine.high %v1374_v8, %v1382_v57  ;;  %v1446_v3 = vld [vmem:[#allocation8 + $0xa60] sm:$0xff] }
 0x27f   :  { %7577 = vmatpush1.bf16.msra.mxu1 %v11683_v50  ;;  %v11763_v50 = vcombine.low %v1371_v15, %v1379_v60  ;;  %v1451_v15 = vld [vmem:[#allocation8 + $0xa88] sm:$0xff] }
 0x280   :  { %8213 = vmatpush1.bf16.msra.mxu0 %v11689_v55  ;;  %7578 = vmatprep.subr.bf16.mxu1 %v11700_v51  ;;  %v11769_v55 = vcombine.low %v1374_v8, %v1382_v57  ;;  %v11780_v51 = vcombine.high %v1387_v25, %v1395_v30  ;;  %v1459_v60 = vld [vmem:[#allocation8 + $0xac8] sm:$0xff]  ;;  %v1454_v8 = vld [vmem:[#allocation8 + $0xaa0] sm:$0xff] }
 0x281   :  { %8214 = vmatprep.subr.bf16.mxu0 %v11706_v53  ;;  %v11786_v53 = vcombine.high %v1390_v32, %v1398_v49  ;;  %v1462_v57 = vld [vmem:[#allocation8 + $0xae0] sm:$0xff] }
 0x283   :  { %7579 = vmatpush1.bf16.msra.mxu1 %v11699_v31  ;;  %v11779_v31 = vcombine.low %v1387_v25, %v1395_v30  ;;  %v1467_v25 = vld [vmem:[#allocation8 + $0xb08] sm:$0xff] }
 0x284   :  { %8215 = vmatpush1.bf16.msra.mxu0 %v11705_v35  ;;  %7580 = vmatprep.subr.bf16.mxu1 %v11716_v41  ;;  %v11785_v35 = vcombine.low %v1390_v32, %v1398_v49  ;;  %v11796_v41 = vcombine.high %v1403_v56, %v1411_v33  ;;  %v1475_v30 = vld [vmem:[#allocation8 + $0xb48] sm:$0xff]  ;;  %v1470_v32 = vld [vmem:[#allocation8 + $0xb20] sm:$0xff] }
 0x285   :  { %8216 = vmatprep.subr.bf16.mxu0 %v11722_v45  ;;  %v11802_v45 = vcombine.high %v1406_v36, %v1414_v22  ;;  %v1478_v49 = vld [vmem:[#allocation8 + $0xb60] sm:$0xff] }
 0x287   :  { %7581 = vmatpush1.bf16.msra.mxu1 %v11715_v16  ;;  %v11795_v16 = vcombine.low %v1403_v56, %v1411_v33  ;;  %v1483_v56 = vld [vmem:[#allocation8 + $0xb88] sm:$0xff] }
 0x288   :  { %8217 = vmatpush1.bf16.msra.mxu0 %v11721_v40  ;;  %7582 = vmatprep.subr.bf16.mxu1 %v11732_v63  ;;  %v11801_v40 = vcombine.low %v1406_v36, %v1414_v22  ;;  %v11812_v63 = vcombine.high %v1419_v46, %v1427_v47  ;;  %v1491_v33 = vld [vmem:[#allocation8 + $0xbc8] sm:$0xff]  ;;  %v1486_v36 = vld [vmem:[#allocation8 + $0xba0] sm:$0xff] }
 0x289   :  { %8218 = vmatprep.subr.bf16.mxu0 %v11738_v26  ;;  %v11818_v26 = vcombine.high %v1422_v52, %v1430_v54  ;;  %v1494_v22 = vld [vmem:[#allocation8 + $0xbe0] sm:$0xff] }
 0x28b   :  { %7583 = vmatpush1.bf16.msra.mxu1 %v11731_v5  ;;  %v11811_v5 = vcombine.low %v1419_v46, %v1427_v47  ;;  %v1499_v46 = vld [vmem:[#allocation8 + $0xc08] sm:$0xff] }
 0x28c   :  { %8219 = vmatpush1.bf16.msra.mxu0 %v11737_v20  ;;  %7584 = vmatprep.subr.bf16.mxu1 %v11748_v7  ;;  %v11817_v20 = vcombine.low %v1422_v52, %v1430_v54  ;;  %v11828_v7 = vcombine.high %v1435_v1, %v1443_v0  ;;  %v1507_v47 = vld [vmem:[#allocation8 + $0xc48] sm:$0xff]  ;;  %v1502_v52 = vld [vmem:[#allocation8 + $0xc20] sm:$0xff] }
 0x28d   :  { %8220 = vmatprep.subr.bf16.mxu0 %v11754_v4  ;;  %v11834_v4 = vcombine.high %v1438_v2, %v1446_v3  ;;  %v1510_v54 = vld [vmem:[#allocation8 + $0xc60] sm:$0xff] }
 0x28f   :  { %7585 = vmatpush1.bf16.msra.mxu1 %v11747_v61  ;;  %v11827_v61 = vcombine.low %v1435_v1, %v1443_v0  ;;  %v1515_v1 = vld [vmem:[#allocation8 + $0xc88] sm:$0xff] }
 0x290   :  { %8221 = vmatpush1.bf16.msra.mxu0 %v11753_v24  ;;  %7607 = vmatprep.subr.bf16.mxu1 %v11764_v12  ;;  %v11833_v24 = vcombine.low %v1438_v2, %v1446_v3  ;;  %v11844_v12 = vcombine.high %v1451_v15, %v1459_v60  ;;  %v1523_v0 = vld [vmem:[#allocation8 + $0xcc8] sm:$0xff]  ;;  %v1518_v2 = vld [vmem:[#allocation8 + $0xca0] sm:$0xff] }
 0x291   :  { %8243 = vmatprep.subr.bf16.mxu0 %v11770_v19  ;;  %v11850_v19 = vcombine.high %v1454_v8, %v1462_v57  ;;  %v1526_v3 = vld [vmem:[#allocation8 + $0xce0] sm:$0xff] }
 0x292   :  { %7587 = vmatmul.mubr.bf16.vlgmr.msra.gmra.mrb[24].mxu1 %v14068_v58 }
 0x293   :  { %8223 = vmatmul.mubr.bf16.vlgmr.msra.gmra.mrb[24].mxu0 %v14068_v58  ;;  %7596 = vmatprep.mubr.bf16.mxu1 %v14118_v44 }
 0x294   :  { %7608 = vmatpush1.bf16.msra.mxu1 %v11763_v50  ;;  %8232 = vmatprep.mubr.bf16.mxu0 %v14118_v44  ;;  %v11843_v50 = vcombine.low %v1451_v15, %v1459_v60  ;;  %v1531_v15 = vld [vmem:[#allocation8 + $0xd08] sm:$0xff] }
 0x295   :  { %8244 = vmatpush1.bf16.msra.mxu0 %v11769_v55  ;;  %7609 = vmatprep.subr.bf16.mxu1 %v11780_v51  ;;  %v11849_v55 = vcombine.low %v1454_v8, %v1462_v57  ;;  %v11860_v51 = vcombine.high %v1467_v25, %v1475_v30  ;;  %v1539_v60 = vld [vmem:[#allocation8 + $0xd48] sm:$0xff]  ;;  %v1534_v8 = vld [vmem:[#allocation8 + $0xd20] sm:$0xff] }
 0x296   :  { %8245 = vmatprep.subr.bf16.mxu0 %v11786_v53  ;;  %v11866_v53 = vcombine.high %v1470_v32, %v1478_v49  ;;  %v1542_v57 = vld [vmem:[#allocation8 + $0xd60] sm:$0xff] }
 0x298   :  { %7610 = vmatpush1.bf16.msra.mxu1 %v11779_v31  ;;  %v11859_v31 = vcombine.low %v1467_v25, %v1475_v30  ;;  %v1547_v25 = vld [vmem:[#allocation8 + $0xd88] sm:$0xff] }
 0x299   :  { %8246 = vmatpush1.bf16.msra.mxu0 %v11785_v35  ;;  %7611 = vmatprep.subr.bf16.mxu1 %v11796_v41  ;;  %v11865_v35 = vcombine.low %v1470_v32, %v1478_v49  ;;  %v11876_v41 = vcombine.high %v1483_v56, %v1491_v33  ;;  %v1555_v30 = vld [vmem:[#allocation8 + $0xdc8] sm:$0xff]  ;;  %v1550_v32 = vld [vmem:[#allocation8 + $0xda0] sm:$0xff] }
 0x29a   :  { %7597 = vmatmul.mubr.bf16.gmra.mrb[28].mxu1 %v14116_v38  ;;  %8247 = vmatprep.subr.bf16.mxu0 %v11802_v45  ;;  %v11882_v45 = vcombine.high %v1486_v36, %v1494_v22  ;;  %v1558_v49 = vld [vmem:[#allocation8 + $0xde0] sm:$0xff] }
 0x29b   :  { %8233 = vmatmul.mubr.bf16.gmra.mrb[28].mxu0 %v14116_v38  ;;  %7639 = vmatprep.mubr.bf16.mxu1 %v14122_v48 }
 0x29c   :  { %7612 = vmatpush1.bf16.msra.mxu1 %v11795_v16  ;;  %8275 = vmatprep.mubr.bf16.mxu0 %v14122_v48  ;;  %v11875_v16 = vcombine.low %v1483_v56, %v1491_v33  ;;  %v1563_v56 = vld [vmem:[#allocation8 + $0xe08] sm:$0xff] }
 0x29d   :  { %8248 = vmatpush1.bf16.msra.mxu0 %v11801_v40  ;;  %7613 = vmatprep.subr.bf16.mxu1 %v11812_v63  ;;  %v11881_v40 = vcombine.low %v1486_v36, %v1494_v22  ;;  %v11892_v63 = vcombine.high %v1499_v46, %v1507_v47  ;;  %v1571_v33 = vld [vmem:[#allocation8 + $0xe48] sm:$0xff]  ;;  %v1566_v36 = vld [vmem:[#allocation8 + $0xe20] sm:$0xff] }
 0x29e   :  { %8249 = vmatprep.subr.bf16.mxu0 %v11818_v26  ;;  %v11898_v26 = vcombine.high %v1502_v52, %v1510_v54  ;;  %v1574_v22 = vld [vmem:[#allocation8 + $0xe60] sm:$0xff] }
 0x2a0   :  { %7614 = vmatpush1.bf16.msra.mxu1 %v11811_v5  ;;  %v11891_v5 = vcombine.low %v1499_v46, %v1507_v47  ;;  %v1579_v46 = vld [vmem:[#allocation8 + $0xe88] sm:$0xff] }
 0x2a1   :  { %8250 = vmatpush1.bf16.msra.mxu0 %v11817_v20  ;;  %7615 = vmatprep.subr.bf16.mxu1 %v11828_v7  ;;  %v11897_v20 = vcombine.low %v1502_v52, %v1510_v54  ;;  %v11908_v7 = vcombine.high %v1515_v1, %v1523_v0  ;;  %v1587_v47 = vld [vmem:[#allocation8 + $0xec8] sm:$0xff]  ;;  %v1582_v52 = vld [vmem:[#allocation8 + $0xea0] sm:$0xff] }
 0x2a2   :  { %8251 = vmatprep.subr.bf16.mxu0 %v11834_v4  ;;  %v11914_v4 = vcombine.high %v1518_v2, %v1526_v3  ;;  %v1590_v54 = vld [vmem:[#allocation8 + $0xee0] sm:$0xff] }
 0x2a4   :  { %7616 = vmatpush1.bf16.msra.mxu1 %v11827_v61  ;;  %v11907_v61 = vcombine.low %v1515_v1, %v1523_v0  ;;  %v1595_v1 = vld [vmem:[#allocation8 + $0xf08] sm:$0xff] }
 0x2a5   :  { %8252 = vmatpush1.bf16.msra.mxu0 %v11833_v24  ;;  %7617 = vmatprep.subr.bf16.mxu1 %v11844_v12  ;;  %v11913_v24 = vcombine.low %v1518_v2, %v1526_v3  ;;  %v11924_v12 = vcombine.high %v1531_v15, %v1539_v60  ;;  %v1603_v0 = vld [vmem:[#allocation8 + $0xf48] sm:$0xff]  ;;  %v1598_v2 = vld [vmem:[#allocation8 + $0xf20] sm:$0xff] }
 0x2a6   :  { %8253 = vmatprep.subr.bf16.mxu0 %v11850_v19  ;;  %v11930_v19 = vcombine.high %v1534_v8, %v1542_v57  ;;  %v1606_v3 = vld [vmem:[#allocation8 + $0xf60] sm:$0xff] }
 0x2a8   :  { %7618 = vmatpush1.bf16.msra.mxu1 %v11843_v50  ;;  %v11923_v50 = vcombine.low %v1531_v15, %v1539_v60  ;;  %v1611_v15 = vld [vmem:[#allocation8 + $0xf88] sm:$0xff] }
 0x2a9   :  { %8254 = vmatpush1.bf16.msra.mxu0 %v11849_v55  ;;  %7619 = vmatprep.subr.bf16.mxu1 %v11860_v51  ;;  %v11929_v55 = vcombine.low %v1534_v8, %v1542_v57  ;;  %v11940_v51 = vcombine.high %v1547_v25, %v1555_v30  ;;  %v1619_v60 = vld [vmem:[#allocation8 + $0xfc8] sm:$0xff]  ;;  %v1614_v8 = vld [vmem:[#allocation8 + $0xfa0] sm:$0xff] }
 0x2aa   :  { %8255 = vmatprep.subr.bf16.mxu0 %v11866_v53  ;;  %v11946_v53 = vcombine.high %v1550_v32, %v1558_v49  ;;  %v1622_v57 = vld [vmem:[#allocation8 + $0xfe0] sm:$0xff] }
 0x2ac   :  { %7620 = vmatpush1.bf16.msra.mxu1 %v11859_v31  ;;  %v11939_v31 = vcombine.low %v1547_v25, %v1555_v30  ;;  %v1627_v25 = vld [vmem:[#allocation8 + $0x1008] sm:$0xff] }
 0x2ad   :  { %8256 = vmatpush1.bf16.msra.mxu0 %v11865_v35  ;;  %7621 = vmatprep.subr.bf16.mxu1 %v11876_v41  ;;  %v11945_v35 = vcombine.low %v1550_v32, %v1558_v49  ;;  %v11956_v41 = vcombine.high %v1563_v56, %v1571_v33  ;;  %v1635_v30 = vld [vmem:[#allocation8 + $0x1048] sm:$0xff]  ;;  %v1630_v32 = vld [vmem:[#allocation8 + $0x1020] sm:$0xff] }
 0x2ae   :  { %8257 = vmatprep.subr.bf16.mxu0 %v11882_v45  ;;  %v11962_v45 = vcombine.high %v1566_v36, %v1574_v22  ;;  %v1638_v49 = vld [vmem:[#allocation8 + $0x1060] sm:$0xff] }
 0x2b0   :  { %7622 = vmatpush1.bf16.msra.mxu1 %v11875_v16  ;;  %v11955_v16 = vcombine.low %v1563_v56, %v1571_v33  ;;  %v1643_v56 = vld [vmem:[#allocation8 + $0x1088] sm:$0xff] }
 0x2b1   :  { %8258 = vmatpush1.bf16.msra.mxu0 %v11881_v40  ;;  %7623 = vmatprep.subr.bf16.mxu1 %v11892_v63  ;;  %v11961_v40 = vcombine.low %v1566_v36, %v1574_v22  ;;  %v11972_v63 = vcombine.high %v1579_v46, %v1587_v47  ;;  %v1651_v33 = vld [vmem:[#allocation8 + $0x10c8] sm:$0xff]  ;;  %v1646_v36 = vld [vmem:[#allocation8 + $0x10a0] sm:$0xff] }
 0x2b2   :  { %8259 = vmatprep.subr.bf16.mxu0 %v11898_v26  ;;  %v11978_v26 = vcombine.high %v1582_v52, %v1590_v54  ;;  %v1654_v22 = vld [vmem:[#allocation8 + $0x10e0] sm:$0xff] }
 0x2b4   :  { %7624 = vmatpush1.bf16.msra.mxu1 %v11891_v5  ;;  %v11971_v5 = vcombine.low %v1579_v46, %v1587_v47  ;;  %v1659_v46 = vld [vmem:[#allocation8 + $0x1108] sm:$0xff] }
 0x2b5   :  { %8260 = vmatpush1.bf16.msra.mxu0 %v11897_v20  ;;  %7625 = vmatprep.subr.bf16.mxu1 %v11908_v7  ;;  %v11977_v20 = vcombine.low %v1582_v52, %v1590_v54  ;;  %v11988_v7 = vcombine.high %v1595_v1, %v1603_v0  ;;  %v1667_v47 = vld [vmem:[#allocation8 + $0x1148] sm:$0xff]  ;;  %v1662_v52 = vld [vmem:[#allocation8 + $0x1120] sm:$0xff] }
 0x2b6   :  { %8261 = vmatprep.subr.bf16.mxu0 %v11914_v4  ;;  %v11994_v4 = vcombine.high %v1598_v2, %v1606_v3  ;;  %v1670_v54 = vld [vmem:[#allocation8 + $0x1160] sm:$0xff] }
 0x2b8   :  { %7626 = vmatpush1.bf16.msra.mxu1 %v11907_v61  ;;  %v11987_v61 = vcombine.low %v1595_v1, %v1603_v0  ;;  %v1675_v1 = vld [vmem:[#allocation8 + $0x1188] sm:$0xff] }
 0x2b9   :  { %8262 = vmatpush1.bf16.msra.mxu0 %v11913_v24  ;;  %7627 = vmatprep.subr.bf16.mxu1 %v11924_v12  ;;  %v11993_v24 = vcombine.low %v1598_v2, %v1606_v3  ;;  %v12004_v12 = vcombine.high %v1611_v15, %v1619_v60  ;;  %v1683_v0 = vld [vmem:[#allocation8 + $0x11c8] sm:$0xff]  ;;  %v1678_v2 = vld [vmem:[#allocation8 + $0x11a0] sm:$0xff] }
 0x2ba   :  { %8263 = vmatprep.subr.bf16.mxu0 %v11930_v19  ;;  %v12010_v19 = vcombine.high %v1614_v8, %v1622_v57  ;;  %v1686_v3 = vld [vmem:[#allocation8 + $0x11e0] sm:$0xff] }
 0x2bc   :  { %7628 = vmatpush1.bf16.msra.mxu1 %v11923_v50  ;;  %v12003_v50 = vcombine.low %v1611_v15, %v1619_v60  ;;  %v1691_v15 = vld [vmem:[#allocation8 + $0x1208] sm:$0xff] }
 0x2bd   :  { %8264 = vmatpush1.bf16.msra.mxu0 %v11929_v55  ;;  %7629 = vmatprep.subr.bf16.mxu1 %v11940_v51  ;;  %v12009_v55 = vcombine.low %v1614_v8, %v1622_v57  ;;  %v12020_v51 = vcombine.high %v1627_v25, %v1635_v30  ;;  %v1699_v60 = vld [vmem:[#allocation8 + $0x1248] sm:$0xff]  ;;  %v1694_v8 = vld [vmem:[#allocation8 + $0x1220] sm:$0xff] }
 0x2be   :  { %8265 = vmatprep.subr.bf16.mxu0 %v11946_v53  ;;  %v12026_v53 = vcombine.high %v1630_v32, %v1638_v49  ;;  %v1702_v57 = vld [vmem:[#allocation8 + $0x1260] sm:$0xff] }
 0x2c0   :  { %7630 = vmatpush1.bf16.msra.mxu1 %v11939_v31  ;;  %v12019_v31 = vcombine.low %v1627_v25, %v1635_v30  ;;  %v1707_v25 = vld [vmem:[#allocation8 + $0x1288] sm:$0xff] }
 0x2c1   :  { %8266 = vmatpush1.bf16.msra.mxu0 %v11945_v35  ;;  %7631 = vmatprep.subr.bf16.mxu1 %v11956_v41  ;;  %v12025_v35 = vcombine.low %v1630_v32, %v1638_v49  ;;  %v12036_v41 = vcombine.high %v1643_v56, %v1651_v33  ;;  %v1715_v30 = vld [vmem:[#allocation8 + $0x12c8] sm:$0xff]  ;;  %v1710_v32 = vld [vmem:[#allocation8 + $0x12a0] sm:$0xff] }
 0x2c2   :  { %8267 = vmatprep.subr.bf16.mxu0 %v11962_v45  ;;  %v12042_v45 = vcombine.high %v1646_v36, %v1654_v22  ;;  %v1718_v49 = vld [vmem:[#allocation8 + $0x12e0] sm:$0xff] }
 0x2c4   :  { %7632 = vmatpush1.bf16.msra.mxu1 %v11955_v16  ;;  %v12035_v16 = vcombine.low %v1643_v56, %v1651_v33  ;;  %v1723_v56 = vld [vmem:[#allocation8 + $0x1308] sm:$0xff] }
 0x2c5   :  { %8268 = vmatpush1.bf16.msra.mxu0 %v11961_v40  ;;  %7633 = vmatprep.subr.bf16.mxu1 %v11972_v63  ;;  %v12041_v40 = vcombine.low %v1646_v36, %v1654_v22  ;;  %v12052_v63 = vcombine.high %v1659_v46, %v1667_v47  ;;  %v1731_v33 = vld [vmem:[#allocation8 + $0x1348] sm:$0xff]  ;;  %v1726_v36 = vld [vmem:[#allocation8 + $0x1320] sm:$0xff] }
 0x2c6   :  { %8269 = vmatprep.subr.bf16.mxu0 %v11978_v26  ;;  %v12058_v26 = vcombine.high %v1662_v52, %v1670_v54  ;;  %v1734_v22 = vld [vmem:[#allocation8 + $0x1360] sm:$0xff] }
 0x2c8   :  { %7634 = vmatpush1.bf16.msra.mxu1 %v11971_v5  ;;  %v12051_v5 = vcombine.low %v1659_v46, %v1667_v47  ;;  %v1739_v46 = vld [vmem:[#allocation8 + $0x1388] sm:$0xff] }
 0x2c9   :  { %8270 = vmatpush1.bf16.msra.mxu0 %v11977_v20  ;;  %7635 = vmatprep.subr.bf16.mxu1 %v11988_v7  ;;  %v12057_v20 = vcombine.low %v1662_v52, %v1670_v54  ;;  %v12068_v7 = vcombine.high %v1675_v1, %v1683_v0  ;;  %v1747_v47 = vld [vmem:[#allocation8 + $0x13c8] sm:$0xff]  ;;  %v1742_v52 = vld [vmem:[#allocation8 + $0x13a0] sm:$0xff] }
 0x2ca   :  { %8271 = vmatprep.subr.bf16.mxu0 %v11994_v4  ;;  %v12074_v4 = vcombine.high %v1678_v2, %v1686_v3  ;;  %v1750_v54 = vld [vmem:[#allocation8 + $0x13e0] sm:$0xff] }
 0x2cc   :  { %7636 = vmatpush1.bf16.msra.mxu1 %v11987_v61  ;;  %v12067_v61 = vcombine.low %v1675_v1, %v1683_v0  ;;  %v1755_v1 = vld [vmem:[#allocation8 + $0x1408] sm:$0xff] }
 0x2cd   :  { %8272 = vmatpush1.bf16.msra.mxu0 %v11993_v24  ;;  %7637 = vmatprep.subr.bf16.mxu1 %v12004_v12  ;;  %v12073_v24 = vcombine.low %v1678_v2, %v1686_v3  ;;  %v12084_v12 = vcombine.high %v1691_v15, %v1699_v60  ;;  %v1763_v0 = vld [vmem:[#allocation8 + $0x1448] sm:$0xff]  ;;  %v1758_v2 = vld [vmem:[#allocation8 + $0x1420] sm:$0xff] }
 0x2ce   :  { %8273 = vmatprep.subr.bf16.mxu0 %v12010_v19  ;;  %v12090_v19 = vcombine.high %v1694_v8, %v1702_v57  ;;  %v1766_v3 = vld [vmem:[#allocation8 + $0x1460] sm:$0xff] }
 0x2d0   :  { %7638 = vmatpush1.bf16.msra.mxu1 %v12003_v50  ;;  %v12083_v50 = vcombine.low %v1691_v15, %v1699_v60  ;;  %v1771_v15 = vld [vmem:[#allocation8 + $0x1488] sm:$0xff] }
 0x2d1   :  { %8274 = vmatpush1.bf16.msra.mxu0 %v12009_v55  ;;  %7660 = vmatprep.subr.bf16.mxu1 %v12020_v51  ;;  %v12089_v55 = vcombine.low %v1694_v8, %v1702_v57  ;;  %v12100_v51 = vcombine.high %v1707_v25, %v1715_v30  ;;  %v1779_v60 = vld [vmem:[#allocation8 + $0x14c8] sm:$0xff]  ;;  %v1774_v8 = vld [vmem:[#allocation8 + $0x14a0] sm:$0xff] }
 0x2d2   :  { %8296 = vmatprep.subr.bf16.mxu0 %v12026_v53  ;;  %v12106_v53 = vcombine.high %v1710_v32, %v1718_v49  ;;  %v1782_v57 = vld [vmem:[#allocation8 + $0x14e0] sm:$0xff] }
 0x2d3   :  { %7640 = vmatmul.mubr.bf16.vlgmr.msra.gmra.mrb[24].mxu1 %v14120_v18 }
 0x2d4   :  { %8276 = vmatmul.mubr.bf16.vlgmr.msra.gmra.mrb[24].mxu0 %v14120_v18  ;;  %7649 = vmatprep.mubr.bf16.mxu1 %v14141_v23 }
 0x2d5   :  { %7661 = vmatpush1.bf16.msra.mxu1 %v12019_v31  ;;  %8285 = vmatprep.mubr.bf16.mxu0 %v14141_v23  ;;  %v12099_v31 = vcombine.low %v1707_v25, %v1715_v30  ;;  %v1787_v25 = vld [vmem:[#allocation8 + $0x1508] sm:$0xff] }
 0x2d6   :  { %8297 = vmatpush1.bf16.msra.mxu0 %v12025_v35  ;;  %7662 = vmatprep.subr.bf16.mxu1 %v12036_v41  ;;  %v12105_v35 = vcombine.low %v1710_v32, %v1718_v49  ;;  %v12116_v41 = vcombine.high %v1723_v56, %v1731_v33  ;;  %v1795_v30 = vld [vmem:[#allocation8 + $0x1548] sm:$0xff]  ;;  %v1790_v32 = vld [vmem:[#allocation8 + $0x1520] sm:$0xff] }
 0x2d7   :  { %8298 = vmatprep.subr.bf16.mxu0 %v12042_v45  ;;  %v12122_v45 = vcombine.high %v1726_v36, %v1734_v22  ;;  %v1798_v49 = vld [vmem:[#allocation8 + $0x1560] sm:$0xff] }
 0x2d9   :  { %7663 = vmatpush1.bf16.msra.mxu1 %v12035_v16  ;;  %v12115_v16 = vcombine.low %v1723_v56, %v1731_v33  ;;  %v1803_v56 = vld [vmem:[#allocation8 + $0x1588] sm:$0xff] }
 0x2da   :  { %8299 = vmatpush1.bf16.msra.mxu0 %v12041_v40  ;;  %7664 = vmatprep.subr.bf16.mxu1 %v12052_v63  ;;  %v12121_v40 = vcombine.low %v1726_v36, %v1734_v22  ;;  %v12132_v63 = vcombine.high %v1739_v46, %v1747_v47  ;;  %v1811_v33 = vld [vmem:[#allocation8 + $0x15c8] sm:$0xff]  ;;  %v1806_v36 = vld [vmem:[#allocation8 + $0x15a0] sm:$0xff] }
 0x2db   :  { %7650 = vmatmul.mubr.bf16.gmra.mrb[28].mxu1 %v14139_v21  ;;  %8300 = vmatprep.subr.bf16.mxu0 %v12058_v26  ;;  %v12138_v26 = vcombine.high %v1742_v52, %v1750_v54  ;;  %v1814_v22 = vld [vmem:[#allocation8 + $0x15e0] sm:$0xff] }
 0x2dc   :  { %8286 = vmatmul.mubr.bf16.gmra.mrb[28].mxu0 %v14139_v21  ;;  %7692 = vmatprep.mubr.bf16.mxu1 %v14203_v14 }
 0x2dd   :  { %7665 = vmatpush1.bf16.msra.mxu1 %v12051_v5  ;;  %8328 = vmatprep.mubr.bf16.mxu0 %v14203_v14  ;;  %v12131_v5 = vcombine.low %v1739_v46, %v1747_v47  ;;  %v1819_v46 = vld [vmem:[#allocation8 + $0x1608] sm:$0xff] }
 0x2de   :  { %8301 = vmatpush1.bf16.msra.mxu0 %v12057_v20  ;;  %7666 = vmatprep.subr.bf16.mxu1 %v12068_v7  ;;  %v12137_v20 = vcombine.low %v1742_v52, %v1750_v54  ;;  %v12148_v7 = vcombine.high %v1755_v1, %v1763_v0  ;;  %v1827_v47 = vld [vmem:[#allocation8 + $0x1648] sm:$0xff]  ;;  %v1822_v52 = vld [vmem:[#allocation8 + $0x1620] sm:$0xff] }
 0x2df   :  { %8302 = vmatprep.subr.bf16.mxu0 %v12074_v4  ;;  %v12154_v4 = vcombine.high %v1758_v2, %v1766_v3  ;;  %v1830_v54 = vld [vmem:[#allocation8 + $0x1660] sm:$0xff] }
 0x2e1   :  { %7667 = vmatpush1.bf16.msra.mxu1 %v12067_v61  ;;  %v12147_v61 = vcombine.low %v1755_v1, %v1763_v0  ;;  %v1835_v1 = vld [vmem:[#allocation8 + $0x1688] sm:$0xff] }
 0x2e2   :  { %8303 = vmatpush1.bf16.msra.mxu0 %v12073_v24  ;;  %7668 = vmatprep.subr.bf16.mxu1 %v12084_v12  ;;  %v12153_v24 = vcombine.low %v1758_v2, %v1766_v3  ;;  %v12164_v12 = vcombine.high %v1771_v15, %v1779_v60  ;;  %v1843_v0 = vld [vmem:[#allocation8 + $0x16c8] sm:$0xff]  ;;  %v1838_v2 = vld [vmem:[#allocation8 + $0x16a0] sm:$0xff] }
 0x2e3   :  { %8304 = vmatprep.subr.bf16.mxu0 %v12090_v19  ;;  %v12170_v19 = vcombine.high %v1774_v8, %v1782_v57  ;;  %v1846_v3 = vld [vmem:[#allocation8 + $0x16e0] sm:$0xff] }
 0x2e5   :  { %7669 = vmatpush1.bf16.msra.mxu1 %v12083_v50  ;;  %v12163_v50 = vcombine.low %v1771_v15, %v1779_v60  ;;  %v1851_v15 = vld [vmem:[#allocation8 + $0x1708] sm:$0xff] }
 0x2e6   :  { %8305 = vmatpush1.bf16.msra.mxu0 %v12089_v55  ;;  %7670 = vmatprep.subr.bf16.mxu1 %v12100_v51  ;;  %v12169_v55 = vcombine.low %v1774_v8, %v1782_v57  ;;  %v12180_v51 = vcombine.high %v1787_v25, %v1795_v30  ;;  %v1859_v60 = vld [vmem:[#allocation8 + $0x1748] sm:$0xff]  ;;  %v1854_v8 = vld [vmem:[#allocation8 + $0x1720] sm:$0xff] }
 0x2e7   :  { %8306 = vmatprep.subr.bf16.mxu0 %v12106_v53  ;;  %v12186_v53 = vcombine.high %v1790_v32, %v1798_v49  ;;  %v1862_v57 = vld [vmem:[#allocation8 + $0x1760] sm:$0xff] }
 0x2e9   :  { %7671 = vmatpush1.bf16.msra.mxu1 %v12099_v31  ;;  %v12179_v31 = vcombine.low %v1787_v25, %v1795_v30  ;;  %v1867_v25 = vld [vmem:[#allocation8 + $0x1788] sm:$0xff] }
 0x2ea   :  { %8307 = vmatpush1.bf16.msra.mxu0 %v12105_v35  ;;  %7672 = vmatprep.subr.bf16.mxu1 %v12116_v41  ;;  %v12185_v35 = vcombine.low %v1790_v32, %v1798_v49  ;;  %v12196_v41 = vcombine.high %v1803_v56, %v1811_v33  ;;  %v1875_v30 = vld [vmem:[#allocation8 + $0x17c8] sm:$0xff]  ;;  %v1870_v32 = vld [vmem:[#allocation8 + $0x17a0] sm:$0xff] }
 0x2eb   :  { %8308 = vmatprep.subr.bf16.mxu0 %v12122_v45  ;;  %v12202_v45 = vcombine.high %v1806_v36, %v1814_v22  ;;  %v1878_v49 = vld [vmem:[#allocation8 + $0x17e0] sm:$0xff] }
 0x2ed   :  { %7673 = vmatpush1.bf16.msra.mxu1 %v12115_v16  ;;  %v12195_v16 = vcombine.low %v1803_v56, %v1811_v33  ;;  %v1883_v56 = vld [vmem:[#allocation8 + $0x1808] sm:$0xff] }
 0x2ee   :  { %8309 = vmatpush1.bf16.msra.mxu0 %v12121_v40  ;;  %7674 = vmatprep.subr.bf16.mxu1 %v12132_v63  ;;  %v12201_v40 = vcombine.low %v1806_v36, %v1814_v22  ;;  %v12212_v63 = vcombine.high %v1819_v46, %v1827_v47  ;;  %v1891_v33 = vld [vmem:[#allocation8 + $0x1848] sm:$0xff]  ;;  %v1886_v36 = vld [vmem:[#allocation8 + $0x1820] sm:$0xff] }
 0x2ef   :  { %8310 = vmatprep.subr.bf16.mxu0 %v12138_v26  ;;  %v12218_v26 = vcombine.high %v1822_v52, %v1830_v54  ;;  %v1894_v22 = vld [vmem:[#allocation8 + $0x1860] sm:$0xff] }
 0x2f1   :  { %7675 = vmatpush1.bf16.msra.mxu1 %v12131_v5  ;;  %v12211_v5 = vcombine.low %v1819_v46, %v1827_v47  ;;  %v1899_v46 = vld [vmem:[#allocation8 + $0x1888] sm:$0xff] }
 0x2f2   :  { %8311 = vmatpush1.bf16.msra.mxu0 %v12137_v20  ;;  %7676 = vmatprep.subr.bf16.mxu1 %v12148_v7  ;;  %v12217_v20 = vcombine.low %v1822_v52, %v1830_v54  ;;  %v12228_v7 = vcombine.high %v1835_v1, %v1843_v0  ;;  %v1907_v47 = vld [vmem:[#allocation8 + $0x18c8] sm:$0xff]  ;;  %v1902_v52 = vld [vmem:[#allocation8 + $0x18a0] sm:$0xff] }
 0x2f3   :  { %8312 = vmatprep.subr.bf16.mxu0 %v12154_v4  ;;  %v12234_v4 = vcombine.high %v1838_v2, %v1846_v3  ;;  %v1910_v54 = vld [vmem:[#allocation8 + $0x18e0] sm:$0xff] }
 0x2f5   :  { %7677 = vmatpush1.bf16.msra.mxu1 %v12147_v61  ;;  %v12227_v61 = vcombine.low %v1835_v1, %v1843_v0  ;;  %v1915_v1 = vld [vmem:[#allocation8 + $0x1908] sm:$0xff] }
 0x2f6   :  { %8313 = vmatpush1.bf16.msra.mxu0 %v12153_v24  ;;  %7678 = vmatprep.subr.bf16.mxu1 %v12164_v12  ;;  %v12233_v24 = vcombine.low %v1838_v2, %v1846_v3  ;;  %v12244_v12 = vcombine.high %v1851_v15, %v1859_v60  ;;  %v1923_v0 = vld [vmem:[#allocation8 + $0x1948] sm:$0xff]  ;;  %v1918_v2 = vld [vmem:[#allocation8 + $0x1920] sm:$0xff] }
 0x2f7   :  { %8314 = vmatprep.subr.bf16.mxu0 %v12170_v19  ;;  %v12250_v19 = vcombine.high %v1854_v8, %v1862_v57  ;;  %v1926_v3 = vld [vmem:[#allocation8 + $0x1960] sm:$0xff] }
 0x2f9   :  { %7679 = vmatpush1.bf16.msra.mxu1 %v12163_v50  ;;  %v12243_v50 = vcombine.low %v1851_v15, %v1859_v60  ;;  %v1931_v15 = vld [vmem:[#allocation8 + $0x1988] sm:$0xff] }
 0x2fa   :  { %8315 = vmatpush1.bf16.msra.mxu0 %v12169_v55  ;;  %7680 = vmatprep.subr.bf16.mxu1 %v12180_v51  ;;  %v12249_v55 = vcombine.low %v1854_v8, %v1862_v57  ;;  %v12260_v51 = vcombine.high %v1867_v25, %v1875_v30  ;;  %v1939_v60 = vld [vmem:[#allocation8 + $0x19c8] sm:$0xff]  ;;  %v1934_v8 = vld [vmem:[#allocation8 + $0x19a0] sm:$0xff] }
 0x2fb   :  { %8316 = vmatprep.subr.bf16.mxu0 %v12186_v53  ;;  %v12266_v53 = vcombine.high %v1870_v32, %v1878_v49  ;;  %v1942_v57 = vld [vmem:[#allocation8 + $0x19e0] sm:$0xff] }
 0x2fd   :  { %7681 = vmatpush1.bf16.msra.mxu1 %v12179_v31  ;;  %v12259_v31 = vcombine.low %v1867_v25, %v1875_v30  ;;  %v1947_v25 = vld [vmem:[#allocation8 + $0x1a08] sm:$0xff] }
 0x2fe   :  { %8317 = vmatpush1.bf16.msra.mxu0 %v12185_v35  ;;  %7682 = vmatprep.subr.bf16.mxu1 %v12196_v41  ;;  %v12265_v35 = vcombine.low %v1870_v32, %v1878_v49  ;;  %v12276_v41 = vcombine.high %v1883_v56, %v1891_v33  ;;  %v1955_v30 = vld [vmem:[#allocation8 + $0x1a48] sm:$0xff]  ;;  %v1950_v32 = vld [vmem:[#allocation8 + $0x1a20] sm:$0xff] }
 0x2ff   :  { %8318 = vmatprep.subr.bf16.mxu0 %v12202_v45  ;;  %v12282_v45 = vcombine.high %v1886_v36, %v1894_v22  ;;  %v1958_v49 = vld [vmem:[#allocation8 + $0x1a60] sm:$0xff] }
 0x301   :  { %7683 = vmatpush1.bf16.msra.mxu1 %v12195_v16  ;;  %v12275_v16 = vcombine.low %v1883_v56, %v1891_v33  ;;  %v12346_v56 = vcombine.high %v1950_v32, %v1958_v49  ;;  %v1963_v33 = vld [vmem:[#allocation8 + $0x1a88] sm:$0xff] }
 0x302   :  { %8319 = vmatpush1.bf16.msra.mxu0 %v12201_v40  ;;  %7684 = vmatprep.subr.bf16.mxu1 %v12212_v63  ;;  %v12281_v40 = vcombine.low %v1886_v36, %v1894_v22  ;;  %v12292_v63 = vcombine.high %v1899_v46, %v1907_v47  ;;  %v1971_v36 = vld [vmem:[#allocation8 + $0x1ac8] sm:$0xff]  ;;  %v1966_v22 = vld [vmem:[#allocation8 + $0x1aa0] sm:$0xff] }
 0x303   :  { %8320 = vmatprep.subr.bf16.mxu0 %v12218_v26  ;;  %v12298_v26 = vcombine.high %v1902_v52, %v1910_v54 }
 0x305   :  { %7685 = vmatpush1.bf16.msra.mxu1 %v12211_v5  ;;  %v12291_v5 = vcombine.low %v1899_v46, %v1907_v47  ;;  %v14293_v47 = vld [vmem:[#allocation8 + $0x1b08] sm:$0xff] }
 0x306   :  { %8321 = vmatpush1.bf16.msra.mxu0 %v12217_v20  ;;  %7686 = vmatprep.subr.bf16.mxu1 %v12228_v7  ;;  %v12297_v20 = vcombine.low %v1902_v52, %v1910_v54  ;;  %v12308_v7 = vcombine.high %v1915_v1, %v1923_v0  ;;  %v14295_v52 = vld [vmem:[#allocation8 + $0x1b48] sm:$0xff] }
 0x307   :  { %8322 = vmatprep.subr.bf16.mxu0 %v12234_v4  ;;  %v12314_v4 = vcombine.high %v1918_v2, %v1926_v3 }
 0x309   :  { %7687 = vmatpush1.bf16.msra.mxu1 %v12227_v61  ;;  %v12307_v61 = vcombine.low %v1915_v1, %v1923_v0 }
 0x30a   :  { %8323 = vmatpush1.bf16.msra.mxu0 %v12233_v24  ;;  %7688 = vmatprep.subr.bf16.mxu1 %v12244_v12  ;;  %v12313_v24 = vcombine.low %v1918_v2, %v1926_v3  ;;  %v12324_v12 = vcombine.high %v1931_v15, %v1939_v60  ;;  %v12355_v3 = vcombine.low %v1963_v33, %v1971_v36 }
 0x30b   :  { %8324 = vmatprep.subr.bf16.mxu0 %v12250_v19  ;;  %v12330_v19 = vcombine.high %v1934_v8, %v1942_v57 }
 0x30d   :  { %7689 = vmatpush1.bf16.msra.mxu1 %v12243_v50  ;;  %v12323_v50 = vcombine.low %v1931_v15, %v1939_v60 }
 0x30e   :  { %8325 = vmatpush1.bf16.msra.mxu0 %v12249_v55  ;;  %7690 = vmatprep.subr.bf16.mxu1 %v12260_v51  ;;  %v12329_v55 = vcombine.low %v1934_v8, %v1942_v57  ;;  %v12340_v51 = vcombine.high %v1947_v25, %v1955_v30  ;;  %v12371_v8 = vcombine.low %v14293_v47, %v14295_v52 }
 0x30f   :  { %8326 = vmatprep.subr.bf16.mxu0 %v12266_v53  ;;  %v2138_v53 = vld [vmem:[#allocation10] sm:$0xff] }
 0x310   :  { %v14291_v46 = vrot.slane %v2138_v53, %v14144_v62  ;;  %v14298_v54 = vrot.slane %v2138_v53, %v14048_v29 }
 0x311   :  { %7691 = vmatpush1.bf16.msra.mxu1 %v12259_v31  ;;  %v1974_v31 = vld [vmem:[#allocation8 + $0x1ae0] sm:$0xff] }
 0x312   :  { %8327 = vmatpush1.bf16.msra.mxu0 %v12265_v35  ;;  %7713 = vmatprep.subr.bf16.mxu1 %v12276_v41  ;;  %v12339_v35 = vcombine.low %v1947_v25, %v1955_v30  ;;  %v12345_v41 = vcombine.low %v1950_v32, %v1958_v49  ;;  %v12362_v1 = vcombine.high %v1966_v22, %v1974_v31  ;;  %v14319_v30 = vld [vmem:[#allocation8 + $0x1b88] sm:$0xff] }
 0x313   :  { %8349 = vmatprep.subr.bf16.mxu0 %v12282_v45  ;;  %v14288_v45 = vrot.slane %v2138_v53, %v14043_v27  ;;  %v14321_v32 = vld [vmem:[#allocation8 + $0x1bc8] sm:$0xff] }
 0x314   :  { %7693 = vmatmul.mubr.bf16.vlgmr.msra.gmra.mrb[24].mxu1 %v14195_v10 }
 0x315   :  { %8329 = vmatmul.mubr.bf16.vlgmr.msra.gmra.mrb[24].mxu0 %v14195_v10  ;;  %7702 = vmatprep.mubr.bf16.mxu1 %v14225_v9 }
 0x316   :  { %7714 = vmatpush1.bf16.msra.mxu1 %v12275_v16  ;;  %8338 = vmatprep.mubr.bf16.mxu0 %v14225_v9  ;;  %v12356_v16 = vcombine.high %v1963_v33, %v1971_v36 }
 0x317   :  { %8350 = vmatpush1.bf16.msra.mxu0 %v12281_v40  ;;  %7715 = vmatprep.subr.bf16.mxu1 %v12292_v63  ;;  %v14301_v40 = vrot.slane %v2138_v53, %v14147_v13  ;;  %v14303_v63 = vld [vmem:[#allocation8 + $0x1b20] sm:$0xff] }
 0x318   :  { %8351 = vmatprep.subr.bf16.mxu0 %v12298_v26  ;;  %v14305_v26 = vld [vmem:[#allocation8 + $0x1b60] sm:$0xff] }
 0x319   :  { %v12377_v57 = vcombine.low %v14303_v63, %v14305_v26  ;;  %v12378_v25 = vcombine.high %v14303_v63, %v14305_v26  ;;  %v12388_v63 = vcombine.high %v14319_v30, %v14321_v32 }
 0x31a   :  { %7716 = vmatpush1.bf16.msra.mxu1 %v12291_v5  ;;  %v12361_v5 = vcombine.low %v1966_v22, %v1974_v31 }
 0x31b   :  { %8352 = vmatpush1.bf16.msra.mxu0 %v12297_v20  ;;  %7717 = vmatprep.subr.bf16.mxu1 %v12308_v7  ;;  %v12372_v20 = vcombine.high %v14293_v47, %v14295_v52 }
 0x31c   :  { %7703 = vmatmul.mubr.bf16.gmra.mrb[28].mxu1 %v14223_v6  ;;  %8353 = vmatprep.subr.bf16.mxu0 %v12314_v4 }
 0x31d   :  { %8339 = vmatmul.mubr.bf16.gmra.mrb[28].mxu0 %v14223_v6  ;;  %7745 = vmatprep.mubr.bf16.mxu1 %v14229_v28 }
 0x31e   :  { %7718 = vmatpush1.bf16.msra.mxu1 %v12307_v61  ;;  %8381 = vmatprep.mubr.bf16.mxu0 %v14229_v28 }
 0x31f   :  { %8354 = vmatpush1.bf16.msra.mxu0 %v12313_v24  ;;  %7719 = vmatprep.subr.bf16.mxu1 %v12324_v12 }
 0x320   :  { %8355 = vmatprep.subr.bf16.mxu0 %v12330_v19 }
 0x322   :  { %7720 = vmatpush1.bf16.msra.mxu1 %v12323_v50 }
 0x323   :  { %8356 = vmatpush1.bf16.msra.mxu0 %v12329_v55  ;;  %7721 = vmatprep.subr.bf16.mxu1 %v12340_v51 }
 0x324   :  { %8357 = vmatprep.subr.bf16.mxu0 %v12346_v56 }
 0x325   :  { %v7535_v0 = vpop.f32.mrb[16].mxu1  ;;  %v7959_v2 = vpop.f32.mrb[16].mxu0 }
 0x326   :  { %7722 = vmatpush1.bf16.msra.mxu1 %v12339_v35  ;;  %v12873_v7 = vadd.f32 %v7535_v0, %v14288_v45  ;;  %v12889_v4 = vadd.f32 %v7959_v2, %v14291_v46  ;;  %v7537_v15 = vpop.f32.mrb[17].mxu1  ;;  %v7961_v60 = vpop.f32.mrb[17].mxu0  ;;  %v14327_v35 = vld [vmem:[#allocation8 + $0x1ba0] sm:$0xff] }
 0x327   :  { %8358 = vmatpush1.bf16.msra.mxu0 %v12345_v41  ;;  %v12874_v61 = vadd.f32 %v7537_v15, %v14298_v54  ;;  %7723 = vmatprep.subr.bf16.mxu1 %v12356_v16  ;;  %v12890_v24 = vadd.f32 %v7961_v60, %v14301_v40  ;;  %v7539_v12 = vpop.f32.mrb[18].mxu1  ;;  %v7963_v19 = vpop.f32.mrb[18].mxu0  ;;  %v14329_v41 = vld [vmem:[#allocation8 + $0x1be0] sm:$0xff]  ;;  %v12387_v16 = vcombine.low %v14319_v30, %v14321_v32 }
 0x328   :  { %v9038_v49 = vmax.f32 %v12873_v7, 0.0  ;;  %v9042_v50 = vmax.f32 %v12889_v4, 0.0  ;;  %8359 = vmatprep.subr.bf16.mxu0 %v12362_v1  ;;  %v12875_v55 = vadd.f32 %v7539_v12, %v14288_v45  ;;  %v12891_v51 = vadd.f32 %v7963_v19, %v14291_v46  ;;  %v7541_v53 = vpop.f32.mrb[19].mxu1  ;;  %v7965_v56 = vpop.f32.mrb[19].mxu0  ;;  %v14335_v7 = vld [vmem:[#allocation8 + $0x1c08] sm:$0xff] }
 0x329   :  { %v9039_v33 = vmax.f32 %v12874_v61, 0.0  ;;  %v9043_v36 = vmax.f32 %v12890_v24, 0.0  ;;  %v12876_v22 = vadd.f32 %v7541_v53, %v14298_v54  ;;  %v12892_v31 = vadd.f32 %v7965_v56, %v14301_v40  ;;  %v14337_v4 = vld [vmem:[#allocation8 + $0x1c48] sm:$0xff]  ;;  %v14347_v24 = vld [vmem:[#allocation8 + $0x1c20] sm:$0xff] }
 0x32a   :  { %v9054_v47 = vmax.f32 %v12875_v55, 0.0  ;;  %7724 = vmatpush1.bf16.msra.mxu1 %v12355_v3  ;;  %v9058_v52 = vmax.f32 %v12891_v51, 0.0  ;;  %v12393_v60 = vcombine.low %v14327_v35, %v14329_v41  ;;  %v12394_v61 = vcombine.high %v14327_v35, %v14329_v41  ;;  %v2027_v35 = vld [vmem:[#allocation8 + $0x1c88] sm:$0xff] }
 0x32b   :  { %v12837_v26 = vpack.c.bf16 %v9039_v33, %v9038_v49  ;;  %v12839_v1 = vpack.c.bf16 %v9043_v36, %v9042_v50  ;;  %8360 = vmatpush1.bf16.msra.mxu0 %v12361_v5  ;;  %v9055_v0 = vmax.f32 %v12876_v22, 0.0  ;;  %v9059_v2 = vmax.f32 %v12892_v31, 0.0  ;;  %7725 = vmatprep.subr.bf16.mxu1 %v12372_v20  ;;  %v14349_v5 = vld [vmem:[#allocation8 + $0x1c60] sm:$0xff]  ;;  %v2035_v41 = vld [vmem:[#allocation8 + $0x1cc8] sm:$0xff] }
 0x32c   :  { %v14339_v15 = vpack.c.bf16 %v9054_v47, %v9038_v49  ;;  %v14341_v3 = vpack.c.bf16 %v9058_v52, %v9042_v50  ;;  %8361 = vmatprep.subr.bf16.mxu0 %v12378_v25  ;;  %v12403_v53 = vcombine.low %v14335_v7, %v14337_v4  ;;  %v12404_v56 = vcombine.high %v14335_v7, %v14337_v4 }
 0x32d   :  { %9294 = vst [vmem:[#allocation15] sm:$0xff] %v12837_v26  ;;  %9296 = vst [vmem:[#allocation15 + $0x10] sm:$0xff] %v12839_v1  ;;  %v14351_v20 = vpack.c.bf16 %v9055_v0, %v9039_v33  ;;  %v12845_v12 = vpack.c.bf16 %v9055_v0, %v9054_v47  ;;  %v14353_v19 = vpack.c.bf16 %v9059_v2, %v9043_v36  ;;  %v7545_v32 = vpop.f32.mrb[20].mxu1  ;;  %v7969_v25 = vpop.f32.mrb[20].mxu0 }
 0x32e   :  { %v12847_v30 = vpack.c.bf16 %v9059_v2, %v9058_v52  ;;  %7726 = vmatpush1.bf16.msra.mxu1 %v12371_v8  ;;  %v12877_v49 = vadd.f32 %v7545_v32, %v14288_v45  ;;  %v12893_v50 = vadd.f32 %v7969_v25, %v14291_v46  ;;  %v7547_v55 = vpop.f32.mrb[21].mxu1  ;;  %v7971_v51 = vpop.f32.mrb[21].mxu0  ;;  %v12410_v31 = vcombine.high %v14347_v24, %v14349_v5 }
 0x32f   :  { %9302 = vst [vmem:[#allocation15 + $0x40] sm:$0xff] %v12845_v12  ;;  %8362 = vmatpush1.bf16.msra.mxu0 %v12377_v57  ;;  %v12878_v33 = vadd.f32 %v7547_v55, %v14298_v54  ;;  %7727 = vmatprep.subr.bf16.mxu1 %v12388_v63  ;;  %v12894_v8 = vadd.f32 %v7971_v51, %v14301_v40  ;;  %v7549_v36 = vpop.f32.mrb[22].mxu1  ;;  %v7973_v22 = vpop.f32.mrb[22].mxu0  ;;  %v2030_v12 = vld [vmem:[#allocation8 + $0x1ca0] sm:$0xff] }
 0x330   :  { %9304 = vst [vmem:[#allocation15 + $0x50] sm:$0xff] %v12847_v30  ;;  %v9070_v47 = vmax.f32 %v12877_v49, 0.0  ;;  %v9074_v52 = vmax.f32 %v12893_v50, 0.0  ;;  %8363 = vmatprep.subr.bf16.mxu0 %v12394_v61  ;;  %v12879_v26 = vadd.f32 %v7549_v36, %v14288_v45  ;;  %v12895_v1 = vadd.f32 %v7973_v22, %v14291_v46  ;;  %v7551_v57 = vpop.f32.mrb[23].mxu1  ;;  %v7975_v0 = vpop.f32.mrb[23].mxu0  ;;  %v2038_v30 = vld [vmem:[#allocation8 + $0x1ce0] sm:$0xff] }
 0x331   :  { %v9071_v2 = vmax.f32 %v12878_v33, 0.0  ;;  %v9075_v63 = vmax.f32 %v12894_v8, 0.0  ;;  %v12880_v7 = vadd.f32 %v7551_v57, %v14298_v54  ;;  %v12896_v4 = vadd.f32 %v7975_v0, %v14301_v40  ;;  %v2043_v33 = vld [vmem:[#allocation8 + $0x1d08] sm:$0xff]  ;;  %v2054_v22 = vld [vmem:[#allocation8 + $0x1d60] sm:$0xff] }
 0x332   :  { %v9086_v32 = vmax.f32 %v12879_v26, 0.0  ;;  %7728 = vmatpush1.bf16.msra.mxu1 %v12387_v16  ;;  %v9090_v25 = vmax.f32 %v12895_v1, 0.0  ;;  %v12409_v61 = vcombine.low %v14347_v24, %v14349_v5  ;;  %v12420_v49 = vcombine.high %v2027_v35, %v2035_v41  ;;  %v2051_v8 = vld [vmem:[#allocation8 + $0x1d48] sm:$0xff]  ;;  %v2062_v57 = vld [vmem:[#allocation8 + $0x1da0] sm:$0xff] }
 0x333   :  { %v12853_v45 = vpack.c.bf16 %v9071_v2, %v9070_v47  ;;  %v12855_v50 = vpack.c.bf16 %v9075_v63, %v9074_v52  ;;  %8364 = vmatpush1.bf16.msra.mxu0 %v12393_v60  ;;  %v9087_v46 = vmax.f32 %v12880_v7, 0.0  ;;  %v9091_v55 = vmax.f32 %v12896_v4, 0.0  ;;  %7729 = vmatprep.subr.bf16.mxu1 %v12404_v56  ;;  %v2046_v60 = vld [vmem:[#allocation8 + $0x1d20] sm:$0xff]  ;;  %v2059_v26 = vld [vmem:[#allocation8 + $0x1d88] sm:$0xff] }
 0x334   :  { %v14371_v51 = vpack.c.bf16 %v9086_v32, %v9070_v47  ;;  %v14373_v54 = vpack.c.bf16 %v9090_v25, %v9074_v52  ;;  %8365 = vmatprep.subr.bf16.mxu0 %v12410_v31  ;;  %v12426_v40 = vcombine.high %v2030_v12, %v2038_v30  ;;  %v12419_v56 = vcombine.low %v2027_v35, %v2035_v41  ;;  %v2067_v1 = vld [vmem:[#allocation8 + $0x1dc8] sm:$0xff]  ;;  %v2070_v0 = vld [vmem:[#allocation8 + $0x1de0] sm:$0xff] }
 0x335   :  { %9310 = vst [vmem:[#allocation15 + $0x80] sm:$0xff] %v12853_v45  ;;  %9312 = vst [vmem:[#allocation15 + $0x90] sm:$0xff] %v12855_v50  ;;  %v14375_v16 = vpack.c.bf16 %v9087_v46, %v9071_v2  ;;  %v12861_v24 = vpack.c.bf16 %v9087_v46, %v9086_v32  ;;  %v14377_v5 = vpack.c.bf16 %v9091_v55, %v9075_v63  ;;  %v2075_v35 = vld [vmem:[#allocation8 + $0x1e08] sm:$0xff]  ;;  %v2078_v4 = vld [vmem:[#allocation8 + $0x1e20] sm:$0xff] }
 0x336   :  { %v12863_v36 = vpack.c.bf16 %v9091_v55, %v9090_v25  ;;  %7730 = vmatpush1.bf16.msra.mxu1 %v12403_v53  ;;  %v12425_v31 = vcombine.low %v2030_v12, %v2038_v30  ;;  %v12436_v47 = vcombine.high %v2043_v33, %v2051_v8  ;;  %v12442_v52 = vcombine.high %v2046_v60, %v2054_v22  ;;  %v2083_v41 = vld [vmem:[#allocation8 + $0x1e48] sm:$0xff]  ;;  %v2086_v32 = vld [vmem:[#allocation8 + $0x1e60] sm:$0xff] }
 0x337   :  { %9318 = vst [vmem:[#allocation15 + $0xc0] sm:$0xff] %v12861_v24  ;;  %8366 = vmatpush1.bf16.msra.mxu0 %v12409_v61  ;;  %7731 = vmatprep.subr.bf16.mxu1 %v12420_v49  ;;  %v12435_v2 = vcombine.low %v2043_v33, %v2051_v8  ;;  %v12441_v63 = vcombine.low %v2046_v60, %v2054_v22  ;;  %v2091_v49 = vld [vmem:[#allocation8 + $0x1e88] sm:$0xff]  ;;  %v2094_v50 = vld [vmem:[#allocation8 + $0x1ea0] sm:$0xff] }
 0x338   :  { %9320 = vst [vmem:[#allocation15 + $0xd0] sm:$0xff] %v12863_v36  ;;  %8367 = vmatprep.subr.bf16.mxu0 %v12426_v40  ;;  %v12452_v7 = vcombine.high %v2059_v26, %v2067_v1  ;;  %v12458_v53 = vcombine.high %v2062_v57, %v2070_v0  ;;  %v12451_v12 = vcombine.low %v2059_v26, %v2067_v1  ;;  %v2099_v45 = vld [vmem:[#allocation8 + $0x1ec8] sm:$0xff]  ;;  %v2102_v46 = vld [vmem:[#allocation8 + $0x1ee0] sm:$0xff] }
 0x339   :  { %v12457_v30 = vcombine.low %v2062_v57, %v2070_v0  ;;  %v12468_v25 = vcombine.high %v2075_v35, %v2083_v41  ;;  %v12474_v61 = vcombine.high %v2078_v4, %v2086_v32  ;;  %v12467_v55 = vcombine.low %v2075_v35, %v2083_v41  ;;  %v2107_v24 = vld [vmem:[#allocation8 + $0x1f08] sm:$0xff]  ;;  %v2110_v60 = vld [vmem:[#allocation8 + $0x1f20] sm:$0xff]  ;;  %v1117_v35 = vld [vmem:[#allocation8 + $0x18] sm:$0xff] }
 0x33a   :  { %7732 = vmatpush1.bf16.msra.mxu1 %v12419_v56  ;;  %v12473_v40 = vcombine.low %v2078_v4, %v2086_v32  ;;  %v12484_v33 = vcombine.high %v2091_v49, %v2099_v45  ;;  %v12490_v8 = vcombine.high %v2094_v50, %v2102_v46  ;;  %v2115_v36 = vld [vmem:[#allocation8 + $0x1f48] sm:$0xff]  ;;  %v2118_v22 = vld [vmem:[#allocation8 + $0x1f60] sm:$0xff]  ;;  %v12483_v56 = vcombine.low %v2091_v49, %v2099_v45  ;;  %v1125_v41 = vld [vmem:[#allocation8 + $0x58] sm:$0xff] }
 0x33b   :  { %8368 = vmatpush1.bf16.msra.mxu0 %v12425_v31  ;;  %7733 = vmatprep.subr.bf16.mxu1 %v12436_v47  ;;  %v12489_v31 = vcombine.low %v2094_v50, %v2102_v46  ;;  %v12500_v47 = vcombine.high %v2107_v24, %v2115_v36  ;;  %v2123_v26 = vld [vmem:[#allocation8 + $0x1f88] sm:$0xff]  ;;  %v2126_v57 = vld [vmem:[#allocation8 + $0x1fa0] sm:$0xff]  ;;  %v1120_v4 = vld [vmem:[#allocation8 + $0x30] sm:$0xff] }
 0x33c   :  { %8369 = vmatprep.subr.bf16.mxu0 %v12442_v52  ;;  %v12506_v52 = vcombine.high %v2110_v60, %v2118_v22  ;;  %v2131_v1 = vld [vmem:[#allocation8 + $0x1fc8] sm:$0xff]  ;;  %v2134_v0 = vld [vmem:[#allocation8 + $0x1fe0] sm:$0xff]  ;;  %v1128_v32 = vld [vmem:[#allocation8 + $0x70] sm:$0xff] }
 0x33d   :  { %v1133_v49 = vld [vmem:[#allocation8 + $0x98] sm:$0xff]  ;;  %v1136_v50 = vld [vmem:[#allocation8 + $0xb0] sm:$0xff] }
 0x33e   :  { %7734 = vmatpush1.bf16.msra.mxu1 %v12435_v2  ;;  %v12499_v2 = vcombine.low %v2107_v24, %v2115_v36  ;;  %v1141_v45 = vld [vmem:[#allocation8 + $0xd8] sm:$0xff]  ;;  %v1144_v46 = vld [vmem:[#allocation8 + $0xf0] sm:$0xff] }
 0x33f   :  { %8370 = vmatpush1.bf16.msra.mxu0 %v12441_v63  ;;  %7735 = vmatprep.subr.bf16.mxu1 %v12452_v7  ;;  %v12505_v63 = vcombine.low %v2110_v60, %v2118_v22  ;;  %v12516_v7 = vcombine.high %v2123_v26, %v2131_v1  ;;  %v1149_v24 = vld [vmem:[#allocation8 + $0x118] sm:$0xff]  ;;  %v1152_v60 = vld [vmem:[#allocation8 + $0x130] sm:$0xff] }
 0x340   :  { %8371 = vmatprep.subr.bf16.mxu0 %v12458_v53  ;;  %v12522_v53 = vcombine.high %v2126_v57, %v2134_v0  ;;  %v1157_v36 = vld [vmem:[#allocation8 + $0x158] sm:$0xff]  ;;  %v1160_v22 = vld [vmem:[#allocation8 + $0x170] sm:$0xff] }
 0x342   :  { %7736 = vmatpush1.bf16.msra.mxu1 %v12451_v12  ;;  %v12515_v12 = vcombine.low %v2123_v26, %v2131_v1  ;;  %v1165_v26 = vld [vmem:[#allocation8 + $0x198] sm:$0xff] }
 0x343   :  { %8372 = vmatpush1.bf16.msra.mxu0 %v12457_v30  ;;  %7737 = vmatprep.subr.bf16.mxu1 %v12468_v25  ;;  %v12521_v30 = vcombine.low %v2126_v57, %v2134_v0  ;;  %v11512_v25 = vcombine.high %v1117_v35, %v1125_v41  ;;  %v1173_v1 = vld [vmem:[#allocation8 + $0x1d8] sm:$0xff]  ;;  %v1168_v57 = vld [vmem:[#allocation8 + $0x1b0] sm:$0xff] }
 0x344   :  { %8373 = vmatprep.subr.bf16.mxu0 %v12474_v61  ;;  %v11518_v61 = vcombine.high %v1120_v4, %v1128_v32  ;;  %v1176_v0 = vld [vmem:[#allocation8 + $0x1f0] sm:$0xff] }
 0x346   :  { %7738 = vmatpush1.bf16.msra.mxu1 %v12467_v55  ;;  %v11511_v55 = vcombine.low %v1117_v35, %v1125_v41  ;;  %v1181_v35 = vld [vmem:[#allocation8 + $0x218] sm:$0xff] }
 0x347   :  { %8374 = vmatpush1.bf16.msra.mxu0 %v12473_v40  ;;  %7739 = vmatprep.subr.bf16.mxu1 %v12484_v33  ;;  %v11517_v40 = vcombine.low %v1120_v4, %v1128_v32  ;;  %v11528_v33 = vcombine.high %v1133_v49, %v1141_v45  ;;  %v1189_v41 = vld [vmem:[#allocation8 + $0x258] sm:$0xff]  ;;  %v1184_v4 = vld [vmem:[#allocation8 + $0x230] sm:$0xff] }
 0x348   :  { %8375 = vmatprep.subr.bf16.mxu0 %v12490_v8  ;;  %v11534_v8 = vcombine.high %v1136_v50, %v1144_v46  ;;  %v1192_v32 = vld [vmem:[#allocation8 + $0x270] sm:$0xff] }
 0x34a   :  { %7740 = vmatpush1.bf16.msra.mxu1 %v12483_v56  ;;  %v11527_v56 = vcombine.low %v1133_v49, %v1141_v45  ;;  %v1197_v49 = vld [vmem:[#allocation8 + $0x298] sm:$0xff] }
 0x34b   :  { %8376 = vmatpush1.bf16.msra.mxu0 %v12489_v31  ;;  %7741 = vmatprep.subr.bf16.mxu1 %v12500_v47  ;;  %v11533_v31 = vcombine.low %v1136_v50, %v1144_v46  ;;  %v11544_v47 = vcombine.high %v1149_v24, %v1157_v36  ;;  %v1205_v45 = vld [vmem:[#allocation8 + $0x2d8] sm:$0xff]  ;;  %v1200_v50 = vld [vmem:[#allocation8 + $0x2b0] sm:$0xff] }
 0x34c   :  { %8377 = vmatprep.subr.bf16.mxu0 %v12506_v52  ;;  %v11550_v52 = vcombine.high %v1152_v60, %v1160_v22  ;;  %v1208_v46 = vld [vmem:[#allocation8 + $0x2f0] sm:$0xff] }
 0x34e   :  { %7742 = vmatpush1.bf16.msra.mxu1 %v12499_v2  ;;  %v11543_v2 = vcombine.low %v1149_v24, %v1157_v36  ;;  %v1213_v24 = vld [vmem:[#allocation8 + $0x318] sm:$0xff] }
 0x34f   :  { %8378 = vmatpush1.bf16.msra.mxu0 %v12505_v63  ;;  %7743 = vmatprep.subr.bf16.mxu1 %v12516_v7  ;;  %v11549_v63 = vcombine.low %v1152_v60, %v1160_v22  ;;  %v11560_v7 = vcombine.high %v1165_v26, %v1173_v1  ;;  %v1221_v36 = vld [vmem:[#allocation8 + $0x358] sm:$0xff]  ;;  %v1216_v60 = vld [vmem:[#allocation8 + $0x330] sm:$0xff] }
 0x350   :  { %8379 = vmatprep.subr.bf16.mxu0 %v12522_v53  ;;  %v11566_v53 = vcombine.high %v1168_v57, %v1176_v0  ;;  %v1224_v22 = vld [vmem:[#allocation8 + $0x370] sm:$0xff] }
 0x352   :  { %7744 = vmatpush1.bf16.msra.mxu1 %v12515_v12  ;;  %v11559_v12 = vcombine.low %v1165_v26, %v1173_v1  ;;  %v1229_v26 = vld [vmem:[#allocation8 + $0x398] sm:$0xff] }
 0x353   :  { %8380 = vmatpush1.bf16.msra.mxu0 %v12521_v30  ;;  %7978 = vmatprep.subr.bf16.mxu1 %v11512_v25  ;;  %v11565_v30 = vcombine.low %v1168_v57, %v1176_v0  ;;  %v11576_v25 = vcombine.high %v1181_v35, %v1189_v41  ;;  %v1237_v1 = vld [vmem:[#allocation8 + $0x3d8] sm:$0xff]  ;;  %v1232_v57 = vld [vmem:[#allocation8 + $0x3b0] sm:$0xff] }
 0x354   :  { %8614 = vmatprep.subr.bf16.mxu0 %v11518_v61  ;;  %v11582_v61 = vcombine.high %v1184_v4, %v1192_v32  ;;  %v1240_v0 = vld [vmem:[#allocation8 + $0x3f0] sm:$0xff] }
 0x355   :  { %7746 = vmatmul.mubr.bf16.vlgmr.msra.gmra.mrb[24].mxu1 %v14227_v59 }
 0x356   :  { %8382 = vmatmul.mubr.bf16.vlgmr.msra.gmra.mrb[24].mxu0 %v14227_v59  ;;  %7755 = vmatprep.mubr.bf16.mxu1 %v14241_v17 }
 0x357   :  { %7979 = vmatpush1.bf16.msra.mxu1 %v11511_v55  ;;  %8391 = vmatprep.mubr.bf16.mxu0 %v14241_v17  ;;  %v11575_v55 = vcombine.low %v1181_v35, %v1189_v41  ;;  %v1245_v35 = vld [vmem:[#allocation8 + $0x418] sm:$0xff] }
 0x358   :  { %8615 = vmatpush1.bf16.msra.mxu0 %v11517_v40  ;;  %7980 = vmatprep.subr.bf16.mxu1 %v11528_v33  ;;  %v11581_v40 = vcombine.low %v1184_v4, %v1192_v32  ;;  %v11592_v33 = vcombine.high %v1197_v49, %v1205_v45  ;;  %v1253_v41 = vld [vmem:[#allocation8 + $0x458] sm:$0xff]  ;;  %v1248_v4 = vld [vmem:[#allocation8 + $0x430] sm:$0xff] }
 0x359   :  { %8616 = vmatprep.subr.bf16.mxu0 %v11534_v8  ;;  %v11598_v8 = vcombine.high %v1200_v50, %v1208_v46  ;;  %v1256_v32 = vld [vmem:[#allocation8 + $0x470] sm:$0xff] }
 0x35b   :  { %7981 = vmatpush1.bf16.msra.mxu1 %v11527_v56  ;;  %v11591_v56 = vcombine.low %v1197_v49, %v1205_v45  ;;  %v1261_v49 = vld [vmem:[#allocation8 + $0x498] sm:$0xff] }
 0x35c   :  { %8617 = vmatpush1.bf16.msra.mxu0 %v11533_v31  ;;  %7982 = vmatprep.subr.bf16.mxu1 %v11544_v47  ;;  %v11597_v31 = vcombine.low %v1200_v50, %v1208_v46  ;;  %v11608_v47 = vcombine.high %v1213_v24, %v1221_v36  ;;  %v1269_v45 = vld [vmem:[#allocation8 + $0x4d8] sm:$0xff]  ;;  %v1264_v50 = vld [vmem:[#allocation8 + $0x4b0] sm:$0xff] }
 0x35d   :  { %7756 = vmatmul.mubr.bf16.gmra.mrb[28].mxu1 %v14239_v11  ;;  %8618 = vmatprep.subr.bf16.mxu0 %v11550_v52  ;;  %v11614_v52 = vcombine.high %v1216_v60, %v1224_v22  ;;  %v1272_v46 = vld [vmem:[#allocation8 + $0x4f0] sm:$0xff] }
 0x35e   :  { %8392 = vmatmul.mubr.bf16.gmra.mrb[28].mxu0 %v14239_v11  ;;  %8010 = vmatprep.mubr.bf16.mxu1 %v14078_v43 }
 0x35f   :  { %7983 = vmatpush1.bf16.msra.mxu1 %v11543_v2  ;;  %8646 = vmatprep.mubr.bf16.mxu0 %v14078_v43  ;;  %v11607_v2 = vcombine.low %v1213_v24, %v1221_v36  ;;  %v1277_v24 = vld [vmem:[#allocation8 + $0x518] sm:$0xff] }
 0x360   :  { %8619 = vmatpush1.bf16.msra.mxu0 %v11549_v63  ;;  %7984 = vmatprep.subr.bf16.mxu1 %v11560_v7  ;;  %v11613_v63 = vcombine.low %v1216_v60, %v1224_v22  ;;  %v11624_v7 = vcombine.high %v1229_v26, %v1237_v1  ;;  %v1285_v36 = vld [vmem:[#allocation8 + $0x558] sm:$0xff]  ;;  %v1280_v60 = vld [vmem:[#allocation8 + $0x530] sm:$0xff] }
 0x361   :  { %8620 = vmatprep.subr.bf16.mxu0 %v11566_v53  ;;  %v11630_v53 = vcombine.high %v1232_v57, %v1240_v0  ;;  %v1288_v22 = vld [vmem:[#allocation8 + $0x570] sm:$0xff] }
 0x363   :  { %7985 = vmatpush1.bf16.msra.mxu1 %v11559_v12  ;;  %v11623_v12 = vcombine.low %v1229_v26, %v1237_v1  ;;  %v1293_v26 = vld [vmem:[#allocation8 + $0x598] sm:$0xff] }
 0x364   :  { %8621 = vmatpush1.bf16.msra.mxu0 %v11565_v30  ;;  %7986 = vmatprep.subr.bf16.mxu1 %v11576_v25  ;;  %v11629_v30 = vcombine.low %v1232_v57, %v1240_v0  ;;  %v11640_v25 = vcombine.high %v1245_v35, %v1253_v41  ;;  %v1301_v1 = vld [vmem:[#allocation8 + $0x5d8] sm:$0xff]  ;;  %v1296_v57 = vld [vmem:[#allocation8 + $0x5b0] sm:$0xff] }
 0x365   :  { %8622 = vmatprep.subr.bf16.mxu0 %v11582_v61  ;;  %v11646_v61 = vcombine.high %v1248_v4, %v1256_v32  ;;  %v1304_v0 = vld [vmem:[#allocation8 + $0x5f0] sm:$0xff] }
 0x367   :  { %7987 = vmatpush1.bf16.msra.mxu1 %v11575_v55  ;;  %v11639_v55 = vcombine.low %v1245_v35, %v1253_v41  ;;  %v1309_v35 = vld [vmem:[#allocation8 + $0x618] sm:$0xff] }
 0x368   :  { %8623 = vmatpush1.bf16.msra.mxu0 %v11581_v40  ;;  %7988 = vmatprep.subr.bf16.mxu1 %v11592_v33  ;;  %v11645_v40 = vcombine.low %v1248_v4, %v1256_v32  ;;  %v11656_v33 = vcombine.high %v1261_v49, %v1269_v45  ;;  %v1317_v41 = vld [vmem:[#allocation8 + $0x658] sm:$0xff]  ;;  %v1312_v4 = vld [vmem:[#allocation8 + $0x630] sm:$0xff] }
 0x369   :  { %8624 = vmatprep.subr.bf16.mxu0 %v11598_v8  ;;  %v11662_v8 = vcombine.high %v1264_v50, %v1272_v46  ;;  %v1320_v32 = vld [vmem:[#allocation8 + $0x670] sm:$0xff] }
 0x36b   :  { %7989 = vmatpush1.bf16.msra.mxu1 %v11591_v56  ;;  %v11655_v56 = vcombine.low %v1261_v49, %v1269_v45  ;;  %v1325_v49 = vld [vmem:[#allocation8 + $0x698] sm:$0xff] }
 0x36c   :  { %8625 = vmatpush1.bf16.msra.mxu0 %v11597_v31  ;;  %7990 = vmatprep.subr.bf16.mxu1 %v11608_v47  ;;  %v11661_v31 = vcombine.low %v1264_v50, %v1272_v46  ;;  %v11672_v47 = vcombine.high %v1277_v24, %v1285_v36  ;;  %v1333_v45 = vld [vmem:[#allocation8 + $0x6d8] sm:$0xff]  ;;  %v1328_v50 = vld [vmem:[#allocation8 + $0x6b0] sm:$0xff] }
 0x36d   :  { %8626 = vmatprep.subr.bf16.mxu0 %v11614_v52  ;;  %v11678_v52 = vcombine.high %v1280_v60, %v1288_v22  ;;  %v1336_v46 = vld [vmem:[#allocation8 + $0x6f0] sm:$0xff] }
 0x36f   :  { %7991 = vmatpush1.bf16.msra.mxu1 %v11607_v2  ;;  %v11671_v2 = vcombine.low %v1277_v24, %v1285_v36  ;;  %v1341_v24 = vld [vmem:[#allocation8 + $0x718] sm:$0xff] }
 0x370   :  { %8627 = vmatpush1.bf16.msra.mxu0 %v11613_v63  ;;  %7992 = vmatprep.subr.bf16.mxu1 %v11624_v7  ;;  %v11677_v63 = vcombine.low %v1280_v60, %v1288_v22  ;;  %v11688_v7 = vcombine.high %v1293_v26, %v1301_v1  ;;  %v1349_v36 = vld [vmem:[#allocation8 + $0x758] sm:$0xff]  ;;  %v1344_v60 = vld [vmem:[#allocation8 + $0x730] sm:$0xff] }
 0x371   :  { %8628 = vmatprep.subr.bf16.mxu0 %v11630_v53  ;;  %v11694_v53 = vcombine.high %v1296_v57, %v1304_v0  ;;  %v1352_v22 = vld [vmem:[#allocation8 + $0x770] sm:$0xff] }
 0x373   :  { %7993 = vmatpush1.bf16.msra.mxu1 %v11623_v12  ;;  %v11687_v12 = vcombine.low %v1293_v26, %v1301_v1  ;;  %v1357_v26 = vld [vmem:[#allocation8 + $0x798] sm:$0xff] }
 0x374   :  { %8629 = vmatpush1.bf16.msra.mxu0 %v11629_v30  ;;  %7994 = vmatprep.subr.bf16.mxu1 %v11640_v25  ;;  %v11693_v30 = vcombine.low %v1296_v57, %v1304_v0  ;;  %v11704_v25 = vcombine.high %v1309_v35, %v1317_v41  ;;  %v1365_v1 = vld [vmem:[#allocation8 + $0x7d8] sm:$0xff]  ;;  %v1360_v57 = vld [vmem:[#allocation8 + $0x7b0] sm:$0xff] }
 0x375   :  { %8630 = vmatprep.subr.bf16.mxu0 %v11646_v61  ;;  %v11710_v61 = vcombine.high %v1312_v4, %v1320_v32  ;;  %v1368_v0 = vld [vmem:[#allocation8 + $0x7f0] sm:$0xff] }
 0x377   :  { %7995 = vmatpush1.bf16.msra.mxu1 %v11639_v55  ;;  %v11703_v55 = vcombine.low %v1309_v35, %v1317_v41  ;;  %v1373_v35 = vld [vmem:[#allocation8 + $0x818] sm:$0xff] }
 0x378   :  { %8631 = vmatpush1.bf16.msra.mxu0 %v11645_v40  ;;  %7996 = vmatprep.subr.bf16.mxu1 %v11656_v33  ;;  %v11709_v40 = vcombine.low %v1312_v4, %v1320_v32  ;;  %v11720_v33 = vcombine.high %v1325_v49, %v1333_v45  ;;  %v1381_v41 = vld [vmem:[#allocation8 + $0x858] sm:$0xff]  ;;  %v1376_v4 = vld [vmem:[#allocation8 + $0x830] sm:$0xff] }
 0x379   :  { %8632 = vmatprep.subr.bf16.mxu0 %v11662_v8  ;;  %v11726_v8 = vcombine.high %v1328_v50, %v1336_v46  ;;  %v1384_v32 = vld [vmem:[#allocation8 + $0x870] sm:$0xff] }
 0x37b   :  { %7997 = vmatpush1.bf16.msra.mxu1 %v11655_v56  ;;  %v11719_v56 = vcombine.low %v1325_v49, %v1333_v45  ;;  %v1389_v49 = vld [vmem:[#allocation8 + $0x898] sm:$0xff] }
 0x37c   :  { %8633 = vmatpush1.bf16.msra.mxu0 %v11661_v31  ;;  %7998 = vmatprep.subr.bf16.mxu1 %v11672_v47  ;;  %v11725_v31 = vcombine.low %v1328_v50, %v1336_v46  ;;  %v11736_v47 = vcombine.high %v1341_v24, %v1349_v36  ;;  %v1397_v45 = vld [vmem:[#allocation8 + $0x8d8] sm:$0xff]  ;;  %v1392_v50 = vld [vmem:[#allocation8 + $0x8b0] sm:$0xff] }
 0x37d   :  { %8634 = vmatprep.subr.bf16.mxu0 %v11678_v52  ;;  %v11742_v52 = vcombine.high %v1344_v60, %v1352_v22  ;;  %v1400_v46 = vld [vmem:[#allocation8 + $0x8f0] sm:$0xff] }
 0x37f   :  { %7999 = vmatpush1.bf16.msra.mxu1 %v11671_v2  ;;  %v11735_v2 = vcombine.low %v1341_v24, %v1349_v36  ;;  %v1405_v24 = vld [vmem:[#allocation8 + $0x918] sm:$0xff] }
 0x380   :  { %8635 = vmatpush1.bf16.msra.mxu0 %v11677_v63  ;;  %8000 = vmatprep.subr.bf16.mxu1 %v11688_v7  ;;  %v11741_v63 = vcombine.low %v1344_v60, %v1352_v22  ;;  %v11752_v7 = vcombine.high %v1357_v26, %v1365_v1  ;;  %v1413_v36 = vld [vmem:[#allocation8 + $0x958] sm:$0xff]  ;;  %v1408_v60 = vld [vmem:[#allocation8 + $0x930] sm:$0xff] }
 0x381   :  { %8636 = vmatprep.subr.bf16.mxu0 %v11694_v53  ;;  %v11758_v53 = vcombine.high %v1360_v57, %v1368_v0  ;;  %v1416_v22 = vld [vmem:[#allocation8 + $0x970] sm:$0xff] }
 0x383   :  { %8001 = vmatpush1.bf16.msra.mxu1 %v11687_v12  ;;  %v11751_v12 = vcombine.low %v1357_v26, %v1365_v1  ;;  %v1421_v26 = vld [vmem:[#allocation8 + $0x998] sm:$0xff] }
 0x384   :  { %8637 = vmatpush1.bf16.msra.mxu0 %v11693_v30  ;;  %8002 = vmatprep.subr.bf16.mxu1 %v11704_v25  ;;  %v11757_v30 = vcombine.low %v1360_v57, %v1368_v0  ;;  %v11768_v25 = vcombine.high %v1373_v35, %v1381_v41  ;;  %v1429_v1 = vld [vmem:[#allocation8 + $0x9d8] sm:$0xff]  ;;  %v1424_v57 = vld [vmem:[#allocation8 + $0x9b0] sm:$0xff] }
 0x385   :  { %8638 = vmatprep.subr.bf16.mxu0 %v11710_v61  ;;  %v11774_v61 = vcombine.high %v1376_v4, %v1384_v32  ;;  %v1432_v0 = vld [vmem:[#allocation8 + $0x9f0] sm:$0xff] }
 0x387   :  { %8003 = vmatpush1.bf16.msra.mxu1 %v11703_v55  ;;  %v11767_v55 = vcombine.low %v1373_v35, %v1381_v41  ;;  %v1437_v35 = vld [vmem:[#allocation8 + $0xa18] sm:$0xff] }
 0x388   :  { %8639 = vmatpush1.bf16.msra.mxu0 %v11709_v40  ;;  %8004 = vmatprep.subr.bf16.mxu1 %v11720_v33  ;;  %v11773_v40 = vcombine.low %v1376_v4, %v1384_v32  ;;  %v11784_v33 = vcombine.high %v1389_v49, %v1397_v45  ;;  %v1445_v41 = vld [vmem:[#allocation8 + $0xa58] sm:$0xff]  ;;  %v1440_v4 = vld [vmem:[#allocation8 + $0xa30] sm:$0xff] }
 0x389   :  { %8640 = vmatprep.subr.bf16.mxu0 %v11726_v8  ;;  %v11790_v8 = vcombine.high %v1392_v50, %v1400_v46  ;;  %v1448_v32 = vld [vmem:[#allocation8 + $0xa70] sm:$0xff] }
 0x38b   :  { %8005 = vmatpush1.bf16.msra.mxu1 %v11719_v56  ;;  %v11783_v56 = vcombine.low %v1389_v49, %v1397_v45  ;;  %v1453_v49 = vld [vmem:[#allocation8 + $0xa98] sm:$0xff] }
 0x38c   :  { %8641 = vmatpush1.bf16.msra.mxu0 %v11725_v31  ;;  %8006 = vmatprep.subr.bf16.mxu1 %v11736_v47  ;;  %v11789_v31 = vcombine.low %v1392_v50, %v1400_v46  ;;  %v11800_v47 = vcombine.high %v1405_v24, %v1413_v36  ;;  %v1461_v45 = vld [vmem:[#allocation8 + $0xad8] sm:$0xff]  ;;  %v1456_v50 = vld [vmem:[#allocation8 + $0xab0] sm:$0xff] }
 0x38d   :  { %8642 = vmatprep.subr.bf16.mxu0 %v11742_v52  ;;  %v11806_v52 = vcombine.high %v1408_v60, %v1416_v22  ;;  %v1464_v46 = vld [vmem:[#allocation8 + $0xaf0] sm:$0xff] }
 0x38f   :  { %8007 = vmatpush1.bf16.msra.mxu1 %v11735_v2  ;;  %v11799_v2 = vcombine.low %v1405_v24, %v1413_v36  ;;  %v1469_v24 = vld [vmem:[#allocation8 + $0xb18] sm:$0xff] }
 0x390   :  { %8643 = vmatpush1.bf16.msra.mxu0 %v11741_v63  ;;  %8008 = vmatprep.subr.bf16.mxu1 %v11752_v7  ;;  %v11805_v63 = vcombine.low %v1408_v60, %v1416_v22  ;;  %v11816_v7 = vcombine.high %v1421_v26, %v1429_v1  ;;  %v1477_v36 = vld [vmem:[#allocation8 + $0xb58] sm:$0xff]  ;;  %v1472_v60 = vld [vmem:[#allocation8 + $0xb30] sm:$0xff] }
 0x391   :  { %8644 = vmatprep.subr.bf16.mxu0 %v11758_v53  ;;  %v11822_v53 = vcombine.high %v1424_v57, %v1432_v0  ;;  %v1480_v22 = vld [vmem:[#allocation8 + $0xb70] sm:$0xff] }
 0x393   :  { %8009 = vmatpush1.bf16.msra.mxu1 %v11751_v12  ;;  %v11815_v12 = vcombine.low %v1421_v26, %v1429_v1  ;;  %v1485_v26 = vld [vmem:[#allocation8 + $0xb98] sm:$0xff] }
 0x394   :  { %8645 = vmatpush1.bf16.msra.mxu0 %v11757_v30  ;;  %8031 = vmatprep.subr.bf16.mxu1 %v11768_v25  ;;  %v11821_v30 = vcombine.low %v1424_v57, %v1432_v0  ;;  %v11832_v25 = vcombine.high %v1437_v35, %v1445_v41  ;;  %v1493_v1 = vld [vmem:[#allocation8 + $0xbd8] sm:$0xff]  ;;  %v1488_v57 = vld [vmem:[#allocation8 + $0xbb0] sm:$0xff] }
 0x395   :  { %8667 = vmatprep.subr.bf16.mxu0 %v11774_v61  ;;  %v11838_v61 = vcombine.high %v1440_v4, %v1448_v32  ;;  %v1496_v0 = vld [vmem:[#allocation8 + $0xbf0] sm:$0xff] }
 0x396   :  { %8011 = vmatmul.mubr.bf16.vlgmr.msra.gmra.mrb[32].mxu1 %v14068_v58 }
 0x397   :  { %8647 = vmatmul.mubr.bf16.vlgmr.msra.gmra.mrb[32].mxu0 %v14068_v58  ;;  %8020 = vmatprep.mubr.bf16.mxu1 %v14118_v44 }
 0x398   :  { %8032 = vmatpush1.bf16.msra.mxu1 %v11767_v55  ;;  %8656 = vmatprep.mubr.bf16.mxu0 %v14118_v44  ;;  %v11831_v55 = vcombine.low %v1437_v35, %v1445_v41  ;;  %v1501_v35 = vld [vmem:[#allocation8 + $0xc18] sm:$0xff] }
 0x399   :  { %8668 = vmatpush1.bf16.msra.mxu0 %v11773_v40  ;;  %8033 = vmatprep.subr.bf16.mxu1 %v11784_v33  ;;  %v11837_v40 = vcombine.low %v1440_v4, %v1448_v32  ;;  %v11848_v33 = vcombine.high %v1453_v49, %v1461_v45  ;;  %v1509_v41 = vld [vmem:[#allocation8 + $0xc58] sm:$0xff]  ;;  %v1504_v4 = vld [vmem:[#allocation8 + $0xc30] sm:$0xff] }
 0x39a   :  { %8669 = vmatprep.subr.bf16.mxu0 %v11790_v8  ;;  %v11854_v8 = vcombine.high %v1456_v50, %v1464_v46  ;;  %v1512_v32 = vld [vmem:[#allocation8 + $0xc70] sm:$0xff] }
 0x39c   :  { %8034 = vmatpush1.bf16.msra.mxu1 %v11783_v56  ;;  %v11847_v56 = vcombine.low %v1453_v49, %v1461_v45  ;;  %v1517_v49 = vld [vmem:[#allocation8 + $0xc98] sm:$0xff] }
 0x39d   :  { %8670 = vmatpush1.bf16.msra.mxu0 %v11789_v31  ;;  %8035 = vmatprep.subr.bf16.mxu1 %v11800_v47  ;;  %v11853_v31 = vcombine.low %v1456_v50, %v1464_v46  ;;  %v11864_v47 = vcombine.high %v1469_v24, %v1477_v36  ;;  %v1525_v45 = vld [vmem:[#allocation8 + $0xcd8] sm:$0xff]  ;;  %v1520_v50 = vld [vmem:[#allocation8 + $0xcb0] sm:$0xff] }
 0x39e   :  { %8021 = vmatmul.mubr.bf16.gmra.mrb[36].mxu1 %v14116_v38  ;;  %8671 = vmatprep.subr.bf16.mxu0 %v11806_v52  ;;  %v11870_v52 = vcombine.high %v1472_v60, %v1480_v22  ;;  %v1528_v46 = vld [vmem:[#allocation8 + $0xcf0] sm:$0xff] }
 0x39f   :  { %8657 = vmatmul.mubr.bf16.gmra.mrb[36].mxu0 %v14116_v38  ;;  %8063 = vmatprep.mubr.bf16.mxu1 %v14122_v48 }
 0x3a0   :  { %8036 = vmatpush1.bf16.msra.mxu1 %v11799_v2  ;;  %8699 = vmatprep.mubr.bf16.mxu0 %v14122_v48  ;;  %v11863_v2 = vcombine.low %v1469_v24, %v1477_v36  ;;  %v1533_v24 = vld [vmem:[#allocation8 + $0xd18] sm:$0xff] }
 0x3a1   :  { %8672 = vmatpush1.bf16.msra.mxu0 %v11805_v63  ;;  %8037 = vmatprep.subr.bf16.mxu1 %v11816_v7  ;;  %v11869_v63 = vcombine.low %v1472_v60, %v1480_v22  ;;  %v11880_v7 = vcombine.high %v1485_v26, %v1493_v1  ;;  %v1541_v36 = vld [vmem:[#allocation8 + $0xd58] sm:$0xff]  ;;  %v1536_v60 = vld [vmem:[#allocation8 + $0xd30] sm:$0xff] }
 0x3a2   :  { %8673 = vmatprep.subr.bf16.mxu0 %v11822_v53  ;;  %v11886_v53 = vcombine.high %v1488_v57, %v1496_v0  ;;  %v1544_v22 = vld [vmem:[#allocation8 + $0xd70] sm:$0xff] }
 0x3a4   :  { %8038 = vmatpush1.bf16.msra.mxu1 %v11815_v12  ;;  %v11879_v12 = vcombine.low %v1485_v26, %v1493_v1  ;;  %v1549_v26 = vld [vmem:[#allocation8 + $0xd98] sm:$0xff] }
 0x3a5   :  { %8674 = vmatpush1.bf16.msra.mxu0 %v11821_v30  ;;  %8039 = vmatprep.subr.bf16.mxu1 %v11832_v25  ;;  %v11885_v30 = vcombine.low %v1488_v57, %v1496_v0  ;;  %v11896_v25 = vcombine.high %v1501_v35, %v1509_v41  ;;  %v1557_v1 = vld [vmem:[#allocation8 + $0xdd8] sm:$0xff]  ;;  %v1552_v57 = vld [vmem:[#allocation8 + $0xdb0] sm:$0xff] }
 0x3a6   :  { %8675 = vmatprep.subr.bf16.mxu0 %v11838_v61  ;;  %v11902_v61 = vcombine.high %v1504_v4, %v1512_v32  ;;  %v1560_v0 = vld [vmem:[#allocation8 + $0xdf0] sm:$0xff] }
 0x3a8   :  { %8040 = vmatpush1.bf16.msra.mxu1 %v11831_v55  ;;  %v11895_v55 = vcombine.low %v1501_v35, %v1509_v41  ;;  %v1565_v35 = vld [vmem:[#allocation8 + $0xe18] sm:$0xff] }
 0x3a9   :  { %8676 = vmatpush1.bf16.msra.mxu0 %v11837_v40  ;;  %8041 = vmatprep.subr.bf16.mxu1 %v11848_v33  ;;  %v11901_v40 = vcombine.low %v1504_v4, %v1512_v32  ;;  %v11912_v33 = vcombine.high %v1517_v49, %v1525_v45  ;;  %v1573_v41 = vld [vmem:[#allocation8 + $0xe58] sm:$0xff]  ;;  %v1568_v4 = vld [vmem:[#allocation8 + $0xe30] sm:$0xff] }
 0x3aa   :  { %8677 = vmatprep.subr.bf16.mxu0 %v11854_v8  ;;  %v11918_v8 = vcombine.high %v1520_v50, %v1528_v46  ;;  %v1576_v32 = vld [vmem:[#allocation8 + $0xe70] sm:$0xff] }
 0x3ac   :  { %8042 = vmatpush1.bf16.msra.mxu1 %v11847_v56  ;;  %v11911_v56 = vcombine.low %v1517_v49, %v1525_v45  ;;  %v1581_v49 = vld [vmem:[#allocation8 + $0xe98] sm:$0xff] }
 0x3ad   :  { %8678 = vmatpush1.bf16.msra.mxu0 %v11853_v31  ;;  %8043 = vmatprep.subr.bf16.mxu1 %v11864_v47  ;;  %v11917_v31 = vcombine.low %v1520_v50, %v1528_v46  ;;  %v11928_v47 = vcombine.high %v1533_v24, %v1541_v36  ;;  %v1589_v45 = vld [vmem:[#allocation8 + $0xed8] sm:$0xff]  ;;  %v1584_v50 = vld [vmem:[#allocation8 + $0xeb0] sm:$0xff] }
 0x3ae   :  { %8679 = vmatprep.subr.bf16.mxu0 %v11870_v52  ;;  %v11934_v52 = vcombine.high %v1536_v60, %v1544_v22  ;;  %v1592_v46 = vld [vmem:[#allocation8 + $0xef0] sm:$0xff] }
 0x3b0   :  { %8044 = vmatpush1.bf16.msra.mxu1 %v11863_v2  ;;  %v11927_v2 = vcombine.low %v1533_v24, %v1541_v36  ;;  %v1597_v24 = vld [vmem:[#allocation8 + $0xf18] sm:$0xff] }
 0x3b1   :  { %8680 = vmatpush1.bf16.msra.mxu0 %v11869_v63  ;;  %8045 = vmatprep.subr.bf16.mxu1 %v11880_v7  ;;  %v11933_v63 = vcombine.low %v1536_v60, %v1544_v22  ;;  %v11944_v7 = vcombine.high %v1549_v26, %v1557_v1  ;;  %v1605_v36 = vld [vmem:[#allocation8 + $0xf58] sm:$0xff]  ;;  %v1600_v60 = vld [vmem:[#allocation8 + $0xf30] sm:$0xff] }
 0x3b2   :  { %8681 = vmatprep.subr.bf16.mxu0 %v11886_v53  ;;  %v11950_v53 = vcombine.high %v1552_v57, %v1560_v0  ;;  %v1608_v22 = vld [vmem:[#allocation8 + $0xf70] sm:$0xff] }
 0x3b4   :  { %8046 = vmatpush1.bf16.msra.mxu1 %v11879_v12  ;;  %v11943_v12 = vcombine.low %v1549_v26, %v1557_v1  ;;  %v1613_v26 = vld [vmem:[#allocation8 + $0xf98] sm:$0xff] }
 0x3b5   :  { %8682 = vmatpush1.bf16.msra.mxu0 %v11885_v30  ;;  %8047 = vmatprep.subr.bf16.mxu1 %v11896_v25  ;;  %v11949_v30 = vcombine.low %v1552_v57, %v1560_v0  ;;  %v11960_v25 = vcombine.high %v1565_v35, %v1573_v41  ;;  %v1621_v1 = vld [vmem:[#allocation8 + $0xfd8] sm:$0xff]  ;;  %v1616_v57 = vld [vmem:[#allocation8 + $0xfb0] sm:$0xff] }
 0x3b6   :  { %8683 = vmatprep.subr.bf16.mxu0 %v11902_v61  ;;  %v11966_v61 = vcombine.high %v1568_v4, %v1576_v32  ;;  %v1624_v0 = vld [vmem:[#allocation8 + $0xff0] sm:$0xff] }
 0x3b8   :  { %8048 = vmatpush1.bf16.msra.mxu1 %v11895_v55  ;;  %v11959_v55 = vcombine.low %v1565_v35, %v1573_v41  ;;  %v1629_v35 = vld [vmem:[#allocation8 + $0x1018] sm:$0xff] }
 0x3b9   :  { %8684 = vmatpush1.bf16.msra.mxu0 %v11901_v40  ;;  %8049 = vmatprep.subr.bf16.mxu1 %v11912_v33  ;;  %v11965_v40 = vcombine.low %v1568_v4, %v1576_v32  ;;  %v11976_v33 = vcombine.high %v1581_v49, %v1589_v45  ;;  %v1637_v41 = vld [vmem:[#allocation8 + $0x1058] sm:$0xff]  ;;  %v1632_v4 = vld [vmem:[#allocation8 + $0x1030] sm:$0xff] }
 0x3ba   :  { %8685 = vmatprep.subr.bf16.mxu0 %v11918_v8  ;;  %v11982_v8 = vcombine.high %v1584_v50, %v1592_v46  ;;  %v1640_v32 = vld [vmem:[#allocation8 + $0x1070] sm:$0xff] }
 0x3bc   :  { %8050 = vmatpush1.bf16.msra.mxu1 %v11911_v56  ;;  %v11975_v56 = vcombine.low %v1581_v49, %v1589_v45  ;;  %v1645_v49 = vld [vmem:[#allocation8 + $0x1098] sm:$0xff] }
 0x3bd   :  { %8686 = vmatpush1.bf16.msra.mxu0 %v11917_v31  ;;  %8051 = vmatprep.subr.bf16.mxu1 %v11928_v47  ;;  %v11981_v31 = vcombine.low %v1584_v50, %v1592_v46  ;;  %v11992_v47 = vcombine.high %v1597_v24, %v1605_v36  ;;  %v1653_v45 = vld [vmem:[#allocation8 + $0x10d8] sm:$0xff]  ;;  %v1648_v50 = vld [vmem:[#allocation8 + $0x10b0] sm:$0xff] }
 0x3be   :  { %8687 = vmatprep.subr.bf16.mxu0 %v11934_v52  ;;  %v11998_v52 = vcombine.high %v1600_v60, %v1608_v22  ;;  %v1656_v46 = vld [vmem:[#allocation8 + $0x10f0] sm:$0xff] }
 0x3c0   :  { %8052 = vmatpush1.bf16.msra.mxu1 %v11927_v2  ;;  %v11991_v2 = vcombine.low %v1597_v24, %v1605_v36  ;;  %v1661_v24 = vld [vmem:[#allocation8 + $0x1118] sm:$0xff] }
 0x3c1   :  { %8688 = vmatpush1.bf16.msra.mxu0 %v11933_v63  ;;  %8053 = vmatprep.subr.bf16.mxu1 %v11944_v7  ;;  %v11997_v63 = vcombine.low %v1600_v60, %v1608_v22  ;;  %v12008_v7 = vcombine.high %v1613_v26, %v1621_v1  ;;  %v1669_v36 = vld [vmem:[#allocation8 + $0x1158] sm:$0xff]  ;;  %v1664_v60 = vld [vmem:[#allocation8 + $0x1130] sm:$0xff] }
 0x3c2   :  { %8689 = vmatprep.subr.bf16.mxu0 %v11950_v53  ;;  %v12014_v53 = vcombine.high %v1616_v57, %v1624_v0  ;;  %v1672_v22 = vld [vmem:[#allocation8 + $0x1170] sm:$0xff] }
 0x3c4   :  { %8054 = vmatpush1.bf16.msra.mxu1 %v11943_v12  ;;  %v12007_v12 = vcombine.low %v1613_v26, %v1621_v1  ;;  %v1677_v26 = vld [vmem:[#allocation8 + $0x1198] sm:$0xff] }
 0x3c5   :  { %8690 = vmatpush1.bf16.msra.mxu0 %v11949_v30  ;;  %8055 = vmatprep.subr.bf16.mxu1 %v11960_v25  ;;  %v12013_v30 = vcombine.low %v1616_v57, %v1624_v0  ;;  %v12024_v25 = vcombine.high %v1629_v35, %v1637_v41  ;;  %v1685_v1 = vld [vmem:[#allocation8 + $0x11d8] sm:$0xff]  ;;  %v1680_v57 = vld [vmem:[#allocation8 + $0x11b0] sm:$0xff] }
 0x3c6   :  { %8691 = vmatprep.subr.bf16.mxu0 %v11966_v61  ;;  %v12030_v61 = vcombine.high %v1632_v4, %v1640_v32  ;;  %v1688_v0 = vld [vmem:[#allocation8 + $0x11f0] sm:$0xff] }
 0x3c8   :  { %8056 = vmatpush1.bf16.msra.mxu1 %v11959_v55  ;;  %v12023_v55 = vcombine.low %v1629_v35, %v1637_v41  ;;  %v1693_v35 = vld [vmem:[#allocation8 + $0x1218] sm:$0xff] }
 0x3c9   :  { %8692 = vmatpush1.bf16.msra.mxu0 %v11965_v40  ;;  %8057 = vmatprep.subr.bf16.mxu1 %v11976_v33  ;;  %v12029_v40 = vcombine.low %v1632_v4, %v1640_v32  ;;  %v12040_v33 = vcombine.high %v1645_v49, %v1653_v45  ;;  %v1701_v41 = vld [vmem:[#allocation8 + $0x1258] sm:$0xff]  ;;  %v1696_v4 = vld [vmem:[#allocation8 + $0x1230] sm:$0xff] }
 0x3ca   :  { %8693 = vmatprep.subr.bf16.mxu0 %v11982_v8  ;;  %v12046_v8 = vcombine.high %v1648_v50, %v1656_v46  ;;  %v1704_v32 = vld [vmem:[#allocation8 + $0x1270] sm:$0xff] }
 0x3cc   :  { %8058 = vmatpush1.bf16.msra.mxu1 %v11975_v56  ;;  %v12039_v56 = vcombine.low %v1645_v49, %v1653_v45  ;;  %v1709_v49 = vld [vmem:[#allocation8 + $0x1298] sm:$0xff] }
 0x3cd   :  { %8694 = vmatpush1.bf16.msra.mxu0 %v11981_v31  ;;  %8059 = vmatprep.subr.bf16.mxu1 %v11992_v47  ;;  %v12045_v31 = vcombine.low %v1648_v50, %v1656_v46  ;;  %v12056_v47 = vcombine.high %v1661_v24, %v1669_v36  ;;  %v1717_v45 = vld [vmem:[#allocation8 + $0x12d8] sm:$0xff]  ;;  %v1712_v50 = vld [vmem:[#allocation8 + $0x12b0] sm:$0xff] }
 0x3ce   :  { %8695 = vmatprep.subr.bf16.mxu0 %v11998_v52  ;;  %v12062_v52 = vcombine.high %v1664_v60, %v1672_v22  ;;  %v1720_v46 = vld [vmem:[#allocation8 + $0x12f0] sm:$0xff] }
 0x3d0   :  { %8060 = vmatpush1.bf16.msra.mxu1 %v11991_v2  ;;  %v12055_v2 = vcombine.low %v1661_v24, %v1669_v36  ;;  %v1725_v24 = vld [vmem:[#allocation8 + $0x1318] sm:$0xff] }
 0x3d1   :  { %8696 = vmatpush1.bf16.msra.mxu0 %v11997_v63  ;;  %8061 = vmatprep.subr.bf16.mxu1 %v12008_v7  ;;  %v12061_v63 = vcombine.low %v1664_v60, %v1672_v22  ;;  %v12072_v7 = vcombine.high %v1677_v26, %v1685_v1  ;;  %v1733_v36 = vld [vmem:[#allocation8 + $0x1358] sm:$0xff]  ;;  %v1728_v60 = vld [vmem:[#allocation8 + $0x1330] sm:$0xff] }
 0x3d2   :  { %8697 = vmatprep.subr.bf16.mxu0 %v12014_v53  ;;  %v12078_v53 = vcombine.high %v1680_v57, %v1688_v0  ;;  %v1736_v22 = vld [vmem:[#allocation8 + $0x1370] sm:$0xff] }
 0x3d4   :  { %8062 = vmatpush1.bf16.msra.mxu1 %v12007_v12  ;;  %v12071_v12 = vcombine.low %v1677_v26, %v1685_v1  ;;  %v1741_v26 = vld [vmem:[#allocation8 + $0x1398] sm:$0xff] }
 0x3d5   :  { %8698 = vmatpush1.bf16.msra.mxu0 %v12013_v30  ;;  %8084 = vmatprep.subr.bf16.mxu1 %v12024_v25  ;;  %v12077_v30 = vcombine.low %v1680_v57, %v1688_v0  ;;  %v12088_v25 = vcombine.high %v1693_v35, %v1701_v41  ;;  %v1749_v1 = vld [vmem:[#allocation8 + $0x13d8] sm:$0xff]  ;;  %v1744_v57 = vld [vmem:[#allocation8 + $0x13b0] sm:$0xff] }
 0x3d6   :  { %8720 = vmatprep.subr.bf16.mxu0 %v12030_v61  ;;  %v12094_v61 = vcombine.high %v1696_v4, %v1704_v32  ;;  %v1752_v0 = vld [vmem:[#allocation8 + $0x13f0] sm:$0xff] }
 0x3d7   :  { %8064 = vmatmul.mubr.bf16.vlgmr.msra.gmra.mrb[32].mxu1 %v14120_v18 }
 0x3d8   :  { %8700 = vmatmul.mubr.bf16.vlgmr.msra.gmra.mrb[32].mxu0 %v14120_v18  ;;  %8073 = vmatprep.mubr.bf16.mxu1 %v14141_v23 }
 0x3d9   :  { %8085 = vmatpush1.bf16.msra.mxu1 %v12023_v55  ;;  %8709 = vmatprep.mubr.bf16.mxu0 %v14141_v23  ;;  %v12087_v55 = vcombine.low %v1693_v35, %v1701_v41  ;;  %v1757_v35 = vld [vmem:[#allocation8 + $0x1418] sm:$0xff] }
 0x3da   :  { %8721 = vmatpush1.bf16.msra.mxu0 %v12029_v40  ;;  %8086 = vmatprep.subr.bf16.mxu1 %v12040_v33  ;;  %v12093_v40 = vcombine.low %v1696_v4, %v1704_v32  ;;  %v12104_v33 = vcombine.high %v1709_v49, %v1717_v45  ;;  %v1765_v41 = vld [vmem:[#allocation8 + $0x1458] sm:$0xff]  ;;  %v1760_v4 = vld [vmem:[#allocation8 + $0x1430] sm:$0xff] }
 0x3db   :  { %8722 = vmatprep.subr.bf16.mxu0 %v12046_v8  ;;  %v12110_v8 = vcombine.high %v1712_v50, %v1720_v46  ;;  %v1768_v32 = vld [vmem:[#allocation8 + $0x1470] sm:$0xff] }
 0x3dd   :  { %8087 = vmatpush1.bf16.msra.mxu1 %v12039_v56  ;;  %v12103_v56 = vcombine.low %v1709_v49, %v1717_v45  ;;  %v1773_v49 = vld [vmem:[#allocation8 + $0x1498] sm:$0xff] }
 0x3de   :  { %8723 = vmatpush1.bf16.msra.mxu0 %v12045_v31  ;;  %8088 = vmatprep.subr.bf16.mxu1 %v12056_v47  ;;  %v12109_v31 = vcombine.low %v1712_v50, %v1720_v46  ;;  %v12120_v47 = vcombine.high %v1725_v24, %v1733_v36  ;;  %v1781_v45 = vld [vmem:[#allocation8 + $0x14d8] sm:$0xff]  ;;  %v1776_v50 = vld [vmem:[#allocation8 + $0x14b0] sm:$0xff] }
 0x3df   :  { %8074 = vmatmul.mubr.bf16.gmra.mrb[36].mxu1 %v14139_v21  ;;  %8724 = vmatprep.subr.bf16.mxu0 %v12062_v52  ;;  %v12126_v52 = vcombine.high %v1728_v60, %v1736_v22  ;;  %v1784_v46 = vld [vmem:[#allocation8 + $0x14f0] sm:$0xff] }
 0x3e0   :  { %8710 = vmatmul.mubr.bf16.gmra.mrb[36].mxu0 %v14139_v21  ;;  %8116 = vmatprep.mubr.bf16.mxu1 %v14203_v14 }
 0x3e1   :  { %8089 = vmatpush1.bf16.msra.mxu1 %v12055_v2  ;;  %8752 = vmatprep.mubr.bf16.mxu0 %v14203_v14  ;;  %v12119_v2 = vcombine.low %v1725_v24, %v1733_v36  ;;  %v1789_v24 = vld [vmem:[#allocation8 + $0x1518] sm:$0xff] }
 0x3e2   :  { %8725 = vmatpush1.bf16.msra.mxu0 %v12061_v63  ;;  %8090 = vmatprep.subr.bf16.mxu1 %v12072_v7  ;;  %v12125_v63 = vcombine.low %v1728_v60, %v1736_v22  ;;  %v12136_v7 = vcombine.high %v1741_v26, %v1749_v1  ;;  %v1797_v36 = vld [vmem:[#allocation8 + $0x1558] sm:$0xff]  ;;  %v1792_v60 = vld [vmem:[#allocation8 + $0x1530] sm:$0xff] }
 0x3e3   :  { %8726 = vmatprep.subr.bf16.mxu0 %v12078_v53  ;;  %v12142_v53 = vcombine.high %v1744_v57, %v1752_v0  ;;  %v1800_v22 = vld [vmem:[#allocation8 + $0x1570] sm:$0xff] }
 0x3e5   :  { %8091 = vmatpush1.bf16.msra.mxu1 %v12071_v12  ;;  %v12135_v12 = vcombine.low %v1741_v26, %v1749_v1  ;;  %v1805_v26 = vld [vmem:[#allocation8 + $0x1598] sm:$0xff] }
 0x3e6   :  { %8727 = vmatpush1.bf16.msra.mxu0 %v12077_v30  ;;  %8092 = vmatprep.subr.bf16.mxu1 %v12088_v25  ;;  %v12141_v30 = vcombine.low %v1744_v57, %v1752_v0  ;;  %v12152_v25 = vcombine.high %v1757_v35, %v1765_v41  ;;  %v1813_v1 = vld [vmem:[#allocation8 + $0x15d8] sm:$0xff]  ;;  %v1808_v57 = vld [vmem:[#allocation8 + $0x15b0] sm:$0xff] }
 0x3e7   :  { %8728 = vmatprep.subr.bf16.mxu0 %v12094_v61  ;;  %v12158_v61 = vcombine.high %v1760_v4, %v1768_v32  ;;  %v1816_v0 = vld [vmem:[#allocation8 + $0x15f0] sm:$0xff] }
 0x3e9   :  { %8093 = vmatpush1.bf16.msra.mxu1 %v12087_v55  ;;  %v12151_v55 = vcombine.low %v1757_v35, %v1765_v41  ;;  %v1821_v35 = vld [vmem:[#allocation8 + $0x1618] sm:$0xff] }
 0x3ea   :  { %8729 = vmatpush1.bf16.msra.mxu0 %v12093_v40  ;;  %8094 = vmatprep.subr.bf16.mxu1 %v12104_v33  ;;  %v12157_v40 = vcombine.low %v1760_v4, %v1768_v32  ;;  %v12168_v33 = vcombine.high %v1773_v49, %v1781_v45  ;;  %v1829_v41 = vld [vmem:[#allocation8 + $0x1658] sm:$0xff]  ;;  %v1824_v4 = vld [vmem:[#allocation8 + $0x1630] sm:$0xff] }
 0x3eb   :  { %8730 = vmatprep.subr.bf16.mxu0 %v12110_v8  ;;  %v12174_v8 = vcombine.high %v1776_v50, %v1784_v46  ;;  %v1832_v32 = vld [vmem:[#allocation8 + $0x1670] sm:$0xff] }
 0x3ed   :  { %8095 = vmatpush1.bf16.msra.mxu1 %v12103_v56  ;;  %v12167_v56 = vcombine.low %v1773_v49, %v1781_v45  ;;  %v1837_v49 = vld [vmem:[#allocation8 + $0x1698] sm:$0xff] }
 0x3ee   :  { %8731 = vmatpush1.bf16.msra.mxu0 %v12109_v31  ;;  %8096 = vmatprep.subr.bf16.mxu1 %v12120_v47  ;;  %v12173_v31 = vcombine.low %v1776_v50, %v1784_v46  ;;  %v12184_v47 = vcombine.high %v1789_v24, %v1797_v36  ;;  %v1845_v45 = vld [vmem:[#allocation8 + $0x16d8] sm:$0xff]  ;;  %v1840_v50 = vld [vmem:[#allocation8 + $0x16b0] sm:$0xff] }
 0x3ef   :  { %8732 = vmatprep.subr.bf16.mxu0 %v12126_v52  ;;  %v12190_v52 = vcombine.high %v1792_v60, %v1800_v22  ;;  %v1848_v46 = vld [vmem:[#allocation8 + $0x16f0] sm:$0xff] }
 0x3f1   :  { %8097 = vmatpush1.bf16.msra.mxu1 %v12119_v2  ;;  %v12183_v2 = vcombine.low %v1789_v24, %v1797_v36  ;;  %v1853_v24 = vld [vmem:[#allocation8 + $0x1718] sm:$0xff] }
 0x3f2   :  { %8733 = vmatpush1.bf16.msra.mxu0 %v12125_v63  ;;  %8098 = vmatprep.subr.bf16.mxu1 %v12136_v7  ;;  %v12189_v63 = vcombine.low %v1792_v60, %v1800_v22  ;;  %v12200_v7 = vcombine.high %v1805_v26, %v1813_v1  ;;  %v1861_v36 = vld [vmem:[#allocation8 + $0x1758] sm:$0xff]  ;;  %v1856_v60 = vld [vmem:[#allocation8 + $0x1730] sm:$0xff] }
 0x3f3   :  { %8734 = vmatprep.subr.bf16.mxu0 %v12142_v53  ;;  %v12206_v53 = vcombine.high %v1808_v57, %v1816_v0  ;;  %v1864_v22 = vld [vmem:[#allocation8 + $0x1770] sm:$0xff] }
 0x3f5   :  { %8099 = vmatpush1.bf16.msra.mxu1 %v12135_v12  ;;  %v12199_v12 = vcombine.low %v1805_v26, %v1813_v1  ;;  %v1869_v26 = vld [vmem:[#allocation8 + $0x1798] sm:$0xff] }
 0x3f6   :  { %8735 = vmatpush1.bf16.msra.mxu0 %v12141_v30  ;;  %8100 = vmatprep.subr.bf16.mxu1 %v12152_v25  ;;  %v12205_v30 = vcombine.low %v1808_v57, %v1816_v0  ;;  %v12216_v25 = vcombine.high %v1821_v35, %v1829_v41  ;;  %v1877_v1 = vld [vmem:[#allocation8 + $0x17d8] sm:$0xff]  ;;  %v1872_v57 = vld [vmem:[#allocation8 + $0x17b0] sm:$0xff] }
 0x3f7   :  { %8736 = vmatprep.subr.bf16.mxu0 %v12158_v61  ;;  %v12222_v61 = vcombine.high %v1824_v4, %v1832_v32  ;;  %v1880_v0 = vld [vmem:[#allocation8 + $0x17f0] sm:$0xff] }
 0x3f9   :  { %8101 = vmatpush1.bf16.msra.mxu1 %v12151_v55  ;;  %v12215_v55 = vcombine.low %v1821_v35, %v1829_v41  ;;  %v1885_v35 = vld [vmem:[#allocation8 + $0x1818] sm:$0xff] }
 0x3fa   :  { %8737 = vmatpush1.bf16.msra.mxu0 %v12157_v40  ;;  %8102 = vmatprep.subr.bf16.mxu1 %v12168_v33  ;;  %v12221_v40 = vcombine.low %v1824_v4, %v1832_v32  ;;  %v12232_v33 = vcombine.high %v1837_v49, %v1845_v45  ;;  %v1893_v41 = vld [vmem:[#allocation8 + $0x1858] sm:$0xff]  ;;  %v1888_v4 = vld [vmem:[#allocation8 + $0x1830] sm:$0xff] }
 0x3fb   :  { %8738 = vmatprep.subr.bf16.mxu0 %v12174_v8  ;;  %v12238_v8 = vcombine.high %v1840_v50, %v1848_v46  ;;  %v1896_v32 = vld [vmem:[#allocation8 + $0x1870] sm:$0xff] }
 0x3fd   :  { %8103 = vmatpush1.bf16.msra.mxu1 %v12167_v56  ;;  %v12231_v56 = vcombine.low %v1837_v49, %v1845_v45  ;;  %v1901_v49 = vld [vmem:[#allocation8 + $0x1898] sm:$0xff] }
 0x3fe   :  { %8739 = vmatpush1.bf16.msra.mxu0 %v12173_v31  ;;  %8104 = vmatprep.subr.bf16.mxu1 %v12184_v47  ;;  %v12237_v31 = vcombine.low %v1840_v50, %v1848_v46  ;;  %v12248_v47 = vcombine.high %v1853_v24, %v1861_v36  ;;  %v1909_v45 = vld [vmem:[#allocation8 + $0x18d8] sm:$0xff]  ;;  %v1904_v50 = vld [vmem:[#allocation8 + $0x18b0] sm:$0xff] }
 0x3ff   :  { %8740 = vmatprep.subr.bf16.mxu0 %v12190_v52  ;;  %v12254_v52 = vcombine.high %v1856_v60, %v1864_v22  ;;  %v1912_v46 = vld [vmem:[#allocation8 + $0x18f0] sm:$0xff] }
 0x401   :  { %8105 = vmatpush1.bf16.msra.mxu1 %v12183_v2  ;;  %v12247_v2 = vcombine.low %v1853_v24, %v1861_v36  ;;  %v1917_v24 = vld [vmem:[#allocation8 + $0x1918] sm:$0xff] }
 0x402   :  { %8741 = vmatpush1.bf16.msra.mxu0 %v12189_v63  ;;  %8106 = vmatprep.subr.bf16.mxu1 %v12200_v7  ;;  %v12253_v63 = vcombine.low %v1856_v60, %v1864_v22  ;;  %v12264_v7 = vcombine.high %v1869_v26, %v1877_v1  ;;  %v1925_v36 = vld [vmem:[#allocation8 + $0x1958] sm:$0xff]  ;;  %v1920_v60 = vld [vmem:[#allocation8 + $0x1930] sm:$0xff] }
 0x403   :  { %8742 = vmatprep.subr.bf16.mxu0 %v12206_v53  ;;  %v12270_v53 = vcombine.high %v1872_v57, %v1880_v0  ;;  %v1928_v22 = vld [vmem:[#allocation8 + $0x1970] sm:$0xff] }
 0x405   :  { %8107 = vmatpush1.bf16.msra.mxu1 %v12199_v12  ;;  %v12263_v12 = vcombine.low %v1869_v26, %v1877_v1  ;;  %v1933_v26 = vld [vmem:[#allocation8 + $0x1998] sm:$0xff] }
 0x406   :  { %8743 = vmatpush1.bf16.msra.mxu0 %v12205_v30  ;;  %8108 = vmatprep.subr.bf16.mxu1 %v12216_v25  ;;  %v12269_v30 = vcombine.low %v1872_v57, %v1880_v0  ;;  %v12280_v25 = vcombine.high %v1885_v35, %v1893_v41  ;;  %v1941_v1 = vld [vmem:[#allocation8 + $0x19d8] sm:$0xff]  ;;  %v1936_v57 = vld [vmem:[#allocation8 + $0x19b0] sm:$0xff] }
 0x407   :  { %8744 = vmatprep.subr.bf16.mxu0 %v12222_v61  ;;  %v12286_v61 = vcombine.high %v1888_v4, %v1896_v32  ;;  %v1944_v0 = vld [vmem:[#allocation8 + $0x19f0] sm:$0xff] }
 0x409   :  { %8109 = vmatpush1.bf16.msra.mxu1 %v12215_v55  ;;  %v12279_v55 = vcombine.low %v1885_v35, %v1893_v41  ;;  %v1949_v35 = vld [vmem:[#allocation8 + $0x1a18] sm:$0xff] }
 0x40a   :  { %8745 = vmatpush1.bf16.msra.mxu0 %v12221_v40  ;;  %8110 = vmatprep.subr.bf16.mxu1 %v12232_v33  ;;  %v12285_v40 = vcombine.low %v1888_v4, %v1896_v32  ;;  %v12296_v33 = vcombine.high %v1901_v49, %v1909_v45  ;;  %v1957_v41 = vld [vmem:[#allocation8 + $0x1a58] sm:$0xff]  ;;  %v1952_v4 = vld [vmem:[#allocation8 + $0x1a30] sm:$0xff] }
 0x40b   :  { %8746 = vmatprep.subr.bf16.mxu0 %v12238_v8  ;;  %v12302_v8 = vcombine.high %v1904_v50, %v1912_v46  ;;  %v1960_v32 = vld [vmem:[#allocation8 + $0x1a70] sm:$0xff] }
 0x40d   :  { %8111 = vmatpush1.bf16.msra.mxu1 %v12231_v56  ;;  %v12295_v56 = vcombine.low %v1901_v49, %v1909_v45  ;;  %v12350_v49 = vcombine.high %v1952_v4, %v1960_v32  ;;  %v1965_v45 = vld [vmem:[#allocation8 + $0x1a98] sm:$0xff] }
 0x40e   :  { %8747 = vmatpush1.bf16.msra.mxu0 %v12237_v31  ;;  %8112 = vmatprep.subr.bf16.mxu1 %v12248_v47  ;;  %v12301_v31 = vcombine.low %v1904_v50, %v1912_v46  ;;  %v12312_v47 = vcombine.high %v1917_v24, %v1925_v36  ;;  %v1973_v50 = vld [vmem:[#allocation8 + $0x1ad8] sm:$0xff]  ;;  %v13595_v46 = vld [vmem:[#allocation10] sm:$0xff] }
 0x40f   :  { %8748 = vmatprep.subr.bf16.mxu0 %v12254_v52  ;;  %v12318_v52 = vcombine.high %v1920_v60, %v1928_v22 }
 0x411   :  { %8113 = vmatpush1.bf16.msra.mxu1 %v12247_v2  ;;  %v12311_v2 = vcombine.low %v1917_v24, %v1925_v36  ;;  %v14418_v36 = vrot.slane %v13595_v46, %v14058_v42 }
 0x412   :  { %8749 = vmatpush1.bf16.msra.mxu0 %v12253_v63  ;;  %8114 = vmatprep.subr.bf16.mxu1 %v12264_v7  ;;  %v12317_v63 = vcombine.low %v1920_v60, %v1928_v22  ;;  %v12328_v7 = vcombine.high %v1933_v26, %v1941_v1  ;;  %v12349_v60 = vcombine.low %v1952_v4, %v1960_v32 }
 0x413   :  { %8750 = vmatprep.subr.bf16.mxu0 %v12270_v53  ;;  %v12334_v53 = vcombine.high %v1936_v57, %v1944_v0  ;;  %v12360_v22 = vcombine.high %v1965_v45, %v1973_v50 }
 0x415   :  { %8115 = vmatpush1.bf16.msra.mxu1 %v12263_v12  ;;  %v12327_v12 = vcombine.low %v1933_v26, %v1941_v1  ;;  %v14427_v1 = vld [vmem:[#allocation8 + $0x1b30] sm:$0xff] }
 0x416   :  { %8751 = vmatpush1.bf16.msra.mxu0 %v12269_v30  ;;  %8137 = vmatprep.subr.bf16.mxu1 %v12280_v25  ;;  %v12333_v30 = vcombine.low %v1936_v57, %v1944_v0  ;;  %v12344_v25 = vcombine.high %v1949_v35, %v1957_v41  ;;  %v14429_v57 = vld [vmem:[#allocation8 + $0x1b70] sm:$0xff] }
 0x417   :  { %8773 = vmatprep.subr.bf16.mxu0 %v12286_v61  ;;  %v2139_v61 = vld [vmem:[#allocation10 + $0x8] sm:$0xff] }
 0x418   :  { %8117 = vmatmul.mubr.bf16.vlgmr.msra.gmra.mrb[32].mxu1 %v14195_v10  ;;  %v14415_v24 = vrot.slane %v2139_v61, %v14043_v27 }
 0x419   :  { %8753 = vmatmul.mubr.bf16.vlgmr.msra.gmra.mrb[32].mxu0 %v14195_v10  ;;  %8126 = vmatprep.mubr.bf16.mxu1 %v14225_v9 }
 0x41a   :  { %8138 = vmatpush1.bf16.msra.mxu1 %v12279_v55  ;;  %8762 = vmatprep.mubr.bf16.mxu0 %v14225_v9  ;;  %v14412_v55 = vrot.slane %v13595_v46, %v14055_v37  ;;  %v2040_v37 = vld [vmem:[#allocation8 + $0x1cf0] sm:$0xff] }
 0x41b   :  { %8774 = vmatpush1.bf16.msra.mxu0 %v12285_v40  ;;  %8139 = vmatprep.subr.bf16.mxu1 %v12296_v33  ;;  %v1968_v40 = vld [vmem:[#allocation8 + $0x1ab0] sm:$0xff] }
 0x41c   :  { %8775 = vmatprep.subr.bf16.mxu0 %v12302_v8  ;;  %v1976_v33 = vld [vmem:[#allocation8 + $0x1af0] sm:$0xff]  ;;  %v12343_v8 = vcombine.low %v1949_v35, %v1957_v41 }
 0x41d   :  { %v12366_v26 = vcombine.high %v1968_v40, %v1976_v33  ;;  %v12365_v4 = vcombine.low %v1968_v40, %v1976_v33 }
 0x41e   :  { %8140 = vmatpush1.bf16.msra.mxu1 %v12295_v56  ;;  %v14421_v56 = vrot.slane %v2139_v61, %v14048_v29 }
 0x41f   :  { %8776 = vmatpush1.bf16.msra.mxu0 %v12301_v31  ;;  %8141 = vmatprep.subr.bf16.mxu1 %v12312_v47  ;;  %v14423_v31 = vld [vmem:[#allocation8 + $0x1b18] sm:$0xff] }
 0x420   :  { %8127 = vmatmul.mubr.bf16.gmra.mrb[36].mxu1 %v14223_v6  ;;  %8777 = vmatprep.subr.bf16.mxu0 %v12318_v52  ;;  %v14425_v47 = vld [vmem:[#allocation8 + $0x1b58] sm:$0xff] }
 0x421   :  { %8763 = vmatmul.mubr.bf16.gmra.mrb[36].mxu0 %v14223_v6  ;;  %8169 = vmatprep.mubr.bf16.mxu1 %v14229_v28 }
 0x422   :  { %8142 = vmatpush1.bf16.msra.mxu1 %v12311_v2  ;;  %8805 = vmatprep.mubr.bf16.mxu0 %v14229_v28 }
 0x423   :  { %8778 = vmatpush1.bf16.msra.mxu0 %v12317_v63  ;;  %8143 = vmatprep.subr.bf16.mxu1 %v12328_v7  ;;  %v12359_v7 = vcombine.low %v1965_v45, %v1973_v50  ;;  %v12382_v50 = vcombine.high %v14427_v1, %v14429_v57 }
 0x424   :  { %8779 = vmatprep.subr.bf16.mxu0 %v12334_v53 }
 0x426   :  { %8144 = vmatpush1.bf16.msra.mxu1 %v12327_v12  ;;  %v12376_v12 = vcombine.high %v14423_v31, %v14425_v47 }
 0x427   :  { %8780 = vmatpush1.bf16.msra.mxu0 %v12333_v30  ;;  %8145 = vmatprep.subr.bf16.mxu1 %v12344_v25 }
 0x428   :  { %8781 = vmatprep.subr.bf16.mxu0 %v12350_v49  ;;  %v7747_v52 = vpop.f32.mrb[24].mxu1 }
 0x429   :  { %v12881_v0 = vadd.f32 %v7747_v52, %v14412_v55  ;;  %v8383_v2 = vpop.f32.mrb[24].mxu0  ;;  %v7749_v63 = vpop.f32.mrb[25].mxu1 }
 0x42a   :  { %8146 = vmatpush1.bf16.msra.mxu1 %v12343_v8  ;;  %v12905_v53 = vadd.f32 %v8383_v2, %v14415_v24  ;;  %v12882_v35 = vadd.f32 %v7749_v63, %v14418_v36  ;;  %v8385_v41 = vpop.f32.mrb[25].mxu0  ;;  %v7751_v32 = vpop.f32.mrb[26].mxu1 }
 0x42b   :  { %8782 = vmatpush1.bf16.msra.mxu0 %v12349_v60  ;;  %v9040_v30 = vmax.f32 %v12881_v0, 0.0  ;;  %8147 = vmatprep.subr.bf16.mxu1 %v12360_v22  ;;  %v12906_v25 = vadd.f32 %v8385_v41, %v14421_v56  ;;  %v12883_v61 = vadd.f32 %v7751_v32, %v14412_v55  ;;  %v8387_v49 = vpop.f32.mrb[26].mxu0  ;;  %v7753_v45 = vpop.f32.mrb[27].mxu1  ;;  %v14442_v60 = vld [vmem:[#allocation8 + $0x1b98] sm:$0xff]  ;;  %v12375_v41 = vcombine.low %v14423_v31, %v14425_v47  ;;  %v14449_v32 = vld [vmem:[#allocation8 + $0x1bb0] sm:$0xff] }
 0x42c   :  { %v9046_v46 = vmax.f32 %v12905_v53, 0.0  ;;  %v9041_v8 = vmax.f32 %v12882_v35, 0.0  ;;  %8783 = vmatprep.subr.bf16.mxu0 %v12366_v26  ;;  %v12907_v40 = vadd.f32 %v8387_v49, %v14415_v24  ;;  %v12884_v33 = vadd.f32 %v7753_v45, %v14418_v36  ;;  %v8389_v52 = vpop.f32.mrb[27].mxu0  ;;  %v14444_v22 = vld [vmem:[#allocation8 + $0x1bd8] sm:$0xff]  ;;  %v14451_v53 = vld [vmem:[#allocation8 + $0x1bf0] sm:$0xff] }
 0x42d   :  { %v9047_v0 = vmax.f32 %v12906_v25, 0.0  ;;  %v9056_v2 = vmax.f32 %v12883_v61, 0.0  ;;  %v12908_v63 = vadd.f32 %v8389_v52, %v14421_v56  ;;  %v12381_v45 = vcombine.low %v14427_v1, %v14429_v57  ;;  %v14459_v47 = vld [vmem:[#allocation8 + $0x1c18] sm:$0xff] }
 0x42e   :  { %v12838_v26 = vpack.c.bf16 %v9041_v8, %v9040_v30  ;;  %8148 = vmatpush1.bf16.msra.mxu1 %v12359_v7  ;;  %v9062_v35 = vmax.f32 %v12907_v40, 0.0  ;;  %v9057_v49 = vmax.f32 %v12884_v33, 0.0  ;;  %v12392_v31 = vcombine.high %v14442_v60, %v14444_v22  ;;  %v14461_v61 = vld [vmem:[#allocation8 + $0x1c58] sm:$0xff] }
 0x42f   :  { %v12841_v29 = vpack.c.bf16 %v9047_v0, %v9046_v46  ;;  %v14455_v27 = vpack.c.bf16 %v9056_v2, %v9040_v30  ;;  %8784 = vmatpush1.bf16.msra.mxu0 %v12365_v4  ;;  %v9063_v25 = vmax.f32 %v12908_v63, 0.0  ;;  %8149 = vmatprep.subr.bf16.mxu1 %v12376_v12  ;;  %v12398_v57 = vcombine.high %v14449_v32, %v14451_v53  ;;  %v14469_v4 = vld [vmem:[#allocation8 + $0x1c30] sm:$0xff] }
 0x430   :  { %9295 = vst [vmem:[#allocation15 + $0x8] sm:$0xff] %v12838_v26  ;;  %v14463_v7 = vpack.c.bf16 %v9062_v35, %v9046_v46  ;;  %v14465_v40 = vpack.c.bf16 %v9057_v49, %v9041_v8  ;;  %v12846_v33 = vpack.c.bf16 %v9057_v49, %v9056_v2  ;;  %8785 = vmatprep.subr.bf16.mxu0 %v12382_v50  ;;  %v7757_v1 = vpop.f32.mrb[28].mxu1  ;;  %v14471_v12 = vld [vmem:[#allocation8 + $0x1c70] sm:$0xff] }
 0x431   :  { %9298 = vst [vmem:[#allocation15 + $0x20] sm:$0xff] %v12841_v29  ;;  %v14473_v30 = vpack.c.bf16 %v9063_v25, %v9047_v0  ;;  %v12849_v52 = vpack.c.bf16 %v9063_v25, %v9062_v35  ;;  %v12885_v63 = vadd.f32 %v7757_v1, %v14412_v55  ;;  %v8393_v46 = vpop.f32.mrb[28].mxu0  ;;  %v7759_v26 = vpop.f32.mrb[29].mxu1  ;;  %v12391_v8 = vcombine.low %v14442_v60, %v14444_v22 }
 0x432   :  { %14685 = vst [vmem:[#allocation28_spill] sm:$0xff] %v14463_v7  ;;  %9303 = vst [vmem:[#allocation15 + $0x48] sm:$0xff] %v12846_v33  ;;  %8150 = vmatpush1.bf16.msra.mxu1 %v12375_v41  ;;  %v12909_v50 = vadd.f32 %v8393_v46, %v14415_v24  ;;  %v12886_v2 = vadd.f32 %v7759_v26, %v14418_v36  ;;  %v8395_v49 = vpop.f32.mrb[29].mxu0  ;;  %v12397_v29 = vcombine.low %v14449_v32, %v14451_v53  ;;  %v7761_v0 = vpop.f32.mrb[30].mxu1 }
 0x433   :  { %v12408_v35 = vcombine.high %v14459_v47, %v14461_v61  ;;  %9306 = vst [vmem:[#allocation15 + $0x60] sm:$0xff] %v12849_v52  ;;  %8786 = vmatpush1.bf16.msra.mxu0 %v12381_v45  ;;  %v9072_v25 = vmax.f32 %v12885_v63, 0.0  ;;  %8151 = vmatprep.subr.bf16.mxu1 %v12392_v31  ;;  %v12910_v60 = vadd.f32 %v8395_v49, %v14421_v56  ;;  %v8397_v41 = vpop.f32.mrb[30].mxu0  ;;  %v7763_v33 = vpop.f32.mrb[31].mxu1  ;;  %v2029_v45 = vld [vmem:[#allocation8 + $0x1c98] sm:$0xff] }
 0x434   :  { %v12887_v22 = vadd.f32 %v7761_v0, %v14412_v55  ;;  %v12414_v1 = vcombine.high %v14469_v4, %v14471_v12  ;;  %v9078_v46 = vmax.f32 %v12909_v50, 0.0  ;;  %v9073_v26 = vmax.f32 %v12886_v2, 0.0  ;;  %8787 = vmatprep.subr.bf16.mxu0 %v12398_v57  ;;  %v8399_v52 = vpop.f32.mrb[31].mxu0  ;;  %v2037_v63 = vld [vmem:[#allocation8 + $0x1cd8] sm:$0xff]  ;;  %v2032_v0 = vld [vmem:[#allocation8 + $0x1cb0] sm:$0xff] }
 0x435   :  { %v12911_v32 = vadd.f32 %v8397_v41, %v14415_v24  ;;  %v12888_v53 = vadd.f32 %v7763_v33, %v14418_v36  ;;  %v9079_v31 = vmax.f32 %v12910_v60, 0.0  ;;  %v12912_v49 = vadd.f32 %v8399_v52, %v14421_v56  ;;  %v2045_v41 = vld [vmem:[#allocation8 + $0x1d18] sm:$0xff] }
 0x436   :  { %v9088_v42 = vmax.f32 %v12887_v22, 0.0  ;;  %v12407_v55 = vcombine.low %v14459_v47, %v14461_v61  ;;  %v12854_v7 = vpack.c.bf16 %v9073_v26, %v9072_v25  ;;  %8152 = vmatpush1.bf16.msra.mxu1 %v12391_v8  ;;  %v12413_v24 = vcombine.low %v14469_v4, %v14471_v12  ;;  %v2053_v33 = vld [vmem:[#allocation8 + $0x1d58] sm:$0xff]  ;;  %v2048_v12 = vld [vmem:[#allocation8 + $0x1d30] sm:$0xff] }
 0x437   :  { %v9094_v50 = vmax.f32 %v12911_v32, 0.0  ;;  %v9089_v57 = vmax.f32 %v12888_v53, 0.0  ;;  %v12857_v36 = vpack.c.bf16 %v9079_v31, %v9078_v46  ;;  %8788 = vmatpush1.bf16.msra.mxu0 %v12397_v29  ;;  %v9095_v60 = vmax.f32 %v12912_v49, 0.0  ;;  %8153 = vmatprep.subr.bf16.mxu1 %v12408_v35  ;;  %v2072_v53 = vld [vmem:[#allocation8 + $0x1df0] sm:$0xff] }
 0x438   :  { %v14495_v2 = vpack.c.bf16 %v9088_v42, %v9072_v25  ;;  %v12424_v22 = vcombine.high %v2029_v45, %v2037_v63  ;;  %9311 = vst [vmem:[#allocation15 + $0x88] sm:$0xff] %v12854_v7  ;;  %8789 = vmatprep.subr.bf16.mxu0 %v12414_v1  ;;  %v12430_v8 = vcombine.high %v2032_v0, %v2040_v37  ;;  %v2056_v25 = vld [vmem:[#allocation8 + $0x1d70] sm:$0xff]  ;;  %v2061_v1 = vld [vmem:[#allocation8 + $0x1d98] sm:$0xff] }
 0x439   :  { %v14497_v56 = vpack.c.bf16 %v9094_v50, %v9078_v46  ;;  %v14499_v47 = vpack.c.bf16 %v9089_v57, %v9073_v26  ;;  %v12862_v61 = vpack.c.bf16 %v9089_v57, %v9088_v42  ;;  %9314 = vst [vmem:[#allocation15 + $0xa0] sm:$0xff] %v12857_v36  ;;  %v14501_v32 = vpack.c.bf16 %v9095_v60, %v9079_v31  ;;  %v2069_v46 = vld [vmem:[#allocation8 + $0x1dd8] sm:$0xff]  ;;  %v2064_v26 = vld [vmem:[#allocation8 + $0x1db0] sm:$0xff] }
 0x43a   :  { %v12865_v4 = vpack.c.bf16 %v9095_v60, %v9094_v50  ;;  %8154 = vmatpush1.bf16.msra.mxu1 %v12407_v55  ;;  %v12423_v29 = vcombine.low %v2029_v45, %v2037_v63  ;;  %v12429_v7 = vcombine.low %v2032_v0, %v2040_v37  ;;  %v12440_v35 = vcombine.high %v2045_v41, %v2053_v33  ;;  %v2077_v45 = vld [vmem:[#allocation8 + $0x1e18] sm:$0xff]  ;;  %v2080_v50 = vld [vmem:[#allocation8 + $0x1e30] sm:$0xff] }
 0x43b   :  { %9319 = vst [vmem:[#allocation15 + $0xc8] sm:$0xff] %v12862_v61  ;;  %8790 = vmatpush1.bf16.msra.mxu0 %v12413_v24  ;;  %8155 = vmatprep.subr.bf16.mxu1 %v12424_v22  ;;  %v12446_v42 = vcombine.high %v2048_v12, %v2056_v25  ;;  %v12439_v52 = vcombine.low %v2045_v41, %v2053_v33  ;;  %v2085_v63 = vld [vmem:[#allocation8 + $0x1e58] sm:$0xff]  ;;  %v2088_v57 = vld [vmem:[#allocation8 + $0x1e70] sm:$0xff] }
 0x43c   :  { %9322 = vst [vmem:[#allocation15 + $0xe0] sm:$0xff] %v12865_v4  ;;  %8791 = vmatprep.subr.bf16.mxu0 %v12430_v8  ;;  %v12445_v31 = vcombine.low %v2048_v12, %v2056_v25  ;;  %v12456_v49 = vcombine.high %v2061_v1, %v2069_v46  ;;  %v12462_v55 = vcombine.high %v2064_v26, %v2072_v53  ;;  %v2093_v60 = vld [vmem:[#allocation8 + $0x1e98] sm:$0xff]  ;;  %v2096_v61 = vld [vmem:[#allocation8 + $0x1eb0] sm:$0xff] }
 0x43d   :  { %v12455_v37 = vcombine.low %v2061_v1, %v2069_v46  ;;  %v12461_v0 = vcombine.low %v2064_v26, %v2072_v53  ;;  %v12472_v24 = vcombine.high %v2077_v45, %v2085_v63  ;;  %v12478_v36 = vcombine.high %v2080_v50, %v2088_v57  ;;  %v2101_v22 = vld [vmem:[#allocation8 + $0x1ed8] sm:$0xff]  ;;  %v2104_v8 = vld [vmem:[#allocation8 + $0x1ef0] sm:$0xff] }
 0x43e   :  { %8156 = vmatpush1.bf16.msra.mxu1 %v12423_v29  ;;  %v12471_v41 = vcombine.low %v2077_v45, %v2085_v63  ;;  %v12477_v33 = vcombine.low %v2080_v50, %v2088_v57  ;;  %v12488_v4 = vcombine.high %v2093_v60, %v2101_v22  ;;  %v12494_v12 = vcombine.high %v2096_v61, %v2104_v8  ;;  %v2109_v25 = vld [vmem:[#allocation8 + $0x1f18] sm:$0xff]  ;;  %v1119_v57 = vld [vmem:[#allocation8 + $0x28] sm:$0xff] }
 0x43f   :  { %8792 = vmatpush1.bf16.msra.mxu0 %v12429_v7  ;;  %8157 = vmatprep.subr.bf16.mxu1 %v12440_v35  ;;  %v2117_v29 = vld [vmem:[#allocation8 + $0x1f58] sm:$0xff]  ;;  %v2112_v7 = vld [vmem:[#allocation8 + $0x1f30] sm:$0xff]  ;;  %v12493_v1 = vcombine.low %v2096_v61, %v2104_v8  ;;  %v1143_v61 = vld [vmem:[#allocation8 + $0xe8] sm:$0xff] }
 0x440   :  { %8793 = vmatprep.subr.bf16.mxu0 %v12446_v42  ;;  %v2120_v35 = vld [vmem:[#allocation8 + $0x1f70] sm:$0xff]  ;;  %v12487_v42 = vcombine.low %v2093_v60, %v2101_v22  ;;  %v12504_v46 = vcombine.high %v2109_v25, %v2117_v29  ;;  %v2125_v53 = vld [vmem:[#allocation8 + $0x1f98] sm:$0xff]  ;;  %v1135_v22 = vld [vmem:[#allocation8 + $0xa8] sm:$0xff] }
 0x441   :  { %v12510_v26 = vcombine.high %v2112_v7, %v2120_v35  ;;  %v12509_v45 = vcombine.low %v2112_v7, %v2120_v35  ;;  %v13213_v60 = vld [vmem:[#allocation11 + $0x4] ss:$8 sps:$4 sm:$0xff]   ;;  %v13214_v7 = vld [vmem:[#allocation11 + $0x10] ss:$8 sps:$4 sm:$0xff]  }
 0x442   :  { %8158 = vmatpush1.bf16.msra.mxu1 %v12439_v52  ;;  %v2133_v52 = vld [vmem:[#allocation8 + $0x1fd8] sm:$0xff] }
 0x443   :  { %8794 = vmatpush1.bf16.msra.mxu0 %v12445_v31  ;;  %8159 = vmatprep.subr.bf16.mxu1 %v12456_v49  ;;  %v2128_v31 = vld [vmem:[#allocation8 + $0x1fb0] sm:$0xff]  ;;  %v12520_v63 = vcombine.high %v2125_v53, %v2133_v52 }
 0x444   :  { %8795 = vmatprep.subr.bf16.mxu0 %v12462_v55  ;;  %v2136_v49 = vld [vmem:[#allocation8 + $0x1ff0] sm:$0xff]  ;;  %v12503_v55 = vcombine.low %v2109_v25, %v2117_v29  ;;  %v1159_v25 = vld [vmem:[#allocation8 + $0x168] sm:$0xff]  ;;  %v11531_v29 = vcombine.low %v1135_v22, %v1143_v61 }
 0x445   :  { %v12526_v50 = vcombine.high %v2128_v31, %v2136_v49 }
 0x446   :  { %8160 = vmatpush1.bf16.msra.mxu1 %v12455_v37  ;;  %v1127_v37 = vld [vmem:[#allocation8 + $0x68] sm:$0xff] }
 0x447   :  { %8796 = vmatpush1.bf16.msra.mxu0 %v12461_v0  ;;  %8161 = vmatprep.subr.bf16.mxu1 %v12472_v24  ;;  %v12519_v0 = vcombine.low %v2125_v53, %v2133_v52  ;;  %v12525_v24 = vcombine.low %v2128_v31, %v2136_v49  ;;  %v11515_v8 = vcombine.low %v1119_v57, %v1127_v37  ;;  %v13217_v53 = vld [vmem:[#allocation11 + $0x20] ss:$8 sps:$4 sm:$0xff]   ;;  %v13222_v31 = vld [vmem:[#allocation11 + $0x34] ss:$8 sps:$4 sm:$0xff]  }
 0x448   :  { %8797 = vmatprep.subr.bf16.mxu0 %v12478_v36  ;;  %v11516_v36 = vcombine.high %v1119_v57, %v1127_v37  ;;  %v1183_v49 = vld [vmem:[#allocation8 + $0x228] sm:$0xff]  ;;  %v13225_v57 = vld [vmem:[#allocation11 + $0x44] ss:$8 sps:$4 sm:$0xff]  }
 0x449   :  { %v1199_v37 = vld [vmem:[#allocation8 + $0x2a8] sm:$0xff] }
 0x44a   :  { %8162 = vmatpush1.bf16.msra.mxu1 %v12471_v41  ;;  %v13211_v41 = vld [vmem:[#allocation11] ss:$8 sps:$4 sm:$0xff]  }
 0x44b   :  { %8798 = vmatpush1.bf16.msra.mxu0 %v12477_v33  ;;  %8163 = vmatprep.subr.bf16.mxu1 %v12488_v4  ;;  %v11532_v33 = vcombine.high %v1135_v22, %v1143_v61  ;;  %v13216_v4 = vld [vmem:[#allocation11 + $0x14] ss:$8 sps:$4 sm:$0xff]  }
 0x44c   :  { %8799 = vmatprep.subr.bf16.mxu0 %v12494_v12  ;;  %v1151_v12 = vld [vmem:[#allocation8 + $0x128] sm:$0xff] }
 0x44d   :  { %v11548_v35 = vcombine.high %v1151_v12, %v1159_v25  ;;  %v13228_v22 = vld [vmem:[#allocation11 + $0x54] ss:$8 sps:$4 sm:$0xff]  }
 0x44e   :  { %8164 = vmatpush1.bf16.msra.mxu1 %v12487_v42  ;;  %v13219_v42 = vld [vmem:[#allocation11 + $0x24] ss:$8 sps:$4 sm:$0xff]   ;;  %v1215_v61 = vld [vmem:[#allocation8 + $0x328] sm:$0xff] }
 0x44f   :  { %8800 = vmatpush1.bf16.msra.mxu0 %v12493_v1  ;;  %8165 = vmatprep.subr.bf16.mxu1 %v12504_v46  ;;  %v1167_v1 = vld [vmem:[#allocation8 + $0x1a8] sm:$0xff] }
 0x450   :  { %8801 = vmatprep.subr.bf16.mxu0 %v12510_v26  ;;  %v1175_v46 = vld [vmem:[#allocation8 + $0x1e8] sm:$0xff]  ;;  %v11547_v26 = vcombine.low %v1151_v12, %v1159_v25 }
 0x451   :  { %v11564_v52 = vcombine.high %v1167_v1, %v1175_v46  ;;  %v1231_v12 = vld [vmem:[#allocation8 + $0x3a8] sm:$0xff] }
 0x452   :  { %8166 = vmatpush1.bf16.msra.mxu1 %v12503_v55  ;;  %v1191_v55 = vld [vmem:[#allocation8 + $0x268] sm:$0xff] }
 0x453   :  { %8802 = vmatpush1.bf16.msra.mxu0 %v12509_v45  ;;  %8167 = vmatprep.subr.bf16.mxu1 %v12520_v63  ;;  %v11563_v45 = vcombine.low %v1167_v1, %v1175_v46  ;;  %v13220_v63 = vld [vmem:[#allocation11 + $0x30] ss:$8 sps:$4 sm:$0xff]  }
 0x454   :  { %8803 = vmatprep.subr.bf16.mxu0 %v12526_v50  ;;  %v11580_v50 = vcombine.high %v1183_v49, %v1191_v55  ;;  %v1239_v25 = vld [vmem:[#allocation8 + $0x3e8] sm:$0xff] }
 0x455   :  { %v1247_v1 = vld [vmem:[#allocation8 + $0x428] sm:$0xff] }
 0x456   :  { %8168 = vmatpush1.bf16.msra.mxu1 %v12519_v0  ;;  %v1207_v0 = vld [vmem:[#allocation8 + $0x2e8] sm:$0xff] }
 0x457   :  { %8804 = vmatpush1.bf16.msra.mxu0 %v12525_v24  ;;  %8402 = vmatprep.subr.bf16.mxu1 %v11516_v36  ;;  %v11579_v24 = vcombine.low %v1183_v49, %v1191_v55  ;;  %v13223_v36 = vld [vmem:[#allocation11 + $0x40] ss:$8 sps:$4 sm:$0xff]   ;;  %v1255_v46 = vld [vmem:[#allocation8 + $0x468] sm:$0xff] }
 0x458   :  { %10874 = vmatprep.subr.bf16.mxu0 %v13213_v60  ;;  %v11596_v60 = vcombine.high %v1199_v37, %v1207_v0  ;;  %v1263_v49 = vld [vmem:[#allocation8 + $0x4a8] sm:$0xff] }
 0x459   :  { %8170 = vmatmul.mubr.bf16.vlgmr.msra.gmra.mrb[32].mxu1 %v14227_v59  ;;  %v1271_v55 = vld [vmem:[#allocation8 + $0x4e8] sm:$0xff] }
 0x45a   :  { %8806 = vmatmul.mubr.bf16.vlgmr.msra.gmra.mrb[32].mxu0 %v14227_v59  ;;  %8179 = vmatprep.mubr.bf16.mxu1 %v14241_v17 }
 0x45b   :  { %8403 = vmatpush1.bf16.msra.mxu1 %v11515_v8  ;;  %8815 = vmatprep.mubr.bf16.mxu0 %v14241_v17  ;;  %v1223_v8 = vld [vmem:[#allocation8 + $0x368] sm:$0xff] }
 0x45c   :  { %10875 = vmatpush1.bf16.msra.mxu0 %v13211_v41  ;;  %8404 = vmatprep.subr.bf16.mxu1 %v11532_v33  ;;  %v13226_v41 = vld [vmem:[#allocation11 + $0x50] ss:$8 sps:$4 sm:$0xff]   ;;  %v11612_v33 = vcombine.high %v1215_v61, %v1223_v8 }
 0x45d   :  { %10876 = vmatprep.subr.bf16.mxu0 %v13216_v4  ;;  %v13231_v4 = vld [vmem:[#allocation11 + $0x64] ss:$8 sps:$4 sm:$0xff]  }
 0x45f   :  { %8405 = vmatpush1.bf16.msra.mxu1 %v11531_v29  ;;  %v11611_v29 = vcombine.low %v1215_v61, %v1223_v8  ;;  %v1295_v61 = vld [vmem:[#allocation8 + $0x5a8] sm:$0xff] }
 0x460   :  { %10877 = vmatpush1.bf16.msra.mxu0 %v13214_v7  ;;  %8406 = vmatprep.subr.bf16.mxu1 %v11548_v35  ;;  %v13229_v7 = vld [vmem:[#allocation11 + $0x60] ss:$8 sps:$4 sm:$0xff]   ;;  %v11628_v35 = vcombine.high %v1231_v12, %v1239_v25  ;;  %v1303_v8 = vld [vmem:[#allocation8 + $0x5e8] sm:$0xff] }
 0x461   :  { %8180 = vmatmul.mubr.bf16.gmra.mrb[36].mxu1 %v14239_v11  ;;  %10878 = vmatprep.subr.bf16.mxu0 %v13219_v42  ;;  %v13234_v42 = vld [vmem:[#allocation11 + $0x74] ss:$8 sps:$4 sm:$0xff]  }
 0x462   :  { %8816 = vmatmul.mubr.bf16.gmra.mrb[36].mxu0 %v14239_v11  ;;  %8434 = vmatprep.mubr.bf16.mxu1 %v14078_v43 }
 0x463   :  { %8407 = vmatpush1.bf16.msra.mxu1 %v11547_v26  ;;  %10906 = vmatprep.mubr.bf16.mxu0 %v14351_v20  ;;  %v11595_v20 = vcombine.low %v1199_v37, %v1207_v0  ;;  %v11627_v26 = vcombine.low %v1231_v12, %v1239_v25  ;;  %v1279_v37 = vld [vmem:[#allocation8 + $0x528] sm:$0xff] }
 0x464   :  { %10879 = vmatpush1.bf16.msra.mxu0 %v13217_v53  ;;  %8408 = vmatprep.subr.bf16.mxu1 %v11564_v52  ;;  %v13232_v53 = vld [vmem:[#allocation11 + $0x70] ss:$8 sps:$4 sm:$0xff]   ;;  %v11644_v52 = vcombine.high %v1247_v1, %v1255_v46 }
 0x465   :  { %10880 = vmatprep.subr.bf16.mxu0 %v13222_v31  ;;  %v13237_v31 = vld [vmem:[#allocation11 + $0x84] ss:$8 sps:$4 sm:$0xff]   ;;  %v1287_v0 = vld [vmem:[#allocation8 + $0x568] sm:$0xff] }
 0x466   :  { %v1311_v12 = vld [vmem:[#allocation8 + $0x628] sm:$0xff] }
 0x467   :  { %8409 = vmatpush1.bf16.msra.mxu1 %v11563_v45  ;;  %v11643_v45 = vcombine.low %v1247_v1, %v1255_v46  ;;  %v1319_v25 = vld [vmem:[#allocation8 + $0x668] sm:$0xff] }
 0x468   :  { %10881 = vmatpush1.bf16.msra.mxu0 %v13220_v63  ;;  %8410 = vmatprep.subr.bf16.mxu1 %v11580_v50  ;;  %v13235_v63 = vld [vmem:[#allocation11 + $0x80] ss:$8 sps:$4 sm:$0xff]   ;;  %v11660_v50 = vcombine.high %v1263_v49, %v1271_v55  ;;  %v1327_v1 = vld [vmem:[#allocation8 + $0x6a8] sm:$0xff] }
 0x469   :  { %10882 = vmatprep.subr.bf16.mxu0 %v13225_v57  ;;  %v13240_v57 = vld [vmem:[#allocation11 + $0x94] ss:$8 sps:$4 sm:$0xff]  }
 0x46a   :  { %v1335_v46 = vld [vmem:[#allocation8 + $0x6e8] sm:$0xff] }
 0x46b   :  { %8411 = vmatpush1.bf16.msra.mxu1 %v11579_v24  ;;  %v11659_v24 = vcombine.low %v1263_v49, %v1271_v55  ;;  %v1343_v49 = vld [vmem:[#allocation8 + $0x728] sm:$0xff] }
 0x46c   :  { %10883 = vmatpush1.bf16.msra.mxu0 %v13223_v36  ;;  %8412 = vmatprep.subr.bf16.mxu1 %v11596_v60  ;;  %v13238_v36 = vld [vmem:[#allocation11 + $0x90] ss:$8 sps:$4 sm:$0xff]   ;;  %v11676_v60 = vcombine.high %v1279_v37, %v1287_v0 }
 0x46d   :  { %10884 = vmatprep.subr.bf16.mxu0 %v13228_v22  ;;  %v13243_v22 = vld [vmem:[#allocation11 + $0xa4] ss:$8 sps:$4 sm:$0xff]   ;;  %v1351_v55 = vld [vmem:[#allocation8 + $0x768] sm:$0xff] }
 0x46f   :  { %8413 = vmatpush1.bf16.msra.mxu1 %v11595_v20  ;;  %v11675_v20 = vcombine.low %v1279_v37, %v1287_v0  ;;  %v1359_v37 = vld [vmem:[#allocation8 + $0x7a8] sm:$0xff] }
 0x470   :  { %10885 = vmatpush1.bf16.msra.mxu0 %v13226_v41  ;;  %8414 = vmatprep.subr.bf16.mxu1 %v11612_v33  ;;  %v13241_v41 = vld [vmem:[#allocation11 + $0xa0] ss:$8 sps:$4 sm:$0xff]   ;;  %v11692_v33 = vcombine.high %v1295_v61, %v1303_v8  ;;  %v1367_v0 = vld [vmem:[#allocation8 + $0x7e8] sm:$0xff] }
 0x471   :  { %10886 = vmatprep.subr.bf16.mxu0 %v13231_v4  ;;  %v13246_v4 = vld [vmem:[#allocation11 + $0xb4] ss:$8 sps:$4 sm:$0xff]  }
 0x473   :  { %8415 = vmatpush1.bf16.msra.mxu1 %v11611_v29  ;;  %v11691_v29 = vcombine.low %v1295_v61, %v1303_v8  ;;  %v1375_v61 = vld [vmem:[#allocation8 + $0x828] sm:$0xff] }
 0x474   :  { %10887 = vmatpush1.bf16.msra.mxu0 %v13229_v7  ;;  %8416 = vmatprep.subr.bf16.mxu1 %v11628_v35  ;;  %v13244_v7 = vld [vmem:[#allocation11 + $0xb0] ss:$8 sps:$4 sm:$0xff]   ;;  %v11708_v35 = vcombine.high %v1311_v12, %v1319_v25 }
 0x475   :  { %10888 = vmatprep.subr.bf16.mxu0 %v13234_v42  ;;  %v13249_v42 = vld [vmem:[#allocation11 + $0xc4] ss:$8 sps:$4 sm:$0xff]   ;;  %v1383_v8 = vld [vmem:[#allocation8 + $0x868] sm:$0xff] }
 0x477   :  { %8417 = vmatpush1.bf16.msra.mxu1 %v11627_v26  ;;  %v11707_v26 = vcombine.low %v1311_v12, %v1319_v25  ;;  %v1391_v12 = vld [vmem:[#allocation8 + $0x8a8] sm:$0xff] }
 0x478   :  { %10889 = vmatpush1.bf16.msra.mxu0 %v13232_v53  ;;  %8418 = vmatprep.subr.bf16.mxu1 %v11644_v52  ;;  %v13247_v53 = vld [vmem:[#allocation11 + $0xc0] ss:$8 sps:$4 sm:$0xff]   ;;  %v11724_v52 = vcombine.high %v1327_v1, %v1335_v46  ;;  %v1399_v25 = vld [vmem:[#allocation8 + $0x8e8] sm:$0xff] }
 0x479   :  { %10890 = vmatprep.subr.bf16.mxu0 %v13237_v31  ;;  %v13252_v31 = vld [vmem:[#allocation11 + $0xd4] ss:$8 sps:$4 sm:$0xff]  }
 0x47b   :  { %8419 = vmatpush1.bf16.msra.mxu1 %v11643_v45  ;;  %v11723_v45 = vcombine.low %v1327_v1, %v1335_v46  ;;  %v1407_v1 = vld [vmem:[#allocation8 + $0x928] sm:$0xff] }
 0x47c   :  { %10891 = vmatpush1.bf16.msra.mxu0 %v13235_v63  ;;  %8420 = vmatprep.subr.bf16.mxu1 %v11660_v50  ;;  %v13250_v63 = vld [vmem:[#allocation11 + $0xd0] ss:$8 sps:$4 sm:$0xff]   ;;  %v11740_v50 = vcombine.high %v1343_v49, %v1351_v55 }
 0x47d   :  { %10892 = vmatprep.subr.bf16.mxu0 %v13240_v57  ;;  %v13255_v57 = vld [vmem:[#allocation11 + $0xe4] ss:$8 sps:$4 sm:$0xff]   ;;  %v1415_v46 = vld [vmem:[#allocation8 + $0x968] sm:$0xff] }
 0x47f   :  { %8421 = vmatpush1.bf16.msra.mxu1 %v11659_v24  ;;  %v11739_v24 = vcombine.low %v1343_v49, %v1351_v55  ;;  %v1423_v49 = vld [vmem:[#allocation8 + $0x9a8] sm:$0xff] }
 0x480   :  { %10893 = vmatpush1.bf16.msra.mxu0 %v13238_v36  ;;  %8422 = vmatprep.subr.bf16.mxu1 %v11676_v60  ;;  %v13253_v36 = vld [vmem:[#allocation11 + $0xe0] ss:$8 sps:$4 sm:$0xff]   ;;  %v11756_v60 = vcombine.high %v1359_v37, %v1367_v0  ;;  %v1431_v55 = vld [vmem:[#allocation8 + $0x9e8] sm:$0xff] }
 0x481   :  { %10894 = vmatprep.subr.bf16.mxu0 %v13243_v22  ;;  %v13258_v22 = vld [vmem:[#allocation11 + $0xf4] ss:$8 sps:$4 sm:$0xff]  }
 0x483   :  { %8423 = vmatpush1.bf16.msra.mxu1 %v11675_v20  ;;  %v11755_v20 = vcombine.low %v1359_v37, %v1367_v0  ;;  %v11819_v37 = vcombine.low %v1423_v49, %v1431_v55  ;;  %v13268_v0 = vld [vmem:[#allocation11 + $0x130] ss:$8 sps:$4 sm:$0xff]  }
 0x484   :  { %10895 = vmatpush1.bf16.msra.mxu0 %v13241_v41  ;;  %8424 = vmatprep.subr.bf16.mxu1 %v11692_v33  ;;  %v13256_v41 = vld [vmem:[#allocation11 + $0xf0] ss:$8 sps:$4 sm:$0xff]   ;;  %v11772_v33 = vcombine.high %v1375_v61, %v1383_v8 }
 0x485   :  { %10896 = vmatprep.subr.bf16.mxu0 %v13246_v4  ;;  %v13261_v4 = vld [vmem:[#allocation11 + $0x104] ss:$8 sps:$4 sm:$0xff]  }
 0x487   :  { %8425 = vmatpush1.bf16.msra.mxu1 %v11691_v29  ;;  %v11771_v29 = vcombine.low %v1375_v61, %v1383_v8  ;;  %v13271_v8 = vld [vmem:[#allocation11 + $0x140] ss:$8 sps:$4 sm:$0xff]  }
 0x488   :  { %10897 = vmatpush1.bf16.msra.mxu0 %v13244_v7  ;;  %8426 = vmatprep.subr.bf16.mxu1 %v11708_v35  ;;  %v13259_v7 = vld [vmem:[#allocation11 + $0x100] ss:$8 sps:$4 sm:$0xff]   ;;  %v11788_v35 = vcombine.high %v1391_v12, %v1399_v25 }
 0x489   :  { %10898 = vmatprep.subr.bf16.mxu0 %v13249_v42  ;;  %v13264_v42 = vld [vmem:[#allocation11 + $0x114] ss:$8 sps:$4 sm:$0xff]  }
 0x48b   :  { %8427 = vmatpush1.bf16.msra.mxu1 %v11707_v26  ;;  %v11787_v26 = vcombine.low %v1391_v12, %v1399_v25  ;;  %v13279_v25 = vld [vmem:[#allocation11 + $0x164] ss:$8 sps:$4 sm:$0xff]  }
 0x48c   :  { %10899 = vmatpush1.bf16.msra.mxu0 %v13247_v53  ;;  %8428 = vmatprep.subr.bf16.mxu1 %v11724_v52  ;;  %v13262_v53 = vld [vmem:[#allocation11 + $0x110] ss:$8 sps:$4 sm:$0xff]   ;;  %v11804_v52 = vcombine.high %v1407_v1, %v1415_v46 }
 0x48d   :  { %10900 = vmatprep.subr.bf16.mxu0 %v13252_v31  ;;  %v13267_v31 = vld [vmem:[#allocation11 + $0x124] ss:$8 sps:$4 sm:$0xff]  }
 0x48f   :  { %8429 = vmatpush1.bf16.msra.mxu1 %v11723_v45  ;;  %v11803_v45 = vcombine.low %v1407_v1, %v1415_v46  ;;  %v13282_v46 = vld [vmem:[#allocation11 + $0x174] ss:$8 sps:$4 sm:$0xff]  }
 0x490   :  { %10901 = vmatpush1.bf16.msra.mxu0 %v13250_v63  ;;  %8430 = vmatprep.subr.bf16.mxu1 %v11740_v50  ;;  %v13265_v63 = vld [vmem:[#allocation11 + $0x120] ss:$8 sps:$4 sm:$0xff]   ;;  %v13270_v50 = vld [vmem:[#allocation11 + $0x134] ss:$8 sps:$4 sm:$0xff]  }
 0x491   :  { %10902 = vmatprep.subr.bf16.mxu0 %v13255_v57  ;;  %v1447_v57 = vld [vmem:[#allocation8 + $0xa68] sm:$0xff] }
 0x493   :  { %8431 = vmatpush1.bf16.msra.mxu1 %v11739_v24 }
 0x494   :  { %10903 = vmatpush1.bf16.msra.mxu0 %v13253_v36  ;;  %8432 = vmatprep.subr.bf16.mxu1 %v11756_v60  ;;  %v13273_v36 = vld [vmem:[#allocation11 + $0x144] ss:$8 sps:$4 sm:$0xff]   ;;  %v1455_v60 = vld [vmem:[#allocation8 + $0xaa8] sm:$0xff] }
 0x495   :  { %10904 = vmatprep.subr.bf16.mxu0 %v13258_v22  ;;  %v1463_v22 = vld [vmem:[#allocation8 + $0xae8] sm:$0xff] }
 0x497   :  { %8433 = vmatpush1.bf16.msra.mxu1 %v11755_v20  ;;  %v13276_v20 = vld [vmem:[#allocation11 + $0x154] ss:$8 sps:$4 sm:$0xff]  }
 0x498   :  { %10905 = vmatpush1.bf16.msra.mxu0 %v13256_v41  ;;  %8455 = vmatprep.subr.bf16.mxu1 %v11772_v33  ;;  %v1471_v41 = vld [vmem:[#allocation8 + $0xb28] sm:$0xff] }
 0x499   :  { %10927 = vmatprep.subr.bf16.mxu0 %v13261_v4  ;;  %v1479_v33 = vld [vmem:[#allocation8 + $0xb68] sm:$0xff] }
 0x49a   :  { %8435 = vmatmul.mubr.bf16.vlgmr.msra.gmra.mrb[40].mxu1 %v14068_v58  ;;  %v13274_v4 = vld [vmem:[#allocation11 + $0x150] ss:$8 sps:$4 sm:$0xff]   ;;  %v11868_v12 = vcombine.high %v1471_v41, %v1479_v33 }
 0x49b   :  { %10907 = vmatmul.mubr.bf16.vlgmr.msra.gmra.mrb[40].mxu0 %v14339_v15  ;;  %8444 = vmatprep.mubr.bf16.mxu1 %v14118_v44  ;;  %v11820_v15 = vcombine.high %v1423_v49, %v1431_v55  ;;  %v13285_v55 = vld [vmem:[#allocation11 + $0x184] ss:$8 sps:$4 sm:$0xff]  }
 0x49c   :  { %8456 = vmatpush1.bf16.msra.mxu1 %v11771_v29  ;;  %10916 = vmatprep.mubr.bf16.mxu0 %v14375_v16  ;;  %v1439_v16 = vld [vmem:[#allocation8 + $0xa28] sm:$0xff] }
 0x49d   :  { %10928 = vmatpush1.bf16.msra.mxu0 %v13259_v7  ;;  %8457 = vmatprep.subr.bf16.mxu1 %v11788_v35  ;;  %v11836_v24 = vcombine.high %v1439_v16, %v1447_v57  ;;  %v11835_v61 = vcombine.low %v1439_v16, %v1447_v57  ;;  %v1487_v29 = vld [vmem:[#allocation8 + $0xba8] sm:$0xff]  ;;  %v11867_v35 = vcombine.low %v1471_v41, %v1479_v33 }
 0x49e   :  { %10929 = vmatprep.subr.bf16.mxu0 %v13264_v42  ;;  %v1495_v7 = vld [vmem:[#allocation8 + $0xbe8] sm:$0xff]  ;;  %v13277_v42 = vld [vmem:[#allocation11 + $0x160] ss:$8 sps:$4 sm:$0xff]  }
 0x49f   :  { %v11884_v1 = vcombine.high %v1487_v29, %v1495_v7  ;;  %v13288_v57 = vld [vmem:[#allocation11 + $0x194] ss:$8 sps:$4 sm:$0xff]  }
 0x4a0   :  { %8458 = vmatpush1.bf16.msra.mxu1 %v11787_v26  ;;  %v1503_v26 = vld [vmem:[#allocation8 + $0xc28] sm:$0xff] }
 0x4a1   :  { %10930 = vmatpush1.bf16.msra.mxu0 %v13262_v53  ;;  %8459 = vmatprep.subr.bf16.mxu1 %v11804_v52  ;;  %v1511_v53 = vld [vmem:[#allocation8 + $0xc68] sm:$0xff]  ;;  %v11883_v52 = vcombine.low %v1487_v29, %v1495_v7  ;;  %v13297_v7 = vld [vmem:[#allocation11 + $0x1c4] ss:$8 sps:$4 sm:$0xff]  }
 0x4a2   :  { %8445 = vmatmul.mubr.bf16.gmra.mrb[44].mxu1 %v14116_v38  ;;  %10931 = vmatprep.subr.bf16.mxu0 %v13267_v31  ;;  %v13280_v31 = vld [vmem:[#allocation11 + $0x170] ss:$8 sps:$4 sm:$0xff]   ;;  %v11900_v49 = vcombine.high %v1503_v26, %v1511_v53  ;;  %v13294_v33 = vld [vmem:[#allocation11 + $0x1b4] ss:$8 sps:$4 sm:$0xff]  }
 0x4a3   :  { %10917 = vmatmul.mubr.bf16.gmra.mrb[44].mxu0 %v14371_v51  ;;  %8487 = vmatprep.mubr.bf16.mxu1 %v14122_v48  ;;  %v11852_v51 = vcombine.high %v1455_v60, %v1463_v22 }
 0x4a4   :  { %8460 = vmatpush1.bf16.msra.mxu1 %v11803_v45  ;;  %10959 = vmatprep.mubr.bf16.mxu0 %v14465_v40  ;;  %v11851_v40 = vcombine.low %v1455_v60, %v1463_v22  ;;  %v1519_v45 = vld [vmem:[#allocation8 + $0xca8] sm:$0xff]  ;;  %v13291_v22 = vld [vmem:[#allocation11 + $0x1a4] ss:$8 sps:$4 sm:$0xff]  }
 0x4a5   :  { %10932 = vmatpush1.bf16.msra.mxu0 %v13265_v63  ;;  %8461 = vmatprep.subr.bf16.mxu1 %v11820_v15  ;;  %v1527_v63 = vld [vmem:[#allocation8 + $0xce8] sm:$0xff]  ;;  %v11899_v15 = vcombine.low %v1503_v26, %v1511_v53 }
 0x4a6   :  { %10933 = vmatprep.subr.bf16.mxu0 %v13270_v50  ;;  %v13283_v50 = vld [vmem:[#allocation11 + $0x180] ss:$8 sps:$4 sm:$0xff]   ;;  %v11916_v16 = vcombine.high %v1519_v45, %v1527_v63  ;;  %v13300_v53 = vld [vmem:[#allocation11 + $0x1d4] ss:$8 sps:$4 sm:$0xff]  }
 0x4a8   :  { %8462 = vmatpush1.bf16.msra.mxu1 %v11819_v37  ;;  %v1535_v37 = vld [vmem:[#allocation8 + $0xd28] sm:$0xff] }
 0x4a9   :  { %10934 = vmatpush1.bf16.msra.mxu0 %v13268_v0  ;;  %8463 = vmatprep.subr.bf16.mxu1 %v11836_v24  ;;  %v1543_v0 = vld [vmem:[#allocation8 + $0xd68] sm:$0xff]  ;;  %v11915_v24 = vcombine.low %v1519_v45, %v1527_v63  ;;  %v13303_v63 = vld [vmem:[#allocation11 + $0x1e4] ss:$8 sps:$4 sm:$0xff]  }
 0x4aa   :  { %10935 = vmatprep.subr.bf16.mxu0 %v13273_v36  ;;  %v13286_v36 = vld [vmem:[#allocation11 + $0x190] ss:$8 sps:$4 sm:$0xff]   ;;  %v11932_v60 = vcombine.high %v1535_v37, %v1543_v0 }
 0x4ac   :  { %8464 = vmatpush1.bf16.msra.mxu1 %v11835_v61  ;;  %v1551_v61 = vld [vmem:[#allocation8 + $0xda8] sm:$0xff] }
 0x4ad   :  { %10936 = vmatpush1.bf16.msra.mxu0 %v13271_v8  ;;  %8465 = vmatprep.subr.bf16.mxu1 %v11852_v51  ;;  %v1559_v8 = vld [vmem:[#allocation8 + $0xde8] sm:$0xff]  ;;  %v11931_v51 = vcombine.low %v1535_v37, %v1543_v0 }
 0x4ae   :  { %10937 = vmatprep.subr.bf16.mxu0 %v13276_v20  ;;  %v13289_v20 = vld [vmem:[#allocation11 + $0x1a0] ss:$8 sps:$4 sm:$0xff]   ;;  %v11948_v41 = vcombine.high %v1551_v61, %v1559_v8  ;;  %v13306_v0 = vld [vmem:[#allocation11 + $0x1f4] ss:$8 sps:$4 sm:$0xff]  }
 0x4b0   :  { %8466 = vmatpush1.bf16.msra.mxu1 %v11851_v40  ;;  %v1567_v40 = vld [vmem:[#allocation8 + $0xe28] sm:$0xff] }
 0x4b1   :  { %10938 = vmatpush1.bf16.msra.mxu0 %v13274_v4  ;;  %8467 = vmatprep.subr.bf16.mxu1 %v11868_v12  ;;  %v1575_v4 = vld [vmem:[#allocation8 + $0xe68] sm:$0xff]  ;;  %v11947_v12 = vcombine.low %v1551_v61, %v1559_v8  ;;  %v13309_v8 = vld [vmem:[#allocation11 + $0x204] ss:$8 sps:$4 sm:$0xff]  }
 0x4b2   :  { %10939 = vmatprep.subr.bf16.mxu0 %v13279_v25  ;;  %v13292_v25 = vld [vmem:[#allocation11 + $0x1b0] ss:$8 sps:$4 sm:$0xff]   ;;  %v11964_v29 = vcombine.high %v1567_v40, %v1575_v4 }
 0x4b4   :  { %8468 = vmatpush1.bf16.msra.mxu1 %v11867_v35  ;;  %v1583_v35 = vld [vmem:[#allocation8 + $0xea8] sm:$0xff] }
 0x4b5   :  { %10940 = vmatpush1.bf16.msra.mxu0 %v13277_v42  ;;  %8469 = vmatprep.subr.bf16.mxu1 %v11884_v1  ;;  %v1591_v42 = vld [vmem:[#allocation8 + $0xee8] sm:$0xff]  ;;  %v11963_v1 = vcombine.low %v1567_v40, %v1575_v4 }
 0x4b6   :  { %10941 = vmatprep.subr.bf16.mxu0 %v13282_v46  ;;  %v13295_v46 = vld [vmem:[#allocation11 + $0x1c0] ss:$8 sps:$4 sm:$0xff]   ;;  %v11980_v26 = vcombine.high %v1583_v35, %v1591_v42  ;;  %v13312_v4 = vld [vmem:[#allocation11 + $0x214] ss:$8 sps:$4 sm:$0xff]  }
 0x4b8   :  { %8470 = vmatpush1.bf16.msra.mxu1 %v11883_v52  ;;  %v1599_v52 = vld [vmem:[#allocation8 + $0xf28] sm:$0xff] }
 0x4b9   :  { %10942 = vmatpush1.bf16.msra.mxu0 %v13280_v31  ;;  %8471 = vmatprep.subr.bf16.mxu1 %v11900_v49  ;;  %v1607_v31 = vld [vmem:[#allocation8 + $0xf68] sm:$0xff]  ;;  %v11979_v49 = vcombine.low %v1583_v35, %v1591_v42  ;;  %v13315_v42 = vld [vmem:[#allocation11 + $0x224] ss:$8 sps:$4 sm:$0xff]  }
 0x4ba   :  { %10943 = vmatprep.subr.bf16.mxu0 %v13285_v55  ;;  %v13298_v55 = vld [vmem:[#allocation11 + $0x1d0] ss:$8 sps:$4 sm:$0xff]   ;;  %v11996_v45 = vcombine.high %v1599_v52, %v1607_v31 }
 0x4bc   :  { %8472 = vmatpush1.bf16.msra.mxu1 %v11899_v15  ;;  %v1615_v15 = vld [vmem:[#allocation8 + $0xfa8] sm:$0xff] }
 0x4bd   :  { %10944 = vmatpush1.bf16.msra.mxu0 %v13283_v50  ;;  %8473 = vmatprep.subr.bf16.mxu1 %v11916_v16  ;;  %v1623_v50 = vld [vmem:[#allocation8 + $0xfe8] sm:$0xff]  ;;  %v11995_v16 = vcombine.low %v1599_v52, %v1607_v31 }
 0x4be   :  { %10945 = vmatprep.subr.bf16.mxu0 %v13288_v57  ;;  %v13301_v57 = vld [vmem:[#allocation11 + $0x1e0] ss:$8 sps:$4 sm:$0xff]   ;;  %v12012_v37 = vcombine.high %v1615_v15, %v1623_v50  ;;  %v13318_v52 = vld [vmem:[#allocation11 + $0x234] ss:$8 sps:$4 sm:$0xff]  }
 0x4bf   :  { %v1703_v31 = vld [vmem:[#allocation8 + $0x1268] sm:$0xff] }
 0x4c0   :  { %8474 = vmatpush1.bf16.msra.mxu1 %v11915_v24  ;;  %v1631_v24 = vld [vmem:[#allocation8 + $0x1028] sm:$0xff] }
 0x4c1   :  { %10946 = vmatpush1.bf16.msra.mxu0 %v13286_v36  ;;  %8475 = vmatprep.subr.bf16.mxu1 %v11932_v60  ;;  %v1639_v36 = vld [vmem:[#allocation8 + $0x1068] sm:$0xff]  ;;  %v12011_v60 = vcombine.low %v1615_v15, %v1623_v50 }
 0x4c2   :  { %10947 = vmatprep.subr.bf16.mxu0 %v13291_v22  ;;  %v13304_v22 = vld [vmem:[#allocation11 + $0x1f0] ss:$8 sps:$4 sm:$0xff]   ;;  %v12028_v61 = vcombine.high %v1631_v24, %v1639_v36 }
 0x4c3   :  { %v1711_v15 = vld [vmem:[#allocation8 + $0x12a8] sm:$0xff] }
 0x4c4   :  { %8476 = vmatpush1.bf16.msra.mxu1 %v11931_v51  ;;  %v1647_v51 = vld [vmem:[#allocation8 + $0x10a8] sm:$0xff] }
 0x4c5   :  { %10948 = vmatpush1.bf16.msra.mxu0 %v13289_v20  ;;  %8477 = vmatprep.subr.bf16.mxu1 %v11948_v41  ;;  %v1655_v20 = vld [vmem:[#allocation8 + $0x10e8] sm:$0xff]  ;;  %v12027_v41 = vcombine.low %v1631_v24, %v1639_v36 }
 0x4c6   :  { %10949 = vmatprep.subr.bf16.mxu0 %v13294_v33  ;;  %v13307_v33 = vld [vmem:[#allocation11 + $0x200] ss:$8 sps:$4 sm:$0xff]   ;;  %v12044_v40 = vcombine.high %v1647_v51, %v1655_v20  ;;  %v1719_v50 = vld [vmem:[#allocation8 + $0x12e8] sm:$0xff] }
 0x4c7   :  { %v1735_v24 = vld [vmem:[#allocation8 + $0x1368] sm:$0xff] }
 0x4c8   :  { %8478 = vmatpush1.bf16.msra.mxu1 %v11947_v12  ;;  %v1663_v12 = vld [vmem:[#allocation8 + $0x1128] sm:$0xff] }
 0x4c9   :  { %10950 = vmatpush1.bf16.msra.mxu0 %v13292_v25  ;;  %8479 = vmatprep.subr.bf16.mxu1 %v11964_v29  ;;  %v1671_v25 = vld [vmem:[#allocation8 + $0x1168] sm:$0xff]  ;;  %v12043_v29 = vcombine.low %v1647_v51, %v1655_v20  ;;  %v13325_v20 = vld [vmem:[#allocation11 + $0x260] ss:$8 sps:$4 sm:$0xff]  }
 0x4ca   :  { %10951 = vmatprep.subr.bf16.mxu0 %v13297_v7  ;;  %v13310_v7 = vld [vmem:[#allocation11 + $0x210] ss:$8 sps:$4 sm:$0xff]   ;;  %v12060_v35 = vcombine.high %v1663_v12, %v1671_v25 }
 0x4cb   :  { %v13322_v36 = vld [vmem:[#allocation11 + $0x250] ss:$8 sps:$4 sm:$0xff]  }
 0x4cc   :  { %8480 = vmatpush1.bf16.msra.mxu1 %v11963_v1  ;;  %v1679_v1 = vld [vmem:[#allocation8 + $0x11a8] sm:$0xff] }
 0x4cd   :  { %10952 = vmatpush1.bf16.msra.mxu0 %v13295_v46  ;;  %8481 = vmatprep.subr.bf16.mxu1 %v11980_v26  ;;  %v1687_v46 = vld [vmem:[#allocation8 + $0x11e8] sm:$0xff]  ;;  %v12059_v26 = vcombine.low %v1663_v12, %v1671_v25 }
 0x4ce   :  { %10953 = vmatprep.subr.bf16.mxu0 %v13300_v53  ;;  %v13313_v53 = vld [vmem:[#allocation11 + $0x220] ss:$8 sps:$4 sm:$0xff]   ;;  %v13328_v25 = vld [vmem:[#allocation11 + $0x270] ss:$8 sps:$4 sm:$0xff]  }
 0x4d0   :  { %8482 = vmatpush1.bf16.msra.mxu1 %v11979_v49  ;;  %v12075_v49 = vcombine.low %v1679_v1, %v1687_v46 }
 0x4d1   :  { %10954 = vmatpush1.bf16.msra.mxu0 %v13298_v55  ;;  %8483 = vmatprep.subr.bf16.mxu1 %v11996_v45  ;;  %v13316_v55 = vld [vmem:[#allocation11 + $0x230] ss:$8 sps:$4 sm:$0xff]  }
 0x4d2   :  { %10955 = vmatprep.subr.bf16.mxu0 %v13303_v63  ;;  %v13321_v63 = vld [vmem:[#allocation11 + $0x244] ss:$8 sps:$4 sm:$0xff]  }
 0x4d4   :  { %8484 = vmatpush1.bf16.msra.mxu1 %v11995_v16 }
 0x4d5   :  { %10956 = vmatpush1.bf16.msra.mxu0 %v13301_v57  ;;  %8485 = vmatprep.subr.bf16.mxu1 %v12012_v37  ;;  %v13319_v57 = vld [vmem:[#allocation11 + $0x240] ss:$8 sps:$4 sm:$0xff]   ;;  %v13324_v37 = vld [vmem:[#allocation11 + $0x254] ss:$8 sps:$4 sm:$0xff]  }
 0x4d6   :  { %10957 = vmatprep.subr.bf16.mxu0 %v13306_v0  ;;  %v1727_v0 = vld [vmem:[#allocation8 + $0x1328] sm:$0xff] }
 0x4d7   :  { %v12123_v51 = vcombine.low %v1727_v0, %v1735_v24 }
 0x4d8   :  { %8486 = vmatpush1.bf16.msra.mxu1 %v12011_v60  ;;  %v12124_v60 = vcombine.high %v1727_v0, %v1735_v24  ;;  %v13340_v24 = vld [vmem:[#allocation11 + $0x2b0] ss:$8 sps:$4 sm:$0xff]  }
 0x4d9   :  { %10958 = vmatpush1.bf16.msra.mxu0 %v13304_v22  ;;  %8508 = vmatprep.subr.bf16.mxu1 %v12028_v61  ;;  %v13327_v22 = vld [vmem:[#allocation11 + $0x264] ss:$8 sps:$4 sm:$0xff]   ;;  %v1743_v61 = vld [vmem:[#allocation8 + $0x13a8] sm:$0xff] }
 0x4da   :  { %10980 = vmatprep.subr.bf16.mxu0 %v13309_v8  ;;  %v1751_v8 = vld [vmem:[#allocation8 + $0x13e8] sm:$0xff] }
 0x4db   :  { %8488 = vmatmul.mubr.bf16.vlgmr.msra.gmra.mrb[40].mxu1 %v14120_v18  ;;  %v12139_v12 = vcombine.low %v1743_v61, %v1751_v8 }
 0x4dc   :  { %10960 = vmatmul.mubr.bf16.vlgmr.msra.gmra.mrb[40].mxu0 %v14455_v27  ;;  %8497 = vmatprep.mubr.bf16.mxu1 %v14141_v23  ;;  %v12076_v27 = vcombine.high %v1679_v1, %v1687_v46  ;;  %v13331_v46 = vld [vmem:[#allocation11 + $0x280] ss:$8 sps:$4 sm:$0xff]  }
 0x4dd   :  { %8509 = vmatpush1.bf16.msra.mxu1 %v12027_v41  ;;  %10969 = vmatprep.mubr.bf16.mxu0 %v14499_v47  ;;  %v1695_v47 = vld [vmem:[#allocation8 + $0x1228] sm:$0xff]  ;;  %v12140_v41 = vcombine.high %v1743_v61, %v1751_v8  ;;  %v13343_v8 = vld [vmem:[#allocation11 + $0x2c0] ss:$8 sps:$4 sm:$0xff]  }
 0x4de   :  { %10981 = vmatpush1.bf16.msra.mxu0 %v13307_v33  ;;  %8510 = vmatprep.subr.bf16.mxu1 %v12044_v40  ;;  %v12092_v45 = vcombine.high %v1695_v47, %v1703_v31  ;;  %v12091_v16 = vcombine.low %v1695_v47, %v1703_v31  ;;  %v13330_v33 = vld [vmem:[#allocation11 + $0x274] ss:$8 sps:$4 sm:$0xff]   ;;  %v13334_v31 = vld [vmem:[#allocation11 + $0x290] ss:$8 sps:$4 sm:$0xff]  }
 0x4df   :  { %10982 = vmatprep.subr.bf16.mxu0 %v13312_v4  ;;  %v1759_v40 = vld [vmem:[#allocation8 + $0x1428] sm:$0xff] }
 0x4e0   :  { %v1767_v4 = vld [vmem:[#allocation8 + $0x1468] sm:$0xff] }
 0x4e1   :  { %8511 = vmatpush1.bf16.msra.mxu1 %v12043_v29  ;;  %v12156_v29 = vcombine.high %v1759_v40, %v1767_v4  ;;  %v12155_v1 = vcombine.low %v1759_v40, %v1767_v4  ;;  %v13346_v4 = vld [vmem:[#allocation11 + $0x2d0] ss:$8 sps:$4 sm:$0xff]  }
 0x4e2   :  { %10983 = vmatpush1.bf16.msra.mxu0 %v13310_v7  ;;  %8512 = vmatprep.subr.bf16.mxu1 %v12060_v35  ;;  %v13333_v7 = vld [vmem:[#allocation11 + $0x284] ss:$8 sps:$4 sm:$0xff]   ;;  %v1775_v35 = vld [vmem:[#allocation8 + $0x14a8] sm:$0xff] }
 0x4e3   :  { %8498 = vmatmul.mubr.bf16.gmra.mrb[44].mxu1 %v14139_v21  ;;  %10984 = vmatprep.subr.bf16.mxu0 %v13315_v42  ;;  %v1783_v42 = vld [vmem:[#allocation8 + $0x14e8] sm:$0xff] }
 0x4e4   :  { %10970 = vmatmul.mubr.bf16.gmra.mrb[44].mxu0 %v14495_v2  ;;  %8540 = vmatprep.mubr.bf16.mxu1 %v14203_v14  ;;  %v12108_v2 = vcombine.high %v1711_v15, %v1719_v50  ;;  %v12171_v47 = vcombine.low %v1775_v35, %v1783_v42 }
 0x4e5   :  { %8513 = vmatpush1.bf16.msra.mxu1 %v12059_v26  ;;  %11012 = vmatprep.mubr.bf16.mxu0 %v14353_v19  ;;  %v12107_v19 = vcombine.low %v1711_v15, %v1719_v50  ;;  %v12172_v26 = vcombine.high %v1775_v35, %v1783_v42  ;;  %v13337_v50 = vld [vmem:[#allocation11 + $0x2a0] ss:$8 sps:$4 sm:$0xff]  }
 0x4e6   :  { %10985 = vmatpush1.bf16.msra.mxu0 %v13313_v53  ;;  %8514 = vmatprep.subr.bf16.mxu1 %v12076_v27  ;;  %v13336_v53 = vld [vmem:[#allocation11 + $0x294] ss:$8 sps:$4 sm:$0xff]   ;;  %v13349_v42 = vld [vmem:[#allocation11 + $0x2e0] ss:$8 sps:$4 sm:$0xff]  }
 0x4e7   :  { %10986 = vmatprep.subr.bf16.mxu0 %v13318_v52  ;;  %v1791_v27 = vld [vmem:[#allocation8 + $0x1528] sm:$0xff] }
 0x4e8   :  { %v1799_v52 = vld [vmem:[#allocation8 + $0x1568] sm:$0xff] }
 0x4e9   :  { %8515 = vmatpush1.bf16.msra.mxu1 %v12075_v49  ;;  %v12188_v49 = vcombine.high %v1791_v27, %v1799_v52  ;;  %v12187_v15 = vcombine.low %v1791_v27, %v1799_v52  ;;  %v13352_v52 = vld [vmem:[#allocation11 + $0x2f0] ss:$8 sps:$4 sm:$0xff]  }
 0x4ea   :  { %10987 = vmatpush1.bf16.msra.mxu0 %v13316_v55  ;;  %8516 = vmatprep.subr.bf16.mxu1 %v12092_v45  ;;  %v13339_v55 = vld [vmem:[#allocation11 + $0x2a4] ss:$8 sps:$4 sm:$0xff]   ;;  %v1807_v45 = vld [vmem:[#allocation8 + $0x15a8] sm:$0xff] }
 0x4eb   :  { %10988 = vmatprep.subr.bf16.mxu0 %v13321_v63  ;;  %v1815_v63 = vld [vmem:[#allocation8 + $0x15e8] sm:$0xff] }
 0x4ec   :  { %v12203_v0 = vcombine.low %v1807_v45, %v1815_v63 }
 0x4ed   :  { %8517 = vmatpush1.bf16.msra.mxu1 %v12091_v16  ;;  %v12204_v16 = vcombine.high %v1807_v45, %v1815_v63  ;;  %v13355_v63 = vld [vmem:[#allocation11 + $0x300] ss:$8 sps:$4 sm:$0xff]  }
 0x4ee   :  { %10989 = vmatpush1.bf16.msra.mxu0 %v13319_v57  ;;  %8518 = vmatprep.subr.bf16.mxu1 %v12108_v2  ;;  %v13342_v57 = vld [vmem:[#allocation11 + $0x2b4] ss:$8 sps:$4 sm:$0xff]  }
 0x4ef   :  { %10990 = vmatprep.subr.bf16.mxu0 %v13324_v37  ;;  %v1823_v2 = vld [vmem:[#allocation8 + $0x1628] sm:$0xff] }
 0x4f0   :  { %v1831_v37 = vld [vmem:[#allocation8 + $0x1668] sm:$0xff] }
 0x4f1   :  { %8519 = vmatpush1.bf16.msra.mxu1 %v12107_v19  ;;  %v12220_v19 = vcombine.high %v1823_v2, %v1831_v37  ;;  %v12219_v61 = vcombine.low %v1823_v2, %v1831_v37  ;;  %v13358_v37 = vld [vmem:[#allocation11 + $0x310] ss:$8 sps:$4 sm:$0xff]  }
 0x4f2   :  { %10991 = vmatpush1.bf16.msra.mxu0 %v13322_v36  ;;  %8520 = vmatprep.subr.bf16.mxu1 %v12124_v60  ;;  %v13345_v36 = vld [vmem:[#allocation11 + $0x2c4] ss:$8 sps:$4 sm:$0xff]   ;;  %v1839_v60 = vld [vmem:[#allocation8 + $0x16a8] sm:$0xff] }
 0x4f3   :  { %10992 = vmatprep.subr.bf16.mxu0 %v13327_v22  ;;  %v1847_v22 = vld [vmem:[#allocation8 + $0x16e8] sm:$0xff] }
 0x4f4   :  { %v12235_v40 = vcombine.low %v1839_v60, %v1847_v22 }
 0x4f5   :  { %8521 = vmatpush1.bf16.msra.mxu1 %v12123_v51  ;;  %v12236_v51 = vcombine.high %v1839_v60, %v1847_v22  ;;  %v13361_v22 = vld [vmem:[#allocation11 + $0x320] ss:$8 sps:$4 sm:$0xff]  }
 0x4f6   :  { %10993 = vmatpush1.bf16.msra.mxu0 %v13325_v20  ;;  %8522 = vmatprep.subr.bf16.mxu1 %v12140_v41  ;;  %v13348_v20 = vld [vmem:[#allocation11 + $0x2d4] ss:$8 sps:$4 sm:$0xff]  }
 0x4f7   :  { %10994 = vmatprep.subr.bf16.mxu0 %v13330_v33  ;;  %v1855_v41 = vld [vmem:[#allocation8 + $0x1728] sm:$0xff] }
 0x4f8   :  { %v1863_v33 = vld [vmem:[#allocation8 + $0x1768] sm:$0xff] }
 0x4f9   :  { %8523 = vmatpush1.bf16.msra.mxu1 %v12139_v12  ;;  %v12252_v12 = vcombine.high %v1855_v41, %v1863_v33  ;;  %v12251_v35 = vcombine.low %v1855_v41, %v1863_v33  ;;  %v13369_v33 = vld [vmem:[#allocation11 + $0x344] ss:$8 sps:$4 sm:$0xff]  }
 0x4fa   :  { %10995 = vmatpush1.bf16.msra.mxu0 %v13328_v25  ;;  %8524 = vmatprep.subr.bf16.mxu1 %v12156_v29  ;;  %v13351_v25 = vld [vmem:[#allocation11 + $0x2e4] ss:$8 sps:$4 sm:$0xff]   ;;  %v1871_v29 = vld [vmem:[#allocation8 + $0x17a8] sm:$0xff] }
 0x4fb   :  { %10996 = vmatprep.subr.bf16.mxu0 %v13333_v7  ;;  %v1879_v7 = vld [vmem:[#allocation8 + $0x17e8] sm:$0xff] }
 0x4fc   :  { %v12267_v27 = vcombine.low %v1871_v29, %v1879_v7 }
 0x4fd   :  { %8525 = vmatpush1.bf16.msra.mxu1 %v12155_v1  ;;  %v12268_v1 = vcombine.high %v1871_v29, %v1879_v7  ;;  %v13597_v7 = vld [vmem:[#allocation10 + $0x8] sm:$0xff] }
 0x4fe   :  { %10997 = vmatpush1.bf16.msra.mxu0 %v13331_v46  ;;  %8526 = vmatprep.subr.bf16.mxu1 %v12172_v26  ;;  %v13354_v46 = vld [vmem:[#allocation11 + $0x2f4] ss:$8 sps:$4 sm:$0xff]  }
 0x4ff   :  { %10998 = vmatprep.subr.bf16.mxu0 %v13336_v53  ;;  %v1887_v26 = vld [vmem:[#allocation8 + $0x1828] sm:$0xff] }
 0x500   :  { %v1895_v53 = vld [vmem:[#allocation8 + $0x1868] sm:$0xff] }
 0x501   :  { %8527 = vmatpush1.bf16.msra.mxu1 %v12171_v47  ;;  %v12284_v47 = vcombine.high %v1887_v26, %v1895_v53  ;;  %v12283_v45 = vcombine.low %v1887_v26, %v1895_v53  ;;  %v13372_v53 = vld [vmem:[#allocation11 + $0x354] ss:$8 sps:$4 sm:$0xff]  }
 0x502   :  { %10999 = vmatpush1.bf16.msra.mxu0 %v13334_v31  ;;  %8528 = vmatprep.subr.bf16.mxu1 %v12188_v49  ;;  %v13357_v31 = vld [vmem:[#allocation11 + $0x304] ss:$8 sps:$4 sm:$0xff]   ;;  %v1903_v49 = vld [vmem:[#allocation8 + $0x18a8] sm:$0xff] }
 0x503   :  { %11000 = vmatprep.subr.bf16.mxu0 %v13339_v55  ;;  %v1911_v55 = vld [vmem:[#allocation8 + $0x18e8] sm:$0xff] }
 0x504   :  { %v12299_v2 = vcombine.low %v1903_v49, %v1911_v55 }
 0x505   :  { %8529 = vmatpush1.bf16.msra.mxu1 %v12187_v15  ;;  %v12300_v15 = vcombine.high %v1903_v49, %v1911_v55 }
 0x506   :  { %11001 = vmatpush1.bf16.msra.mxu0 %v13337_v50  ;;  %8530 = vmatprep.subr.bf16.mxu1 %v12204_v16  ;;  %v13360_v50 = vld [vmem:[#allocation11 + $0x314] ss:$8 sps:$4 sm:$0xff]  }
 0x507   :  { %11002 = vmatprep.subr.bf16.mxu0 %v13342_v57  ;;  %v1919_v16 = vld [vmem:[#allocation8 + $0x1928] sm:$0xff] }
 0x508   :  { %v1927_v57 = vld [vmem:[#allocation8 + $0x1968] sm:$0xff] }
 0x509   :  { %8531 = vmatpush1.bf16.msra.mxu1 %v12203_v0  ;;  %v12316_v0 = vcombine.high %v1919_v16, %v1927_v57  ;;  %v12315_v60 = vcombine.low %v1919_v16, %v1927_v57 }
 0x50a   :  { %11003 = vmatpush1.bf16.msra.mxu0 %v13340_v24  ;;  %8532 = vmatprep.subr.bf16.mxu1 %v12220_v19  ;;  %v13363_v24 = vld [vmem:[#allocation11 + $0x324] ss:$8 sps:$4 sm:$0xff]   ;;  %v1935_v19 = vld [vmem:[#allocation8 + $0x19a8] sm:$0xff] }
 0x50b   :  { %11004 = vmatprep.subr.bf16.mxu0 %v13345_v36  ;;  %v1943_v36 = vld [vmem:[#allocation8 + $0x19e8] sm:$0xff] }
 0x50d   :  { %8533 = vmatpush1.bf16.msra.mxu1 %v12219_v61  ;;  %v13366_v61 = vld [vmem:[#allocation11 + $0x334] ss:$8 sps:$4 sm:$0xff]  }
 0x50e   :  { %11005 = vmatpush1.bf16.msra.mxu0 %v13343_v8  ;;  %8534 = vmatprep.subr.bf16.mxu1 %v12236_v51  ;;  %v1959_v8 = vld [vmem:[#allocation8 + $0x1a68] sm:$0xff]  ;;  %v12331_v51 = vcombine.low %v1935_v19, %v1943_v36 }
 0x50f   :  { %11006 = vmatprep.subr.bf16.mxu0 %v13348_v20  ;;  %v13364_v20 = vld [vmem:[#allocation11 + $0x330] ss:$8 sps:$4 sm:$0xff]  }
 0x511   :  { %8535 = vmatpush1.bf16.msra.mxu1 %v12235_v40  ;;  %v1967_v40 = vld [vmem:[#allocation8 + $0x1aa8] sm:$0xff] }
 0x512   :  { %11007 = vmatpush1.bf16.msra.mxu0 %v13346_v4  ;;  %8536 = vmatprep.subr.bf16.mxu1 %v12252_v12  ;;  %v1975_v4 = vld [vmem:[#allocation8 + $0x1ae8] sm:$0xff]  ;;  %v13596_v12 = vld [vmem:[#allocation10] sm:$0xff] }
 0x513   :  { %11008 = vmatprep.subr.bf16.mxu0 %v13351_v25  ;;  %v14535_v25 = vrot.slane %v13596_v12, %v14166_v34 }
 0x515   :  { %8537 = vmatpush1.bf16.msra.mxu1 %v12251_v35  ;;  %v14541_v35 = vrot.slane %v13596_v12, %v14170_v39 }
 0x516   :  { %11009 = vmatpush1.bf16.msra.mxu0 %v13349_v42  ;;  %8538 = vmatprep.subr.bf16.mxu1 %v12268_v1  ;;  %v13367_v42 = vld [vmem:[#allocation11 + $0x340] ss:$8 sps:$4 sm:$0xff]   ;;  %v12364_v1 = vcombine.high %v1967_v40, %v1975_v4 }
 0x517   :  { %11010 = vmatprep.subr.bf16.mxu0 %v13354_v46  ;;  %v14544_v46 = vrot.slane %v13597_v7, %v14147_v13 }
 0x519   :  { %8539 = vmatpush1.bf16.msra.mxu1 %v12267_v27  ;;  %v1983_v27 = vld [vmem:[#allocation8 + $0x1b28] sm:$0xff] }
 0x51a   :  { %11011 = vmatpush1.bf16.msra.mxu0 %v13352_v52  ;;  %8561 = vmatprep.subr.bf16.mxu1 %v12284_v47  ;;  %v1991_v52 = vld [vmem:[#allocation8 + $0x1b68] sm:$0xff] }
 0x51b   :  { %11033 = vmatprep.subr.bf16.mxu0 %v13357_v31 }
 0x51c   :  { %8541 = vmatmul.mubr.bf16.vlgmr.msra.gmra.mrb[40].mxu1 %v14195_v10 }
 0x51d   :  { %11013 = vmatmul.mubr.bf16.vlgmr.msra.gmra.mrb[40].mxu0 %v14341_v3  ;;  %8550 = vmatprep.mubr.bf16.mxu1 %v14225_v9  ;;  %v12332_v3 = vcombine.high %v1935_v19, %v1943_v36 }
 0x51e   :  { %8562 = vmatpush1.bf16.msra.mxu1 %v12283_v45  ;;  %11022 = vmatprep.mubr.bf16.mxu0 %v14377_v5  ;;  %v1951_v5 = vld [vmem:[#allocation8 + $0x1a28] sm:$0xff]  ;;  %v12363_v45 = vcombine.low %v1967_v40, %v1975_v4  ;;  %v12379_v4 = vcombine.low %v1983_v27, %v1991_v52 }
 0x51f   :  { %11034 = vmatpush1.bf16.msra.mxu0 %v13355_v63  ;;  %8563 = vmatprep.subr.bf16.mxu1 %v12300_v15  ;;  %v12348_v41 = vcombine.high %v1951_v5, %v1959_v8  ;;  %v12347_v29 = vcombine.low %v1951_v5, %v1959_v8  ;;  %v13370_v15 = vld [vmem:[#allocation11 + $0x350] ss:$8 sps:$4 sm:$0xff]  }
 0x520   :  { %11035 = vmatprep.subr.bf16.mxu0 %v13360_v50  ;;  %v2007_v5 = vld [vmem:[#allocation8 + $0x1be8] sm:$0xff] }
 0x522   :  { %8564 = vmatpush1.bf16.msra.mxu1 %v12299_v2 }
 0x523   :  { %11036 = vmatpush1.bf16.msra.mxu0 %v13358_v37  ;;  %8565 = vmatprep.subr.bf16.mxu1 %v12316_v0  ;;  %v12380_v0 = vcombine.high %v1983_v27, %v1991_v52 }
 0x524   :  { %8551 = vmatmul.mubr.bf16.gmra.mrb[44].mxu1 %v14223_v6  ;;  %11037 = vmatprep.subr.bf16.mxu0 %v13363_v24  ;;  %v13375_v24 = vld [vmem:[#allocation11 + $0x364] ss:$8 sps:$4 sm:$0xff]  }
 0x525   :  { %11023 = vmatmul.mubr.bf16.gmra.mrb[44].mxu0 %v14373_v54  ;;  %8593 = vmatprep.mubr.bf16.mxu1 %v14229_v28  ;;  %v14538_v54 = vrot.slane %v13597_v7, %v14144_v62 }
 0x526   :  { %8566 = vmatpush1.bf16.msra.mxu1 %v12315_v60 }
 0x527   :  { %11038 = vmatpush1.bf16.msra.mxu0 %v13361_v22  ;;  %8567 = vmatprep.subr.bf16.mxu1 %v12332_v3 }
 0x528   :  { %11039 = vmatprep.subr.bf16.mxu0 %v13366_v61  ;;  %v14553_v61 = vld [vmem:[#allocation8 + $0x1ba8] sm:$0xff] }
 0x52a   :  { %8568 = vmatpush1.bf16.msra.mxu1 %v12331_v51 }
 0x52b   :  { %11040 = vmatpush1.bf16.msra.mxu0 %v13364_v20  ;;  %8569 = vmatprep.subr.bf16.mxu1 %v12348_v41 }
 0x52c   :  { %11041 = vmatprep.subr.bf16.mxu0 %v13369_v33  ;;  %v8171_v26 = vpop.f32.mrb[32].mxu1 }
 0x52d   :  { %v12897_v47 = vadd.f32 %v8171_v26, %v14535_v25  ;;  %v8807_v31 = vpop.f32.mrb[32].mxu0  ;;  %v8173_v62 = vpop.f32.mrb[33].mxu1 }
 0x52e   :  { %8570 = vmatpush1.bf16.msra.mxu1 %v12347_v29  ;;  %v12921_v49 = vadd.f32 %v8807_v31, %v14538_v54  ;;  %v12898_v55 = vadd.f32 %v8173_v62, %v14541_v35  ;;  %v8809_v63 = vpop.f32.mrb[33].mxu0  ;;  %v8175_v50 = vpop.f32.mrb[34].mxu1  ;;  %v13378_v62 = vld [vmem:[#allocation11 + $0x374] ss:$8 sps:$4 sm:$0xff]  }
 0x52f   :  { %11042 = vmatpush1.bf16.msra.mxu0 %v13367_v42  ;;  %v9044_v13 = vmax.f32 %v12897_v47, 0.0  ;;  %8571 = vmatprep.subr.bf16.mxu1 %v12364_v1  ;;  %v12922_v16 = vadd.f32 %v8809_v63, %v14544_v46  ;;  %v12899_v57 = vadd.f32 %v8175_v50, %v14535_v25  ;;  %v8811_v2 = vpop.f32.mrb[34].mxu0  ;;  %v8177_v37 = vpop.f32.mrb[35].mxu1  ;;  %v13373_v42 = vld [vmem:[#allocation11 + $0x360] ss:$8 sps:$4 sm:$0xff]   ;;  %v12396_v1 = vcombine.high %v14553_v61, %v2007_v5 }
 0x530   :  { %v9050_v19 = vmax.f32 %v12921_v49, 0.0  ;;  %v9045_v36 = vmax.f32 %v12898_v55, 0.0  ;;  %11043 = vmatprep.subr.bf16.mxu0 %v13372_v53  ;;  %v12923_v60 = vadd.f32 %v8811_v2, %v14538_v54  ;;  %v12900_v22 = vadd.f32 %v8177_v37, %v14541_v35  ;;  %v8813_v3 = vpop.f32.mrb[35].mxu0  ;;  %v2015_v49 = vld [vmem:[#allocation8 + $0x1c28] sm:$0xff] }
 0x531   :  { %v9051_v8 = vmax.f32 %v12922_v16, 0.0  ;;  %v9060_v51 = vmax.f32 %v12899_v57, 0.0  ;;  %v12924_v20 = vadd.f32 %v8813_v3, %v14544_v46  ;;  %v2023_v55 = vld [vmem:[#allocation8 + $0x1c68] sm:$0xff]  ;;  %v12395_v16 = vcombine.low %v14553_v61, %v2007_v5  ;;  %v13381_v3 = vld [vmem:[#allocation11 + $0x384] ss:$8 sps:$4 sm:$0xff]  }
 0x532   :  { %v12840_v41 = vpack.c.bf16 %v9045_v36, %v9044_v13  ;;  %8572 = vmatpush1.bf16.msra.mxu1 %v12363_v45  ;;  %v9066_v33 = vmax.f32 %v12923_v60, 0.0  ;;  %v9061_v40 = vmax.f32 %v12900_v22, 0.0  ;;  %v13376_v2 = vld [vmem:[#allocation11 + $0x370] ss:$8 sps:$4 sm:$0xff]   ;;  %v12412_v22 = vcombine.high %v2015_v49, %v2023_v55 }
 0x533   :  { %v12843_v12 = vpack.c.bf16 %v9051_v8, %v9050_v19  ;;  %v14556_v29 = vpack.c.bf16 %v9060_v51, %v9044_v13  ;;  %11044 = vmatpush1.bf16.msra.mxu0 %v13370_v15  ;;  %v9067_v7 = vmax.f32 %v12924_v20, 0.0  ;;  %8573 = vmatprep.subr.bf16.mxu1 %v12380_v0 }
 0x534   :  { %9297 = vst [vmem:[#allocation15 + $0x18] sm:$0xff] %v12840_v41  ;;  %v14559_v26 = vpack.c.bf16 %v9066_v33, %v9050_v19  ;;  %v9109_v53 = vpack.c.bf16 %v9061_v40, %v9045_v36  ;;  %v12848_v47 = vpack.c.bf16 %v9061_v40, %v9060_v51  ;;  %11045 = vmatprep.subr.bf16.mxu0 %v13375_v24  ;;  %v8181_v31 = vpop.f32.mrb[36].mxu1  ;;  %v2031_v41 = vld [vmem:[#allocation8 + $0x1ca8] sm:$0xff] }
 0x535   :  { %9300 = vst [vmem:[#allocation15 + $0x30] sm:$0xff] %v12843_v12  ;;  %v14561_v27 = vpack.c.bf16 %v9067_v7, %v9051_v8  ;;  %v12851_v52 = vpack.c.bf16 %v9067_v7, %v9066_v33  ;;  %v12901_v45 = vadd.f32 %v8181_v31, %v14535_v25  ;;  %v8817_v63 = vpop.f32.mrb[36].mxu0  ;;  %v8183_v15 = vpop.f32.mrb[37].mxu1  ;;  %v2039_v33 = vld [vmem:[#allocation8 + $0x1ce8] sm:$0xff] }
 0x536   :  { %9305 = vst [vmem:[#allocation15 + $0x58] sm:$0xff] %v12848_v47  ;;  %8574 = vmatpush1.bf16.msra.mxu1 %v12379_v4  ;;  %v12925_v50 = vadd.f32 %v8817_v63, %v14538_v54  ;;  %v12902_v13 = vadd.f32 %v8183_v15, %v14541_v35  ;;  %v8819_v57 = vpop.f32.mrb[37].mxu0  ;;  %v8185_v37 = vpop.f32.mrb[38].mxu1  ;;  %11065 = vmatprep.mubr.bf16.mxu0 %v9109_v53  ;;  %v2047_v63 = vld [vmem:[#allocation8 + $0x1d28] sm:$0xff] }
 0x537   :  { %9308 = vst [vmem:[#allocation15 + $0x70] sm:$0xff] %v12851_v52  ;;  %11046 = vmatpush1.bf16.msra.mxu0 %v13373_v42  ;;  %v9076_v0 = vmax.f32 %v12901_v45, 0.0  ;;  %8575 = vmatprep.subr.bf16.mxu1 %v12396_v1  ;;  %v12926_v24 = vadd.f32 %v8819_v57, %v14544_v46  ;;  %v12903_v19 = vadd.f32 %v8185_v37, %v14535_v25  ;;  %v8821_v36 = vpop.f32.mrb[38].mxu0  ;;  %v8187_v60 = vpop.f32.mrb[39].mxu1  ;;  %v2055_v15 = vld [vmem:[#allocation8 + $0x1d68] sm:$0xff] }
 0x538   :  { %v9082_v8 = vmax.f32 %v12925_v50, 0.0  ;;  %v9077_v51 = vmax.f32 %v12902_v13, 0.0  ;;  %11047 = vmatprep.subr.bf16.mxu0 %v13378_v62  ;;  %v12927_v61 = vadd.f32 %v8821_v36, %v14538_v54  ;;  %v12904_v5 = vadd.f32 %v8187_v60, %v14541_v35  ;;  %v8823_v20 = vpop.f32.mrb[39].mxu0  ;;  %v13379_v54 = vld [vmem:[#allocation11 + $0x380] ss:$8 sps:$4 sm:$0xff]   ;;  %v2071_v37 = vld [vmem:[#allocation8 + $0x1de8] sm:$0xff] }
 0x539   :  { %v9083_v40 = vmax.f32 %v12926_v24, 0.0  ;;  %v9092_v4 = vmax.f32 %v12903_v19, 0.0  ;;  %v12928_v12 = vadd.f32 %v8823_v20, %v14544_v46  ;;  %v12411_v1 = vcombine.low %v2015_v49, %v2023_v55  ;;  %v13384_v46 = vld [vmem:[#allocation11 + $0x394] ss:$8 sps:$4 sm:$0xff]   ;;  %v13382_v13 = vld [vmem:[#allocation11 + $0x390] ss:$8 sps:$4 sm:$0xff]  }
 0x53a   :  { %v12856_v7 = vpack.c.bf16 %v9077_v51, %v9076_v0  ;;  %8576 = vmatpush1.bf16.msra.mxu1 %v12395_v16  ;;  %v9098_v25 = vmax.f32 %v12927_v61, 0.0  ;;  %v9093_v42 = vmax.f32 %v12904_v5, 0.0  ;;  %v12428_v35 = vcombine.high %v2031_v41, %v2039_v33  ;;  %v13387_v57 = vld [vmem:[#allocation11 + $0x3a4] ss:$8 sps:$4 sm:$0xff]   ;;  %v13385_v24 = vld [vmem:[#allocation11 + $0x3a0] ss:$8 sps:$4 sm:$0xff]  }
 0x53b   :  { %v12859_v53 = vpack.c.bf16 %v9083_v40, %v9082_v8  ;;  %v14572_v47 = vpack.c.bf16 %v9092_v4, %v9076_v0  ;;  %11048 = vmatpush1.bf16.msra.mxu0 %v13376_v2  ;;  %v9099_v31 = vmax.f32 %v12928_v12, 0.0  ;;  %8577 = vmatprep.subr.bf16.mxu1 %v12412_v22  ;;  %v12427_v50 = vcombine.low %v2031_v41, %v2039_v33  ;;  %v2063_v2 = vld [vmem:[#allocation8 + $0x1da8] sm:$0xff]  ;;  %v13393_v61 = vld [vmem:[#allocation11 + $0x3c4] ss:$8 sps:$4 sm:$0xff]   ;;  %v13391_v33 = vld [vmem:[#allocation11 + $0x3c0] ss:$8 sps:$4 sm:$0xff]  }
 0x53c   :  { %9313 = vst [vmem:[#allocation15 + $0x98] sm:$0xff] %v12856_v7  ;;  %v14574_v62 = vpack.c.bf16 %v9098_v25, %v9082_v8  ;;  %v14576_v52 = vpack.c.bf16 %v9093_v42, %v9077_v51  ;;  %v12864_v45 = vpack.c.bf16 %v9093_v42, %v9092_v4  ;;  %11049 = vmatprep.subr.bf16.mxu0 %v13381_v3  ;;  %v13390_v36 = vld [vmem:[#allocation11 + $0x3b4] ss:$8 sps:$4 sm:$0xff]   ;;  %v13388_v8 = vld [vmem:[#allocation11 + $0x3b0] ss:$8 sps:$4 sm:$0xff]  }
 0x53d   :  { %9316 = vst [vmem:[#allocation15 + $0xb0] sm:$0xff] %v12859_v53  ;;  %v14578_v49 = vpack.c.bf16 %v9099_v31, %v9083_v40  ;;  %v12867_v55 = vpack.c.bf16 %v9099_v31, %v9098_v25  ;;  %v12444_v16 = vcombine.high %v2047_v63, %v2055_v15  ;;  %v12443_v0 = vcombine.low %v2047_v63, %v2055_v15  ;;  %v2079_v60 = vld [vmem:[#allocation8 + $0x1e28] sm:$0xff]  ;;  %v13399_v53 = vld [vmem:[#allocation11 + $0x3e4] ss:$8 sps:$4 sm:$0xff]  }
 0x53e   :  { %9321 = vst [vmem:[#allocation15 + $0xd8] sm:$0xff] %v12864_v45  ;;  %8578 = vmatpush1.bf16.msra.mxu1 %v12411_v1  ;;  %v12460_v19 = vcombine.high %v2063_v2, %v2071_v37  ;;  %v2087_v22 = vld [vmem:[#allocation8 + $0x1e68] sm:$0xff]  ;;  %v12459_v3 = vcombine.low %v2063_v2, %v2071_v37  ;;  %v13397_v45 = vld [vmem:[#allocation11 + $0x3e0] ss:$8 sps:$4 sm:$0xff]  }
 0x53f   :  { %9324 = vst [vmem:[#allocation15 + $0xf0] sm:$0xff] %v12867_v55  ;;  %11050 = vmatpush1.bf16.msra.mxu0 %v13379_v54  ;;  %8579 = vmatprep.subr.bf16.mxu1 %v12428_v35  ;;  %v12476_v51 = vcombine.high %v2079_v60, %v2087_v22  ;;  %v2095_v5 = vld [vmem:[#allocation8 + $0x1ea8] sm:$0xff]  ;;  %v12475_v41 = vcombine.low %v2079_v60, %v2087_v22  ;;  %v1121_v15 = vld [vmem:[#allocation8 + $0x38] sm:$0xff] }
 0x540   :  { %11051 = vmatprep.subr.bf16.mxu0 %v13384_v46  ;;  %v2103_v20 = vld [vmem:[#allocation8 + $0x1ee8] sm:$0xff]  ;;  %v1129_v55 = vld [vmem:[#allocation8 + $0x78] sm:$0xff] }
 0x541   :  { %v12492_v40 = vcombine.high %v2095_v5, %v2103_v20  ;;  %v13396_v4 = vld [vmem:[#allocation11 + $0x3d4] ss:$8 sps:$4 sm:$0xff]   ;;  %v12491_v25 = vcombine.low %v2095_v5, %v2103_v20  ;;  %v13394_v42 = vld [vmem:[#allocation11 + $0x3d0] ss:$8 sps:$4 sm:$0xff]   ;;  %v1137_v2 = vld [vmem:[#allocation8 + $0xb8] sm:$0xff] }
 0x542   :  { %8580 = vmatpush1.bf16.msra.mxu1 %v12427_v50  ;;  %v2111_v12 = vld [vmem:[#allocation8 + $0x1f28] sm:$0xff]  ;;  %v1145_v37 = vld [vmem:[#allocation8 + $0xf8] sm:$0xff] }
 0x543   :  { %11052 = vmatpush1.bf16.msra.mxu0 %v13382_v13  ;;  %8581 = vmatprep.subr.bf16.mxu1 %v12444_v16  ;;  %v2119_v7 = vld [vmem:[#allocation8 + $0x1f68] sm:$0xff]  ;;  %v11520_v16 = vcombine.high %v1121_v15, %v1129_v55  ;;  %v1153_v60 = vld [vmem:[#allocation8 + $0x138] sm:$0xff] }
 0x544   :  { %11053 = vmatprep.subr.bf16.mxu0 %v13387_v57  ;;  %v12508_v1 = vcombine.high %v2111_v12, %v2119_v7  ;;  %v2127_v31 = vld [vmem:[#allocation8 + $0x1fa8] sm:$0xff]  ;;  %v12507_v35 = vcombine.low %v2111_v12, %v2119_v7  ;;  %v13405_v57 = vld [vmem:[#allocation11 + $0x404] ss:$8 sps:$4 sm:$0xff]  }
 0x545   :  { %v2135_v54 = vld [vmem:[#allocation8 + $0x1fe8] sm:$0xff]  ;;  %v1161_v22 = vld [vmem:[#allocation8 + $0x178] sm:$0xff] }
 0x546   :  { %8582 = vmatpush1.bf16.msra.mxu1 %v12443_v0  ;;  %v12524_v46 = vcombine.high %v2127_v31, %v2135_v54  ;;  %v13402_v63 = vld [vmem:[#allocation11 + $0x3f4] ss:$8 sps:$4 sm:$0xff]   ;;  %v12523_v50 = vcombine.low %v2127_v31, %v2135_v54  ;;  %v13400_v13 = vld [vmem:[#allocation11 + $0x3f0] ss:$8 sps:$4 sm:$0xff]   ;;  %v11519_v0 = vcombine.low %v1121_v15, %v1129_v55  ;;  %v1169_v5 = vld [vmem:[#allocation8 + $0x1b8] sm:$0xff] }
 0x547   :  { %11054 = vmatpush1.bf16.msra.mxu0 %v13385_v24  ;;  %8583 = vmatprep.subr.bf16.mxu1 %v12460_v19  ;;  %v13403_v24 = vld [vmem:[#allocation11 + $0x400] ss:$8 sps:$4 sm:$0xff]   ;;  %v11536_v19 = vcombine.high %v1137_v2, %v1145_v37  ;;  %v13412_v7 = vld [vmem:[#allocation11 + $0x430] ss:$8 sps:$4 sm:$0xff]   ;;  %v13423_v15 = vld [vmem:[#allocation11 + $0x464] ss:$8 sps:$4 sm:$0xff]  }
 0x548   :  { %11055 = vmatprep.subr.bf16.mxu0 %v13390_v36  ;;  %v13408_v36 = vld [vmem:[#allocation11 + $0x414] ss:$8 sps:$4 sm:$0xff]   ;;  %v1177_v20 = vld [vmem:[#allocation8 + $0x1f8] sm:$0xff] }
 0x549   :  { %v11567_v12 = vcombine.low %v1169_v5, %v1177_v20  ;;  %v13415_v54 = vld [vmem:[#allocation11 + $0x440] ss:$8 sps:$4 sm:$0xff]  }
 0x54a   :  { %8584 = vmatpush1.bf16.msra.mxu1 %v12459_v3  ;;  %v11535_v3 = vcombine.low %v1137_v2, %v1145_v37  ;;  %v1233_v55 = vld [vmem:[#allocation8 + $0x3b8] sm:$0xff]  ;;  %v13426_v2 = vld [vmem:[#allocation11 + $0x474] ss:$8 sps:$4 sm:$0xff]  }
 0x54b   :  { %11056 = vmatpush1.bf16.msra.mxu0 %v13388_v8  ;;  %8585 = vmatprep.subr.bf16.mxu1 %v12476_v51  ;;  %v13406_v8 = vld [vmem:[#allocation11 + $0x410] ss:$8 sps:$4 sm:$0xff]   ;;  %v11552_v51 = vcombine.high %v1153_v60, %v1161_v22  ;;  %v1249_v37 = vld [vmem:[#allocation8 + $0x438] sm:$0xff] }
 0x54c   :  { %11057 = vmatprep.subr.bf16.mxu0 %v13393_v61  ;;  %v13411_v61 = vld [vmem:[#allocation11 + $0x424] ss:$8 sps:$4 sm:$0xff]  }
 0x54e   :  { %8586 = vmatpush1.bf16.msra.mxu1 %v12475_v41  ;;  %v11551_v41 = vcombine.low %v1153_v60, %v1161_v22  ;;  %v13429_v60 = vld [vmem:[#allocation11 + $0x484] ss:$8 sps:$4 sm:$0xff]  }
 0x54f   :  { %11058 = vmatpush1.bf16.msra.mxu0 %v13391_v33  ;;  %8587 = vmatprep.subr.bf16.mxu1 %v12492_v40  ;;  %v13409_v33 = vld [vmem:[#allocation11 + $0x420] ss:$8 sps:$4 sm:$0xff]   ;;  %v13414_v40 = vld [vmem:[#allocation11 + $0x434] ss:$8 sps:$4 sm:$0xff]  }
 0x550   :  { %11059 = vmatprep.subr.bf16.mxu0 %v13396_v4  ;;  %v1193_v4 = vld [vmem:[#allocation8 + $0x278] sm:$0xff] }
 0x551   :  { %v1265_v22 = vld [vmem:[#allocation8 + $0x4b8] sm:$0xff] }
 0x552   :  { %8588 = vmatpush1.bf16.msra.mxu1 %v12491_v25 }
 0x553   :  { %11060 = vmatpush1.bf16.msra.mxu0 %v13394_v42  ;;  %8589 = vmatprep.subr.bf16.mxu1 %v12508_v1  ;;  %v13417_v42 = vld [vmem:[#allocation11 + $0x444] ss:$8 sps:$4 sm:$0xff]  }
 0x554   :  { %11061 = vmatprep.subr.bf16.mxu0 %v13399_v53  ;;  %v1201_v1 = vld [vmem:[#allocation8 + $0x2b8] sm:$0xff] }
 0x555   :  { %v1209_v53 = vld [vmem:[#allocation8 + $0x2f8] sm:$0xff] }
 0x556   :  { %8590 = vmatpush1.bf16.msra.mxu1 %v12507_v35  ;;  %v1217_v35 = vld [vmem:[#allocation8 + $0x338] sm:$0xff] }
 0x557   :  { %11062 = vmatpush1.bf16.msra.mxu0 %v13397_v45  ;;  %8591 = vmatprep.subr.bf16.mxu1 %v12524_v46  ;;  %v1225_v45 = vld [vmem:[#allocation8 + $0x378] sm:$0xff]  ;;  %v13418_v46 = vld [vmem:[#allocation11 + $0x450] ss:$8 sps:$4 sm:$0xff]  }
 0x558   :  { %11063 = vmatprep.subr.bf16.mxu0 %v13402_v63  ;;  %v11616_v63 = vcombine.high %v1217_v35, %v1225_v45 }
 0x55a   :  { %8592 = vmatpush1.bf16.msra.mxu1 %v12523_v50  ;;  %v1241_v50 = vld [vmem:[#allocation8 + $0x3f8] sm:$0xff] }
 0x55b   :  { %11064 = vmatpush1.bf16.msra.mxu0 %v13400_v13  ;;  %8826 = vmatprep.subr.bf16.mxu1 %v11520_v16  ;;  %v11615_v13 = vcombine.low %v1217_v35, %v1225_v45  ;;  %v13421_v16 = vld [vmem:[#allocation11 + $0x460] ss:$8 sps:$4 sm:$0xff]   ;;  %v13441_v35 = vld [vmem:[#allocation11 + $0x4c4] ss:$8 sps:$4 sm:$0xff]  }
 0x55c   :  { %11086 = vmatprep.subr.bf16.mxu0 %v13405_v57  ;;  %v11632_v57 = vcombine.high %v1233_v55, %v1241_v50  ;;  %v1329_v45 = vld [vmem:[#allocation8 + $0x6b8] sm:$0xff] }
 0x55d   :  { %8594 = vmatmul.mubr.bf16.vlgmr.msra.gmra.mrb[40].mxu1 %v14227_v59 }
 0x55e   :  { %11066 = vmatmul.mubr.bf16.vlgmr.msra.gmra.mrb[40].mxu0 %v14556_v29  ;;  %8603 = vmatprep.mubr.bf16.mxu1 %v14241_v17  ;;  %v11568_v29 = vcombine.high %v1169_v5, %v1177_v20  ;;  %v13432_v5 = vld [vmem:[#allocation11 + $0x494] ss:$8 sps:$4 sm:$0xff]   ;;  %v1281_v20 = vld [vmem:[#allocation8 + $0x538] sm:$0xff] }
 0x55f   :  { %8827 = vmatpush1.bf16.msra.mxu1 %v11519_v0  ;;  %11075 = vmatprep.mubr.bf16.mxu0 %v14576_v52  ;;  %v1185_v52 = vld [vmem:[#allocation8 + $0x238] sm:$0xff] }
 0x560   :  { %11087 = vmatpush1.bf16.msra.mxu0 %v13403_v24  ;;  %8828 = vmatprep.subr.bf16.mxu1 %v11536_v19  ;;  %v11584_v25 = vcombine.high %v1185_v52, %v1193_v4  ;;  %v11583_v31 = vcombine.low %v1185_v52, %v1193_v4  ;;  %v1257_v0 = vld [vmem:[#allocation8 + $0x478] sm:$0xff]  ;;  %v11631_v24 = vcombine.low %v1233_v55, %v1241_v50  ;;  %v13424_v19 = vld [vmem:[#allocation11 + $0x470] ss:$8 sps:$4 sm:$0xff]   ;;  %v13444_v55 = vld [vmem:[#allocation11 + $0x4d4] ss:$8 sps:$4 sm:$0xff]  }
 0x561   :  { %11088 = vmatprep.subr.bf16.mxu0 %v13408_v36  ;;  %v11648_v36 = vcombine.high %v1249_v37, %v1257_v0  ;;  %v13435_v52 = vld [vmem:[#allocation11 + $0x4a4] ss:$8 sps:$4 sm:$0xff]  }
 0x562   :  { %v1297_v4 = vld [vmem:[#allocation8 + $0x5b8] sm:$0xff] }
 0x563   :  { %8829 = vmatpush1.bf16.msra.mxu1 %v11535_v3  ;;  %v1273_v3 = vld [vmem:[#allocation8 + $0x4f8] sm:$0xff] }
 0x564   :  { %11089 = vmatpush1.bf16.msra.mxu0 %v13406_v8  ;;  %8830 = vmatprep.subr.bf16.mxu1 %v11552_v51  ;;  %v11647_v8 = vcombine.low %v1249_v37, %v1257_v0  ;;  %v13427_v51 = vld [vmem:[#allocation11 + $0x480] ss:$8 sps:$4 sm:$0xff]   ;;  %v13447_v37 = vld [vmem:[#allocation11 + $0x4e4] ss:$8 sps:$4 sm:$0xff]  }
 0x565   :  { %8604 = vmatmul.mubr.bf16.gmra.mrb[44].mxu1 %v14239_v11  ;;  %11090 = vmatprep.subr.bf16.mxu0 %v13411_v61  ;;  %v11664_v61 = vcombine.high %v1265_v22, %v1273_v3  ;;  %v1345_v50 = vld [vmem:[#allocation8 + $0x738] sm:$0xff] }
 0x566   :  { %11076 = vmatmul.mubr.bf16.gmra.mrb[44].mxu0 %v14572_v47  ;;  %8858 = vmatprep.mubr.bf16.mxu1 %v14078_v43  ;;  %v11600_v47 = vcombine.high %v1201_v1, %v1209_v53  ;;  %v13420_v43 = vld [vmem:[#allocation11 + $0x454] ss:$8 sps:$4 sm:$0xff]   ;;  %v1361_v0 = vld [vmem:[#allocation8 + $0x7b8] sm:$0xff] }
 0x567   :  { %8831 = vmatpush1.bf16.msra.mxu1 %v11551_v41  ;;  %11118 = vmatprep.mubr.bf16.mxu0 %v14473_v30  ;;  %v11599_v30 = vcombine.low %v1201_v1, %v1209_v53  ;;  %v1289_v41 = vld [vmem:[#allocation8 + $0x578] sm:$0xff]  ;;  %v13438_v1 = vld [vmem:[#allocation11 + $0x4b4] ss:$8 sps:$4 sm:$0xff]  }
 0x568   :  { %11091 = vmatpush1.bf16.msra.mxu0 %v13409_v33  ;;  %8832 = vmatprep.subr.bf16.mxu1 %v11568_v29  ;;  %v11663_v33 = vcombine.low %v1265_v22, %v1273_v3  ;;  %v13430_v29 = vld [vmem:[#allocation11 + $0x490] ss:$8 sps:$4 sm:$0xff]   ;;  %v1313_v53 = vld [vmem:[#allocation8 + $0x638] sm:$0xff]  ;;  %v13450_v22 = vld [vmem:[#allocation11 + $0x4f4] ss:$8 sps:$4 sm:$0xff]  }
 0x569   :  { %11092 = vmatprep.subr.bf16.mxu0 %v13414_v40  ;;  %v11680_v40 = vcombine.high %v1281_v20, %v1289_v41  ;;  %v1377_v3 = vld [vmem:[#allocation8 + $0x838] sm:$0xff] }
 0x56b   :  { %8833 = vmatpush1.bf16.msra.mxu1 %v11567_v12  ;;  %v1305_v12 = vld [vmem:[#allocation8 + $0x5f8] sm:$0xff] }
 0x56c   :  { %11093 = vmatpush1.bf16.msra.mxu0 %v13412_v7  ;;  %8834 = vmatprep.subr.bf16.mxu1 %v11584_v25  ;;  %v11679_v7 = vcombine.low %v1281_v20, %v1289_v41  ;;  %v13433_v25 = vld [vmem:[#allocation11 + $0x4a0] ss:$8 sps:$4 sm:$0xff]   ;;  %v13453_v20 = vld [vmem:[#allocation11 + $0x504] ss:$8 sps:$4 sm:$0xff]  }
 0x56d   :  { %11094 = vmatprep.subr.bf16.mxu0 %v13417_v42  ;;  %v11696_v42 = vcombine.high %v1297_v4, %v1305_v12  ;;  %v1393_v41 = vld [vmem:[#allocation8 + $0x8b8] sm:$0xff] }
 0x56f   :  { %8835 = vmatpush1.bf16.msra.mxu1 %v11583_v31  ;;  %v1321_v31 = vld [vmem:[#allocation8 + $0x678] sm:$0xff] }
 0x570   :  { %11095 = vmatpush1.bf16.msra.mxu0 %v13415_v54  ;;  %8836 = vmatprep.subr.bf16.mxu1 %v11600_v47  ;;  %v11695_v54 = vcombine.low %v1297_v4, %v1305_v12  ;;  %v13436_v47 = vld [vmem:[#allocation11 + $0x4b0] ss:$8 sps:$4 sm:$0xff]   ;;  %v1409_v4 = vld [vmem:[#allocation8 + $0x938] sm:$0xff] }
 0x571   :  { %11096 = vmatprep.subr.bf16.mxu0 %v13420_v43  ;;  %v11712_v43 = vcombine.high %v1313_v53, %v1321_v31  ;;  %v1417_v12 = vld [vmem:[#allocation8 + $0x978] sm:$0xff] }
 0x573   :  { %8837 = vmatpush1.bf16.msra.mxu1 %v11599_v30  ;;  %v1337_v30 = vld [vmem:[#allocation8 + $0x6f8] sm:$0xff] }
 0x574   :  { %11097 = vmatpush1.bf16.msra.mxu0 %v13418_v46  ;;  %8838 = vmatprep.subr.bf16.mxu1 %v11616_v63  ;;  %v11711_v46 = vcombine.low %v1313_v53, %v1321_v31  ;;  %v13439_v63 = vld [vmem:[#allocation11 + $0x4c0] ss:$8 sps:$4 sm:$0xff]   ;;  %v13454_v53 = vld [vmem:[#allocation11 + $0x510] ss:$8 sps:$4 sm:$0xff]  }
 0x575   :  { %11098 = vmatprep.subr.bf16.mxu0 %v13423_v15  ;;  %v11728_v15 = vcombine.high %v1329_v45, %v1337_v30  ;;  %v1425_v31 = vld [vmem:[#allocation8 + $0x9b8] sm:$0xff] }
 0x577   :  { %8839 = vmatpush1.bf16.msra.mxu1 %v11615_v13  ;;  %v1353_v13 = vld [vmem:[#allocation8 + $0x778] sm:$0xff] }
 0x578   :  { %11099 = vmatpush1.bf16.msra.mxu0 %v13421_v16  ;;  %8840 = vmatprep.subr.bf16.mxu1 %v11632_v57  ;;  %v11727_v16 = vcombine.low %v1329_v45, %v1337_v30  ;;  %v13442_v57 = vld [vmem:[#allocation11 + $0x4d0] ss:$8 sps:$4 sm:$0xff]   ;;  %v1449_v45 = vld [vmem:[#allocation8 + $0xa78] sm:$0xff] }
 0x579   :  { %11100 = vmatprep.subr.bf16.mxu0 %v13426_v2  ;;  %v11744_v2 = vcombine.high %v1345_v50, %v1353_v13 }
 0x57b   :  { %8841 = vmatpush1.bf16.msra.mxu1 %v11631_v24  ;;  %v1369_v24 = vld [vmem:[#allocation8 + $0x7f8] sm:$0xff] }
 0x57c   :  { %11101 = vmatpush1.bf16.msra.mxu0 %v13424_v19  ;;  %8842 = vmatprep.subr.bf16.mxu1 %v11648_v36  ;;  %v11743_v19 = vcombine.low %v1345_v50, %v1353_v13  ;;  %v13445_v36 = vld [vmem:[#allocation11 + $0x4e0] ss:$8 sps:$4 sm:$0xff]   ;;  %v13465_v50 = vld [vmem:[#allocation11 + $0x544] ss:$8 sps:$4 sm:$0xff]  }
 0x57d   :  { %11102 = vmatprep.subr.bf16.mxu0 %v13429_v60  ;;  %v11760_v60 = vcombine.high %v1361_v0, %v1369_v24 }
 0x57f   :  { %8843 = vmatpush1.bf16.msra.mxu1 %v11647_v8  ;;  %v1385_v8 = vld [vmem:[#allocation8 + $0x878] sm:$0xff] }
 0x580   :  { %11103 = vmatpush1.bf16.msra.mxu0 %v13427_v51  ;;  %8844 = vmatprep.subr.bf16.mxu1 %v11664_v61  ;;  %v11759_v51 = vcombine.low %v1361_v0, %v1369_v24  ;;  %v13448_v61 = vld [vmem:[#allocation11 + $0x4f0] ss:$8 sps:$4 sm:$0xff]   ;;  %v1489_v24 = vld [vmem:[#allocation8 + $0xbb8] sm:$0xff] }
 0x581   :  { %11104 = vmatprep.subr.bf16.mxu0 %v13432_v5  ;;  %v11776_v5 = vcombine.high %v1377_v3, %v1385_v8  ;;  %v13466_v0 = vld [vmem:[#allocation11 + $0x550] ss:$8 sps:$4 sm:$0xff]  }
 0x583   :  { %8845 = vmatpush1.bf16.msra.mxu1 %v11663_v33  ;;  %v1401_v33 = vld [vmem:[#allocation8 + $0x8f8] sm:$0xff] }
 0x584   :  { %11105 = vmatpush1.bf16.msra.mxu0 %v13430_v29  ;;  %8846 = vmatprep.subr.bf16.mxu1 %v11680_v40  ;;  %v11775_v29 = vcombine.low %v1377_v3, %v1385_v8  ;;  %v11792_v40 = vcombine.high %v1393_v41, %v1401_v33  ;;  %v13469_v3 = vld [vmem:[#allocation11 + $0x560] ss:$8 sps:$4 sm:$0xff]  }
 0x585   :  { %11106 = vmatprep.subr.bf16.mxu0 %v13435_v52  ;;  %v13451_v52 = vld [vmem:[#allocation11 + $0x500] ss:$8 sps:$4 sm:$0xff]  }
 0x586   :  { %v1505_v8 = vld [vmem:[#allocation8 + $0xc38] sm:$0xff] }
 0x587   :  { %8847 = vmatpush1.bf16.msra.mxu1 %v11679_v7  ;;  %v13456_v7 = vld [vmem:[#allocation11 + $0x514] ss:$8 sps:$4 sm:$0xff]  }
 0x588   :  { %11107 = vmatpush1.bf16.msra.mxu0 %v13433_v25  ;;  %8848 = vmatprep.subr.bf16.mxu1 %v11696_v42  ;;  %v14686_v25 = vld [vmem:[#allocation28_spill] sm:$0xff]  ;;  %v11791_v42 = vcombine.low %v1393_v41, %v1401_v33  ;;  %v13472_v41 = vld [vmem:[#allocation11 + $0x570] ss:$8 sps:$4 sm:$0xff]  }
 0x589   :  { %11108 = vmatprep.subr.bf16.mxu0 %v13438_v1  ;;  %v11808_v1 = vcombine.high %v1409_v4, %v1417_v12  ;;  %v1521_v33 = vld [vmem:[#allocation8 + $0xcb8] sm:$0xff] }
 0x58b   :  { %8849 = vmatpush1.bf16.msra.mxu1 %v11695_v54  ;;  %v1433_v54 = vld [vmem:[#allocation8 + $0x9f8] sm:$0xff] }
 0x58c   :  { %11109 = vmatpush1.bf16.msra.mxu0 %v13436_v47  ;;  %8850 = vmatprep.subr.bf16.mxu1 %v11712_v43  ;;  %v13459_v47 = vld [vmem:[#allocation11 + $0x524] ss:$8 sps:$4 sm:$0xff]   ;;  %v11824_v43 = vcombine.high %v1425_v31, %v1433_v54  ;;  %v11823_v30 = vcombine.low %v1425_v31, %v1433_v54  ;;  %v13478_v31 = vld [vmem:[#allocation11 + $0x590] ss:$8 sps:$4 sm:$0xff]  }
 0x58d   :  { %11110 = vmatprep.subr.bf16.mxu0 %v13441_v35  ;;  %v13457_v35 = vld [vmem:[#allocation11 + $0x520] ss:$8 sps:$4 sm:$0xff]  }
 0x58e   :  { %v1553_v54 = vld [vmem:[#allocation8 + $0xdb8] sm:$0xff] }
 0x58f   :  { %8851 = vmatpush1.bf16.msra.mxu1 %v11711_v46 }
 0x590   :  { %11111 = vmatpush1.bf16.msra.mxu0 %v13439_v63  ;;  %8852 = vmatprep.subr.bf16.mxu1 %v11728_v15  ;;  %v13460_v63 = vld [vmem:[#allocation11 + $0x530] ss:$8 sps:$4 sm:$0xff]   ;;  %v1457_v15 = vld [vmem:[#allocation8 + $0xab8] sm:$0xff] }
 0x591   :  { %11112 = vmatprep.subr.bf16.mxu0 %v13444_v55  ;;  %v1465_v55 = vld [vmem:[#allocation8 + $0xaf8] sm:$0xff] }
 0x592   :  { %v11856_v13 = vcombine.high %v1457_v15, %v1465_v55 }
 0x593   :  { %8853 = vmatpush1.bf16.msra.mxu1 %v11727_v16  ;;  %v13463_v16 = vld [vmem:[#allocation11 + $0x540] ss:$8 sps:$4 sm:$0xff]  }
 0x594   :  { %11113 = vmatpush1.bf16.msra.mxu0 %v13442_v57  ;;  %8854 = vmatprep.subr.bf16.mxu1 %v11744_v2  ;;  %v1473_v57 = vld [vmem:[#allocation8 + $0xb38] sm:$0xff]  ;;  %v11855_v2 = vcombine.low %v1457_v15, %v1465_v55  ;;  %v13484_v15 = vld [vmem:[#allocation11 + $0x5b0] ss:$8 sps:$4 sm:$0xff]  }
 0x595   :  { %11114 = vmatprep.subr.bf16.mxu0 %v13447_v37  ;;  %v1585_v55 = vld [vmem:[#allocation8 + $0xeb8] sm:$0xff] }
 0x597   :  { %8855 = vmatpush1.bf16.msra.mxu1 %v11743_v19  ;;  %v1497_v19 = vld [vmem:[#allocation8 + $0xbf8] sm:$0xff] }
 0x598   :  { %11115 = vmatpush1.bf16.msra.mxu0 %v13445_v36  ;;  %8856 = vmatprep.subr.bf16.mxu1 %v11760_v60  ;;  %v13471_v36 = vld [vmem:[#allocation11 + $0x564] ss:$8 sps:$4 sm:$0xff]  }
 0x599   :  { %11116 = vmatprep.subr.bf16.mxu0 %v13450_v22  ;;  %v11888_v22 = vcombine.high %v1489_v24, %v1497_v19 }
 0x59b   :  { %8857 = vmatpush1.bf16.msra.mxu1 %v11759_v51  ;;  %v1513_v51 = vld [vmem:[#allocation8 + $0xc78] sm:$0xff] }
 0x59c   :  { %11117 = vmatpush1.bf16.msra.mxu0 %v13448_v61  ;;  %8879 = vmatprep.subr.bf16.mxu1 %v11776_v5  ;;  %v13474_v61 = vld [vmem:[#allocation11 + $0x574] ss:$8 sps:$4 sm:$0xff]   ;;  %v11887_v5 = vcombine.low %v1489_v24, %v1497_v19  ;;  %v13490_v24 = vld [vmem:[#allocation11 + $0x5d0] ss:$8 sps:$4 sm:$0xff]   ;;  %v1617_v19 = vld [vmem:[#allocation8 + $0xfb8] sm:$0xff] }
 0x59d   :  { %11139 = vmatprep.subr.bf16.mxu0 %v13453_v20  ;;  %v11904_v20 = vcombine.high %v1505_v8, %v1513_v51 }
 0x59e   :  { %8859 = vmatmul.mubr.bf16.vlgmr.msra.gmra.mrb[48].mxu1 %v14068_v58  ;;  %v11807_v58 = vcombine.low %v1409_v4, %v1417_v12  ;;  %v13475_v12 = vld [vmem:[#allocation11 + $0x580] ss:$8 sps:$4 sm:$0xff]  }
 0x59f   :  { %11119 = vmatmul.mubr.bf16.vlgmr.msra.gmra.mrb[40].mxu0 %v14686_v25  ;;  %8868 = vmatprep.mubr.bf16.mxu1 %v14118_v44  ;;  %v1441_v44 = vld [vmem:[#allocation8 + $0xa38] sm:$0xff] }
 0x5a0   :  { %8880 = vmatpush1.bf16.msra.mxu1 %v11775_v29  ;;  %11128 = vmatprep.mubr.bf16.mxu0 %v14501_v32  ;;  %v13462_v32 = vld [vmem:[#allocation11 + $0x534] ss:$8 sps:$4 sm:$0xff]   ;;  %v11840_v46 = vcombine.high %v1441_v44, %v1449_v45  ;;  %v1529_v29 = vld [vmem:[#allocation8 + $0xcf8] sm:$0xff] }
 0x5a1   :  { %8881 = vmatprep.subr.bf16.mxu1 %v11792_v40  ;;  %11140 = vmatpush1.bf16.msra.mxu0 %v13451_v52  ;;  %v13477_v40 = vld [vmem:[#allocation11 + $0x584] ss:$8 sps:$4 sm:$0xff]   ;;  %v11903_v52 = vcombine.low %v1505_v8, %v1513_v51  ;;  %v11920_v4 = vcombine.high %v1521_v33, %v1529_v29  ;;  %v13493_v8 = vld [vmem:[#allocation11 + $0x5e0] ss:$8 sps:$4 sm:$0xff]  }
 0x5a2   :  { %11141 = vmatprep.subr.bf16.mxu0 %v13456_v7  ;;  %v1537_v7 = vld [vmem:[#allocation8 + $0xd38] sm:$0xff] }
 0x5a3   :  { %v1545_v25 = vld [vmem:[#allocation8 + $0xd78] sm:$0xff] }
 0x5a4   :  { %8882 = vmatpush1.bf16.msra.mxu1 %v11791_v42  ;;  %v13480_v42 = vld [vmem:[#allocation11 + $0x594] ss:$8 sps:$4 sm:$0xff]   ;;  %v1633_v51 = vld [vmem:[#allocation8 + $0x1038] sm:$0xff] }
 0x5a5   :  { %8883 = vmatprep.subr.bf16.mxu1 %v11808_v1  ;;  %11142 = vmatpush1.bf16.msra.mxu0 %v13454_v53  ;;  %v11919_v1 = vcombine.low %v1521_v33, %v1529_v29  ;;  %v11936_v53 = vcombine.high %v1537_v7, %v1545_v25  ;;  %v13496_v33 = vld [vmem:[#allocation11 + $0x5f0] ss:$8 sps:$4 sm:$0xff]   ;;  %v1649_v29 = vld [vmem:[#allocation8 + $0x10b8] sm:$0xff] }
 0x5a6   :  { %8869 = vmatmul.mubr.bf16.gmra.mrb[52].mxu1 %v14116_v38  ;;  %11143 = vmatprep.subr.bf16.mxu0 %v13459_v47  ;;  %v11839_v38 = vcombine.low %v1441_v44, %v1449_v45  ;;  %v1561_v47 = vld [vmem:[#allocation8 + $0xdf8] sm:$0xff] }
 0x5a7   :  { %11129 = vmatmul.mubr.bf16.gmra.mrb[44].mxu0 %v14497_v56  ;;  %8911 = vmatprep.mubr.bf16.mxu1 %v14122_v48  ;;  %v1481_v56 = vld [vmem:[#allocation8 + $0xb78] sm:$0xff]  ;;  %v13468_v48 = vld [vmem:[#allocation11 + $0x554] ss:$8 sps:$4 sm:$0xff]  }
 0x5a8   :  { %8884 = vmatpush1.bf16.msra.mxu1 %v11807_v58  ;;  %v11872_v37 = vcombine.high %v1473_v57, %v1481_v56  ;;  %v11871_v60 = vcombine.low %v1473_v57, %v1481_v56  ;;  %v13483_v58 = vld [vmem:[#allocation11 + $0x5a4] ss:$8 sps:$4 sm:$0xff]   ;;  %v13481_v44 = vld [vmem:[#allocation11 + $0x5a0] ss:$8 sps:$4 sm:$0xff]  }
 0x5a9   :  { %8885 = vmatprep.subr.bf16.mxu1 %v11824_v43  ;;  %11144 = vmatpush1.bf16.msra.mxu0 %v13457_v35  ;;  %v11935_v43 = vcombine.low %v1537_v7, %v1545_v25  ;;  %v11952_v35 = vcombine.high %v1553_v54, %v1561_v47  ;;  %v1569_v45 = vld [vmem:[#allocation8 + $0xe38] sm:$0xff] }
 0x5aa   :  { %11145 = vmatprep.subr.bf16.mxu0 %v13462_v32  ;;  %v1577_v32 = vld [vmem:[#allocation8 + $0xe78] sm:$0xff] }
 0x5ab   :  { %v13487_v57 = vld [vmem:[#allocation11 + $0x5c0] ss:$8 sps:$4 sm:$0xff]  }
 0x5ac   :  { %8886 = vmatpush1.bf16.msra.mxu1 %v11823_v30  ;;  %v13486_v30 = vld [vmem:[#allocation11 + $0x5b4] ss:$8 sps:$4 sm:$0xff]   ;;  %v1601_v56 = vld [vmem:[#allocation8 + $0xf38] sm:$0xff] }
 0x5ad   :  { %8887 = vmatprep.subr.bf16.mxu1 %v11840_v46  ;;  %11146 = vmatpush1.bf16.msra.mxu0 %v13460_v63  ;;  %v11951_v46 = vcombine.low %v1553_v54, %v1561_v47  ;;  %v11968_v63 = vcombine.high %v1569_v45, %v1577_v32  ;;  %v1665_v7 = vld [vmem:[#allocation8 + $0x1138] sm:$0xff] }
 0x5ae   :  { %11147 = vmatprep.subr.bf16.mxu0 %v13465_v50  ;;  %v1593_v50 = vld [vmem:[#allocation8 + $0xef8] sm:$0xff] }
 0x5af   :  { %v1673_v25 = vld [vmem:[#allocation8 + $0x1178] sm:$0xff] }
 0x5b0   :  { %8888 = vmatpush1.bf16.msra.mxu1 %v11839_v38  ;;  %v13489_v38 = vld [vmem:[#allocation11 + $0x5c4] ss:$8 sps:$4 sm:$0xff]   ;;  %v12063_v54 = vcombine.low %v1665_v7, %v1673_v25 }
 0x5b1   :  { %8889 = vmatprep.subr.bf16.mxu1 %v11856_v13  ;;  %11148 = vmatpush1.bf16.msra.mxu0 %v13463_v16  ;;  %v11967_v13 = vcombine.low %v1569_v45, %v1577_v32  ;;  %v11984_v16 = vcombine.high %v1585_v55, %v1593_v50 }
 0x5b2   :  { %11149 = vmatprep.subr.bf16.mxu0 %v13468_v48  ;;  %v1609_v48 = vld [vmem:[#allocation8 + $0xf78] sm:$0xff] }
 0x5b4   :  { %8890 = vmatpush1.bf16.msra.mxu1 %v11855_v2  ;;  %v13492_v2 = vld [vmem:[#allocation11 + $0x5d4] ss:$8 sps:$4 sm:$0xff]  }
 0x5b5   :  { %8891 = vmatprep.subr.bf16.mxu1 %v11872_v37  ;;  %11150 = vmatpush1.bf16.msra.mxu0 %v13466_v0  ;;  %v11983_v37 = vcombine.low %v1585_v55, %v1593_v50  ;;  %v12000_v0 = vcombine.high %v1601_v56, %v1609_v48  ;;  %v1745_v55 = vld [vmem:[#allocation8 + $0x13b8] sm:$0xff] }
 0x5b6   :  { %11151 = vmatprep.subr.bf16.mxu0 %v13471_v36  ;;  %v1625_v36 = vld [vmem:[#allocation8 + $0xff8] sm:$0xff] }
 0x5b8   :  { %8892 = vmatpush1.bf16.msra.mxu1 %v11871_v60  ;;  %v13495_v60 = vld [vmem:[#allocation11 + $0x5e4] ss:$8 sps:$4 sm:$0xff]  }
 0x5b9   :  { %8893 = vmatprep.subr.bf16.mxu1 %v11888_v22  ;;  %11152 = vmatpush1.bf16.msra.mxu0 %v13469_v3  ;;  %v11999_v22 = vcombine.low %v1601_v56, %v1609_v48  ;;  %v12016_v3 = vcombine.high %v1617_v19, %v1625_v36  ;;  %v1777_v56 = vld [vmem:[#allocation8 + $0x14b8] sm:$0xff] }
 0x5ba   :  { %11153 = vmatprep.subr.bf16.mxu0 %v13474_v61  ;;  %v1641_v61 = vld [vmem:[#allocation8 + $0x1078] sm:$0xff] }
 0x5bb   :  { %v1785_v48 = vld [vmem:[#allocation8 + $0x14f8] sm:$0xff] }
 0x5bc   :  { %8894 = vmatpush1.bf16.msra.mxu1 %v11887_v5  ;;  %v13498_v5 = vld [vmem:[#allocation11 + $0x5f4] ss:$8 sps:$4 sm:$0xff]  }
 0x5bd   :  { %8895 = vmatprep.subr.bf16.mxu1 %v11904_v20  ;;  %11154 = vmatpush1.bf16.msra.mxu0 %v13472_v41  ;;  %v12015_v20 = vcombine.low %v1617_v19, %v1625_v36  ;;  %v12032_v41 = vcombine.high %v1633_v51, %v1641_v61  ;;  %v12175_v19 = vcombine.low %v1777_v56, %v1785_v48 }
 0x5be   :  { %11155 = vmatprep.subr.bf16.mxu0 %v13477_v40  ;;  %v1657_v40 = vld [vmem:[#allocation8 + $0x10f8] sm:$0xff] }
 0x5c0   :  { %8896 = vmatpush1.bf16.msra.mxu1 %v11903_v52  ;;  %v13501_v52 = vld [vmem:[#allocation11 + $0x604] ss:$8 sps:$4 sm:$0xff]  }
 0x5c1   :  { %8897 = vmatprep.subr.bf16.mxu1 %v11920_v4  ;;  %11156 = vmatpush1.bf16.msra.mxu0 %v13475_v12  ;;  %v12031_v4 = vcombine.low %v1633_v51, %v1641_v61  ;;  %v12048_v12 = vcombine.high %v1649_v29, %v1657_v40  ;;  %v1825_v51 = vld [vmem:[#allocation8 + $0x1638] sm:$0xff] }
 0x5c2   :  { %11157 = vmatprep.subr.bf16.mxu0 %v13480_v42  ;;  %v12047_v42 = vcombine.low %v1649_v29, %v1657_v40  ;;  %v1833_v61 = vld [vmem:[#allocation8 + $0x1678] sm:$0xff] }
 0x5c3   :  { %v12223_v29 = vcombine.low %v1825_v51, %v1833_v61 }
 0x5c4   :  { %8898 = vmatpush1.bf16.msra.mxu1 %v11919_v1  ;;  %v12064_v1 = vcombine.high %v1665_v7, %v1673_v25  ;;  %v1873_v25 = vld [vmem:[#allocation8 + $0x17b8] sm:$0xff] }
 0x5c5   :  { %8899 = vmatprep.subr.bf16.mxu1 %v11936_v53  ;;  %11158 = vmatpush1.bf16.msra.mxu0 %v13478_v31  ;;  %v1681_v53 = vld [vmem:[#allocation8 + $0x11b8] sm:$0xff] }
 0x5c6   :  { %11159 = vmatprep.subr.bf16.mxu0 %v13483_v58  ;;  %v1689_v31 = vld [vmem:[#allocation8 + $0x11f8] sm:$0xff] }
 0x5c7   :  { %v12080_v47 = vcombine.high %v1681_v53, %v1689_v31  ;;  %v1697_v58 = vld [vmem:[#allocation8 + $0x1238] sm:$0xff] }
 0x5c8   :  { %8900 = vmatpush1.bf16.msra.mxu1 %v11935_v43  ;;  %v1705_v43 = vld [vmem:[#allocation8 + $0x1278] sm:$0xff] }
 0x5c9   :  { %8901 = vmatprep.subr.bf16.mxu1 %v11952_v35  ;;  %11160 = vmatpush1.bf16.msra.mxu0 %v13481_v44  ;;  %v1713_v35 = vld [vmem:[#allocation8 + $0x12b8] sm:$0xff]  ;;  %v12095_v45 = vcombine.low %v1697_v58, %v1705_v43 }
 0x5ca   :  { %11161 = vmatprep.subr.bf16.mxu0 %v13486_v30  ;;  %v1721_v44 = vld [vmem:[#allocation8 + $0x12f8] sm:$0xff] }
 0x5cb   :  { %v12112_v32 = vcombine.high %v1713_v35, %v1721_v44  ;;  %v1729_v30 = vld [vmem:[#allocation8 + $0x1338] sm:$0xff] }
 0x5cc   :  { %8902 = vmatpush1.bf16.msra.mxu1 %v11951_v46  ;;  %v1737_v46 = vld [vmem:[#allocation8 + $0x1378] sm:$0xff] }
 0x5cd   :  { %8903 = vmatprep.subr.bf16.mxu1 %v11968_v63  ;;  %11162 = vmatpush1.bf16.msra.mxu0 %v13484_v15  ;;  %v12111_v63 = vcombine.low %v1713_v35, %v1721_v44  ;;  %v12128_v15 = vcombine.high %v1729_v30, %v1737_v46  ;;  %v12127_v50 = vcombine.low %v1729_v30, %v1737_v46  ;;  %v1921_v44 = vld [vmem:[#allocation8 + $0x1938] sm:$0xff] }
 0x5ce   :  { %11163 = vmatprep.subr.bf16.mxu0 %v13489_v38  ;;  %v1761_v38 = vld [vmem:[#allocation8 + $0x1438] sm:$0xff] }
 0x5cf   :  { %v1937_v46 = vld [vmem:[#allocation8 + $0x19b8] sm:$0xff] }
 0x5d0   :  { %8904 = vmatpush1.bf16.msra.mxu1 %v11967_v13  ;;  %v1769_v13 = vld [vmem:[#allocation8 + $0x1478] sm:$0xff] }
 0x5d1   :  { %8905 = vmatprep.subr.bf16.mxu1 %v11984_v16  ;;  %11164 = vmatpush1.bf16.msra.mxu0 %v13487_v57  ;;  %v12160_v57 = vcombine.high %v1761_v38, %v1769_v13 }
 0x5d2   :  { %11165 = vmatprep.subr.bf16.mxu0 %v13492_v2  ;;  %v12159_v2 = vcombine.low %v1761_v38, %v1769_v13  ;;  %v1977_v38 = vld [vmem:[#allocation8 + $0x1af8] sm:$0xff] }
 0x5d4   :  { %8906 = vmatpush1.bf16.msra.mxu1 %v11983_v37  ;;  %v12176_v37 = vcombine.high %v1777_v56, %v1785_v48 }
 0x5d5   :  { %8907 = vmatprep.subr.bf16.mxu1 %v12000_v0  ;;  %11166 = vmatpush1.bf16.msra.mxu0 %v13490_v24  ;;  %v1793_v0 = vld [vmem:[#allocation8 + $0x1538] sm:$0xff] }
 0x5d6   :  { %11167 = vmatprep.subr.bf16.mxu0 %v13495_v60  ;;  %v1801_v24 = vld [vmem:[#allocation8 + $0x1578] sm:$0xff] }
 0x5d7   :  { %v12192_v36 = vcombine.high %v1793_v0, %v1801_v24  ;;  %v1809_v60 = vld [vmem:[#allocation8 + $0x15b8] sm:$0xff] }
 0x5d8   :  { %8908 = vmatpush1.bf16.msra.mxu1 %v11999_v22  ;;  %v1817_v22 = vld [vmem:[#allocation8 + $0x15f8] sm:$0xff] }
 0x5d9   :  { %8909 = vmatprep.subr.bf16.mxu1 %v12016_v3  ;;  %11168 = vmatpush1.bf16.msra.mxu0 %v13493_v8  ;;  %v12191_v3 = vcombine.low %v1793_v0, %v1801_v24  ;;  %v12208_v8 = vcombine.high %v1809_v60, %v1817_v22  ;;  %v1993_v0 = vld [vmem:[#allocation8 + $0x1b78] sm:$0xff] }
 0x5da   :  { %11169 = vmatprep.subr.bf16.mxu0 %v13498_v5  ;;  %v12207_v5 = vcombine.low %v1809_v60, %v1817_v22 }
 0x5dc   :  { %8910 = vmatpush1.bf16.msra.mxu1 %v12015_v20  ;;  %v12224_v20 = vcombine.high %v1825_v51, %v1833_v61  ;;  %v2009_v51 = vld [vmem:[#allocation8 + $0x1bf8] sm:$0xff] }
 0x5dd   :  { %8932 = vmatprep.subr.bf16.mxu1 %v12032_v41  ;;  %11170 = vmatpush1.bf16.msra.mxu0 %v13496_v33  ;;  %v1841_v41 = vld [vmem:[#allocation8 + $0x16b8] sm:$0xff] }
 0x5de   :  { %11192 = vmatprep.subr.bf16.mxu0 %v13501_v52  ;;  %v1849_v33 = vld [vmem:[#allocation8 + $0x16f8] sm:$0xff] }
 0x5df   :  { %8912 = vmatmul.mubr.bf16.vlgmr.msra.gmra.mrb[48].mxu1 %v14120_v18  ;;  %v12079_v18 = vcombine.low %v1681_v53, %v1689_v31  ;;  %v12240_v40 = vcombine.high %v1841_v41, %v1849_v33  ;;  %v1857_v52 = vld [vmem:[#allocation8 + $0x1738] sm:$0xff] }
 0x5e0   :  { %8921 = vmatprep.mubr.bf16.mxu1 %v14141_v23  ;;  %8933 = vmatpush1.bf16.msra.mxu1 %v12031_v4  ;;  %v12096_v23 = vcombine.high %v1697_v58, %v1705_v43  ;;  %v1865_v4 = vld [vmem:[#allocation8 + $0x1778] sm:$0xff] }
 0x5e1   :  { %8934 = vmatprep.subr.bf16.mxu1 %v12048_v12  ;;  %v12239_v12 = vcombine.low %v1841_v41, %v1849_v33  ;;  %v12256_v7 = vcombine.high %v1857_v52, %v1865_v4  ;;  %v1889_v31 = vld [vmem:[#allocation8 + $0x1838] sm:$0xff] }
 0x5e2   :  { %v1905_v43 = vld [vmem:[#allocation8 + $0x18b8] sm:$0xff] }
 0x5e4   :  { %8935 = vmatpush1.bf16.msra.mxu1 %v12047_v42  ;;  %v1881_v42 = vld [vmem:[#allocation8 + $0x17f8] sm:$0xff] }
 0x5e5   :  { %8936 = vmatprep.subr.bf16.mxu1 %v12064_v1  ;;  %v12255_v1 = vcombine.low %v1857_v52, %v1865_v4  ;;  %v12272_v53 = vcombine.high %v1873_v25, %v1881_v42 }
 0x5e7   :  { %8922 = vmatmul.mubr.bf16.gmra.mrb[52].mxu1 %v14139_v21  ;;  %v1753_v21 = vld [vmem:[#allocation8 + $0x13f8] sm:$0xff] }
 0x5e8   :  { %8937 = vmatpush1.bf16.msra.mxu1 %v12063_v54  ;;  %8964 = vmatprep.mubr.bf16.mxu1 %v14203_v14  ;;  %v12144_v14 = vcombine.high %v1745_v55, %v1753_v21  ;;  %v12143_v16 = vcombine.low %v1745_v55, %v1753_v21  ;;  %v1897_v54 = vld [vmem:[#allocation8 + $0x1878] sm:$0xff] }
 0x5e9   :  { %8938 = vmatprep.subr.bf16.mxu1 %v12080_v47  ;;  %v12271_v47 = vcombine.low %v1873_v25, %v1881_v42  ;;  %v12288_v58 = vcombine.high %v1889_v31, %v1897_v54  ;;  %v1953_v21 = vld [vmem:[#allocation8 + $0x1a38] sm:$0xff] }
 0x5ea   :  { %v2025_v25 = vld [vmem:[#allocation8 + $0x1c78] sm:$0xff] }
 0x5ec   :  { %8939 = vmatpush1.bf16.msra.mxu1 %v12079_v18  ;;  %v1913_v18 = vld [vmem:[#allocation8 + $0x18f8] sm:$0xff] }
 0x5ed   :  { %8940 = vmatprep.subr.bf16.mxu1 %v12096_v23  ;;  %v12287_v23 = vcombine.low %v1889_v31, %v1897_v54  ;;  %v12304_v35 = vcombine.high %v1905_v43, %v1913_v18 }
 0x5f0   :  { %8941 = vmatpush1.bf16.msra.mxu1 %v12095_v45  ;;  %v1929_v45 = vld [vmem:[#allocation8 + $0x1978] sm:$0xff] }
 0x5f1   :  { %8942 = vmatprep.subr.bf16.mxu1 %v12112_v32  ;;  %v12303_v32 = vcombine.low %v1905_v43, %v1913_v18  ;;  %v12320_v30 = vcombine.high %v1921_v44, %v1929_v45 }
 0x5f4   :  { %8943 = vmatpush1.bf16.msra.mxu1 %v12111_v63  ;;  %v1945_v63 = vld [vmem:[#allocation8 + $0x19f8] sm:$0xff] }
 0x5f5   :  { %8944 = vmatprep.subr.bf16.mxu1 %v12128_v15  ;;  %v12319_v15 = vcombine.low %v1921_v44, %v1929_v45  ;;  %v12336_v55 = vcombine.high %v1937_v46, %v1945_v63  ;;  %v2033_v45 = vld [vmem:[#allocation8 + $0x1cb8] sm:$0xff] }
 0x5f8   :  { %8945 = vmatpush1.bf16.msra.mxu1 %v12127_v50  ;;  %v1961_v50 = vld [vmem:[#allocation8 + $0x1a78] sm:$0xff] }
 0x5f9   :  { %8946 = vmatprep.subr.bf16.mxu1 %v12144_v14  ;;  %v1969_v14 = vld [vmem:[#allocation8 + $0x1ab8] sm:$0xff]  ;;  %v12351_v13 = vcombine.low %v1953_v21, %v1961_v50 }
 0x5fa   :  { %v12368_v48 = vcombine.high %v1969_v14, %v1977_v38  ;;  %v12367_v24 = vcombine.low %v1969_v14, %v1977_v38  ;;  %v13507_v14 = vld [vmem:[#allocation11 + $0x624] ss:$8 sps:$4 sm:$0xff]  }
 0x5fc   :  { %8947 = vmatpush1.bf16.msra.mxu1 %v12143_v16  ;;  %v14603_v16 = vld [vmem:[#allocation10 + $0x8] sm:$0xff] }
 0x5fd   :  { %8948 = vmatprep.subr.bf16.mxu1 %v12160_v57  ;;  %v14687_v57 = vld [vmem:[#allocation26_spill] sm:$0xff] }
 0x5fe   :  { %v2185_v56 = vrot.slane %v14603_v16, %v14687_v57  ;;  %v2049_v57 = vld [vmem:[#allocation8 + $0x1d38] sm:$0xff] }
 0x600   :  { %8949 = vmatpush1.bf16.msra.mxu1 %v12159_v2  ;;  %v14688_v2 = vld [vmem:[#allocation27_spill] sm:$0xff] }
 0x601   :  { %8950 = vmatprep.subr.bf16.mxu1 %v12176_v37  ;;  %v1985_v37 = vld [vmem:[#allocation8 + $0x1b38] sm:$0xff] }
 0x602   :  { %v12384_v60 = vcombine.high %v1985_v37, %v1993_v0 }
 0x604   :  { %8951 = vmatpush1.bf16.msra.mxu1 %v12175_v19 }
 0x605   :  { %8952 = vmatprep.subr.bf16.mxu1 %v12192_v36 }
 0x608   :  { %8953 = vmatpush1.bf16.msra.mxu1 %v12191_v3 }
 0x609   :  { %8954 = vmatprep.subr.bf16.mxu1 %v12208_v8  ;;  %v2001_v8 = vld [vmem:[#allocation8 + $0x1bb8] sm:$0xff] }
 0x60a   :  { %v12400_v52 = vcombine.high %v2001_v8, %v2009_v51  ;;  %v12399_v54 = vcombine.low %v2001_v8, %v2009_v51  ;;  %v13513_v8 = vld [vmem:[#allocation11 + $0x644] ss:$8 sps:$4 sm:$0xff]  }
 0x60b   :  { %v2081_v51 = vld [vmem:[#allocation8 + $0x1e38] sm:$0xff] }
 0x60c   :  { %8955 = vmatpush1.bf16.msra.mxu1 %v12207_v5 }
 0x60d   :  { %8956 = vmatprep.subr.bf16.mxu1 %v12224_v20 }
 0x610   :  { %8957 = vmatpush1.bf16.msra.mxu1 %v12223_v29  ;;  %v12383_v29 = vcombine.low %v1985_v37, %v1993_v0 }
 0x611   :  { %8958 = vmatprep.subr.bf16.mxu1 %v12240_v40 }
 0x614   :  { %8959 = vmatpush1.bf16.msra.mxu1 %v12239_v12 }
 0x615   :  { %8960 = vmatprep.subr.bf16.mxu1 %v12256_v7  ;;  %v2017_v7 = vld [vmem:[#allocation8 + $0x1c38] sm:$0xff] }
 0x616   :  { %v12416_v18 = vcombine.high %v2017_v7, %v2025_v25 }
 0x618   :  { %8961 = vmatpush1.bf16.msra.mxu1 %v12255_v1 }
 0x619   :  { %8962 = vmatprep.subr.bf16.mxu1 %v12272_v53 }
 0x61c   :  { %8963 = vmatpush1.bf16.msra.mxu1 %v12271_v47  ;;  %v13499_v47 = vld [vmem:[#allocation11 + $0x600] ss:$8 sps:$4 sm:$0xff]  }
 0x61d   :  { %8985 = vmatprep.subr.bf16.mxu1 %v12288_v58 }
 0x61f   :  { %8965 = vmatmul.mubr.bf16.vlgmr.msra.gmra.mrb[48].mxu1 %v14195_v10  ;;  %v12335_v10 = vcombine.low %v1937_v46, %v1945_v63 }
 0x620   :  { %8974 = vmatprep.mubr.bf16.mxu1 %v14225_v9  ;;  %8986 = vmatpush1.bf16.msra.mxu1 %v12287_v23  ;;  %v12352_v9 = vcombine.high %v1953_v21, %v1961_v50  ;;  %v13504_v23 = vld [vmem:[#allocation11 + $0x614] ss:$8 sps:$4 sm:$0xff]   ;;  %v12415_v21 = vcombine.low %v2017_v7, %v2025_v25  ;;  %v13502_v50 = vld [vmem:[#allocation11 + $0x610] ss:$8 sps:$4 sm:$0xff]   ;;  %v2113_v7 = vld [vmem:[#allocation8 + $0x1f38] sm:$0xff] }
 0x621   :  { %8987 = vmatprep.subr.bf16.mxu1 %v12304_v35  ;;  %v2121_v25 = vld [vmem:[#allocation8 + $0x1f78] sm:$0xff] }
 0x624   :  { %8988 = vmatpush1.bf16.msra.mxu1 %v12303_v32  ;;  %v2041_v32 = vld [vmem:[#allocation8 + $0x1cf8] sm:$0xff] }
 0x625   :  { %8989 = vmatprep.subr.bf16.mxu1 %v12320_v30  ;;  %v12431_v0 = vcombine.low %v2033_v45, %v2041_v32 }
 0x627   :  { %8975 = vmatmul.mubr.bf16.gmra.mrb[52].mxu1 %v14223_v6  ;;  %v2189_v6 = vrot.slane %v14603_v16, %v14688_v2 }
 0x628   :  { %8990 = vmatpush1.bf16.msra.mxu1 %v12319_v15  ;;  %9017 = vmatprep.mubr.bf16.mxu1 %v14229_v28 }
 0x629   :  { %8991 = vmatprep.subr.bf16.mxu1 %v12336_v55 }
 0x62c   :  { %8992 = vmatpush1.bf16.msra.mxu1 %v12335_v10 }
 0x62d   :  { %8993 = vmatprep.subr.bf16.mxu1 %v12352_v9  ;;  %v12432_v9 = vcombine.high %v2033_v45, %v2041_v32  ;;  %v13528_v45 = vld [vmem:[#allocation11 + $0x694] ss:$8 sps:$4 sm:$0xff]   ;;  %v13526_v32 = vld [vmem:[#allocation11 + $0x690] ss:$8 sps:$4 sm:$0xff]  }
 0x630   :  { %8994 = vmatpush1.bf16.msra.mxu1 %v12351_v13  ;;  %v8595_v28 = vpop.f32.mrb[40].mxu1 }
 0x631   :  { %v12913_v19 = vadd.f32 %v8595_v28, %v2185_v56  ;;  %v8597_v36 = vpop.f32.mrb[41].mxu1  ;;  %8995 = vmatprep.subr.bf16.mxu1 %v12368_v48  ;;  %v2057_v48 = vld [vmem:[#allocation8 + $0x1d78] sm:$0xff] }
 0x632   :  { %v12914_v22 = vadd.f32 %v8597_v36, %v2189_v6  ;;  %v8599_v3 = vpop.f32.mrb[42].mxu1  ;;  %v12448_v28 = vcombine.high %v2049_v57, %v2057_v48  ;;  %v2073_v36 = vld [vmem:[#allocation8 + $0x1df8] sm:$0xff] }
 0x633   :  { %v9048_v61 = vmax.f32 %v12913_v19, 0.0  ;;  %v12915_v5 = vadd.f32 %v8599_v3, %v2185_v56  ;;  %v8601_v20 = vpop.f32.mrb[43].mxu1  ;;  %v2065_v19 = vld [vmem:[#allocation8 + $0x1db8] sm:$0xff] }
 0x634   :  { %v9049_v41 = vmax.f32 %v12914_v22, 0.0  ;;  %8996 = vmatpush1.bf16.msra.mxu1 %v12367_v24  ;;  %v12916_v33 = vadd.f32 %v8601_v20, %v2189_v6  ;;  %v13510_v24 = vld [vmem:[#allocation11 + $0x634] ss:$8 sps:$4 sm:$0xff]   ;;  %v13508_v22 = vld [vmem:[#allocation11 + $0x630] ss:$8 sps:$4 sm:$0xff]   ;;  %v12464_v3 = vcombine.high %v2065_v19, %v2073_v36 }
 0x635   :  { %v9064_v40 = vmax.f32 %v12915_v5, 0.0  ;;  %8997 = vmatprep.subr.bf16.mxu1 %v12384_v60  ;;  %v12447_v60 = vcombine.low %v2049_v57, %v2057_v48  ;;  %v12463_v5 = vcombine.low %v2065_v19, %v2073_v36  ;;  %v13511_v20 = vld [vmem:[#allocation11 + $0x640] ss:$8 sps:$4 sm:$0xff]   ;;  %v13550_v57 = vld [vmem:[#allocation11 + $0x710] ss:$8 sps:$4 sm:$0xff]  }
 0x636   :  { %v12842_v4 = vpack.c.bf16 %v9049_v41, %v9048_v61  ;;  %v9065_v12 = vmax.f32 %v12916_v33, 0.0  ;;  %v13516_v33 = vld [vmem:[#allocation11 + $0x654] ss:$8 sps:$4 sm:$0xff]   ;;  %v13555_v48 = vld [vmem:[#allocation11 + $0x724] ss:$8 sps:$4 sm:$0xff]  }
 0x637   :  { %v9112_v42 = vpack.c.bf16 %v9064_v40, %v9048_v61  ;;  %v2089_v61 = vld [vmem:[#allocation8 + $0x1e78] sm:$0xff]  ;;  %v13570_v19 = vld [vmem:[#allocation11 + $0x774] ss:$8 sps:$4 sm:$0xff]   ;;  %v13568_v36 = vld [vmem:[#allocation11 + $0x770] ss:$8 sps:$4 sm:$0xff]  }
 0x638   :  { %9299 = vst [vmem:[#allocation15 + $0x28] sm:$0xff] %v12842_v4  ;;  %v9113_v1 = vpack.c.bf16 %v9065_v12, %v9049_v41  ;;  %v12850_v53 = vpack.c.bf16 %v9065_v12, %v9064_v40  ;;  %8998 = vmatpush1.bf16.msra.mxu1 %v12383_v29  ;;  %v8605_v31 = vpop.f32.mrb[44].mxu1  ;;  %v12480_v41 = vcombine.high %v2081_v51, %v2089_v61  ;;  %v2097_v29 = vld [vmem:[#allocation8 + $0x1eb8] sm:$0xff] }
 0x639   :  { %v12917_v58 = vadd.f32 %v8605_v31, %v2185_v56  ;;  %v8607_v43 = vpop.f32.mrb[45].mxu1  ;;  %8999 = vmatprep.subr.bf16.mxu1 %v12400_v52  ;;  %v2105_v40 = vld [vmem:[#allocation8 + $0x1ef8] sm:$0xff]  ;;  %v12479_v52 = vcombine.low %v2081_v51, %v2089_v61  ;;  %v13522_v31 = vld [vmem:[#allocation11 + $0x674] ss:$8 sps:$4 sm:$0xff]  }
 0x63a   :  { %9307 = vst [vmem:[#allocation15 + $0x68] sm:$0xff] %v12850_v53  ;;  %v12918_v35 = vadd.f32 %v8607_v43, %v2189_v6  ;;  %v8609_v44 = vpop.f32.mrb[46].mxu1  ;;  %11171 = vmatprep.mubr.bf16.mxu0 %v9113_v1  ;;  %v12496_v4 = vcombine.high %v2097_v29, %v2105_v40  ;;  %v13519_v12 = vld [vmem:[#allocation11 + $0x664] ss:$8 sps:$4 sm:$0xff]   ;;  %v13517_v1 = vld [vmem:[#allocation11 + $0x660] ss:$8 sps:$4 sm:$0xff]   ;;  %v12512_v53 = vcombine.high %v2113_v7, %v2121_v25 }
 0x63b   :  { %v9080_v30 = vmax.f32 %v12917_v58, 0.0  ;;  %v12919_v46 = vadd.f32 %v8609_v44, %v2185_v56  ;;  %v8611_v63 = vpop.f32.mrb[47].mxu1  ;;  %11172 = vmatmul.mubr.bf16.vlgmr.msra.gmra.mrb[40].mxu0 %v9112_v42  ;;  %v12495_v42 = vcombine.low %v2097_v29, %v2105_v40  ;;  %v12511_v58 = vcombine.low %v2113_v7, %v2121_v25  ;;  %v13520_v43 = vld [vmem:[#allocation11 + $0x670] ss:$8 sps:$4 sm:$0xff]   ;;  %v13523_v44 = vld [vmem:[#allocation11 + $0x680] ss:$8 sps:$4 sm:$0xff]  }
 0x63c   :  { %v9081_v15 = vmax.f32 %v12918_v35, 0.0  ;;  %9000 = vmatpush1.bf16.msra.mxu1 %v12399_v54  ;;  %v12920_v55 = vadd.f32 %v8611_v63, %v2189_v6  ;;  %11193 = vmatpush1.bf16.msra.mxu0 %v13499_v47  ;;  %v13505_v6 = vld [vmem:[#allocation11 + $0x620] ss:$8 sps:$4 sm:$0xff]   ;;  %v13534_v63 = vld [vmem:[#allocation11 + $0x6b4] ss:$8 sps:$4 sm:$0xff]   ;;  %v2205_v7 = vrot.slane %v14603_v16, %v14170_v39 }
 0x63d   :  { %v9096_v10 = vmax.f32 %v12919_v46, 0.0  ;;  %9001 = vmatprep.subr.bf16.mxu1 %v12416_v18  ;;  %11194 = vmatprep.subr.bf16.mxu0 %v13504_v23  ;;  %v2129_v54 = vld [vmem:[#allocation8 + $0x1fb8] sm:$0xff]  ;;  %v13582_v61 = vld [vmem:[#allocation11 + $0x7b4] ss:$8 sps:$4 sm:$0xff]   ;;  %v13586_v29 = vld [vmem:[#allocation11 + $0x7d0] ss:$8 sps:$4 sm:$0xff]  }
 0x63e   :  { %v12858_v38 = vpack.c.bf16 %v9081_v15, %v9080_v30  ;;  %v9097_v13 = vmax.f32 %v12920_v55, 0.0  ;;  %v2137_v47 = vld [vmem:[#allocation8 + $0x1ff8] sm:$0xff] }
 0x63f   :  { %v9128_v2 = vpack.c.bf16 %v9096_v10, %v9080_v30  ;;  %v12528_v18 = vcombine.high %v2129_v54, %v2137_v47  ;;  %v13525_v23 = vld [vmem:[#allocation11 + $0x684] ss:$8 sps:$4 sm:$0xff]   ;;  %v12527_v35 = vcombine.low %v2129_v54, %v2137_v47  ;;  %v13529_v46 = vld [vmem:[#allocation11 + $0x6a0] ss:$8 sps:$4 sm:$0xff]  }
 0x640   :  { %9315 = vst [vmem:[#allocation15 + $0xa8] sm:$0xff] %v12858_v38  ;;  %v9129_v56 = vpack.c.bf16 %v9097_v13, %v9081_v15  ;;  %v12866_v37 = vpack.c.bf16 %v9097_v13, %v9096_v10  ;;  %9002 = vmatpush1.bf16.msra.mxu1 %v12415_v21  ;;  %11195 = vmatpush1.bf16.msra.mxu0 %v13502_v50  ;;  %v13531_v30 = vld [vmem:[#allocation11 + $0x6a4] ss:$8 sps:$4 sm:$0xff]   ;;  %v13532_v15 = vld [vmem:[#allocation11 + $0x6b0] ss:$8 sps:$4 sm:$0xff]  }
 0x641   :  { %9003 = vmatprep.subr.bf16.mxu1 %v12432_v9  ;;  %11196 = vmatprep.subr.bf16.mxu0 %v13507_v14  ;;  %v13537_v55 = vld [vmem:[#allocation11 + $0x6c4] ss:$8 sps:$4 sm:$0xff]   ;;  %v13535_v21 = vld [vmem:[#allocation11 + $0x6c0] ss:$8 sps:$4 sm:$0xff]   ;;  %v13540_v50 = vld [vmem:[#allocation11 + $0x6d4] ss:$8 sps:$4 sm:$0xff]  }
 0x642   :  { %9323 = vst [vmem:[#allocation15 + $0xe8] sm:$0xff] %v12866_v37  ;;  %11181 = vmatprep.mubr.bf16.mxu0 %v9129_v56  ;;  %v13538_v10 = vld [vmem:[#allocation11 + $0x6d0] ss:$8 sps:$4 sm:$0xff]   ;;  %v13546_v9 = vld [vmem:[#allocation11 + $0x6f4] ss:$8 sps:$4 sm:$0xff]  }
 0x643   :  { %11182 = vmatmul.mubr.bf16.gmra.mrb[44].mxu0 %v9128_v2  ;;  %v13544_v14 = vld [vmem:[#allocation11 + $0x6f0] ss:$8 sps:$4 sm:$0xff]   ;;  %v13549_v38 = vld [vmem:[#allocation11 + $0x704] ss:$8 sps:$4 sm:$0xff]   ;;  %v13547_v13 = vld [vmem:[#allocation11 + $0x700] ss:$8 sps:$4 sm:$0xff]  }
 0x644   :  { %9004 = vmatpush1.bf16.msra.mxu1 %v12431_v0  ;;  %11197 = vmatpush1.bf16.msra.mxu0 %v13505_v6  ;;  %v13553_v2 = vld [vmem:[#allocation11 + $0x720] ss:$8 sps:$4 sm:$0xff]   ;;  %v13558_v56 = vld [vmem:[#allocation11 + $0x734] ss:$8 sps:$4 sm:$0xff]   ;;  %v13556_v37 = vld [vmem:[#allocation11 + $0x730] ss:$8 sps:$4 sm:$0xff]  }
 0x645   :  { %11224 = vmatprep.mubr.bf16.mxu0 %v14561_v27  ;;  %9005 = vmatprep.subr.bf16.mxu1 %v12448_v28  ;;  %v13514_v27 = vld [vmem:[#allocation11 + $0x650] ss:$8 sps:$4 sm:$0xff]   ;;  %v13561_v0 = vld [vmem:[#allocation11 + $0x744] ss:$8 sps:$4 sm:$0xff]   ;;  %v13559_v6 = vld [vmem:[#allocation11 + $0x740] ss:$8 sps:$4 sm:$0xff]  }
 0x646   :  { %11198 = vmatprep.subr.bf16.mxu0 %v13510_v24  ;;  %v13567_v28 = vld [vmem:[#allocation11 + $0x764] ss:$8 sps:$4 sm:$0xff]   ;;  %v13565_v24 = vld [vmem:[#allocation11 + $0x760] ss:$8 sps:$4 sm:$0xff]  }
 0x647   :  { %v13577_v51 = vld [vmem:[#allocation11 + $0x7a0] ss:$8 sps:$4 sm:$0xff]   ;;  %v13591_v40 = vld [vmem:[#allocation11 + $0x7e4] ss:$8 sps:$4 sm:$0xff]  }
 0x648   :  { %9006 = vmatpush1.bf16.msra.mxu1 %v12447_v60  ;;  %11199 = vmatpush1.bf16.msra.mxu0 %v13508_v22  ;;  %v13571_v60 = vld [vmem:[#allocation11 + $0x780] ss:$8 sps:$4 sm:$0xff]   ;;  %v13576_v22 = vld [vmem:[#allocation11 + $0x794] ss:$8 sps:$4 sm:$0xff]  }
 0x649   :  { %9007 = vmatprep.subr.bf16.mxu1 %v12464_v3  ;;  %11200 = vmatprep.subr.bf16.mxu0 %v13513_v8  ;;  %v13574_v3 = vld [vmem:[#allocation11 + $0x790] ss:$8 sps:$4 sm:$0xff]   ;;  %v13579_v8 = vld [vmem:[#allocation11 + $0x7a4] ss:$8 sps:$4 sm:$0xff]  }
 0x64c   :  { %9008 = vmatpush1.bf16.msra.mxu1 %v12463_v5  ;;  %11201 = vmatpush1.bf16.msra.mxu0 %v13511_v20  ;;  %v13580_v5 = vld [vmem:[#allocation11 + $0x7b0] ss:$8 sps:$4 sm:$0xff]   ;;  %v13585_v20 = vld [vmem:[#allocation11 + $0x7c4] ss:$8 sps:$4 sm:$0xff]  }
 0x64d   :  { %9009 = vmatprep.subr.bf16.mxu1 %v12480_v41  ;;  %11202 = vmatprep.subr.bf16.mxu0 %v13516_v33  ;;  %v13583_v41 = vld [vmem:[#allocation11 + $0x7c0] ss:$8 sps:$4 sm:$0xff]   ;;  %v13588_v33 = vld [vmem:[#allocation11 + $0x7d4] ss:$8 sps:$4 sm:$0xff]  }
 0x650   :  { %9010 = vmatpush1.bf16.msra.mxu1 %v12479_v52  ;;  %11203 = vmatpush1.bf16.msra.mxu0 %v13514_v27  ;;  %v13589_v52 = vld [vmem:[#allocation11 + $0x7e0] ss:$8 sps:$4 sm:$0xff]   ;;  %v13594_v27 = vld [vmem:[#allocation11 + $0x7f4] ss:$8 sps:$4 sm:$0xff]  }
 0x651   :  { %9011 = vmatprep.subr.bf16.mxu1 %v12496_v4  ;;  %11204 = vmatprep.subr.bf16.mxu0 %v13519_v12  ;;  %v13592_v4 = vld [vmem:[#allocation11 + $0x7f0] ss:$8 sps:$4 sm:$0xff]   ;;  %v2201_v12 = vrot.slane %v14603_v16, %v14166_v34 }
 0x654   :  { %9012 = vmatpush1.bf16.msra.mxu1 %v12495_v42  ;;  %11205 = vmatpush1.bf16.msra.mxu0 %v13517_v1 }
 0x655   :  { %9013 = vmatprep.subr.bf16.mxu1 %v12512_v53  ;;  %11206 = vmatprep.subr.bf16.mxu0 %v13522_v31 }
 0x658   :  { %9014 = vmatpush1.bf16.msra.mxu1 %v12511_v58  ;;  %11207 = vmatpush1.bf16.msra.mxu0 %v13520_v43 }
 0x659   :  { %9015 = vmatprep.subr.bf16.mxu1 %v12528_v18  ;;  %11208 = vmatprep.subr.bf16.mxu0 %v13525_v23 }
 0x65c   :  { %9016 = vmatpush1.bf16.msra.mxu1 %v12527_v35  ;;  %11209 = vmatpush1.bf16.msra.mxu0 %v13523_v44 }
 0x65d   :  { %11210 = vmatprep.subr.bf16.mxu0 %v13528_v45 }
 0x65f   :  { %9018 = vmatmul.mubr.bf16.vlgmr.msra.gmra.mrb[48].mxu1 %v14227_v59  ;;  %v13543_v59 = vld [vmem:[#allocation11 + $0x6e4] ss:$8 sps:$4 sm:$0xff]  }
 0x660   :  { %9027 = vmatprep.mubr.bf16.mxu1 %v14241_v17  ;;  %11211 = vmatpush1.bf16.msra.mxu0 %v13526_v32  ;;  %v13541_v17 = vld [vmem:[#allocation11 + $0x6e0] ss:$8 sps:$4 sm:$0xff]  }
 0x661   :  { %11212 = vmatprep.subr.bf16.mxu0 %v13531_v30 }
 0x664   :  { %11213 = vmatpush1.bf16.msra.mxu0 %v13529_v46 }
 0x665   :  { %11214 = vmatprep.subr.bf16.mxu0 %v13534_v63 }
 0x667   :  { %9028 = vmatmul.mubr.bf16.gmra.mrb[52].mxu1 %v14239_v11  ;;  %v13552_v11 = vld [vmem:[#allocation11 + $0x714] ss:$8 sps:$4 sm:$0xff]  }
 0x668   :  { %11215 = vmatpush1.bf16.msra.mxu0 %v13532_v15 }
 0x669   :  { %11216 = vmatprep.subr.bf16.mxu0 %v13537_v55 }
 0x66c   :  { %11217 = vmatpush1.bf16.msra.mxu0 %v13535_v21 }
 0x66d   :  { %11218 = vmatprep.subr.bf16.mxu0 %v13540_v50 }
 0x670   :  { %11219 = vmatpush1.bf16.msra.mxu0 %v13538_v10 }
 0x671   :  { %11220 = vmatprep.subr.bf16.mxu0 %v13543_v59 }
 0x674   :  { %11221 = vmatpush1.bf16.msra.mxu0 %v13541_v17 }
 0x675   :  { %11222 = vmatprep.subr.bf16.mxu0 %v13546_v9 }
 0x678   :  { %11223 = vmatpush1.bf16.msra.mxu0 %v13544_v14 }
 0x679   :  { %11245 = vmatprep.subr.bf16.mxu0 %v13549_v38 }
 0x67b   :  { %11225 = vmatmul.mubr.bf16.vlgmr.msra.gmra.mrb[40].mxu0 %v14559_v26  ;;  %v13564_v26 = vld [vmem:[#allocation11 + $0x754] ss:$8 sps:$4 sm:$0xff]  }
 0x67c   :  { %11234 = vmatprep.mubr.bf16.mxu0 %v14578_v49  ;;  %11246 = vmatpush1.bf16.msra.mxu0 %v13547_v13  ;;  %v13562_v49 = vld [vmem:[#allocation11 + $0x750] ss:$8 sps:$4 sm:$0xff]  }
 0x67d   :  { %11247 = vmatprep.subr.bf16.mxu0 %v13552_v11 }
 0x680   :  { %11248 = vmatpush1.bf16.msra.mxu0 %v13550_v57 }
 0x681   :  { %11249 = vmatprep.subr.bf16.mxu0 %v13555_v48 }
 0x683   :  { %11235 = vmatmul.mubr.bf16.gmra.mrb[44].mxu0 %v14574_v62  ;;  %v13573_v62 = vld [vmem:[#allocation11 + $0x784] ss:$8 sps:$4 sm:$0xff]  }
 0x684   :  { %11250 = vmatpush1.bf16.msra.mxu0 %v13553_v2 }
 0x685   :  { %11251 = vmatprep.subr.bf16.mxu0 %v13558_v56 }
 0x688   :  { %11252 = vmatpush1.bf16.msra.mxu0 %v13556_v37 }
 0x689   :  { %11253 = vmatprep.subr.bf16.mxu0 %v13561_v0 }
 0x68c   :  { %11254 = vmatpush1.bf16.msra.mxu0 %v13559_v6 }
 0x68d   :  { %11255 = vmatprep.subr.bf16.mxu0 %v13564_v26 }
 0x690   :  { %11256 = vmatpush1.bf16.msra.mxu0 %v13562_v49 }
 0x691   :  { %11257 = vmatprep.subr.bf16.mxu0 %v13567_v28 }
 0x694   :  { %11258 = vmatpush1.bf16.msra.mxu0 %v13565_v24 }
 0x695   :  { %11259 = vmatprep.subr.bf16.mxu0 %v13570_v19 }
 0x698   :  { %11260 = vmatpush1.bf16.msra.mxu0 %v13568_v36 }
 0x699   :  { %11261 = vmatprep.subr.bf16.mxu0 %v13573_v62 }
 0x69c   :  { %11262 = vmatpush1.bf16.msra.mxu0 %v13571_v60 }
 0x69d   :  { %11263 = vmatprep.subr.bf16.mxu0 %v13576_v22 }
 0x6a0   :  { %11264 = vmatpush1.bf16.msra.mxu0 %v13574_v3 }
 0x6a1   :  { %11265 = vmatprep.subr.bf16.mxu0 %v13579_v8 }
 0x6a4   :  { %11266 = vmatpush1.bf16.msra.mxu0 %v13577_v51 }
 0x6a5   :  { %11267 = vmatprep.subr.bf16.mxu0 %v13582_v61 }
 0x6a8   :  { %11268 = vmatpush1.bf16.msra.mxu0 %v13580_v5 }
 0x6a9   :  { %11269 = vmatprep.subr.bf16.mxu0 %v13585_v20 }
 0x6ac   :  { %11270 = vmatpush1.bf16.msra.mxu0 %v13583_v41 }
 0x6ad   :  { %11271 = vmatprep.subr.bf16.mxu0 %v13588_v33 }
 0x6b0   :  { %11272 = vmatpush1.bf16.msra.mxu0 %v13586_v29 }
 0x6b1   :  { %11273 = vmatprep.subr.bf16.mxu0 %v13591_v40 }
 0x6b4   :  { %11274 = vmatpush1.bf16.msra.mxu0 %v13589_v52 }
 0x6b5   :  { %11275 = vmatprep.subr.bf16.mxu0 %v13594_v27 }
 0x6b8   :  { %11276 = vmatpush1.bf16.msra.mxu0 %v13592_v4 }
 0x732   :  { %v9019_v25 = vpop.f32.mrb[48].mxu1 }
 0x733   :  { %v12929_v42 = vadd.f32 %v9019_v25, %v2201_v12  ;;  %v9021_v1 = vpop.f32.mrb[49].mxu1 }
 0x734   :  { %v12930_v53 = vadd.f32 %v9021_v1, %v2205_v7  ;;  %v9023_v31 = vpop.f32.mrb[50].mxu1 }
 0x735   :  { %v9052_v54 = vmax.f32 %v12929_v42, 0.0  ;;  %v12931_v47 = vadd.f32 %v9023_v31, %v2201_v12  ;;  %v9025_v58 = vpop.f32.mrb[51].mxu1 }
 0x736   :  { %v9053_v43 = vmax.f32 %v12930_v53, 0.0  ;;  %v12932_v18 = vadd.f32 %v9025_v58, %v2205_v7 }
 0x737   :  { %v9068_v23 = vmax.f32 %v12931_v47, 0.0 }
 0x738   :  { %v12844_v35 = vpack.c.bf16 %v9053_v43, %v9052_v54  ;;  %v9069_v44 = vmax.f32 %v12932_v18, 0.0 }
 0x739   :  { %v9116_v45 = vpack.c.bf16 %v9068_v23, %v9052_v54 }
 0x73a   :  { %9301 = vst [vmem:[#allocation15 + $0x38] sm:$0xff] %v12844_v35  ;;  %v9117_v32 = vpack.c.bf16 %v9069_v44, %v9053_v43  ;;  %v12852_v34 = vpack.c.bf16 %v9069_v44, %v9068_v23  ;;  %v9029_v30 = vpop.f32.mrb[52].mxu1 }
 0x73b   :  { %v12933_v46 = vadd.f32 %v9029_v30, %v2201_v12  ;;  %v9031_v39 = vpop.f32.mrb[53].mxu1 }
 0x73c   :  { %9309 = vst [vmem:[#allocation15 + $0x78] sm:$0xff] %v12852_v34  ;;  %v12934_v16 = vadd.f32 %v9031_v39, %v2205_v7  ;;  %v9033_v63 = vpop.f32.mrb[54].mxu1  ;;  %11277 = vmatprep.mubr.bf16.mxu0 %v9117_v32 }
 0x73d   :  { %v9084_v15 = vmax.f32 %v12933_v46, 0.0  ;;  %v12935_v55 = vadd.f32 %v9033_v63, %v2201_v12  ;;  %v9035_v21 = vpop.f32.mrb[55].mxu1  ;;  %11278 = vmatmul.mubr.bf16.vlgmr.msra.gmra.mrb[40].mxu0 %v9116_v45 }
 0x73e   :  { %v9085_v50 = vmax.f32 %v12934_v16, 0.0  ;;  %v12936_v10 = vadd.f32 %v9035_v21, %v2205_v7 }
 0x73f   :  { %v9100_v59 = vmax.f32 %v12935_v55, 0.0 }
 0x740   :  { %v12860_v17 = vpack.c.bf16 %v9085_v50, %v9084_v15  ;;  %v9101_v9 = vmax.f32 %v12936_v10, 0.0 }
 0x741   :  { %v9132_v14 = vpack.c.bf16 %v9100_v59, %v9084_v15 }
 0x742   :  { %9317 = vst [vmem:[#allocation15 + $0xb8] sm:$0xff] %v12860_v17  ;;  %v9133_v38 = vpack.c.bf16 %v9101_v9, %v9085_v50  ;;  %v12868_v13 = vpack.c.bf16 %v9101_v9, %v9100_v59 }
 0x744   :  { %9325 = vst [vmem:[#allocation15 + $0xf8] sm:$0xff] %v12868_v13  ;;  %11287 = vmatprep.mubr.bf16.mxu0 %v9133_v38 }
 0x745   :  { %11288 = vmatmul.mubr.bf16.gmra.mrb[44].mxu0 %v9132_v14 }
 0x746   :  { %13764 = shalt.err (!%p13761_p4)
}
 0x747   :  { %s13765_s30 = scalar_lea.hbm %s14675_s8, 4096 }
 0x748   :  { %p13766_p5 = scmp.ne.s32.totalorder %s14675_s8, %s13765_s30  ;;  %p13769_p6 = scmp.lt.u32.totalorder %s13765_s30, %s14675_s8 }
 0x74a   :  { %p13771_p7 = pnand %p13769_p6, %p13766_p5 }
 0x74c   :  { %13774 = shalt.err (!%p13771_p7)
}
 0x74d   :  { %11357 = dma.vmem_to_hbm [thread:$0]  %s11352_s5, 4096, %s14675_s8, [#allocation16], %s13835_s1, %s13835_s1, %s13836_s10  }
 0x74e   :  { %s13775_s17 = scalar_lea.vmem %s11340_s23, 2048  ;;  %p13780_p9 = scmp.lt.s32.totalorder %s11340_s23, %s11340_s23 }
 0x74f   :  { %p13776_p8 = scmp.ne.s32.totalorder %s11340_s23, %s13775_s17  ;;  %p13781_p10 = scmp.lt.s32.totalorder %s13775_s17, %s13775_s17 }
 0x751   :  { %p13782_p11 = por %p13781_p10, %p13780_p9 }
 0x753   :  { %p13783_p12 = pnand %p13782_p11, %p13776_p8 }
 0x755   :  { %13786 = shalt.err (!%p13783_p12)
}
 0x756   :  { %s13787_s11 = scalar_lea.hbm %s14674_s7, 2048 }
 0x757   :  { %p13788_p13 = scmp.ne.s32.totalorder %s14674_s7, %s13787_s11  ;;  %p13791_p0 = scmp.lt.u32.totalorder %s13787_s11, %s14674_s7 }
 0x759   :  { %p13793_p1 = pnand %p13791_p0, %p13788_p13 }
 0x75b   :  { %13796 = shalt.err (!%p13793_p1)
}
 0x75c   :  { %11345 = dma.vmem_to_hbm [thread:$0]  %s11340_s23, 2048, %s14674_s7, [#allocation4], %s13832_s19, %s13832_s19, %s13833_s20   ;;  %v9582_v11 = vld [vmem:[#allocation13] sm:$0x3]  ;;  %v14689_v57 = vld [vmem:[#allocation24_spill] sm:$0xff]  ;;  %v14690_v2 = vld [vmem:[#allocation25_spill] sm:$0xff] }
 0x75d   :  { %v9587_v48 = vrot.slane %v9582_v11, %v14689_v57  ;;  %v9591_v56 = vrot.slane %v9582_v11, %v14690_v2  ;;  %s13848_s7 = smov [#allocation17]  }
 0x75e   :  { %s11363_s19 = sshll.u32 %s13848_s7, 4  ;;  %s11364_s19 = int_to_ptr.vmem [resolvable:$true] %s11363_s19 }
 0x75f   :  { %s13797_s20 = scalar_lea.vmem %s11364_s19, 512  ;;  %p13802_p3 = scmp.lt.s32.totalorder %s11364_s19, %s11364_s19 }
 0x760   :  { %p13798_p2 = scmp.ne.s32.totalorder %s11364_s19, %s13797_s20  ;;  %p13803_p4 = scmp.lt.s32.totalorder %s13797_s20, %s13797_s20 }
 0x762   :  { %p13804_p5 = por %p13803_p4, %p13802_p3 }
 0x764   :  { %p13805_p6 = pnand %p13804_p5, %p13798_p2 }
 0x810   :  { %v11279_v37 = vpop.f32.mrb[40].mxu0 }
 0x811   :  { %v12937_v0 = vadd.f32 %v11279_v37, %v9587_v48  ;;  %v11281_v6 = vpop.f32.mrb[41].mxu0 }
 0x812   :  { %v12938_v26 = vadd.f32 %v11281_v6, %v9591_v56  ;;  %v11283_v49 = vpop.f32.mrb[42].mxu0 }
 0x813   :  { %v11298_v28 = vmax.f32 %v12937_v0, 0.0  ;;  %v12939_v24 = vadd.f32 %v11283_v49, %v9587_v48  ;;  %v11285_v19 = vpop.f32.mrb[43].mxu0 }
 0x814   :  { %v11299_v36 = vmax.f32 %v12938_v26, 0.0  ;;  %v12940_v62 = vadd.f32 %v11285_v19, %v9591_v56 }
 0x815   :  { %v11300_v60 = vmax.f32 %v12939_v24, 0.0 }
 0x816   :  { %v12869_v22 = vpack.c.bf16 %v11299_v36, %v11298_v28  ;;  %v11301_v3 = vmax.f32 %v12940_v62, 0.0 }
 0x818   :  { %11330 = vst [vmem:[#allocation17] sm:$0xff] %v12869_v22  ;;  %v12870_v8 = vpack.c.bf16 %v11301_v3, %v11300_v60  ;;  %v11289_v51 = vpop.f32.mrb[44].mxu0 }
 0x819   :  { %v12941_v61 = vadd.f32 %v11289_v51, %v9587_v48  ;;  %v11291_v5 = vpop.f32.mrb[45].mxu0 }
 0x81a   :  { %11331 = vst [vmem:[#allocation17 + $0x8] sm:$0xff] %v12870_v8  ;;  %v12942_v20 = vadd.f32 %v11291_v5, %v9591_v56  ;;  %v11293_v41 = vpop.f32.mrb[46].mxu0 }
 0x81b   :  { %v11302_v33 = vmax.f32 %v12941_v61, 0.0  ;;  %v12943_v29 = vadd.f32 %v11293_v41, %v9587_v48  ;;  %v11295_v40 = vpop.f32.mrb[47].mxu0 }
 0x81c   :  { %v11303_v52 = vmax.f32 %v12942_v20, 0.0  ;;  %v12944_v27 = vadd.f32 %v11295_v40, %v9591_v56 }
 0x81d   :  { %v11304_v4 = vmax.f32 %v12943_v29, 0.0 }
 0x81e   :  { %v12871_v12 = vpack.c.bf16 %v11303_v52, %v11302_v33  ;;  %v11305_v7 = vmax.f32 %v12944_v27, 0.0 }
 0x820   :  { %11332 = vst [vmem:[#allocation17 + $0x10] sm:$0xff] %v12871_v12  ;;  %v12872_v25 = vpack.c.bf16 %v11305_v7, %v11304_v4 }
 0x822   :  { %11333 = vst [vmem:[#allocation17 + $0x18] sm:$0xff] %v12872_v25 }
 0x823   :  { %13808 = shalt.err (!%p13805_p6)
}
 0x824   :  { %s13809_s5 = scalar_lea.hbm %s14676_s9, 512 }
 0x825   :  { %p13810_p7 = scmp.ne.s32.totalorder %s14676_s9, %s13809_s5  ;;  %p13813_p8 = scmp.lt.u32.totalorder %s13809_s5, %s14676_s9 }
 0x827   :  { %p13815_p9 = pnand %p13813_p8, %p13810_p7 }
 0x829   :  { %13818 = shalt.err (!%p13815_p9)
}
 0x82a   :  { %11369 = dma.vmem_to_hbm [thread:$0]  %s11364_s19, 512, %s14676_s9, [#allocation16], %s13838_s3, %s13838_s3, %s13839_s24  }
 0x82b   :  { %13827 = dma.done.wait [#allocation4], 2048  }
 0x82c   :  { %13828 = vsyncadd [#allocation4], 4294965248 }
 0x82d   :  { %13829 = dma.done.wait [#allocation16], 4608  }
 0x82e   :  { %13830 = vsyncadd [#allocation16], 4294962688 }
 0x82f   :  { %11379 = vsyncpa [#allocation3], 1 }
 0x830   :  { %11380 = vsyncpa [#allocation6], 1 }
 0x831   :  { %11381 = vsyncpa [#allocation9], 1 }
 0x832   :  { %11382 = vsyncpa [#allocation12], 1 }
 0x833   :  { %11383 = vsyncpa [#allocation4], 1 }
 0x834   :  { %11384 = vsyncpa [#allocation16], 1 }

</bundles_post_ra>
